<compile_context>
chip_gen: v7x
topology: tpu7x:2x2x1
jax: 0.10.0
libtpu: 0.0.40
codegen_flags: <defaults>
</compile_context>

<pallas_src>
import numpy as np
import jax
import jax.numpy as jnp
from jax import lax
from jax.experimental import pallas as pl
from jax.experimental.pallas import tpu as pltpu

# ----------------------------- configuration -------------------------------
B = 2                      # batch
H = W = 8                  # input_resolution
DIM = 32                   # dim
NUM_HEADS = 4
HEAD_DIM = DIM // NUM_HEADS
WINDOW = 4                 # window_size
SHIFT = WINDOW // 2
DEPTH = 2                  # one regular + one shifted block
MLP_RATIO = 4.0
HIDDEN = int(DIM * MLP_RATIO)
L = H * W
N_WIN = WINDOW * WINDOW
N_WINDOWS = (H // WINDOW) * (W // WINDOW)
SCALE = HEAD_DIM ** -0.5
LN_EPS = 1e-5
NEG_BIG = -1e9             # cross-window kill value for the dense attention

# packed (per-block, 32-wide) vector rows
R_PROJB, R_G11, R_B11, R_G12, R_B12, R_G2, R_B2, R_FC2B = range(8)


# ------------------------- static helper matrices ---------------------------
def _bilinear_matrix(n_in):
    """PyTorch bilinear x2 upsample (align_corners=False) as a (2n, n) matrix."""
    n_out = 2 * n_in
    m = np.zeros((n_out, n_in), dtype=np.float32)
    for i in range(n_out):
        src = max((i + 0.5) / 2.0 - 0.5, 0.0)
        i0 = min(int(np.floor(src)), n_in - 1)
        i1 = min(i0 + 1, n_in - 1)
        frac = src - i0
        m[i, i0] += 1.0 - frac
        m[i, i1] += frac
    return m


def _linear_halve_matrix(c):
    """PyTorch linear interpolate C -> C/2 (align_corners=False) as (C, C/2)."""
    d = np.zeros((c, c // 2), dtype=np.float32)
    for i in range(c // 2):
        d[2 * i, i] = 0.5
        d[2 * i + 1, i] = 0.5
    return d


def _group_ln_matrices(width, group):
    """Matrices for grouped LayerNorm over `group`-sized channel blocks."""
    ng = width // group
    gsum = np.zeros((width, ng), dtype=np.float32)   # channel -> group mean
    gbc = np.zeros((ng, width), dtype=np.float32)    # group -> channel bcast
    for g in range(ng):
        gsum[g * group:(g + 1) * group, g] = 1.0 / group
        gbc[g, g * group:(g + 1) * group] = 1.0
    return gsum, gbc


def _log_relative_position_index(ws):
    coords = np.stack(np.meshgrid(np.arange(ws), np.arange(ws), indexing="ij"))
    coords_flat = coords.reshape(2, -1)
    rel = coords_flat[:, :, None] - coords_flat[:, None, :]   # (2, N, N)
    rel = rel.transpose(1, 2, 0).astype(np.float32)           # (N, N, 2)
    return np.sign(rel) * np.log(1.0 + np.abs(rel))


def _compute_attn_mask(h, w, ws, shift):
    img = np.zeros((1, h, w, 1), dtype=np.float32)
    slices = (slice(0, -ws), slice(-ws, -shift), slice(-shift, None))
    cnt = 0
    for hs in slices:
        for wsl in slices:
            img[:, hs, wsl, :] = cnt
            cnt += 1
    mw = img.reshape(1, h // ws, ws, w // ws, ws, 1)
    mw = mw.transpose(0, 1, 3, 2, 4, 5).reshape(-1, ws * ws)
    am = mw[:, None, :] - mw[:, :, None]
    return np.where(am != 0, -100.0, 0.0).astype(np.float32)


def _perm_matrices():
    """Row-permutation matrices: raster <-> (rolled) window order, per image."""
    def part(shift):
        p = np.zeros((L, L), dtype=np.float32)
        for row in range(L):
            wi, iw = divmod(row, N_WIN)
            gh, gw = divmod(wi, W // WINDOW)
            hh = gh * WINDOW + iw // WINDOW
            ww = gw * WINDOW + iw % WINDOW
            src = ((hh + shift) % H) * W + ((ww + shift) % W)
            p[row, src] = 1.0
        return p
    p0 = part(0)          # partition (no shift)
    p1 = part(SHIFT)      # roll(-shift) + partition
    # [P_in, P_mid = P1 @ P0^T, P_out = P1^T]
    return np.stack([p0, p1 @ p0.T, p1.T]).astype(np.float32)


def _dense_static_masks():
    """Static additive masks for the dense 64-token attention, per block."""
    block = np.full((L, L), NEG_BIG, dtype=np.float32)
    for wi in range(N_WINDOWS):
        sl = slice(wi * N_WIN, (wi + 1) * N_WIN)
        block[sl, sl] = 0.0
    shift_mask = _compute_attn_mask(H, W, WINDOW, SHIFT)      # (nW, N, N)
    masks = np.zeros((DEPTH, L, L), dtype=np.float32)
    for d in range(DEPTH):
        masks[d] = block
        if d % 2 == 1:   # shifted block: Swin -100 mask inside windows
            for wi in range(N_WINDOWS):
                sl = slice(wi * N_WIN, (wi + 1) * N_WIN)
                masks[d, sl, sl] += shift_mask[wi]
    return masks


def _head_masks():
    """(2, nh, 1, 2C): channel masks selecting Q/K head channels and V head channels."""
    m = np.zeros((2, NUM_HEADS, 1, 2 * DIM), dtype=np.float32)
    for h in range(NUM_HEADS):
        m[0, h, 0, h * HEAD_DIM:(h + 1) * HEAD_DIM] = 1.0
        m[1, h, 0, DIM + h * HEAD_DIM:DIM + (h + 1) * HEAD_DIM] = 1.0
    return m


PERMS_NP = _perm_matrices()                                  # (3, L, L)
MASK_STATIC_NP = _dense_static_masks()                       # (DEPTH, L, L)
HM_NP = _head_masks()                                        # (2, nh, 1, 2C)
U2_NP = np.kron(_bilinear_matrix(H), _bilinear_matrix(W))    # (4L, L)
U2P_NP = (U2_NP @ PERMS_NP[2]).astype(np.float32)            # fold window_reverse+unroll
DHALF_NP = _linear_halve_matrix(DIM)                         # (C, C/2)
GSUM_NP, GBC_NP = _group_ln_matrices(2 * DIM, DIM // 2)      # (2C, 4), (4, 2C)


# ------------------------------ fused kernel --------------------------------
def _layer_kernel(x_ref, kv_ref, perms_ref, qw_ref, kvw_ref, projw_ref,
                  fc1w_ref, fc2w_ref, vec64_ref, vec32_ref, fc1b_ref,
                  muladd_ref, hm_ref, expw_ref, pegb_ref, gsum_ref, gbc_ref,
                  dmat_ref, u2p_ref, dec_ref, pe_ref, kvup_ref):
    f32 = jnp.float32

    def mm(a, b):
        return jnp.dot(a, b, preferred_element_type=f32)

    def layer_norm(t, g, b):
        mu = jnp.mean(t, axis=-1, keepdims=True)
        tc = t - mu
        var = jnp.mean(tc * tc, axis=-1, keepdims=True)
        return tc * lax.rsqrt(var + LN_EPS) * g + b

    hm = hm_ref[...]
    hm_q = hm[0]                     # (nh, 1, 2C) Q / K head channels
    hm_v = hm[1]                     # (nh, 1, 2C) V head channels

    # window partition (block 0, no shift) as a permutation matmul
    xw = mm(perms_ref[0], x_ref[0])
    kvw = mm(perms_ref[0], kv_ref[0])

    for blk in range(DEPTH):
        if blk > 0:
            # window_reverse -> roll(-shift) -> window_partition, fused
            xw = mm(perms_ref[1], xw)
            kvw = mm(perms_ref[1], kvw)

        # projections: Q padded to 2C; K/V as one merged (C -> 2C) GEMM
        q = (mm(xw, qw_ref[blk]) + vec64_ref[blk, 0:1, :]) * SCALE
        kv = mm(kvw, kvw_ref[blk]) + vec64_ref[blk, 1:2, :]

        qh = q[None] * hm_q                       # (nh, L, 2C)
        kh = kv[None] * hm_q
        vh = kv[None] * hm_v

        # cosine-similarity attention, dense over the 64 folded tokens
        s = jnp.einsum('hqc,hkc->hqk', qh, kh, preferred_element_type=f32)
        q_sq = jnp.sum(qh * qh, axis=-1, keepdims=True)       # (nh, L, 1)
        k_sq = jnp.sum(kh * kh, axis=-1)                       # (nh, L)
        inv_den = lax.rsqrt(jnp.maximum(q_sq * k_sq[:, None, :], 1e-12))
        attn = s * inv_den * muladd_ref[0, blk] + muladd_ref[1, blk]
        attn = attn - jnp.max(attn, axis=-1, keepdims=True)
        e = jnp.exp(attn)
        probs = e * pl.reciprocal(jnp.sum(e, axis=-1, keepdims=True), approx=True)
        o = jnp.einsum('hqk,hkc->hqc', probs, vh, preferred_element_type=f32)
        o = jnp.sum(o, axis=0)                                 # (L, 2C), V half used
        a = mm(o, projw_ref[blk]) + vec32_ref[blk, R_PROJB:R_PROJB + 1, :]

        # block tail: norm1_1 + residual, MLP + norm2, norm1_2 on KV (row-wise)
        x1 = xw + layer_norm(a, vec32_ref[blk, R_G11:R_G11 + 1, :],
                             vec32_ref[blk, R_B11:R_B11 + 1, :])
        hmid = mm(x1, fc1w_ref[blk]) + fc1b_ref[blk]
        hmid = 0.5 * hmid * (1.0 + lax.erf(hmid * (1.0 / np.sqrt(2.0))))  # exact GELU
        mlp = mm(hmid, fc2w_ref[blk]) + vec32_ref[blk, R_FC2B:R_FC2B + 1, :]
        xw = x1 + layer_norm(mlp, vec32_ref[blk, R_G2:R_G2 + 1, :],
                             vec32_ref[blk, R_B2:R_B2 + 1, :])
        kvw = layer_norm(kvw, vec32_ref[blk, R_G12:R_G12 + 1, :],
                         vec32_ref[blk, R_B12:R_B12 + 1, :])

    # window_reverse + un-roll back to raster order (decoder feature)
    dec = mm(perms_ref[2], xw)
    dec_ref[0] = dec.astype(dec_ref.dtype)

    # PatchExpand: Linear(dim -> 2dim) + grouped LayerNorm (pre pixel-shuffle)
    xe = mm(dec, expw_ref[...])
    mu = mm(mm(xe, gsum_ref[...]), gbc_ref[...])
    xc = xe - mu
    var = mm(mm(xc * xc, gsum_ref[...]), gbc_ref[...])
    pe_ref[0] = (xc * lax.rsqrt(var + LN_EPS) * pegb_ref[0:1, :]
                 + pegb_ref[1:2, :]).astype(pe_ref.dtype)

    # KVExpand: channel-halving matmul first, then bilinear spatial upsample;
    # window_reverse + un-roll are pre-folded into u2p.
    kvd = mm(kvw, dmat_ref[...])                               # (L, C/2)
    kvup_ref[0] = mm(u2p_ref[...], kvd).astype(kvup_ref.dtype)


# --------------------------- parameter packing -------------------------------
def _pack_params(blocks, pe):
    f32 = jnp.float32
    zmat = jnp.zeros((DIM, DIM), f32)
    zvec = jnp.zeros((DIM,), f32)

    qw = jnp.stack([jnp.concatenate([p["qw"], zmat], axis=1) for p in blocks])
    kvw = jnp.stack([p["kvw"] for p in blocks])
    projw = jnp.stack([jnp.concatenate([zmat, p["projw"]], axis=0) for p in blocks])
    fc1w = jnp.stack([p["fc1w"] for p in blocks])
    fc2w = jnp.stack([p["fc2w"] for p in blocks])
    vec64 = jnp.stack([jnp.stack([jnp.concatenate([p["qb"], zvec]), p["kvb"]])
                       for p in blocks])
    vec32 = jnp.stack([jnp.stack([p["projb"],
                                  p["ln11_g"], p["ln11_b"],
                                  p["ln12_g"], p["ln12_b"],
                                  p["ln2_g"], p["ln2_b"],
                                  p["fc2b"]]) for p in blocks])
    fc1b = jnp.stack([p["fc1b"][None, :] for p in blocks])

    # attention terms: 1/clip(tau) and cpb bias + static window/shift masks,
    # expanded once per forward (parameter-only) to the dense 64-token layout.
    lrpi = jnp.asarray(_log_relative_position_index(WINDOW), f32).reshape(-1, 2)
    static_masks = jnp.asarray(MASK_STATIC_NP)
    reps = (1, L // N_WIN, L // N_WIN)
    muls, adds = [], []
    for i, p in enumerate(blocks):
        hid = jnp.maximum(lrpi @ p["cpb_w1"] + p["cpb_b1"], 0.0)
        bias = (hid @ p["cpb_w2"] + p["cpb_b2"]).reshape(N_WIN, N_WIN, NUM_HEADS)
        bias = jnp.transpose(bias, (2, 0, 1))                       # (nh, N, N)
        inv_tau = 1.0 / jnp.maximum(p["tau"], 0.01)
        muls.append(jnp.tile(inv_tau, reps))
        adds.append(jnp.tile(bias, reps) + static_masks[i][None])
    muladd = jnp.stack([jnp.stack(muls), jnp.stack(adds)])          # (2,depth,nh,L,L)

    ng = (2 * DIM) // (DIM // 2)
    pe_gb = jnp.stack([jnp.tile(pe["pe_norm_g"], ng), jnp.tile(pe["pe_norm_b"], ng)])

    return (jnp.asarray(PERMS_NP), qw, kvw, projw, fc1w, fc2w,
            vec64, vec32, fc1b, muladd, jnp.asarray(HM_NP),
            pe["expand_w"], pe_gb,
            jnp.asarray(GSUM_NP), jnp.asarray(GBC_NP),
            jnp.asarray(DHALF_NP), jnp.asarray(U2P_NP))


def _const_spec(shape):
    zeros = (0,) * len(shape)
    return pl.BlockSpec(shape, lambda i, _z=zeros: _z)


# ----------------------------- module forward -------------------------------
def basic_layer_up(x, kv, blocks_params, pe_params):
    b = x.shape[0]
    packed = _pack_params(blocks_params, pe_params)

    row_spec = pl.BlockSpec((1, L, DIM), lambda i: (i, 0, 0))
    in_specs = [row_spec, row_spec] + [_const_spec(a.shape) for a in packed]
    out_specs = (pl.BlockSpec((1, L, DIM), lambda i: (i, 0, 0)),
                 pl.BlockSpec((1, L, 2 * DIM), lambda i: (i, 0, 0)),
                 pl.BlockSpec((1, 4 * L, DIM // 2), lambda i: (i, 0, 0)))
    out_shape = (jax.ShapeDtypeStruct((b, L, DIM), x.dtype),           # decoder feature
                 jax.ShapeDtypeStruct((b, L, 2 * DIM), x.dtype),       # pre-shuffle expand
                 jax.ShapeDtypeStruct((b, 4 * L, DIM // 2), x.dtype))  # kv upsample

    dec, pe_out, kv_up = pl.pallas_call(
        _layer_kernel,
        grid_spec=pltpu.PrefetchScalarGridSpec(
            num_scalar_prefetch=0, grid=(b,),
            in_specs=in_specs, out_specs=out_specs),
        out_shape=out_shape,
        compiler_params=pltpu.CompilerParams(
            dimension_semantics=("parallel",)),
    )(x, kv, *packed)

    # pixel shuffle: (b,h,w,p1,p2,c/4) -> (b,2h,2w,c/4) -- pure layout op.
    x_up = pe_out.reshape(b, H, W, 2, 2, DIM // 2)
    x_up = x_up.transpose(0, 1, 3, 2, 4, 5).reshape(b, 4 * L, DIM // 2)
    return x_up, kv_up, dec


# ----------------------------- parameter init -------------------------------
def init_params(key):
    keys = jax.random.split(key, 64)
    it = iter(keys)

    def w(shape, scale=0.05):
        return jax.random.normal(next(it), shape, dtype=jnp.float32) * scale

    blocks = []
    for _ in range(DEPTH):
        blocks.append(dict(
            qw=w((DIM, DIM)), qb=w((DIM,), 0.02),
            kvw=w((DIM, 2 * DIM)), kvb=w((2 * DIM,), 0.02),
            projw=w((DIM, DIM)), projb=w((DIM,), 0.02),
            tau=jnp.ones((NUM_HEADS, N_WIN, N_WIN), jnp.float32),
            cpb_w1=w((2, 256)), cpb_b1=w((256,), 0.02),
            cpb_w2=w((256, NUM_HEADS)), cpb_b2=w((NUM_HEADS,), 0.02),
            ln11_g=jnp.ones((DIM,), jnp.float32), ln11_b=jnp.zeros((DIM,), jnp.float32),
            ln12_g=jnp.ones((DIM,), jnp.float32), ln12_b=jnp.zeros((DIM,), jnp.float32),
            ln2_g=jnp.ones((DIM,), jnp.float32), ln2_b=jnp.zeros((DIM,), jnp.float32),
            fc1w=w((DIM, HIDDEN)), fc1b=w((HIDDEN,), 0.02),
            fc2w=w((HIDDEN, DIM)), fc2b=w((DIM,), 0.02),
        ))
    pe = dict(
        expand_w=w((DIM, 2 * DIM)),
        pe_norm_g=jnp.ones((DIM // 2,), jnp.float32),
        pe_norm_b=jnp.zeros((DIM // 2,), jnp.float32),
    )
    return blocks, pe


# ---------------------------------- main -------------------------------------
if __name__ == "__main__":
    key = jax.random.PRNGKey(0)
    kx, kkv, kp = jax.random.split(key, 3)
    x = jax.random.normal(kx, (B, L, DIM), dtype=jnp.float32)
    kv = jax.random.normal(kkv, (B, L, DIM), dtype=jnp.float32)
    blocks_params, pe_params = init_params(kp)

    fwd = jax.jit(basic_layer_up)
    x_up, kv_up, dec = fwd(x, kv, blocks_params, pe_params)
    jax.block_until_ready((x_up, kv_up, dec))

    assert x_up.shape == (B, 4 * L, DIM // 2)
    assert kv_up.shape == (B, 4 * L, DIM // 2)
    assert dec.shape == (B, L, DIM)
    assert all(bool(jnp.all(jnp.isfinite(t))) for t in (x_up, kv_up, dec))
    print("KERNEL_OK")
</pallas_src>

<mosaic_0001>
module attributes {stable_mosaic.version = 11 : i64} {
  func.func @_layer_kernel(%arg0: i32, %arg1: memref<1x64x32xf32, #tpu.memory_space<vmem>>, %arg2: memref<1x64x32xf32, #tpu.memory_space<vmem>>, %arg3: memref<3x64x64xf32, #tpu.memory_space<vmem>>, %arg4: memref<2x32x64xf32, #tpu.memory_space<vmem>>, %arg5: memref<2x32x64xf32, #tpu.memory_space<vmem>>, %arg6: memref<2x64x32xf32, #tpu.memory_space<vmem>>, %arg7: memref<2x32x128xf32, #tpu.memory_space<vmem>>, %arg8: memref<2x128x32xf32, #tpu.memory_space<vmem>>, %arg9: memref<2x2x64xf32, #tpu.memory_space<vmem>>, %arg10: memref<2x8x32xf32, #tpu.memory_space<vmem>>, %arg11: memref<2x1x128xf32, #tpu.memory_space<vmem>>, %arg12: memref<2x2x4x64x64xf32, #tpu.memory_space<vmem>>, %arg13: memref<2x4x1x64xf32, #tpu.memory_space<vmem>>, %arg14: memref<32x64xf32, #tpu.memory_space<vmem>>, %arg15: memref<2x64xf32, #tpu.memory_space<vmem>>, %arg16: memref<64x4xf32, #tpu.memory_space<vmem>>, %arg17: memref<4x64xf32, #tpu.memory_space<vmem>>, %arg18: memref<32x16xf32, #tpu.memory_space<vmem>>, %arg19: memref<256x64xf32, #tpu.memory_space<vmem>>, %arg20: memref<1x64x32xf32, #tpu.memory_space<vmem>>, %arg21: memref<1x64x64xf32, #tpu.memory_space<vmem>>, %arg22: memref<1x256x16xf32, #tpu.memory_space<vmem>>) attributes {dimension_semantics = [#tpu.dimension_semantics<parallel>], iteration_bounds = array<i64: 2>, scalar_prefetch = 0 : i64, scratch_operands = 0 : i64, tpu.core_type = #tpu.core_type<tc>, window_params = [{transform_indices = @transform_0, window_bounds = array<i64: 1, 64, 32>}, {transform_indices = @transform_1, window_bounds = array<i64: 1, 64, 32>}, {pipeline_mode = #tpu.pipeline_mode<synchronous>, transform_indices = @transform_2, window_bounds = array<i64: 3, 64, 64>}, {pipeline_mode = #tpu.pipeline_mode<synchronous>, transform_indices = @transform_3, window_bounds = array<i64: 2, 32, 64>}, {pipeline_mode = #tpu.pipeline_mode<synchronous>, transform_indices = @transform_4, window_bounds = array<i64: 2, 32, 64>}, {pipeline_mode = #tpu.pipeline_mode<synchronous>, transform_indices = @transform_5, window_bounds = array<i64: 2, 64, 32>}, {pipeline_mode = #tpu.pipeline_mode<synchronous>, transform_indices = @transform_6, window_bounds = array<i64: 2, 32, 128>}, {pipeline_mode = #tpu.pipeline_mode<synchronous>, transform_indices = @transform_7, window_bounds = array<i64: 2, 128, 32>}, {pipeline_mode = #tpu.pipeline_mode<synchronous>, transform_indices = @transform_8, window_bounds = array<i64: 2, 2, 64>}, {pipeline_mode = #tpu.pipeline_mode<synchronous>, transform_indices = @transform_9, window_bounds = array<i64: 2, 8, 32>}, {pipeline_mode = #tpu.pipeline_mode<synchronous>, transform_indices = @transform_10, window_bounds = array<i64: 2, 1, 128>}, {pipeline_mode = #tpu.pipeline_mode<synchronous>, transform_indices = @transform_11, window_bounds = array<i64: 2, 2, 4, 64, 64>}, {pipeline_mode = #tpu.pipeline_mode<synchronous>, transform_indices = @transform_12, window_bounds = array<i64: 2, 4, 1, 64>}, {pipeline_mode = #tpu.pipeline_mode<synchronous>, transform_indices = @transform_13, window_bounds = array<i64: 32, 64>}, {pipeline_mode = #tpu.pipeline_mode<synchronous>, transform_indices = @transform_14, window_bounds = array<i64: 2, 64>}, {pipeline_mode = #tpu.pipeline_mode<synchronous>, transform_indices = @transform_15, window_bounds = array<i64: 64, 4>}, {pipeline_mode = #tpu.pipeline_mode<synchronous>, transform_indices = @transform_16, window_bounds = array<i64: 4, 64>}, {pipeline_mode = #tpu.pipeline_mode<synchronous>, transform_indices = @transform_17, window_bounds = array<i64: 32, 16>}, {pipeline_mode = #tpu.pipeline_mode<synchronous>, transform_indices = @transform_18, window_bounds = array<i64: 256, 64>}, {transform_indices = @transform_19, window_bounds = array<i64: 1, 64, 32>}, {transform_indices = @transform_20, window_bounds = array<i64: 1, 64, 64>}, {transform_indices = @transform_21, window_bounds = array<i64: 1, 256, 16>}]} {
    %c0 = arith.constant 0 : index
    %c0_0 = arith.constant 0 : index
    %c0_1 = arith.constant 0 : index
    %c0_2 = arith.constant 0 : index
    %0 = vector.load %arg13[%c0, %c0_0, %c0_1, %c0_2] : memref<2x4x1x64xf32, #tpu.memory_space<vmem>>, vector<2x4x1x64xf32>
    %1 = vector.extract_strided_slice %0 {offsets = [0, 0, 0, 0], sizes = [1, 4, 1, 64], strides = [1, 1, 1, 1]} : vector<2x4x1x64xf32> to vector<1x4x1x64xf32>
    %2 = vector.shape_cast %1 : vector<1x4x1x64xf32> to vector<4x1x64xf32>
    %3 = vector.extract_strided_slice %0 {offsets = [1, 0, 0, 0], sizes = [1, 4, 1, 64], strides = [1, 1, 1, 1]} : vector<2x4x1x64xf32> to vector<1x4x1x64xf32>
    %4 = vector.shape_cast %3 : vector<1x4x1x64xf32> to vector<4x1x64xf32>
    %c0_3 = arith.constant 0 : index
    %c0_4 = arith.constant 0 : index
    %c0_5 = arith.constant 0 : index
    %5 = vector.load %arg3[%c0_3, %c0_4, %c0_5] : memref<3x64x64xf32, #tpu.memory_space<vmem>>, vector<1x64x64xf32>
    %6 = vector.shape_cast %5 : vector<1x64x64xf32> to vector<64x64xf32>
    %c0_6 = arith.constant 0 : index
    %c0_7 = arith.constant 0 : index
    %c0_8 = arith.constant 0 : index
    %7 = vector.load %arg1[%c0_6, %c0_7, %c0_8] : memref<1x64x32xf32, #tpu.memory_space<vmem>>, vector<1x64x32xf32>
    %8 = vector.shape_cast %7 : vector<1x64x32xf32> to vector<64x32xf32>
    %cst = arith.constant dense<0.000000e+00> : vector<64x32xf32>
    %9 = tpu.matmul %6, %8, %cst {dimension_numbers = #tpu.dot_dimension_numbers<[1], [0], [0], [1], [0, 0, 1, 1], [], []>} : vector<64x64xf32>, vector<64x32xf32>, vector<64x32xf32> -> vector<64x32xf32>
    %c0_9 = arith.constant 0 : index
    %c0_10 = arith.constant 0 : index
    %c0_11 = arith.constant 0 : index
    %10 = vector.load %arg3[%c0_9, %c0_10, %c0_11] : memref<3x64x64xf32, #tpu.memory_space<vmem>>, vector<1x64x64xf32>
    %11 = vector.shape_cast %10 : vector<1x64x64xf32> to vector<64x64xf32>
    %c0_12 = arith.constant 0 : index
    %c0_13 = arith.constant 0 : index
    %c0_14 = arith.constant 0 : index
    %12 = vector.load %arg2[%c0_12, %c0_13, %c0_14] : memref<1x64x32xf32, #tpu.memory_space<vmem>>, vector<1x64x32xf32>
    %13 = vector.shape_cast %12 : vector<1x64x32xf32> to vector<64x32xf32>
    %cst_15 = arith.constant dense<0.000000e+00> : vector<64x32xf32>
    %14 = tpu.matmul %11, %13, %cst_15 {dimension_numbers = #tpu.dot_dimension_numbers<[1], [0], [0], [1], [0, 0, 1, 1], [], []>} : vector<64x64xf32>, vector<64x32xf32>, vector<64x32xf32> -> vector<64x32xf32>
    %c0_16 = arith.constant 0 : index
    %c0_17 = arith.constant 0 : index
    %c0_18 = arith.constant 0 : index
    %15 = vector.load %arg4[%c0_16, %c0_17, %c0_18] : memref<2x32x64xf32, #tpu.memory_space<vmem>>, vector<1x32x64xf32>
    %16 = vector.shape_cast %15 : vector<1x32x64xf32> to vector<32x64xf32>
    %cst_19 = arith.constant dense<0.000000e+00> : vector<64x64xf32>
    %17 = tpu.matmul %9, %16, %cst_19 {dimension_numbers = #tpu.dot_dimension_numbers<[1], [0], [0], [1], [0, 0, 1, 1], [], []>} : vector<64x32xf32>, vector<32x64xf32>, vector<64x64xf32> -> vector<64x64xf32>
    %c0_20 = arith.constant 0 : index
    %c0_21 = arith.constant 0 : index
    %c0_22 = arith.constant 0 : index
    %18 = vector.load %arg9[%c0_20, %c0_21, %c0_22] : memref<2x2x64xf32, #tpu.memory_space<vmem>>, vector<1x1x64xf32>
    %19 = vector.shape_cast %18 : vector<1x1x64xf32> to vector<1x64xf32>
    %20 = vector.broadcast %19 : vector<1x64xf32> to vector<64x64xf32>
    %21 = arith.addf %17, %20 : vector<64x64xf32>
    %cst_23 = arith.constant 0.353553385 : f32
    %22 = vector.broadcast %cst_23 : f32 to vector<64x64xf32>
    %23 = arith.mulf %21, %22 : vector<64x64xf32>
    %c0_24 = arith.constant 0 : index
    %c0_25 = arith.constant 0 : index
    %c0_26 = arith.constant 0 : index
    %24 = vector.load %arg5[%c0_24, %c0_25, %c0_26] : memref<2x32x64xf32, #tpu.memory_space<vmem>>, vector<1x32x64xf32>
    %25 = vector.shape_cast %24 : vector<1x32x64xf32> to vector<32x64xf32>
    %cst_27 = arith.constant dense<0.000000e+00> : vector<64x64xf32>
    %26 = tpu.matmul %14, %25, %cst_27 {dimension_numbers = #tpu.dot_dimension_numbers<[1], [0], [0], [1], [0, 0, 1, 1], [], []>} : vector<64x32xf32>, vector<32x64xf32>, vector<64x64xf32> -> vector<64x64xf32>
    %c0_28 = arith.constant 0 : index
    %c1 = arith.constant 1 : index
    %c0_29 = arith.constant 0 : index
    %27 = vector.load %arg9[%c0_28, %c1, %c0_29] : memref<2x2x64xf32, #tpu.memory_space<vmem>>, vector<1x1x64xf32>
    %28 = vector.shape_cast %27 : vector<1x1x64xf32> to vector<1x64xf32>
    %29 = vector.broadcast %28 : vector<1x64xf32> to vector<64x64xf32>
    %30 = arith.addf %26, %29 : vector<64x64xf32>
    %31 = vector.shape_cast %23 : vector<64x64xf32> to vector<1x64x64xf32>
    %32 = vector.broadcast %31 : vector<1x64x64xf32> to vector<4x64x64xf32>
    %33 = vector.broadcast %2 : vector<4x1x64xf32> to vector<4x64x64xf32>
    %34 = arith.mulf %32, %33 : vector<4x64x64xf32>
    %35 = vector.shape_cast %30 : vector<64x64xf32> to vector<1x64x64xf32>
    %36 = vector.broadcast %35 : vector<1x64x64xf32> to vector<4x64x64xf32>
    %37 = vector.broadcast %2 : vector<4x1x64xf32> to vector<4x64x64xf32>
    %38 = arith.mulf %36, %37 : vector<4x64x64xf32>
    %39 = vector.shape_cast %30 : vector<64x64xf32> to vector<1x64x64xf32>
    %40 = vector.broadcast %39 : vector<1x64x64xf32> to vector<4x64x64xf32>
    %41 = vector.broadcast %4 : vector<4x1x64xf32> to vector<4x64x64xf32>
    %42 = arith.mulf %40, %41 : vector<4x64x64xf32>
    "tpu.trace_start"() <{level = 10 : i32, message = "hqc,hkc->hqk"}> : () -> ()
    %cst_30 = arith.constant dense<0.000000e+00> : vector<4x64x64xf32>
    %43 = tpu.matmul %34, %38, %cst_30 {dimension_numbers = #tpu.dot_dimension_numbers<[2], [2], [1], [1], [0, 0, 0, 1, 1, 1], [0], [0]>} : vector<4x64x64xf32>, vector<4x64x64xf32>, vector<4x64x64xf32> -> vector<4x64x64xf32>
    "tpu.trace_stop"() : () -> ()
    %44 = arith.mulf %34, %34 : vector<4x64x64xf32>
    %cst_31 = arith.constant dense<0.000000e+00> : vector<4x64xf32>
    %45 = vector.multi_reduction <add>, %44, %cst_31 [2] : vector<4x64x64xf32> to vector<4x64xf32>
    %46 = vector.shape_cast %45 : vector<4x64xf32> to vector<4x64x1xf32>
    %47 = arith.mulf %38, %38 : vector<4x64x64xf32>
    %cst_32 = arith.constant dense<0.000000e+00> : vector<4x64xf32>
    %48 = vector.multi_reduction <add>, %47, %cst_32 [2] : vector<4x64x64xf32> to vector<4x64xf32>
    %49 = vector.shape_cast %48 : vector<4x64xf32> to vector<4x1x64xf32>
    %50 = vector.broadcast %46 : vector<4x64x1xf32> to vector<4x64x64xf32>
    %51 = vector.broadcast %49 : vector<4x1x64xf32> to vector<4x64x64xf32>
    %52 = arith.mulf %50, %51 : vector<4x64x64xf32>
    %cst_33 = arith.constant 9.99999996E-13 : f32
    %53 = vector.broadcast %cst_33 : f32 to vector<4x64x64xf32>
    %54 = arith.maximumf %52, %53 : vector<4x64x64xf32>
    %55 = math.rsqrt %54 : vector<4x64x64xf32>
    %56 = arith.mulf %43, %55 : vector<4x64x64xf32>
    %c0_34 = arith.constant 0 : index
    %c0_35 = arith.constant 0 : index
    %c0_36 = arith.constant 0 : index
    %c0_37 = arith.constant 0 : index
    %c0_38 = arith.constant 0 : index
    %57 = vector.load %arg12[%c0_34, %c0_35, %c0_36, %c0_37, %c0_38] : memref<2x2x4x64x64xf32, #tpu.memory_space<vmem>>, vector<1x1x4x64x64xf32>
    %58 = vector.shape_cast %57 : vector<1x1x4x64x64xf32> to vector<4x64x64xf32>
    %59 = arith.mulf %56, %58 : vector<4x64x64xf32>
    %c1_39 = arith.constant 1 : index
    %c0_40 = arith.constant 0 : index
    %c0_41 = arith.constant 0 : index
    %c0_42 = arith.constant 0 : index
    %c0_43 = arith.constant 0 : index
    %60 = vector.load %arg12[%c1_39, %c0_40, %c0_41, %c0_42, %c0_43] : memref<2x2x4x64x64xf32, #tpu.memory_space<vmem>>, vector<1x1x4x64x64xf32>
    %61 = vector.shape_cast %60 : vector<1x1x4x64x64xf32> to vector<4x64x64xf32>
    %62 = arith.addf %59, %61 : vector<4x64x64xf32>
    %cst_44 = arith.constant dense<0xFF800000> : vector<4x64xf32>
    %63 = vector.multi_reduction <maximumf>, %62, %cst_44 [2] : vector<4x64x64xf32> to vector<4x64xf32>
    %64 = vector.shape_cast %63 : vector<4x64xf32> to vector<4x64x1xf32>
    %65 = vector.broadcast %64 : vector<4x64x1xf32> to vector<4x64x64xf32>
    %66 = arith.subf %62, %65 : vector<4x64x64xf32>
    %67 = math.exp %66 : vector<4x64x64xf32>
    %cst_45 = arith.constant dense<0.000000e+00> : vector<4x64xf32>
    %68 = vector.multi_reduction <add>, %67, %cst_45 [2] : vector<4x64x64xf32> to vector<4x64xf32>
    %69 = vector.shape_cast %68 : vector<4x64xf32> to vector<4x64x1xf32>
    %70 = tpu.reciprocal %69 {approx = true} : vector<4x64x1xf32> -> vector<4x64x1xf32>
    %71 = vector.broadcast %70 : vector<4x64x1xf32> to vector<4x64x64xf32>
    %72 = arith.mulf %67, %71 : vector<4x64x64xf32>
    "tpu.trace_start"() <{level = 10 : i32, message = "hqk,hkc->hqc"}> : () -> ()
    %cst_46 = arith.constant dense<0.000000e+00> : vector<4x64x64xf32>
    %73 = tpu.matmul %72, %42, %cst_46 {dimension_numbers = #tpu.dot_dimension_numbers<[2], [1], [1], [2], [0, 0, 0, 1, 1, 2], [0], [0]>} : vector<4x64x64xf32>, vector<4x64x64xf32>, vector<4x64x64xf32> -> vector<4x64x64xf32>
    "tpu.trace_stop"() : () -> ()
    %cst_47 = arith.constant dense<0.000000e+00> : vector<64x64xf32>
    %74 = vector.multi_reduction <add>, %73, %cst_47 [0] : vector<4x64x64xf32> to vector<64x64xf32>
    %c0_48 = arith.constant 0 : index
    %c0_49 = arith.constant 0 : index
    %c0_50 = arith.constant 0 : index
    %75 = vector.load %arg6[%c0_48, %c0_49, %c0_50] : memref<2x64x32xf32, #tpu.memory_space<vmem>>, vector<1x64x32xf32>
    %76 = vector.shape_cast %75 : vector<1x64x32xf32> to vector<64x32xf32>
    %cst_51 = arith.constant dense<0.000000e+00> : vector<64x32xf32>
    %77 = tpu.matmul %74, %76, %cst_51 {dimension_numbers = #tpu.dot_dimension_numbers<[1], [0], [0], [1], [0, 0, 1, 1], [], []>} : vector<64x64xf32>, vector<64x32xf32>, vector<64x32xf32> -> vector<64x32xf32>
    %c0_52 = arith.constant 0 : index
    %c0_53 = arith.constant 0 : index
    %c0_54 = arith.constant 0 : index
    %78 = vector.load %arg10[%c0_52, %c0_53, %c0_54] : memref<2x8x32xf32, #tpu.memory_space<vmem>>, vector<1x1x32xf32>
    %79 = vector.shape_cast %78 : vector<1x1x32xf32> to vector<1x32xf32>
    %80 = vector.broadcast %79 : vector<1x32xf32> to vector<64x32xf32>
    %81 = arith.addf %77, %80 : vector<64x32xf32>
    %c0_55 = arith.constant 0 : index
    %c1_56 = arith.constant 1 : index
    %c0_57 = arith.constant 0 : index
    %82 = vector.load %arg10[%c0_55, %c1_56, %c0_57] : memref<2x8x32xf32, #tpu.memory_space<vmem>>, vector<1x1x32xf32>
    %83 = vector.shape_cast %82 : vector<1x1x32xf32> to vector<1x32xf32>
    %c0_58 = arith.constant 0 : index
    %c2 = arith.constant 2 : index
    %c0_59 = arith.constant 0 : index
    %84 = vector.load %arg10[%c0_58, %c2, %c0_59] : memref<2x8x32xf32, #tpu.memory_space<vmem>>, vector<1x1x32xf32>
    %85 = vector.shape_cast %84 : vector<1x1x32xf32> to vector<1x32xf32>
    %cst_60 = arith.constant dense<0.000000e+00> : vector<64xf32>
    %86 = vector.multi_reduction <add>, %81, %cst_60 [1] : vector<64x32xf32> to vector<64xf32>
    %87 = vector.shape_cast %86 : vector<64xf32> to vector<64x1xf32>
    %cst_61 = arith.constant 3.200000e+01 : f32
    %88 = vector.broadcast %cst_61 : f32 to vector<64x1xf32>
    %89 = arith.divf %87, %88 : vector<64x1xf32>
    %90 = vector.broadcast %89 : vector<64x1xf32> to vector<64x32xf32>
    %91 = arith.subf %81, %90 : vector<64x32xf32>
    %92 = arith.mulf %91, %91 : vector<64x32xf32>
    %cst_62 = arith.constant dense<0.000000e+00> : vector<64xf32>
    %93 = vector.multi_reduction <add>, %92, %cst_62 [1] : vector<64x32xf32> to vector<64xf32>
    %94 = vector.shape_cast %93 : vector<64xf32> to vector<64x1xf32>
    %cst_63 = arith.constant 3.200000e+01 : f32
    %95 = vector.broadcast %cst_63 : f32 to vector<64x1xf32>
    %96 = arith.divf %94, %95 : vector<64x1xf32>
    %cst_64 = arith.constant 9.99999974E-6 : f32
    %97 = vector.broadcast %cst_64 : f32 to vector<64x1xf32>
    %98 = arith.addf %96, %97 : vector<64x1xf32>
    %99 = math.rsqrt %98 : vector<64x1xf32>
    %100 = vector.broadcast %99 : vector<64x1xf32> to vector<64x32xf32>
    %101 = arith.mulf %91, %100 : vector<64x32xf32>
    %102 = vector.broadcast %83 : vector<1x32xf32> to vector<64x32xf32>
    %103 = arith.mulf %101, %102 : vector<64x32xf32>
    %104 = vector.broadcast %85 : vector<1x32xf32> to vector<64x32xf32>
    %105 = arith.addf %103, %104 : vector<64x32xf32>
    %106 = arith.addf %9, %105 : vector<64x32xf32>
    %c0_65 = arith.constant 0 : index
    %c0_66 = arith.constant 0 : index
    %c0_67 = arith.constant 0 : index
    %107 = vector.load %arg7[%c0_65, %c0_66, %c0_67] : memref<2x32x128xf32, #tpu.memory_space<vmem>>, vector<1x32x128xf32>
    %108 = vector.shape_cast %107 : vector<1x32x128xf32> to vector<32x128xf32>
    %cst_68 = arith.constant dense<0.000000e+00> : vector<64x128xf32>
    %109 = tpu.matmul %106, %108, %cst_68 {dimension_numbers = #tpu.dot_dimension_numbers<[1], [0], [0], [1], [0, 0, 1, 1], [], []>} : vector<64x32xf32>, vector<32x128xf32>, vector<64x128xf32> -> vector<64x128xf32>
    %c0_69 = arith.constant 0 : index
    %c0_70 = arith.constant 0 : index
    %c0_71 = arith.constant 0 : index
    %110 = vector.load %arg11[%c0_69, %c0_70, %c0_71] : memref<2x1x128xf32, #tpu.memory_space<vmem>>, vector<1x1x128xf32>
    %111 = vector.shape_cast %110 : vector<1x1x128xf32> to vector<1x128xf32>
    %112 = vector.broadcast %111 : vector<1x128xf32> to vector<64x128xf32>
    %113 = arith.addf %109, %112 : vector<64x128xf32>
    %cst_72 = arith.constant 5.000000e-01 : f32
    %114 = vector.broadcast %cst_72 : f32 to vector<64x128xf32>
    %115 = arith.mulf %114, %113 : vector<64x128xf32>
    %cst_73 = arith.constant 0.707106769 : f32
    %116 = vector.broadcast %cst_73 : f32 to vector<64x128xf32>
    %117 = arith.mulf %113, %116 : vector<64x128xf32>
    %118 = math.erf %117 : vector<64x128xf32>
    %cst_74 = arith.constant 1.000000e+00 : f32
    %119 = vector.broadcast %cst_74 : f32 to vector<64x128xf32>
    %120 = arith.addf %119, %118 : vector<64x128xf32>
    %121 = arith.mulf %115, %120 : vector<64x128xf32>
    %c0_75 = arith.constant 0 : index
    %c0_76 = arith.constant 0 : index
    %c0_77 = arith.constant 0 : index
    %122 = vector.load %arg8[%c0_75, %c0_76, %c0_77] : memref<2x128x32xf32, #tpu.memory_space<vmem>>, vector<1x128x32xf32>
    %123 = vector.shape_cast %122 : vector<1x128x32xf32> to vector<128x32xf32>
    %cst_78 = arith.constant dense<0.000000e+00> : vector<64x32xf32>
    %124 = tpu.matmul %121, %123, %cst_78 {dimension_numbers = #tpu.dot_dimension_numbers<[1], [0], [0], [1], [0, 0, 1, 1], [], []>} : vector<64x128xf32>, vector<128x32xf32>, vector<64x32xf32> -> vector<64x32xf32>
    %c0_79 = arith.constant 0 : index
    %c7 = arith.constant 7 : index
    %c0_80 = arith.constant 0 : index
    %125 = vector.load %arg10[%c0_79, %c7, %c0_80] : memref<2x8x32xf32, #tpu.memory_space<vmem>>, vector<1x1x32xf32>
    %126 = vector.shape_cast %125 : vector<1x1x32xf32> to vector<1x32xf32>
    %127 = vector.broadcast %126 : vector<1x32xf32> to vector<64x32xf32>
    %128 = arith.addf %124, %127 : vector<64x32xf32>
    %c0_81 = arith.constant 0 : index
    %c5 = arith.constant 5 : index
    %c0_82 = arith.constant 0 : index
    %129 = vector.load %arg10[%c0_81, %c5, %c0_82] : memref<2x8x32xf32, #tpu.memory_space<vmem>>, vector<1x1x32xf32>
    %130 = vector.shape_cast %129 : vector<1x1x32xf32> to vector<1x32xf32>
    %c0_83 = arith.constant 0 : index
    %c6 = arith.constant 6 : index
    %c0_84 = arith.constant 0 : index
    %131 = vector.load %arg10[%c0_83, %c6, %c0_84] : memref<2x8x32xf32, #tpu.memory_space<vmem>>, vector<1x1x32xf32>
    %132 = vector.shape_cast %131 : vector<1x1x32xf32> to vector<1x32xf32>
    %cst_85 = arith.constant dense<0.000000e+00> : vector<64xf32>
    %133 = vector.multi_reduction <add>, %128, %cst_85 [1] : vector<64x32xf32> to vector<64xf32>
    %134 = vector.shape_cast %133 : vector<64xf32> to vector<64x1xf32>
    %cst_86 = arith.constant 3.200000e+01 : f32
    %135 = vector.broadcast %cst_86 : f32 to vector<64x1xf32>
    %136 = arith.divf %134, %135 : vector<64x1xf32>
    %137 = vector.broadcast %136 : vector<64x1xf32> to vector<64x32xf32>
    %138 = arith.subf %128, %137 : vector<64x32xf32>
    %139 = arith.mulf %138, %138 : vector<64x32xf32>
    %cst_87 = arith.constant dense<0.000000e+00> : vector<64xf32>
    %140 = vector.multi_reduction <add>, %139, %cst_87 [1] : vector<64x32xf32> to vector<64xf32>
    %141 = vector.shape_cast %140 : vector<64xf32> to vector<64x1xf32>
    %cst_88 = arith.constant 3.200000e+01 : f32
    %142 = vector.broadcast %cst_88 : f32 to vector<64x1xf32>
    %143 = arith.divf %141, %142 : vector<64x1xf32>
    %cst_89 = arith.constant 9.99999974E-6 : f32
    %144 = vector.broadcast %cst_89 : f32 to vector<64x1xf32>
    %145 = arith.addf %143, %144 : vector<64x1xf32>
    %146 = math.rsqrt %145 : vector<64x1xf32>
    %147 = vector.broadcast %146 : vector<64x1xf32> to vector<64x32xf32>
    %148 = arith.mulf %138, %147 : vector<64x32xf32>
    %149 = vector.broadcast %130 : vector<1x32xf32> to vector<64x32xf32>
    %150 = arith.mulf %148, %149 : vector<64x32xf32>
    %151 = vector.broadcast %132 : vector<1x32xf32> to vector<64x32xf32>
    %152 = arith.addf %150, %151 : vector<64x32xf32>
    %153 = arith.addf %106, %152 : vector<64x32xf32>
    %c0_90 = arith.constant 0 : index
    %c3 = arith.constant 3 : index
    %c0_91 = arith.constant 0 : index
    %154 = vector.load %arg10[%c0_90, %c3, %c0_91] : memref<2x8x32xf32, #tpu.memory_space<vmem>>, vector<1x1x32xf32>
    %155 = vector.shape_cast %154 : vector<1x1x32xf32> to vector<1x32xf32>
    %c0_92 = arith.constant 0 : index
    %c4 = arith.constant 4 : index
    %c0_93 = arith.constant 0 : index
    %156 = vector.load %arg10[%c0_92, %c4, %c0_93] : memref<2x8x32xf32, #tpu.memory_space<vmem>>, vector<1x1x32xf32>
    %157 = vector.shape_cast %156 : vector<1x1x32xf32> to vector<1x32xf32>
    %cst_94 = arith.constant dense<0.000000e+00> : vector<64xf32>
    %158 = vector.multi_reduction <add>, %14, %cst_94 [1] : vector<64x32xf32> to vector<64xf32>
    %159 = vector.shape_cast %158 : vector<64xf32> to vector<64x1xf32>
    %cst_95 = arith.constant 3.200000e+01 : f32
    %160 = vector.broadcast %cst_95 : f32 to vector<64x1xf32>
    %161 = arith.divf %159, %160 : vector<64x1xf32>
    %162 = vector.broadcast %161 : vector<64x1xf32> to vector<64x32xf32>
    %163 = arith.subf %14, %162 : vector<64x32xf32>
    %164 = arith.mulf %163, %163 : vector<64x32xf32>
    %cst_96 = arith.constant dense<0.000000e+00> : vector<64xf32>
    %165 = vector.multi_reduction <add>, %164, %cst_96 [1] : vector<64x32xf32> to vector<64xf32>
    %166 = vector.shape_cast %165 : vector<64xf32> to vector<64x1xf32>
    %cst_97 = arith.constant 3.200000e+01 : f32
    %167 = vector.broadcast %cst_97 : f32 to vector<64x1xf32>
    %168 = arith.divf %166, %167 : vector<64x1xf32>
    %cst_98 = arith.constant 9.99999974E-6 : f32
    %169 = vector.broadcast %cst_98 : f32 to vector<64x1xf32>
    %170 = arith.addf %168, %169 : vector<64x1xf32>
    %171 = math.rsqrt %170 : vector<64x1xf32>
    %172 = vector.broadcast %171 : vector<64x1xf32> to vector<64x32xf32>
    %173 = arith.mulf %163, %172 : vector<64x32xf32>
    %174 = vector.broadcast %155 : vector<1x32xf32> to vector<64x32xf32>
    %175 = arith.mulf %173, %174 : vector<64x32xf32>
    %176 = vector.broadcast %157 : vector<1x32xf32> to vector<64x32xf32>
    %177 = arith.addf %175, %176 : vector<64x32xf32>
    %c1_99 = arith.constant 1 : index
    %c0_100 = arith.constant 0 : index
    %c0_101 = arith.constant 0 : index
    %178 = vector.load %arg3[%c1_99, %c0_100, %c0_101] : memref<3x64x64xf32, #tpu.memory_space<vmem>>, vector<1x64x64xf32>
    %179 = vector.shape_cast %178 : vector<1x64x64xf32> to vector<64x64xf32>
    %cst_102 = arith.constant dense<0.000000e+00> : vector<64x32xf32>
    %180 = tpu.matmul %179, %153, %cst_102 {dimension_numbers = #tpu.dot_dimension_numbers<[1], [0], [0], [1], [0, 0, 1, 1], [], []>} : vector<64x64xf32>, vector<64x32xf32>, vector<64x32xf32> -> vector<64x32xf32>
    %c1_103 = arith.constant 1 : index
    %c0_104 = arith.constant 0 : index
    %c0_105 = arith.constant 0 : index
    %181 = vector.load %arg3[%c1_103, %c0_104, %c0_105] : memref<3x64x64xf32, #tpu.memory_space<vmem>>, vector<1x64x64xf32>
    %182 = vector.shape_cast %181 : vector<1x64x64xf32> to vector<64x64xf32>
    %cst_106 = arith.constant dense<0.000000e+00> : vector<64x32xf32>
    %183 = tpu.matmul %182, %177, %cst_106 {dimension_numbers = #tpu.dot_dimension_numbers<[1], [0], [0], [1], [0, 0, 1, 1], [], []>} : vector<64x64xf32>, vector<64x32xf32>, vector<64x32xf32> -> vector<64x32xf32>
    %c1_107 = arith.constant 1 : index
    %c0_108 = arith.constant 0 : index
    %c0_109 = arith.constant 0 : index
    %184 = vector.load %arg4[%c1_107, %c0_108, %c0_109] : memref<2x32x64xf32, #tpu.memory_space<vmem>>, vector<1x32x64xf32>
    %185 = vector.shape_cast %184 : vector<1x32x64xf32> to vector<32x64xf32>
    %cst_110 = arith.constant dense<0.000000e+00> : vector<64x64xf32>
    %186 = tpu.matmul %180, %185, %cst_110 {dimension_numbers = #tpu.dot_dimension_numbers<[1], [0], [0], [1], [0, 0, 1, 1], [], []>} : vector<64x32xf32>, vector<32x64xf32>, vector<64x64xf32> -> vector<64x64xf32>
    %c1_111 = arith.constant 1 : index
    %c0_112 = arith.constant 0 : index
    %c0_113 = arith.constant 0 : index
    %187 = vector.load %arg9[%c1_111, %c0_112, %c0_113] : memref<2x2x64xf32, #tpu.memory_space<vmem>>, vector<1x1x64xf32>
    %188 = vector.shape_cast %187 : vector<1x1x64xf32> to vector<1x64xf32>
    %189 = vector.broadcast %188 : vector<1x64xf32> to vector<64x64xf32>
    %190 = arith.addf %186, %189 : vector<64x64xf32>
    %cst_114 = arith.constant 0.353553385 : f32
    %191 = vector.broadcast %cst_114 : f32 to vector<64x64xf32>
    %192 = arith.mulf %190, %191 : vector<64x64xf32>
    %c1_115 = arith.constant 1 : index
    %c0_116 = arith.constant 0 : index
    %c0_117 = arith.constant 0 : index
    %193 = vector.load %arg5[%c1_115, %c0_116, %c0_117] : memref<2x32x64xf32, #tpu.memory_space<vmem>>, vector<1x32x64xf32>
    %194 = vector.shape_cast %193 : vector<1x32x64xf32> to vector<32x64xf32>
    %cst_118 = arith.constant dense<0.000000e+00> : vector<64x64xf32>
    %195 = tpu.matmul %183, %194, %cst_118 {dimension_numbers = #tpu.dot_dimension_numbers<[1], [0], [0], [1], [0, 0, 1, 1], [], []>} : vector<64x32xf32>, vector<32x64xf32>, vector<64x64xf32> -> vector<64x64xf32>
    %c1_119 = arith.constant 1 : index
    %c1_120 = arith.constant 1 : index
    %c0_121 = arith.constant 0 : index
    %196 = vector.load %arg9[%c1_119, %c1_120, %c0_121] : memref<2x2x64xf32, #tpu.memory_space<vmem>>, vector<1x1x64xf32>
    %197 = vector.shape_cast %196 : vector<1x1x64xf32> to vector<1x64xf32>
    %198 = vector.broadcast %197 : vector<1x64xf32> to vector<64x64xf32>
    %199 = arith.addf %195, %198 : vector<64x64xf32>
    %200 = vector.shape_cast %192 : vector<64x64xf32> to vector<1x64x64xf32>
    %201 = vector.broadcast %200 : vector<1x64x64xf32> to vector<4x64x64xf32>
    %202 = vector.broadcast %2 : vector<4x1x64xf32> to vector<4x64x64xf32>
    %203 = arith.mulf %201, %202 : vector<4x64x64xf32>
    %204 = vector.shape_cast %199 : vector<64x64xf32> to vector<1x64x64xf32>
    %205 = vector.broadcast %204 : vector<1x64x64xf32> to vector<4x64x64xf32>
    %206 = vector.broadcast %2 : vector<4x1x64xf32> to vector<4x64x64xf32>
    %207 = arith.mulf %205, %206 : vector<4x64x64xf32>
    %208 = vector.shape_cast %199 : vector<64x64xf32> to vector<1x64x64xf32>
    %209 = vector.broadcast %208 : vector<1x64x64xf32> to vector<4x64x64xf32>
    %210 = vector.broadcast %4 : vector<4x1x64xf32> to vector<4x64x64xf32>
    %211 = arith.mulf %209, %210 : vector<4x64x64xf32>
    "tpu.trace_start"() <{level = 10 : i32, message = "hqc,hkc->hqk"}> : () -> ()
    %cst_122 = arith.constant dense<0.000000e+00> : vector<4x64x64xf32>
    %212 = tpu.matmul %203, %207, %cst_122 {dimension_numbers = #tpu.dot_dimension_numbers<[2], [2], [1], [1], [0, 0, 0, 1, 1, 1], [0], [0]>} : vector<4x64x64xf32>, vector<4x64x64xf32>, vector<4x64x64xf32> -> vector<4x64x64xf32>
    "tpu.trace_stop"() : () -> ()
    %213 = arith.mulf %203, %203 : vector<4x64x64xf32>
    %cst_123 = arith.constant dense<0.000000e+00> : vector<4x64xf32>
    %214 = vector.multi_reduction <add>, %213, %cst_123 [2] : vector<4x64x64xf32> to vector<4x64xf32>
    %215 = vector.shape_cast %214 : vector<4x64xf32> to vector<4x64x1xf32>
    %216 = arith.mulf %207, %207 : vector<4x64x64xf32>
    %cst_124 = arith.constant dense<0.000000e+00> : vector<4x64xf32>
    %217 = vector.multi_reduction <add>, %216, %cst_124 [2] : vector<4x64x64xf32> to vector<4x64xf32>
    %218 = vector.shape_cast %217 : vector<4x64xf32> to vector<4x1x64xf32>
    %219 = vector.broadcast %215 : vector<4x64x1xf32> to vector<4x64x64xf32>
    %220 = vector.broadcast %218 : vector<4x1x64xf32> to vector<4x64x64xf32>
    %221 = arith.mulf %219, %220 : vector<4x64x64xf32>
    %cst_125 = arith.constant 9.99999996E-13 : f32
    %222 = vector.broadcast %cst_125 : f32 to vector<4x64x64xf32>
    %223 = arith.maximumf %221, %222 : vector<4x64x64xf32>
    %224 = math.rsqrt %223 : vector<4x64x64xf32>
    %225 = arith.mulf %212, %224 : vector<4x64x64xf32>
    %c0_126 = arith.constant 0 : index
    %c1_127 = arith.constant 1 : index
    %c0_128 = arith.constant 0 : index
    %c0_129 = arith.constant 0 : index
    %c0_130 = arith.constant 0 : index
    %226 = vector.load %arg12[%c0_126, %c1_127, %c0_128, %c0_129, %c0_130] : memref<2x2x4x64x64xf32, #tpu.memory_space<vmem>>, vector<1x1x4x64x64xf32>
    %227 = vector.shape_cast %226 : vector<1x1x4x64x64xf32> to vector<4x64x64xf32>
    %228 = arith.mulf %225, %227 : vector<4x64x64xf32>
    %c1_131 = arith.constant 1 : index
    %c1_132 = arith.constant 1 : index
    %c0_133 = arith.constant 0 : index
    %c0_134 = arith.constant 0 : index
    %c0_135 = arith.constant 0 : index
    %229 = vector.load %arg12[%c1_131, %c1_132, %c0_133, %c0_134, %c0_135] : memref<2x2x4x64x64xf32, #tpu.memory_space<vmem>>, vector<1x1x4x64x64xf32>
    %230 = vector.shape_cast %229 : vector<1x1x4x64x64xf32> to vector<4x64x64xf32>
    %231 = arith.addf %228, %230 : vector<4x64x64xf32>
    %cst_136 = arith.constant dense<0xFF800000> : vector<4x64xf32>
    %232 = vector.multi_reduction <maximumf>, %231, %cst_136 [2] : vector<4x64x64xf32> to vector<4x64xf32>
    %233 = vector.shape_cast %232 : vector<4x64xf32> to vector<4x64x1xf32>
    %234 = vector.broadcast %233 : vector<4x64x1xf32> to vector<4x64x64xf32>
    %235 = arith.subf %231, %234 : vector<4x64x64xf32>
    %236 = math.exp %235 : vector<4x64x64xf32>
    %cst_137 = arith.constant dense<0.000000e+00> : vector<4x64xf32>
    %237 = vector.multi_reduction <add>, %236, %cst_137 [2] : vector<4x64x64xf32> to vector<4x64xf32>
    %238 = vector.shape_cast %237 : vector<4x64xf32> to vector<4x64x1xf32>
    %239 = tpu.reciprocal %238 {approx = true} : vector<4x64x1xf32> -> vector<4x64x1xf32>
    %240 = vector.broadcast %239 : vector<4x64x1xf32> to vector<4x64x64xf32>
    %241 = arith.mulf %236, %240 : vector<4x64x64xf32>
    "tpu.trace_start"() <{level = 10 : i32, message = "hqk,hkc->hqc"}> : () -> ()
    %cst_138 = arith.constant dense<0.000000e+00> : vector<4x64x64xf32>
    %242 = tpu.matmul %241, %211, %cst_138 {dimension_numbers = #tpu.dot_dimension_numbers<[2], [1], [1], [2], [0, 0, 0, 1, 1, 2], [0], [0]>} : vector<4x64x64xf32>, vector<4x64x64xf32>, vector<4x64x64xf32> -> vector<4x64x64xf32>
    "tpu.trace_stop"() : () -> ()
    %cst_139 = arith.constant dense<0.000000e+00> : vector<64x64xf32>
    %243 = vector.multi_reduction <add>, %242, %cst_139 [0] : vector<4x64x64xf32> to vector<64x64xf32>
    %c1_140 = arith.constant 1 : index
    %c0_141 = arith.constant 0 : index
    %c0_142 = arith.constant 0 : index
    %244 = vector.load %arg6[%c1_140, %c0_141, %c0_142] : memref<2x64x32xf32, #tpu.memory_space<vmem>>, vector<1x64x32xf32>
    %245 = vector.shape_cast %244 : vector<1x64x32xf32> to vector<64x32xf32>
    %cst_143 = arith.constant dense<0.000000e+00> : vector<64x32xf32>
    %246 = tpu.matmul %243, %245, %cst_143 {dimension_numbers = #tpu.dot_dimension_numbers<[1], [0], [0], [1], [0, 0, 1, 1], [], []>} : vector<64x64xf32>, vector<64x32xf32>, vector<64x32xf32> -> vector<64x32xf32>
    %c1_144 = arith.constant 1 : index
    %c0_145 = arith.constant 0 : index
    %c0_146 = arith.constant 0 : index
    %247 = vector.load %arg10[%c1_144, %c0_145, %c0_146] : memref<2x8x32xf32, #tpu.memory_space<vmem>>, vector<1x1x32xf32>
    %248 = vector.shape_cast %247 : vector<1x1x32xf32> to vector<1x32xf32>
    %249 = vector.broadcast %248 : vector<1x32xf32> to vector<64x32xf32>
    %250 = arith.addf %246, %249 : vector<64x32xf32>
    %c1_147 = arith.constant 1 : index
    %c1_148 = arith.constant 1 : index
    %c0_149 = arith.constant 0 : index
    %251 = vector.load %arg10[%c1_147, %c1_148, %c0_149] : memref<2x8x32xf32, #tpu.memory_space<vmem>>, vector<1x1x32xf32>
    %252 = vector.shape_cast %251 : vector<1x1x32xf32> to vector<1x32xf32>
    %c1_150 = arith.constant 1 : index
    %c2_151 = arith.constant 2 : index
    %c0_152 = arith.constant 0 : index
    %253 = vector.load %arg10[%c1_150, %c2_151, %c0_152] : memref<2x8x32xf32, #tpu.memory_space<vmem>>, vector<1x1x32xf32>
    %254 = vector.shape_cast %253 : vector<1x1x32xf32> to vector<1x32xf32>
    %cst_153 = arith.constant dense<0.000000e+00> : vector<64xf32>
    %255 = vector.multi_reduction <add>, %250, %cst_153 [1] : vector<64x32xf32> to vector<64xf32>
    %256 = vector.shape_cast %255 : vector<64xf32> to vector<64x1xf32>
    %cst_154 = arith.constant 3.200000e+01 : f32
    %257 = vector.broadcast %cst_154 : f32 to vector<64x1xf32>
    %258 = arith.divf %256, %257 : vector<64x1xf32>
    %259 = vector.broadcast %258 : vector<64x1xf32> to vector<64x32xf32>
    %260 = arith.subf %250, %259 : vector<64x32xf32>
    %261 = arith.mulf %260, %260 : vector<64x32xf32>
    %cst_155 = arith.constant dense<0.000000e+00> : vector<64xf32>
    %262 = vector.multi_reduction <add>, %261, %cst_155 [1] : vector<64x32xf32> to vector<64xf32>
    %263 = vector.shape_cast %262 : vector<64xf32> to vector<64x1xf32>
    %cst_156 = arith.constant 3.200000e+01 : f32
    %264 = vector.broadcast %cst_156 : f32 to vector<64x1xf32>
    %265 = arith.divf %263, %264 : vector<64x1xf32>
    %cst_157 = arith.constant 9.99999974E-6 : f32
    %266 = vector.broadcast %cst_157 : f32 to vector<64x1xf32>
    %267 = arith.addf %265, %266 : vector<64x1xf32>
    %268 = math.rsqrt %267 : vector<64x1xf32>
    %269 = vector.broadcast %268 : vector<64x1xf32> to vector<64x32xf32>
    %270 = arith.mulf %260, %269 : vector<64x32xf32>
    %271 = vector.broadcast %252 : vector<1x32xf32> to vector<64x32xf32>
    %272 = arith.mulf %270, %271 : vector<64x32xf32>
    %273 = vector.broadcast %254 : vector<1x32xf32> to vector<64x32xf32>
    %274 = arith.addf %272, %273 : vector<64x32xf32>
    %275 = arith.addf %180, %274 : vector<64x32xf32>
    %c1_158 = arith.constant 1 : index
    %c0_159 = arith.constant 0 : index
    %c0_160 = arith.constant 0 : index
    %276 = vector.load %arg7[%c1_158, %c0_159, %c0_160] : memref<2x32x128xf32, #tpu.memory_space<vmem>>, vector<1x32x128xf32>
    %277 = vector.shape_cast %276 : vector<1x32x128xf32> to vector<32x128xf32>
    %cst_161 = arith.constant dense<0.000000e+00> : vector<64x128xf32>
    %278 = tpu.matmul %275, %277, %cst_161 {dimension_numbers = #tpu.dot_dimension_numbers<[1], [0], [0], [1], [0, 0, 1, 1], [], []>} : vector<64x32xf32>, vector<32x128xf32>, vector<64x128xf32> -> vector<64x128xf32>
    %c1_162 = arith.constant 1 : index
    %c0_163 = arith.constant 0 : index
    %c0_164 = arith.constant 0 : index
    %279 = vector.load %arg11[%c1_162, %c0_163, %c0_164] : memref<2x1x128xf32, #tpu.memory_space<vmem>>, vector<1x1x128xf32>
    %280 = vector.shape_cast %279 : vector<1x1x128xf32> to vector<1x128xf32>
    %281 = vector.broadcast %280 : vector<1x128xf32> to vector<64x128xf32>
    %282 = arith.addf %278, %281 : vector<64x128xf32>
    %cst_165 = arith.constant 5.000000e-01 : f32
    %283 = vector.broadcast %cst_165 : f32 to vector<64x128xf32>
    %284 = arith.mulf %283, %282 : vector<64x128xf32>
    %cst_166 = arith.constant 0.707106769 : f32
    %285 = vector.broadcast %cst_166 : f32 to vector<64x128xf32>
    %286 = arith.mulf %282, %285 : vector<64x128xf32>
    %287 = math.erf %286 : vector<64x128xf32>
    %cst_167 = arith.constant 1.000000e+00 : f32
    %288 = vector.broadcast %cst_167 : f32 to vector<64x128xf32>
    %289 = arith.addf %288, %287 : vector<64x128xf32>
    %290 = arith.mulf %284, %289 : vector<64x128xf32>
    %c1_168 = arith.constant 1 : index
    %c0_169 = arith.constant 0 : index
    %c0_170 = arith.constant 0 : index
    %291 = vector.load %arg8[%c1_168, %c0_169, %c0_170] : memref<2x128x32xf32, #tpu.memory_space<vmem>>, vector<1x128x32xf32>
    %292 = vector.shape_cast %291 : vector<1x128x32xf32> to vector<128x32xf32>
    %cst_171 = arith.constant dense<0.000000e+00> : vector<64x32xf32>
    %293 = tpu.matmul %290, %292, %cst_171 {dimension_numbers = #tpu.dot_dimension_numbers<[1], [0], [0], [1], [0, 0, 1, 1], [], []>} : vector<64x128xf32>, vector<128x32xf32>, vector<64x32xf32> -> vector<64x32xf32>
    %c1_172 = arith.constant 1 : index
    %c7_173 = arith.constant 7 : index
    %c0_174 = arith.constant 0 : index
    %294 = vector.load %arg10[%c1_172, %c7_173, %c0_174] : memref<2x8x32xf32, #tpu.memory_space<vmem>>, vector<1x1x32xf32>
    %295 = vector.shape_cast %294 : vector<1x1x32xf32> to vector<1x32xf32>
    %296 = vector.broadcast %295 : vector<1x32xf32> to vector<64x32xf32>
    %297 = arith.addf %293, %296 : vector<64x32xf32>
    %c1_175 = arith.constant 1 : index
    %c5_176 = arith.constant 5 : index
    %c0_177 = arith.constant 0 : index
    %298 = vector.load %arg10[%c1_175, %c5_176, %c0_177] : memref<2x8x32xf32, #tpu.memory_space<vmem>>, vector<1x1x32xf32>
    %299 = vector.shape_cast %298 : vector<1x1x32xf32> to vector<1x32xf32>
    %c1_178 = arith.constant 1 : index
    %c6_179 = arith.constant 6 : index
    %c0_180 = arith.constant 0 : index
    %300 = vector.load %arg10[%c1_178, %c6_179, %c0_180] : memref<2x8x32xf32, #tpu.memory_space<vmem>>, vector<1x1x32xf32>
    %301 = vector.shape_cast %300 : vector<1x1x32xf32> to vector<1x32xf32>
    %cst_181 = arith.constant dense<0.000000e+00> : vector<64xf32>
    %302 = vector.multi_reduction <add>, %297, %cst_181 [1] : vector<64x32xf32> to vector<64xf32>
    %303 = vector.shape_cast %302 : vector<64xf32> to vector<64x1xf32>
    %cst_182 = arith.constant 3.200000e+01 : f32
    %304 = vector.broadcast %cst_182 : f32 to vector<64x1xf32>
    %305 = arith.divf %303, %304 : vector<64x1xf32>
    %306 = vector.broadcast %305 : vector<64x1xf32> to vector<64x32xf32>
    %307 = arith.subf %297, %306 : vector<64x32xf32>
    %308 = arith.mulf %307, %307 : vector<64x32xf32>
    %cst_183 = arith.constant dense<0.000000e+00> : vector<64xf32>
    %309 = vector.multi_reduction <add>, %308, %cst_183 [1] : vector<64x32xf32> to vector<64xf32>
    %310 = vector.shape_cast %309 : vector<64xf32> to vector<64x1xf32>
    %cst_184 = arith.constant 3.200000e+01 : f32
    %311 = vector.broadcast %cst_184 : f32 to vector<64x1xf32>
    %312 = arith.divf %310, %311 : vector<64x1xf32>
    %cst_185 = arith.constant 9.99999974E-6 : f32
    %313 = vector.broadcast %cst_185 : f32 to vector<64x1xf32>
    %314 = arith.addf %312, %313 : vector<64x1xf32>
    %315 = math.rsqrt %314 : vector<64x1xf32>
    %316 = vector.broadcast %315 : vector<64x1xf32> to vector<64x32xf32>
    %317 = arith.mulf %307, %316 : vector<64x32xf32>
    %318 = vector.broadcast %299 : vector<1x32xf32> to vector<64x32xf32>
    %319 = arith.mulf %317, %318 : vector<64x32xf32>
    %320 = vector.broadcast %301 : vector<1x32xf32> to vector<64x32xf32>
    %321 = arith.addf %319, %320 : vector<64x32xf32>
    %322 = arith.addf %275, %321 : vector<64x32xf32>
    %c1_186 = arith.constant 1 : index
    %c3_187 = arith.constant 3 : index
    %c0_188 = arith.constant 0 : index
    %323 = vector.load %arg10[%c1_186, %c3_187, %c0_188] : memref<2x8x32xf32, #tpu.memory_space<vmem>>, vector<1x1x32xf32>
    %324 = vector.shape_cast %323 : vector<1x1x32xf32> to vector<1x32xf32>
    %c1_189 = arith.constant 1 : index
    %c4_190 = arith.constant 4 : index
    %c0_191 = arith.constant 0 : index
    %325 = vector.load %arg10[%c1_189, %c4_190, %c0_191] : memref<2x8x32xf32, #tpu.memory_space<vmem>>, vector<1x1x32xf32>
    %326 = vector.shape_cast %325 : vector<1x1x32xf32> to vector<1x32xf32>
    %cst_192 = arith.constant dense<0.000000e+00> : vector<64xf32>
    %327 = vector.multi_reduction <add>, %183, %cst_192 [1] : vector<64x32xf32> to vector<64xf32>
    %328 = vector.shape_cast %327 : vector<64xf32> to vector<64x1xf32>
    %cst_193 = arith.constant 3.200000e+01 : f32
    %329 = vector.broadcast %cst_193 : f32 to vector<64x1xf32>
    %330 = arith.divf %328, %329 : vector<64x1xf32>
    %331 = vector.broadcast %330 : vector<64x1xf32> to vector<64x32xf32>
    %332 = arith.subf %183, %331 : vector<64x32xf32>
    %333 = arith.mulf %332, %332 : vector<64x32xf32>
    %cst_194 = arith.constant dense<0.000000e+00> : vector<64xf32>
    %334 = vector.multi_reduction <add>, %333, %cst_194 [1] : vector<64x32xf32> to vector<64xf32>
    %335 = vector.shape_cast %334 : vector<64xf32> to vector<64x1xf32>
    %cst_195 = arith.constant 3.200000e+01 : f32
    %336 = vector.broadcast %cst_195 : f32 to vector<64x1xf32>
    %337 = arith.divf %335, %336 : vector<64x1xf32>
    %cst_196 = arith.constant 9.99999974E-6 : f32
    %338 = vector.broadcast %cst_196 : f32 to vector<64x1xf32>
    %339 = arith.addf %337, %338 : vector<64x1xf32>
    %340 = math.rsqrt %339 : vector<64x1xf32>
    %341 = vector.broadcast %340 : vector<64x1xf32> to vector<64x32xf32>
    %342 = arith.mulf %332, %341 : vector<64x32xf32>
    %343 = vector.broadcast %324 : vector<1x32xf32> to vector<64x32xf32>
    %344 = arith.mulf %342, %343 : vector<64x32xf32>
    %345 = vector.broadcast %326 : vector<1x32xf32> to vector<64x32xf32>
    %346 = arith.addf %344, %345 : vector<64x32xf32>
    %c2_197 = arith.constant 2 : index
    %c0_198 = arith.constant 0 : index
    %c0_199 = arith.constant 0 : index
    %347 = vector.load %arg3[%c2_197, %c0_198, %c0_199] : memref<3x64x64xf32, #tpu.memory_space<vmem>>, vector<1x64x64xf32>
    %348 = vector.shape_cast %347 : vector<1x64x64xf32> to vector<64x64xf32>
    %cst_200 = arith.constant dense<0.000000e+00> : vector<64x32xf32>
    %349 = tpu.matmul %348, %322, %cst_200 {dimension_numbers = #tpu.dot_dimension_numbers<[1], [0], [0], [1], [0, 0, 1, 1], [], []>} : vector<64x64xf32>, vector<64x32xf32>, vector<64x32xf32> -> vector<64x32xf32>
    %c0_201 = arith.constant 0 : index
    %c0_202 = arith.constant 0 : index
    %c0_203 = arith.constant 0 : index
    %350 = vector.load %arg20[%c0_201, %c0_202, %c0_203] : memref<1x64x32xf32, #tpu.memory_space<vmem>>, vector<1x64x32xf32>
    %351 = vector.shape_cast %350 : vector<1x64x32xf32> to vector<64x32xf32>
    %352 = vector.shape_cast %349 : vector<64x32xf32> to vector<1x64x32xf32>
    tpu.vector_store %arg20[%c0_201, %c0_202, %c0_203], %352 {strides = array<i32>} : memref<1x64x32xf32, #tpu.memory_space<vmem>>, vector<1x64x32xf32>,
    %c0_204 = arith.constant 0 : index
    %c0_205 = arith.constant 0 : index
    %353 = vector.load %arg14[%c0_204, %c0_205] : memref<32x64xf32, #tpu.memory_space<vmem>>, vector<32x64xf32>
    %cst_206 = arith.constant dense<0.000000e+00> : vector<64x64xf32>
    %354 = tpu.matmul %349, %353, %cst_206 {dimension_numbers = #tpu.dot_dimension_numbers<[1], [0], [0], [1], [0, 0, 1, 1], [], []>} : vector<64x32xf32>, vector<32x64xf32>, vector<64x64xf32> -> vector<64x64xf32>
    %c0_207 = arith.constant 0 : index
    %c0_208 = arith.constant 0 : index
    %355 = vector.load %arg16[%c0_207, %c0_208] : memref<64x4xf32, #tpu.memory_space<vmem>>, vector<64x4xf32>
    %cst_209 = arith.constant dense<0.000000e+00> : vector<64x4xf32>
    %356 = tpu.matmul %354, %355, %cst_209 {dimension_numbers = #tpu.dot_dimension_numbers<[1], [0], [0], [1], [0, 0, 1, 1], [], []>} : vector<64x64xf32>, vector<64x4xf32>, vector<64x4xf32> -> vector<64x4xf32>
    %c0_210 = arith.constant 0 : index
    %c0_211 = arith.constant 0 : index
    %357 = vector.load %arg17[%c0_210, %c0_211] : memref<4x64xf32, #tpu.memory_space<vmem>>, vector<4x64xf32>
    %cst_212 = arith.constant dense<0.000000e+00> : vector<64x64xf32>
    %358 = tpu.matmul %356, %357, %cst_212 {dimension_numbers = #tpu.dot_dimension_numbers<[1], [0], [0], [1], [0, 0, 1, 1], [], []>} : vector<64x4xf32>, vector<4x64xf32>, vector<64x64xf32> -> vector<64x64xf32>
    %359 = arith.subf %354, %358 : vector<64x64xf32>
    %360 = arith.mulf %359, %359 : vector<64x64xf32>
    %c0_213 = arith.constant 0 : index
    %c0_214 = arith.constant 0 : index
    %361 = vector.load %arg16[%c0_213, %c0_214] : memref<64x4xf32, #tpu.memory_space<vmem>>, vector<64x4xf32>
    %cst_215 = arith.constant dense<0.000000e+00> : vector<64x4xf32>
    %362 = tpu.matmul %360, %361, %cst_215 {dimension_numbers = #tpu.dot_dimension_numbers<[1], [0], [0], [1], [0, 0, 1, 1], [], []>} : vector<64x64xf32>, vector<64x4xf32>, vector<64x4xf32> -> vector<64x4xf32>
    %c0_216 = arith.constant 0 : index
    %c0_217 = arith.constant 0 : index
    %363 = vector.load %arg17[%c0_216, %c0_217] : memref<4x64xf32, #tpu.memory_space<vmem>>, vector<4x64xf32>
    %cst_218 = arith.constant dense<0.000000e+00> : vector<64x64xf32>
    %364 = tpu.matmul %362, %363, %cst_218 {dimension_numbers = #tpu.dot_dimension_numbers<[1], [0], [0], [1], [0, 0, 1, 1], [], []>} : vector<64x4xf32>, vector<4x64xf32>, vector<64x64xf32> -> vector<64x64xf32>
    %cst_219 = arith.constant 9.99999974E-6 : f32
    %365 = vector.broadcast %cst_219 : f32 to vector<64x64xf32>
    %366 = arith.addf %364, %365 : vector<64x64xf32>
    %367 = math.rsqrt %366 : vector<64x64xf32>
    %368 = arith.mulf %359, %367 : vector<64x64xf32>
    %c0_220 = arith.constant 0 : index
    %c0_221 = arith.constant 0 : index
    %369 = vector.load %arg15[%c0_220, %c0_221] : memref<2x64xf32, #tpu.memory_space<vmem>>, vector<1x64xf32>
    %370 = vector.broadcast %369 : vector<1x64xf32> to vector<64x64xf32>
    %371 = arith.mulf %368, %370 : vector<64x64xf32>
    %c1_222 = arith.constant 1 : index
    %c0_223 = arith.constant 0 : index
    %372 = vector.load %arg15[%c1_222, %c0_223] : memref<2x64xf32, #tpu.memory_space<vmem>>, vector<1x64xf32>
    %373 = vector.broadcast %372 : vector<1x64xf32> to vector<64x64xf32>
    %374 = arith.addf %371, %373 : vector<64x64xf32>
    %c0_224 = arith.constant 0 : index
    %c0_225 = arith.constant 0 : index
    %c0_226 = arith.constant 0 : index
    %375 = vector.load %arg21[%c0_224, %c0_225, %c0_226] : memref<1x64x64xf32, #tpu.memory_space<vmem>>, vector<1x64x64xf32>
    %376 = vector.shape_cast %375 : vector<1x64x64xf32> to vector<64x64xf32>
    %377 = vector.shape_cast %374 : vector<64x64xf32> to vector<1x64x64xf32>
    tpu.vector_store %arg21[%c0_224, %c0_225, %c0_226], %377 {strides = array<i32>} : memref<1x64x64xf32, #tpu.memory_space<vmem>>, vector<1x64x64xf32>,
    %c0_227 = arith.constant 0 : index
    %c0_228 = arith.constant 0 : index
    %378 = vector.load %arg18[%c0_227, %c0_228] : memref<32x16xf32, #tpu.memory_space<vmem>>, vector<32x16xf32>
    %cst_229 = arith.constant dense<0.000000e+00> : vector<64x16xf32>
    %379 = tpu.matmul %346, %378, %cst_229 {dimension_numbers = #tpu.dot_dimension_numbers<[1], [0], [0], [1], [0, 0, 1, 1], [], []>} : vector<64x32xf32>, vector<32x16xf32>, vector<64x16xf32> -> vector<64x16xf32>
    %c0_230 = arith.constant 0 : index
    %c0_231 = arith.constant 0 : index
    %380 = vector.load %arg19[%c0_230, %c0_231] : memref<256x64xf32, #tpu.memory_space<vmem>>, vector<256x64xf32>
    %cst_232 = arith.constant dense<0.000000e+00> : vector<256x16xf32>
    %381 = tpu.matmul %380, %379, %cst_232 {dimension_numbers = #tpu.dot_dimension_numbers<[1], [0], [0], [1], [0, 0, 1, 1], [], []>} : vector<256x64xf32>, vector<64x16xf32>, vector<256x16xf32> -> vector<256x16xf32>
    %c0_233 = arith.constant 0 : index
    %c0_234 = arith.constant 0 : index
    %c0_235 = arith.constant 0 : index
    %382 = vector.load %arg22[%c0_233, %c0_234, %c0_235] : memref<1x256x16xf32, #tpu.memory_space<vmem>>, vector<1x256x16xf32>
    %383 = vector.shape_cast %382 : vector<1x256x16xf32> to vector<256x16xf32>
    %384 = vector.shape_cast %381 : vector<256x16xf32> to vector<1x256x16xf32>
    tpu.vector_store %arg22[%c0_233, %c0_234, %c0_235], %384 {strides = array<i32>} : memref<1x256x16xf32, #tpu.memory_space<vmem>>, vector<1x256x16xf32>,
    return
  }
  func.func @transform_0(%arg0: i32) -> (i32, i32, i32) {
    %c0_i32 = arith.constant 0 : i32
    %c0_i32_0 = arith.constant 0 : i32
    %c0_i32_1 = arith.constant 0 : i32
    return %arg0, %c0_i32, %c0_i32_0 : i32, i32, i32
  }
  func.func @transform_1(%arg0: i32) -> (i32, i32, i32) {
    %c0_i32 = arith.constant 0 : i32
    %c0_i32_0 = arith.constant 0 : i32
    %c0_i32_1 = arith.constant 0 : i32
    return %arg0, %c0_i32, %c0_i32_0 : i32, i32, i32
  }
  func.func @transform_2(%arg0: i32) -> (i32, i32, i32) {
    %c0_i32 = arith.constant 0 : i32
    %c0_i32_0 = arith.constant 0 : i32
    %c0_i32_1 = arith.constant 0 : i32
    %c0_i32_2 = arith.constant 0 : i32
    return %c0_i32, %c0_i32_0, %c0_i32_1 : i32, i32, i32
  }
  func.func @transform_3(%arg0: i32) -> (i32, i32, i32) {
    %c0_i32 = arith.constant 0 : i32
    %c0_i32_0 = arith.constant 0 : i32
    %c0_i32_1 = arith.constant 0 : i32
    %c0_i32_2 = arith.constant 0 : i32
    return %c0_i32, %c0_i32_0, %c0_i32_1 : i32, i32, i32
  }
  func.func @transform_4(%arg0: i32) -> (i32, i32, i32) {
    %c0_i32 = arith.constant 0 : i32
    %c0_i32_0 = arith.constant 0 : i32
    %c0_i32_1 = arith.constant 0 : i32
    %c0_i32_2 = arith.constant 0 : i32
    return %c0_i32, %c0_i32_0, %c0_i32_1 : i32, i32, i32
  }
  func.func @transform_5(%arg0: i32) -> (i32, i32, i32) {
    %c0_i32 = arith.constant 0 : i32
    %c0_i32_0 = arith.constant 0 : i32
    %c0_i32_1 = arith.constant 0 : i32
    %c0_i32_2 = arith.constant 0 : i32
    return %c0_i32, %c0_i32_0, %c0_i32_1 : i32, i32, i32
  }
  func.func @transform_6(%arg0: i32) -> (i32, i32, i32) {
    %c0_i32 = arith.constant 0 : i32
    %c0_i32_0 = arith.constant 0 : i32
    %c0_i32_1 = arith.constant 0 : i32
    %c0_i32_2 = arith.constant 0 : i32
    return %c0_i32, %c0_i32_0, %c0_i32_1 : i32, i32, i32
  }
  func.func @transform_7(%arg0: i32) -> (i32, i32, i32) {
    %c0_i32 = arith.constant 0 : i32
    %c0_i32_0 = arith.constant 0 : i32
    %c0_i32_1 = arith.constant 0 : i32
    %c0_i32_2 = arith.constant 0 : i32
    return %c0_i32, %c0_i32_0, %c0_i32_1 : i32, i32, i32
  }
  func.func @transform_8(%arg0: i32) -> (i32, i32, i32) {
    %c0_i32 = arith.constant 0 : i32
    %c0_i32_0 = arith.constant 0 : i32
    %c0_i32_1 = arith.constant 0 : i32
    %c0_i32_2 = arith.constant 0 : i32
    return %c0_i32, %c0_i32_0, %c0_i32_1 : i32, i32, i32
  }
  func.func @transform_9(%arg0: i32) -> (i32, i32, i32) {
    %c0_i32 = arith.constant 0 : i32
    %c0_i32_0 = arith.constant 0 : i32
    %c0_i32_1 = arith.constant 0 : i32
    %c0_i32_2 = arith.constant 0 : i32
    return %c0_i32, %c0_i32_0, %c0_i32_1 : i32, i32, i32
  }
  func.func @transform_10(%arg0: i32) -> (i32, i32, i32) {
    %c0_i32 = arith.constant 0 : i32
    %c0_i32_0 = arith.constant 0 : i32
    %c0_i32_1 = arith.constant 0 : i32
    %c0_i32_2 = arith.constant 0 : i32
    return %c0_i32, %c0_i32_0, %c0_i32_1 : i32, i32, i32
  }
  func.func @transform_11(%arg0: i32) -> (i32, i32, i32, i32, i32) {
    %c0_i32 = arith.constant 0 : i32
    %c0_i32_0 = arith.constant 0 : i32
    %c0_i32_1 = arith.constant 0 : i32
    %c0_i32_2 = arith.constant 0 : i32
    %c0_i32_3 = arith.constant 0 : i32
    %c0_i32_4 = arith.constant 0 : i32
    return %c0_i32, %c0_i32_0, %c0_i32_1, %c0_i32_2, %c0_i32_3 : i32, i32, i32, i32, i32
  }
  func.func @transform_12(%arg0: i32) -> (i32, i32, i32, i32) {
    %c0_i32 = arith.constant 0 : i32
    %c0_i32_0 = arith.constant 0 : i32
    %c0_i32_1 = arith.constant 0 : i32
    %c0_i32_2 = arith.constant 0 : i32
    %c0_i32_3 = arith.constant 0 : i32
    return %c0_i32, %c0_i32_0, %c0_i32_1, %c0_i32_2 : i32, i32, i32, i32
  }
  func.func @transform_13(%arg0: i32) -> (i32, i32) {
    %c0_i32 = arith.constant 0 : i32
    %c0_i32_0 = arith.constant 0 : i32
    %c0_i32_1 = arith.constant 0 : i32
    return %c0_i32, %c0_i32_0 : i32, i32
  }
  func.func @transform_14(%arg0: i32) -> (i32, i32) {
    %c0_i32 = arith.constant 0 : i32
    %c0_i32_0 = arith.constant 0 : i32
    %c0_i32_1 = arith.constant 0 : i32
    return %c0_i32, %c0_i32_0 : i32, i32
  }
  func.func @transform_15(%arg0: i32) -> (i32, i32) {
    %c0_i32 = arith.constant 0 : i32
    %c0_i32_0 = arith.constant 0 : i32
    %c0_i32_1 = arith.constant 0 : i32
    return %c0_i32, %c0_i32_0 : i32, i32
  }
  func.func @transform_16(%arg0: i32) -> (i32, i32) {
    %c0_i32 = arith.constant 0 : i32
    %c0_i32_0 = arith.constant 0 : i32
    %c0_i32_1 = arith.constant 0 : i32
    return %c0_i32, %c0_i32_0 : i32, i32
  }
  func.func @transform_17(%arg0: i32) -> (i32, i32) {
    %c0_i32 = arith.constant 0 : i32
    %c0_i32_0 = arith.constant 0 : i32
    %c0_i32_1 = arith.constant 0 : i32
    return %c0_i32, %c0_i32_0 : i32, i32
  }
  func.func @transform_18(%arg0: i32) -> (i32, i32) {
    %c0_i32 = arith.constant 0 : i32
    %c0_i32_0 = arith.constant 0 : i32
    %c0_i32_1 = arith.constant 0 : i32
    return %c0_i32, %c0_i32_0 : i32, i32
  }
  func.func @transform_19(%arg0: i32) -> (i32, i32, i32) {
    %c0_i32 = arith.constant 0 : i32
    %c0_i32_0 = arith.constant 0 : i32
    %c0_i32_1 = arith.constant 0 : i32
    return %arg0, %c0_i32, %c0_i32_0 : i32, i32, i32
  }
  func.func @transform_20(%arg0: i32) -> (i32, i32, i32) {
    %c0_i32 = arith.constant 0 : i32
    %c0_i32_0 = arith.constant 0 : i32
    %c0_i32_1 = arith.constant 0 : i32
    return %arg0, %c0_i32, %c0_i32_0 : i32, i32, i32
  }
  func.func @transform_21(%arg0: i32) -> (i32, i32, i32) {
    %c0_i32 = arith.constant 0 : i32
    %c0_i32_0 = arith.constant 0 : i32
    %c0_i32_1 = arith.constant 0 : i32
    return %arg0, %c0_i32, %c0_i32_0 : i32, i32, i32
  }
}

</mosaic_0001>

<bundles_post_ra>
// kernel: tile.53
= control target key start
LH: loop header
LB: loop body
LE: loop exit
PB: predicated region body
PF: predicated region fallthrough
CT: control target
= control target key end

     0   :  { %s22_s0 = inlined_call_operand.vmem [shape: f32[16], index: 0, kind: input, shape index: {}]   ;;  %s23_s1 = inlined_call_operand.vmem [shape: f32[4,16], index: 1, kind: output, shape index: {}]  }
   0x1   :  { %v4_v0 = vld [vmem:[%s22_s0] ss:$0 sm:$0xff] }
   0x2   :  { %5 = vst [vmem:[%s23_s1] sm:$0xf] %v4_v0 }

// kernel: tile.58
= control target key start
LH: loop header
LB: loop body
LE: loop exit
PB: predicated region body
PF: predicated region fallthrough
CT: control target
= control target key end

     0   :  { %vm7_vm0 = vcmask 130048   ;;  %s37_s8 = smov 16   ;;  %s38_s9 = smov 32   ;;  %vm13_vm1 = vcmask 523648   ;;  %vm19_vm2 = vcmask 392448   ;;  %vm25_vm3 = vcmask 261248   ;;  %s55_s0 = inlined_call_operand.vmem [shape: f32[4,16], index: 0, kind: input, shape index: {}]   ;;  %s56_s1 = inlined_call_operand.vmem [shape: f32[1,64], index: 1, kind: output, shape index: {}]  }
   0x1   :  { %v4_v0 = vld [vmem:[%s55_s0] sm:$0xf]  ;;  %s36_s0 = smov 48  }
   0x2   :  { %5 = vst [vmem:[#allocation1] sm:$0xf] %v4_v0 }
   0x9   :  { %v10_v1 = vld [vmem:[#allocation1 + $0x3] sm:$0x1]   ;;  %v22_v2 = vld [vmem:[#allocation1 + $0x1] sm:$0x1]   ;;  %v6_v3 = vld [vmem:[#allocation1] sm:$0x1]  }
   0xa   :  { %11 = vrot.lane.b32.xlu0 %v10_v1, %s36_s0  ;;  %23 = vrot.lane.b32.xlu1 %v22_v2, %s37_s8  ;;  %v16_v4 = vld [vmem:[#allocation1 + $0x2] sm:$0x1]   ;;  %8 = vst.msk [vmem:[#allocation0] sm:$0x1] %vm7_vm0, %v6_v3  }
   0xe   :  { %17 = vrot.lane.b32.xlu0 %v16_v4, %s38_s9 }
  0x7c   :  { %v12_v5 = vpop.permute.xlu0 %11   ;;  %v24_v6 = vpop.permute.xlu1 %23  }
  0x7d   :  { %14 = vst.msk [vmem:[#allocation0] sm:$0x1] %vm13_vm1, %v12_v5  }
  0x80   :  { %v18_v7 = vpop.permute.xlu0 %17  }
  0x81   :  { %20 = vst.msk [vmem:[#allocation0] sm:$0x1] %vm19_vm2, %v18_v7  }
  0x82   :  { %26 = vst.msk [vmem:[#allocation0] sm:$0x1] %vm25_vm3, %v24_v6  }
  0x89   :  { %v30_v8 = vld [vmem:[#allocation0] sm:$0x1] }
  0x8a   :  { %32 = vst [vmem:[%s56_s1] sm:$0x1] %v30_v8 }

// kernel: basic_layer_up.1
= control target key start
LH: loop header
LB: loop body
LE: loop exit
PB: predicated region body
PF: predicated region fallthrough
CT: control target
= control target key end

     0   :  { %s17970_s0 = inlined_call_operand.vmem [shape: f32[2,64,32], index: 0, kind: input, shape index: {}]   ;;  %s17971_s1 = inlined_call_operand.vmem [shape: f32[2,64,32], index: 1, kind: input, shape index: {}]   ;;  %s17972_s2 = inlined_call_operand.vmem [shape: f32[3,64,64], index: 2, kind: input, shape index: {}]   ;;  %s17973_s3 = inlined_call_operand.vmem [shape: f32[2,32,64], index: 3, kind: input, shape index: {}]   ;;  %s17974_s4 = inlined_call_operand.vmem [shape: f32[2,32,64], index: 4, kind: input, shape index: {}]   ;;  %s17975_s5 = inlined_call_operand.vmem [shape: f32[2,64,32], index: 5, kind: input, shape index: {}]   ;;  %s17976_s6 = inlined_call_operand.vmem [shape: f32[2,32,128], index: 6, kind: input, shape index: {}]   ;;  %s17977_s7 = inlined_call_operand.vmem [shape: f32[2,128,32], index: 7, kind: input, shape index: {}]   ;;  %s17978_s8 = inlined_call_operand.vmem [shape: f32[2,2,64], index: 8, kind: input, shape index: {}]   ;;  %s17979_s9 = inlined_call_operand.vmem [shape: f32[2,8,32], index: 9, kind: input, shape index: {}]   ;;  %s17980_s10 = inlined_call_operand.vmem [shape: f32[2,1,128], index: 10, kind: input, shape index: {}]   ;;  %s17981_s11 = inlined_call_operand.vmem [shape: f32[2,2,4,64,64], index: 11, kind: input, shape index: {}]   ;;  %s17982_s12 = inlined_call_operand.vmem [shape: f32[2,4,1,64], index: 12, kind: input, shape index: {}]   ;;  %s17983_s13 = inlined_call_operand.vmem [shape: f32[32,64], index: 13, kind: input, shape index: {}]   ;;  %s17984_s14 = inlined_call_operand.vmem [shape: f32[2,64], index: 14, kind: input, shape index: {}]   ;;  %s17985_s15 = inlined_call_operand.vmem [shape: f32[64,4], index: 15, kind: input, shape index: {}]   ;;  %s17986_s16 = inlined_call_operand.vmem [shape: f32[4,64], index: 16, kind: input, shape index: {}]   ;;  %s17987_s17 = inlined_call_operand.vmem [shape: f32[32,16], index: 17, kind: input, shape index: {}]   ;;  %s17988_s18 = inlined_call_operand.vmem [shape: f32[256,64], index: 18, kind: input, shape index: {}]   ;;  %s17989_s19 = inlined_call_operand.vmem [shape: f32[2,64,32], index: 19, kind: output, shape index: {0}]   ;;  %s17990_s20 = inlined_call_operand.vmem [shape: f32[2,64,64], index: 20, kind: output, shape index: {1}]   ;;  %s17991_s21 = inlined_call_operand.vmem [shape: f32[2,256,16], index: 21, kind: output, shape index: {2}]  }
   0x1   :  { %18124 = sst [smem:[#allocation49_spill]] %s17970_s0 }
   0x2   :  { %18125 = sst [smem:[#allocation50_spill]] %s17971_s1 }
   0x3   :  { %18126 = sst [smem:[#allocation51_spill]] %s17972_s2  ;;  %s13329_s2 = smov 0  }
   0x4   :  { %18127 = sst [smem:[#allocation52_spill]] %s17973_s3 }
   0x5   :  { %18128 = sst [smem:[#allocation53_spill]] %s17974_s4 }
   0x6   :  { %18129 = sst [smem:[#allocation54_spill]] %s17975_s5 }
   0x7   :  { %18130 = sst [smem:[#allocation55_spill]] %s17991_s21 }
   0x8 LB: > { %18131 = sst [smem:[#allocation2_spill]] %s13217_s2  ;;  %s9818_s25 = sadd.s32 4294967295, %s13217_s2   ;;  %s13217_s2 = sphi %s13329_s2, %s32_s2  }
   0x9   : > { %p9822_p0 = scmp.ge.s32.totalorder %s13217_s2, 1  ;;  %p602_p1 = scmp.lt.s32.totalorder %s13217_s2, 3 }
   0xb   : > { %p603_p2 = pnand %p9822_p0, %p602_p1 }
   0xd   : > { %606 = sbr.rel (%p603_p2) target bundleno = 6613 (0x19d5), region = 96 }
  0x14   : > { %p677_p3 = scmp.lt.s32.totalorder %s9818_s25, 1  ;;  %s18132_s3 = sld [smem:[#allocation51_spill]]  ;;  %vm726_vm0 = vcmask 523264   ;;  %vm978_vm1 = vcmask 261120   ;;  %v9849_v60 = vld [vmem:[%s17978_s8] ss:$0 sm:$0xff] }
  0x15   : > { %s18133_s4 = sld [smem:[#allocation49_spill]]  ;;  %s18134_s23 = sld [smem:[#allocation50_spill]]  ;;  %vm13618_vm2 = vmpackc.low %vm726_vm0, %vm726_vm0  ;;  %vm2309_vm3 = vcmask 130112   ;;  %vm2316_vm4 = vcmask 195712   ;;  %vm2323_vm5 = vcmask 261312   ;;  %vm2330_vm6 = vcmask 326912  }
  0x16   : > { %s18319_s25 = smov (!%p677_p3, %s9818_s25), 1  ;;  %s18135_s0 = sld [smem:[#allocation52_spill]]  ;;  %vm2337_vm7 = vcmask 392512   ;;  %vm2344_vm8 = vcmask 458112   ;;  %vm2351_vm9 = vcmask 523712   ;;  %vm8733_vm10 = vcmask 1043456  }
  0x17   : > { %s13347_s28 = sshll.u32 %s18319_s25, 6  ;;  %s18214_s22 = sld [smem:[#allocation54_spill]]  ;;  %vm8708_vm11 = vcmask 31744   ;;  %vm9652_vm12 = vcmask 130048  }
  0x18   : > { %s17873_s27 = scalar_lea.vmem %s17990_s20, %s13347_s28 }
  0x1a   : > { %v13340_v0 = vld [vmem:[%s18132_s3] sm:$0xff]  ;;  %v711_v18 = vld [vmem:[%s18132_s3 + $0x8] sm:$0xff]  ;;  %v712_v19 = vld [vmem:[%s18132_s3 + $0x10] sm:$0xff] }
  0x1b   : > { %11027 = vmatprep.mubr.msk.f32.mxu0 %vm726_vm0, %v13340_v0  ;;  %s681_s30 = scalar_lea.vmem %s18133_s4, %s13347_s28  ;;  %s686_s1 = scalar_lea.vmem %s18134_s23, %s13347_s28  ;;  %v713_v23 = vld [vmem:[%s18132_s3 + $0x18] sm:$0xff]  ;;  %v714_v24 = vld [vmem:[%s18132_s3 + $0x20] sm:$0xff]  ;;  %v715_v28 = vld [vmem:[%s18132_s3 + $0x28] sm:$0xff] }
  0x1c   : > { %v718_v1 = vld [vmem:[%s681_s30] sm:$0xff]  ;;  %v719_v2 = vld [vmem:[%s681_s30 + $0x8] sm:$0xff]  ;;  %v720_v3 = vld [vmem:[%s681_s30 + $0x10] sm:$0xff]  ;;  %s691_s23 = scalar_lea.vmem %s17989_s19, %s13347_s28  ;;  %s10408_s28 = sshll.u32 %s18319_s25, 8 }
  0x1d   : > { %v12051_v4 = vpack.c.bf16 %v719_v2, %v718_v1  ;;  %v721_v5 = vld [vmem:[%s681_s30 + $0x18] sm:$0xff]  ;;  %v722_v7 = vld [vmem:[%s681_s30 + $0x20] sm:$0xff]  ;;  %v723_v8 = vld [vmem:[%s681_s30 + $0x28] sm:$0xff] }
  0x1e   : > { %v12055_v6 = vpack.c.bf16 %v721_v5, %v720_v3  ;;  %v12059_v9 = vpack.c.bf16 %v723_v8, %v722_v7  ;;  %v724_v10 = vld [vmem:[%s681_s30 + $0x30] sm:$0xff]  ;;  %v725_v11 = vld [vmem:[%s681_s30 + $0x38] sm:$0xff]  ;;  %v856_v13 = vld [vmem:[%s686_s1] sm:$0xff]  ;;  %s18316_s30 = sld [smem:[#allocation55_spill]] }
  0x1f   : > { %12052 = vmatprep.subr.bf16.mxu0 %v12051_v4  ;;  %v12063_v12 = vpack.c.bf16 %v725_v11, %v724_v10  ;;  %v857_v14 = vld [vmem:[%s686_s1 + $0x8] sm:$0xff]  ;;  %v858_v16 = vld [vmem:[%s686_s1 + $0x10] sm:$0xff]  ;;  %v859_v17 = vld [vmem:[%s686_s1 + $0x18] sm:$0xff] }
  0x20   : > { %12054 = vmatpush3.bf16.msra.mxu0 %v12051_v4  ;;  %v12067_v15 = vpack.c.bf16 %v857_v14, %v856_v13  ;;  %v12071_v20 = vpack.c.bf16 %v859_v17, %v858_v16  ;;  %v860_v21 = vld [vmem:[%s686_s1 + $0x20] sm:$0xff]  ;;  %v861_v22 = vld [vmem:[%s686_s1 + $0x28] sm:$0xff]  ;;  %v862_v26 = vld [vmem:[%s686_s1 + $0x30] sm:$0xff] }
  0x21   : > { %12056 = vmatprep.subr.bf16.mxu0 %v12055_v6  ;;  %v12075_v25 = vpack.c.bf16 %v861_v22, %v860_v21  ;;  %v863_v27 = vld [vmem:[%s686_s1 + $0x38] sm:$0xff]  ;;  %v716_v29 = vld [vmem:[%s18132_s3 + $0x30] sm:$0xff]  ;;  %v969_v31 = vld [vmem:[%s18135_s0] sm:$0xff]  ;;  %s18136_s1 = sld [smem:[#allocation53_spill]] }
  0x22   : > { %v12079_v30 = vpack.c.bf16 %v863_v27, %v862_v26  ;;  %v970_v32 = vld [vmem:[%s18135_s0 + $0x8] sm:$0xff]  ;;  %v717_v33 = vld [vmem:[%s18132_s3 + $0x38] sm:$0xff]  ;;  %v971_v35 = vld [vmem:[%s18135_s0 + $0x10] sm:$0xff] }
  0x23   : > { %v12083_v34 = vpack.c.bf16 %v970_v32, %v969_v31  ;;  %v972_v36 = vld [vmem:[%s18135_s0 + $0x18] sm:$0xff]  ;;  %v13488_v1 = vld [vmem:[%s17982_s12] ss:$0 sm:$0xff]  ;;  %v13495_v3 = vld [vmem:[%s17982_s12 + $0x1] ss:$0 sm:$0xff] }
  0x24   : > { %12058 = vmatpush3.bf16.msra.mxu0 %v12055_v6  ;;  %v12087_v37 = vpack.c.bf16 %v972_v36, %v971_v35  ;;  %s17897_s5 = scalar_lea.vmem %s18316_s30, %s10408_s28 }
  0x25   : > { %12060 = vmatprep.subr.bf16.mxu0 %v12059_v9 }
  0x27   : > { %v1116_v38 = vld [vmem:[%s18136_s1] sm:$0xff]  ;;  %v1117_v39 = vld [vmem:[%s18136_s1 + $0x8] sm:$0xff]  ;;  %v1118_v41 = vld [vmem:[%s18136_s1 + $0x10] sm:$0xff] }
  0x28   : > { %12062 = vmatpush3.bf16.msra.mxu0 %v12059_v9  ;;  %v12091_v40 = vpack.c.bf16 %v1117_v39, %v1116_v38  ;;  %v1119_v42 = vld [vmem:[%s18136_s1 + $0x18] sm:$0xff] }
  0x29   : > { %12064 = vmatprep.subr.bf16.mxu0 %v12063_v12  ;;  %v12095_v43 = vpack.c.bf16 %v1119_v42, %v1118_v41 }
  0x2a   : > { %12092 = vmatprep.subr.bf16.mxu1 %v12091_v40 }
  0x2b   : > { %12094 = vmatpush3.bf16.msra.mxu1 %v12091_v40 }
  0x2c   : > { %12066 = vmatpush3.bf16.msra.mxu0 %v12063_v12  ;;  %12096 = vmatprep.subr.bf16.mxu1 %v12095_v43 }
  0x2d   : > { %12068 = vmatprep.subr.bf16.mxu0 %v12067_v15 }
  0x2f   : > { %11028 = vmatmul.mubr.msk.f32.vlgmr.msra.gmra.mrb[0].mxu0 %vm726_vm0, %v711_v18  ;;  %12098 = vmatpush3.bf16.msra.mxu1 %v12095_v43 }
  0x30   : > { %12070 = vmatpush3.bf16.msra.mxu0 %v12067_v15  ;;  %11030 = vmatprep.mubr.msk.f32.mxu0 %vm726_vm0, %v712_v19 }
  0x31   : > { %12072 = vmatprep.subr.bf16.mxu0 %v12071_v20 }
  0x33   : > { %11031 = vmatmul.mubr.msk.f32.gmra.mrb[2].mxu0 %vm726_vm0, %v713_v23 }
  0x34   : > { %12074 = vmatpush3.bf16.msra.mxu0 %v12071_v20  ;;  %11033 = vmatprep.mubr.msk.f32.mxu0 %vm726_vm0, %v714_v24 }
  0x35   : > { %12076 = vmatprep.subr.bf16.mxu0 %v12075_v25 }
  0x37   : > { %11034 = vmatmul.mubr.msk.f32.gmra.mrb[4].mxu0 %vm726_vm0, %v715_v28 }
  0x38   : > { %12078 = vmatpush3.bf16.msra.mxu0 %v12075_v25  ;;  %11036 = vmatprep.mubr.msk.f32.mxu0 %vm726_vm0, %v716_v29 }
  0x39   : > { %12080 = vmatprep.subr.bf16.mxu0 %v12079_v30 }
  0x3b   : > { %11037 = vmatmul.mubr.msk.f32.gmra.mrb[6].mxu0 %vm726_vm0, %v717_v33 }
  0x3c   : > { %12082 = vmatpush3.bf16.msra.mxu0 %v12079_v30  ;;  %11055 = vmatprep.mubr.msk.f32.mxu0 %vm726_vm0, %v13340_v0 }
  0x3d   : > { %12084 = vmatprep.subr.bf16.mxu0 %v12083_v34 }
  0x3f   : > { %11056 = vmatmul.mubr.msk.f32.vlgmr.msra.gmra.mrb[8].mxu0 %vm726_vm0, %v711_v18 }
  0x40   : > { %11058 = vmatprep.mubr.msk.f32.mxu0 %vm726_vm0, %v712_v19  ;;  %12086 = vmatpush3.bf16.msra.mxu0 %v12083_v34 }
  0x41   : > { %12088 = vmatprep.subr.bf16.mxu0 %v12087_v37 }
  0x43   : > { %11059 = vmatmul.mubr.msk.f32.gmra.mrb[10].mxu0 %vm726_vm0, %v713_v23 }
  0x44   : > { %11061 = vmatprep.mubr.msk.f32.mxu0 %vm726_vm0, %v714_v24  ;;  %12090 = vmatpush3.bf16.msra.mxu0 %v12087_v37  ;;  %v13550_v37 = vld [vmem:[%s17978_s8 + $0x1] ss:$0 sm:$0xff] }
  0x47   : > { %11062 = vmatmul.mubr.msk.f32.gmra.mrb[12].mxu0 %vm726_vm0, %v715_v28 }
  0x48   : > { %11064 = vmatprep.mubr.msk.f32.mxu0 %vm726_vm0, %v716_v29 }
  0x4b   : > { %11065 = vmatmul.mubr.msk.f32.gmra.mrb[14].mxu0 %vm726_vm0, %v717_v33 }
 0x102   : > { %v13418_v44 = vpop.f32.mrb[0].mxu0 }
 0x103   : > { %18137 = vst [vmem:[#allocation3_spill] sm:$0xff] %v13418_v44  ;;  %v13420_v45 = vpop.f32.mrb[1].mxu0 }
 0x104   : > { %18138 = vst [vmem:[#allocation4_spill] sm:$0xff] %v13420_v45  ;;  %11075 = vmatprep.mubr.msk.f32.mxu0 %vm978_vm1, %v13420_v45 }
 0x105   : > { %11076 = vmatmul.mubr.msk.f32.vlgmr.msra.gmra.mrb[16].mxu0 %vm978_vm1, %v13418_v44 }
 0x106   : > { %v13426_v46 = vpop.f32.mrb[2].mxu0 }
 0x107   : > { %18139 = vst [vmem:[#allocation5_spill] sm:$0xff] %v13426_v46  ;;  %v13428_v47 = vpop.f32.mrb[3].mxu0 }
 0x108   : > { %18140 = vst [vmem:[#allocation6_spill] sm:$0xff] %v13428_v47  ;;  %11078 = vmatprep.mubr.msk.f32.mxu0 %vm978_vm1, %v13428_v47 }
 0x109   : > { %11079 = vmatmul.mubr.msk.f32.gmra.mrb[18].mxu0 %vm978_vm1, %v13426_v46 }
 0x10a   : > { %v13434_v48 = vpop.f32.mrb[4].mxu0 }
 0x10b   : > { %18141 = vst [vmem:[#allocation7_spill] sm:$0xff] %v13434_v48  ;;  %v13436_v49 = vpop.f32.mrb[5].mxu0 }
 0x10c   : > { %18142 = vst [vmem:[#allocation8_spill] sm:$0xff] %v13436_v49  ;;  %11081 = vmatprep.mubr.msk.f32.mxu0 %vm978_vm1, %v13436_v49 }
 0x10d   : > { %11082 = vmatmul.mubr.msk.f32.gmra.mrb[20].mxu0 %vm978_vm1, %v13434_v48 }
 0x10e   : > { %v13442_v50 = vpop.f32.mrb[6].mxu0 }
 0x10f   : > { %18143 = vst [vmem:[#allocation9_spill] sm:$0xff] %v13442_v50  ;;  %v13444_v51 = vpop.f32.mrb[7].mxu0 }
 0x110   : > { %18144 = vst [vmem:[#allocation10_spill] sm:$0xff] %v13444_v51  ;;  %11084 = vmatprep.mubr.msk.f32.mxu0 %vm978_vm1, %v13444_v51 }
 0x111   : > { %11085 = vmatmul.mubr.msk.f32.gmra.mrb[22].mxu0 %vm978_vm1, %v13442_v50 }
 0x112   : > { %v13450_v52 = vpop.f32.mrb[8].mxu0 }
 0x113   : > { %18145 = vst [vmem:[#allocation11_spill] sm:$0xff] %v13450_v52  ;;  %v13452_v53 = vpop.f32.mrb[9].mxu0 }
 0x114   : > { %18146 = vst [vmem:[#allocation12_spill] sm:$0xff] %v13452_v53  ;;  %11095 = vmatprep.mubr.msk.f32.mxu1 %vm978_vm1, %v13452_v53 }
 0x115   : > { %11096 = vmatmul.mubr.msk.f32.vlgmr.msra.gmra.mrb[0].mxu1 %vm978_vm1, %v13450_v52 }
 0x116   : > { %v13458_v54 = vpop.f32.mrb[10].mxu0 }
 0x117   : > { %18147 = vst [vmem:[#allocation13_spill] sm:$0xff] %v13458_v54  ;;  %v13460_v55 = vpop.f32.mrb[11].mxu0 }
 0x118   : > { %18148 = vst [vmem:[#allocation14_spill] sm:$0xff] %v13460_v55  ;;  %11098 = vmatprep.mubr.msk.f32.mxu1 %vm978_vm1, %v13460_v55 }
 0x119   : > { %11099 = vmatmul.mubr.msk.f32.gmra.mrb[2].mxu1 %vm978_vm1, %v13458_v54 }
 0x11a   : > { %v13466_v56 = vpop.f32.mrb[12].mxu0 }
 0x11b   : > { %18149 = vst [vmem:[#allocation15_spill] sm:$0xff] %v13466_v56  ;;  %v13468_v57 = vpop.f32.mrb[13].mxu0 }
 0x11c   : > { %18150 = vst [vmem:[#allocation16_spill] sm:$0xff] %v13468_v57  ;;  %11101 = vmatprep.mubr.msk.f32.mxu1 %vm978_vm1, %v13468_v57 }
 0x11d   : > { %11102 = vmatmul.mubr.msk.f32.gmra.mrb[4].mxu1 %vm978_vm1, %v13466_v56 }
 0x11e   : > { %v13474_v58 = vpop.f32.mrb[14].mxu0 }
 0x11f   : > { %18151 = vst [vmem:[#allocation17_spill] sm:$0xff] %v13474_v58  ;;  %v13476_v59 = vpop.f32.mrb[15].mxu0 }
 0x120   : > { %18152 = vst [vmem:[#allocation18_spill] sm:$0xff] %v13476_v59  ;;  %11104 = vmatprep.mubr.msk.f32.mxu1 %vm978_vm1, %v13476_v59 }
 0x121   : > { %11105 = vmatmul.mubr.msk.f32.gmra.mrb[6].mxu1 %vm978_vm1, %v13474_v58 }
 0x1d8   : > { %v11077_v61 = vpop.f32.mrb[16].mxu0 }
 0x1d9   : > { %v1075_v62 = vadd.f32 %v11077_v61, %v9849_v60  ;;  %v1069_v63 = vpop.f32.mrb[17].mxu0 }
 0x1da   : > { %v1070_v0 = vadd.f32 %v9849_v60, %v1069_v63 }
 0x1db   : > { %v13490_v2 = vmul.f32 0.35355338, %v1075_v62 }
 0x1dc   : > { %v13497_v4 = vmul.f32 0.35355338, %v1070_v0  ;;  %v11080_v5 = vpop.f32.mrb[18].mxu0 }
 0x1dd   : > { %18153 = vst [vmem:[#allocation19_spill] sm:$0xff] %v13490_v2  ;;  %v1085_v6 = vadd.f32 %v11080_v5, %v9849_v60  ;;  %v1079_v7 = vpop.f32.mrb[19].mxu0  ;;  %v13501_v8 = vmul.f32 %v13488_v1, %v13490_v2  ;;  %v13509_v12 = vmul.f32 %v13495_v3, %v13490_v2 }
 0x1de   : > { %v1080_v9 = vadd.f32 %v9849_v60, %v1079_v7  ;;  %v1278_v10 = vmul.f32 %v13488_v1, %v13497_v4  ;;  %v1286_v11 = vmul.f32 %v13495_v3, %v13497_v4 }
 0x1df   : > { %v13511_v13 = vmul.f32 0.35355338, %v1085_v6  ;;  %v2011_v14 = vmul.f32 %v13501_v8, %v13501_v8  ;;  %v2019_v18 = vmul.f32 %v13509_v12, %v13509_v12 }
 0x1e0   : > { %v13515_v15 = vmul.f32 0.35355338, %v1080_v9  ;;  %v11083_v16 = vpop.f32.mrb[20].mxu0  ;;  %11123 = vmatprep.mubr.msk.f32.mxu0 %vm726_vm0, %v1278_v10  ;;  %11151 = vmatprep.mubr.msk.f32.mxu1 %vm726_vm0, %v1286_v11  ;;  %v2010_v17 = vmul.f32 %v1278_v10, %v1278_v10  ;;  %v2018_v25 = vmul.f32 %v1286_v11, %v1286_v11  ;;  %v13580_v10 = vld [vmem:[%s17982_s12 + $0x2] ss:$0 sm:$0xff] }
 0x1e1   : > { %18154 = vst [vmem:[#allocation20_spill] sm:$0xff] %v13511_v13  ;;  %v1095_v19 = vadd.f32 %v11083_v16, %v9849_v60  ;;  %v1089_v20 = vpop.f32.mrb[21].mxu0  ;;  %v2045_v21 = vsel %vm726_vm0, %v2011_v14, 0.0  ;;  %v13524_v22 = vmul.f32 %v13488_v1, %v13511_v13  ;;  %v13528_v23 = vmul.f32 %v13495_v3, %v13511_v13 }
 0x1e2   : > { %18155 = vst [vmem:[#allocation21_spill] sm:$0xff] %v13515_v15  ;;  %2046 = vadd.xlane.f32.xlu1 %v2045_v21  ;;  %v2042_v24 = vsel %vm726_vm0, %v2010_v17, 0.0  ;;  %v1090_v26 = vadd.f32 %v9849_v60, %v1089_v20  ;;  %v13533_v27 = vmul.f32 %v13488_v1, %v13515_v15  ;;  %v2069_v29 = vsel %vm726_vm0, %v2019_v18, 0.0 }
 0x1e3   : > { %2043 = vadd.xlane.f32.xlu0 %v2042_v24  ;;  %v2013_v30 = vmul.f32 %v13524_v22, %v13524_v22  ;;  %v13538_v31 = vmul.f32 0.35355338, %v1095_v19  ;;  %v2021_v34 = vmul.f32 %v13528_v23, %v13528_v23  ;;  %v13544_v35 = vmul.f32 %v13495_v3, %v13515_v15 }
 0x1e4   : > { %v11086_v28 = vpop.f32.mrb[22].mxu0  ;;  %v2066_v36 = vsel %vm726_vm0, %v2018_v25, 0.0  ;;  %v2012_v38 = vmul.f32 %v13533_v27, %v13533_v27  ;;  %v13554_v39 = vmul.f32 0.35355338, %v1090_v26 }
 0x1e5   : > { %18156 = vst [vmem:[#allocation22_spill] sm:$0xff] %v13538_v31  ;;  %v1105_v32 = vadd.f32 %v11086_v28, %v9849_v60  ;;  %v1099_v33 = vpop.f32.mrb[23].mxu0  ;;  %v2051_v42 = vsel %vm726_vm0, %v2013_v30, 0.0  ;;  %v2075_v62 = vsel %vm726_vm0, %v2021_v34, 0.0  ;;  %v2020_v63 = vmul.f32 %v13544_v35, %v13544_v35 }
 0x1e6   : > { %2070 = vadd.xlane.f32.xlu1 %v2069_v29  ;;  %18157 = vst [vmem:[#allocation23_spill] sm:$0xff] %v13554_v39  ;;  %v13567_v0 = vmul.f32 %v13495_v3, %v13538_v31  ;;  %v1100_v5 = vadd.f32 %v9849_v60, %v1099_v33  ;;  %v2048_v7 = vsel %vm726_vm0, %v2012_v38, 0.0  ;;  %v13575_v9 = vmul.f32 %v13488_v1, %v13538_v31 }
 0x1e7   : > { %2067 = vadd.xlane.f32.xlu0 %v2066_v36  ;;  %v13556_v40 = vmul.f32 0.35355338, %v1105_v32  ;;  %v13590_v14 = vmul.f32 %v13488_v1, %v13554_v39  ;;  %v13594_v16 = vmul.f32 %v13495_v3, %v13554_v39  ;;  %v2072_v26 = vsel %vm726_vm0, %v2020_v63, 0.0 }
 0x1e8   : > { %v11097_v41 = vpop.f32.mrb[0].mxu1  ;;  %v18159_v28 = vmov 0  ;;  %v2023_v29 = vmul.f32 %v13567_v0, %v13567_v0  ;;  %v2015_v36 = vmul.f32 %v13575_v9, %v13575_v9 }
 0x1e9   : > { %18158 = vst [vmem:[#allocation24_spill] sm:$0xff] %v13556_v40  ;;  %v13560_v43 = vadd.f32 %v11097_v41, %v13550_v37  ;;  %v1215_v61 = vpop.f32.mrb[1].mxu1  ;;  %v13606_v20 = vmul.f32 %v13488_v1, %v13556_v40  ;;  %v18160_v28 = vsel %vm13618_vm2, 4294967295, %v18159_v28  ;;  %v13715_v52 = vmul.f32 %v13495_v3, %v13556_v40 }
 0x1ea   : > { %v13570_v6 = vadd.f32 %v13550_v37, %v1215_v61  ;;  %2052 = vadd.xlane.f32.xlu1 %v2051_v42  ;;  %18161 = vst [vmem:[#allocation25_spill] sm:$0xff] %v18160_v28  ;;  %v2014_v42 = vmul.f32 %v13590_v14, %v13590_v14  ;;  %v2057_v55 = vsel %vm726_vm0, %v2015_v36, 0.0  ;;  %v2022_v51 = vmul.f32 %v13594_v16, %v13594_v16 }
 0x1eb   : > { %2049 = vadd.xlane.f32.xlu0 %v2048_v7  ;;  %v13584_v11 = vmul.f32 %v13488_v1, %v13560_v43  ;;  %v1319_v60 = vmul.f32 %v13495_v3, %v13560_v43  ;;  %v1327_v30 = vmul.f32 %v13580_v10, %v13560_v43 }
 0x1ec   : > { %v11100_v17 = vpop.f32.mrb[2].mxu1  ;;  %v13598_v18 = vmul.f32 %v13488_v1, %v13570_v6  ;;  %v13602_v19 = vmul.f32 %v13495_v3, %v13570_v6  ;;  %v13610_v21 = vmul.f32 %v13580_v10, %v13570_v6  ;;  %v2054_v46 = vsel %vm726_vm0, %v2014_v42, 0.0 }
 0x1ed   : > { %v13613_v24 = vadd.f32 %v11100_v17, %v13550_v37  ;;  %v1225_v25 = vpop.f32.mrb[3].mxu1  ;;  %v2147_v50 = vmul.f32 %v1319_v60, %v1319_v60  ;;  %v2025_v42 = vmul.f32 %v13715_v52, %v13715_v52  ;;  %v2078_v31 = vsel %vm726_vm0, %v2022_v51, 0.0 }
 0x1ee   : > { %v13627_v32 = vadd.f32 %v13550_v37, %v1225_v25  ;;  %2076 = vadd.xlane.f32.xlu1 %v2075_v62  ;;  %v12099_v33 = vpack.c.bf16 %v13584_v11, %v13598_v18  ;;  %v12123_v34 = vpack.c.bf16 %v1319_v60, %v13602_v19  ;;  %v13645_v61 = vpack.c.bf16 %v1327_v30, %v13610_v21  ;;  %v13650_v62 = vld [vmem:[%s17982_s12 + $0x3] ss:$0 sm:$0xff] }
 0x1ef   : > { %2073 = vadd.xlane.f32.xlu0 %v2072_v26  ;;  %v13636_v38 = vmul.f32 %v13488_v1, %v13613_v24  ;;  %v13640_v41 = vmul.f32 %v13495_v3, %v13613_v24  ;;  %v2017_v25 = vmul.f32 %v13606_v20, %v13606_v20  ;;  %v2081_v26 = vsel %vm726_vm0, %v2023_v29, 0.0 }
 0x1f0   : > { %12101 = vmatprep.subr.msk.bf16.mxu0 %vm13618_vm2, %v12099_v33  ;;  %12125 = vmatprep.subr.msk.bf16.mxu1 %vm13618_vm2, %v12123_v34  ;;  %v11103_v63 = vpop.f32.mrb[4].mxu1  ;;  %v13658_v7 = vmul.f32 %v13488_v1, %v13627_v32  ;;  %v13662_v17 = vmul.f32 %v13495_v3, %v13627_v32  ;;  %v13676_v57 = vmul.f32 %v13650_v62, %v13570_v6 }
 0x1f1   : > { %12104 = vmatpush3.bf16.xpose.msk.msra.mxu0 %vm13618_vm2, %v12099_v33  ;;  %12128 = vmatpush3.bf16.xpose.msk.msra.mxu1 %vm13618_vm2, %v12123_v34  ;;  %v13672_v59 = vadd.f32 %v11103_v63, %v13550_v37  ;;  %v1235_v58 = vpop.f32.mrb[5].mxu1  ;;  %v1335_v56 = vmul.f32 %v13650_v62, %v13560_v43  ;;  %v1329_v40 = vmul.f32 %v13580_v10, %v13613_v24 }
 0x1f2   : > { %2082 = vadd.xlane.f32.xlu1 %v2081_v26  ;;  %v12105_v33 = vpack.c.bf16 %v13636_v38, %v13658_v7  ;;  %v12129_v29 = vpack.c.bf16 %v13640_v41, %v13662_v17  ;;  %v13686_v34 = vadd.f32 %v13550_v37, %v1235_v58  ;;  %v13699_v26 = vmul.f32 0.35355338, %v1100_v5 }
 0x1f3   : > { %2058 = vadd.xlane.f32.xlu0 %v2057_v55  ;;  %v13690_v63 = vmul.f32 %v13488_v1, %v13672_v59  ;;  %v13694_v54 = vmul.f32 %v13495_v3, %v13672_v59  ;;  %v13697_v36 = vpack.c.bf16 %v1335_v56, %v13676_v57  ;;  %v2063_v5 = vsel %vm726_vm0, %v2017_v25, 0.0 }
 0x1f4   : > { %18162 = vst [vmem:[#allocation26_spill] sm:$0xff] %v13699_v26  ;;  %12107 = vmatprep.subr.msk.bf16.mxu0 %vm13618_vm2, %v12105_v33  ;;  %12131 = vmatprep.subr.msk.bf16.mxu1 %vm13618_vm2, %v12129_v29  ;;  %v11106_v55 = vpop.f32.mrb[6].mxu1  ;;  %v13707_v58 = vmul.f32 %v13488_v1, %v13686_v34  ;;  %v13711_v53 = vmul.f32 %v13495_v3, %v13686_v34 }
 0x1f5   : > { %v13721_v48 = vadd.f32 %v11106_v55, %v13550_v37  ;;  %v1245_v49 = vpop.f32.mrb[7].mxu1  ;;  %v13778_v51 = vmul.f32 %v13650_v62, %v13627_v32  ;;  %v13794_v13 = vmul.f32 %v13495_v3, %v13699_v26 }
 0x1f6   : > { %18163 = vst [vmem:[#allocation27_spill] sm:$0xff] %v13707_v58  ;;  %18164 = vst [vmem:[#allocation28_spill] sm:$0xff] %v13711_v53  ;;  %2064 = vadd.xlane.f32.xlu1 %v2063_v5  ;;  %v12111_v47 = vpack.c.bf16 %v13690_v63, %v13707_v58  ;;  %v12135_v44 = vpack.c.bf16 %v13694_v54, %v13711_v53  ;;  %v13729_v45 = vadd.f32 %v13550_v37, %v1245_v49 }
 0x1f7   : > { %2055 = vadd.xlane.f32.xlu0 %v2054_v46  ;;  %v13733_v60 = vmul.f32 %v13488_v1, %v13721_v48  ;;  %v13737_v25 = vmul.f32 %v13495_v3, %v13721_v48  ;;  %v2197_v46 = vsel %vm726_vm0, %v2147_v50, 0.0  ;;  %v2155_v37 = vmul.f32 %v1327_v30, %v1327_v30 }
 0x1f8   : > { %v13743_v55 = vmul.f32 %v13488_v1, %v13729_v45  ;;  %v13747_v49 = vmul.f32 %v13495_v3, %v13729_v45  ;;  %v13756_v5 = vmul.f32 %v13580_v10, %v13627_v32  ;;  %v13851_v15 = vmul.f32 %v13650_v62, %v13721_v48 }
 0x1f9   : > { %18165 = vst [vmem:[#allocation29_spill] sm:$0xff] %v13733_v60  ;;  %18166 = vst [vmem:[#allocation30_spill] sm:$0xff] %v13737_v25  ;;  %12110 = vmatpush3.bf16.xpose.msk.msra.mxu0 %vm13618_vm2, %v12105_v33  ;;  %12134 = vmatpush3.bf16.xpose.msk.msra.mxu1 %vm13618_vm2, %v12129_v29  ;;  %v13765_v33 = vmul.f32 %v13488_v1, %v13699_v26  ;;  %v13782_v1 = vmul.f32 %v13650_v62, %v13613_v24 }
 0x1fa   : > { %18167 = vst [vmem:[#allocation31_spill] sm:$0xff] %v13743_v55  ;;  %18168 = vst [vmem:[#allocation32_spill] sm:$0xff] %v13747_v49  ;;  %2198 = vadd.xlane.f32.xlu1 %v2197_v46  ;;  %12113 = vmatprep.subr.msk.bf16.mxu0 %vm13618_vm2, %v12111_v47  ;;  %v12117_v50 = vpack.c.bf16 %v13733_v60, %v13743_v55  ;;  %v12141_v30 = vpack.c.bf16 %v13737_v25, %v13747_v49  ;;  %v2221_v46 = vsel %vm726_vm0, %v2155_v37, 0.0  ;;  %v9872_v25 = vld [vmem:[%s17982_s12 + $0x5] ss:$0 sm:$0xff] }
 0x1fb   : > { %2079 = vadd.xlane.f32.xlu0 %v2078_v31  ;;  %12137 = vmatprep.subr.msk.bf16.mxu1 %vm13618_vm2, %v12135_v44  ;;  %v13774_v29 = vpack.c.bf16 %v1329_v40, %v13756_v5  ;;  %v2163_v55 = vmul.f32 %v1335_v56, %v1335_v56  ;;  %v13787_v31 = vmul.f32 %v13580_v10, %v13686_v34  ;;  %v2087_v49 = vsel %vm726_vm0, %v2025_v42, 0.0 }
 0x1fc   : > { %v2016_v39 = vmul.f32 %v13765_v33, %v13765_v33  ;;  %v13798_v60 = vpack.c.bf16 %v13782_v1, %v13778_v51  ;;  %v13802_v56 = vmul.f32 %v13580_v10, %v13672_v59  ;;  %v13806_v37 = vmul.f32 %v13650_v62, %v13686_v34 }
 0x1fd   : > { %18169 = vst [vmem:[#allocation33_spill] sm:$0xff] %v13787_v31  ;;  %v13810_v42 = vmul.f32 %v13650_v62, %v13672_v59  ;;  %v2245_v3 = vsel %vm726_vm0, %v2163_v55, 0.0  ;;  %v9871_v55 = vld [vmem:[%s17982_s12 + $0x4] ss:$0 sm:$0xff]  ;;  %v2149_v53 = vmul.f32 %v13640_v41, %v13640_v41 }
 0x1fe   : > { %2222 = vadd.xlane.f32.xlu1 %v2221_v46  ;;  %18170 = vst [vmem:[#allocation34_spill] sm:$0xff] %v13802_v56  ;;  %18171 = vst [vmem:[#allocation35_spill] sm:$0xff] %v13806_v37  ;;  %v13821_v46 = vpack.c.bf16 %v13802_v56, %v13787_v31  ;;  %v2060_v26 = vsel %vm726_vm0, %v2016_v39, 0.0  ;;  %v13843_v39 = vmul.f32 %v13580_v10, %v13721_v48 }
 0x1ff   : > { %2088 = vadd.xlane.f32.xlu0 %v2087_v49  ;;  %v2141_v49 = vmul.f32 %v13636_v38, %v13636_v38  ;;  %v13834_v38 = vmul.f32 %v13580_v10, %v13729_v45  ;;  %v1367_v31 = vmul.f32 %v9871_v55, %v13560_v43  ;;  %v2139_v56 = vmul.f32 %v13584_v11, %v13584_v11 }
 0x200   : > { %18173 = vst [vmem:[#allocation37_spill] sm:$0xff] %v13843_v39  ;;  %v1368_v41 = vmul.f32 %v9871_v55, %v13627_v32 }
 0x201   : > { %12116 = vmatpush3.bf16.xpose.msk.msra.mxu0 %vm13618_vm2, %v12111_v47  ;;  %12140 = vmatpush3.bf16.xpose.msk.msra.mxu1 %vm13618_vm2, %v12135_v44  ;;  %v2024_v47 = vmul.f32 %v13794_v13, %v13794_v13  ;;  %v13830_v44 = vpack.c.bf16 %v13810_v42, %v13806_v37  ;;  %18172 = vst [vmem:[#allocation36_spill] sm:$0xff] %v13834_v38 }
 0x202   : > { %2246 = vadd.xlane.f32.xlu1 %v2245_v3  ;;  %12119 = vmatprep.subr.msk.bf16.mxu0 %vm13618_vm2, %v12117_v50  ;;  %v13847_v3 = vmul.f32 %v13650_v62, %v13729_v45  ;;  %v13859_v2 = vpack.c.bf16 %v13843_v39, %v13834_v38  ;;  %v1366_v37 = vmul.f32 %v9871_v55, %v13570_v6 }
 0x203   : > { %2061 = vadd.xlane.f32.xlu0 %v2060_v26  ;;  %12143 = vmatprep.subr.msk.bf16.mxu1 %vm13618_vm2, %v12141_v30  ;;  %v2179_v26 = vsel %vm726_vm0, %v2141_v49, 0.0  ;;  %v2084_v58 = vsel %vm726_vm0, %v2024_v47, 0.0  ;;  %v1374_v39 = vmul.f32 %v9872_v25, %v13570_v6  ;;  %v2138_v47 = vmul.f32 %v13598_v18, %v13598_v18 }
 0x204   : > { %18174 = vst [vmem:[#allocation38_spill] sm:$0xff] %v13847_v3  ;;  %18175 = vst [vmem:[#allocation39_spill] sm:$0xff] %v13859_v2  ;;  %v13870_v49 = vpack.c.bf16 %v13851_v15, %v13847_v3  ;;  %v13872_v38 = vpack.c.bf16 %v1367_v31, %v1366_v37  ;;  %v1375_v2 = vmul.f32 %v9872_v25, %v13560_v43  ;;  %v2173_v18 = vsel %vm726_vm0, %v2139_v56, 0.0 }
 0x205   : > { %v2170_v37 = vsel %vm726_vm0, %v2138_v47, 0.0  ;;  %v1370_v3 = vmul.f32 %v9871_v55, %v13686_v34  ;;  %v1371_v56 = vmul.f32 %v9871_v55, %v13672_v59 }
 0x206   : > { %2180 = vadd.xlane.f32.xlu1 %v2179_v26  ;;  %v2157_v26 = vmul.f32 %v1329_v40, %v1329_v40  ;;  %v13882_v11 = vpack.c.bf16 %v1375_v2, %v1374_v39  ;;  %v2203_v40 = vsel %vm726_vm0, %v2149_v53, 0.0  ;;  %v2165_v53 = vmul.f32 %v13782_v1, %v13782_v1 }
 0x207   : > { %2085 = vadd.xlane.f32.xlu0 %v2084_v58  ;;  %v1369_v58 = vmul.f32 %v9871_v55, %v13613_v24  ;;  %v13914_v47 = vpack.c.bf16 %v1371_v56, %v1370_v3 }
 0x208   : > { %v2227_v31 = vsel %vm726_vm0, %v2157_v26, 0.0  ;;  %v2146_v26 = vmul.f32 %v13602_v19, %v13602_v19  ;;  %v1372_v19 = vmul.f32 %v9871_v55, %v13729_v45 }
 0x209   : > { %12122 = vmatpush3.bf16.xpose.msk.msra.mxu0 %vm13618_vm2, %v12117_v50  ;;  %12146 = vmatpush3.bf16.xpose.msk.msra.mxu1 %vm13618_vm2, %v12141_v30  ;;  %v13894_v2 = vpack.c.bf16 %v1369_v58, %v1368_v41  ;;  %v1376_v50 = vmul.f32 %v9872_v25, %v13627_v32  ;;  %v1377_v30 = vmul.f32 %v9872_v25, %v13613_v24 }
 0x20a   : > { %12149 = vmatprep.subr.msk.bf16.mxu0 %vm13618_vm2, %v13645_v61  ;;  %12173 = vmatprep.subr.msk.bf16.mxu1 %vm13618_vm2, %v13697_v36  ;;  %v1378_v41 = vmul.f32 %v9872_v25, %v13686_v34  ;;  %v1379_v58 = vmul.f32 %v9872_v25, %v13672_v59 }
 0x20b   : > { %2204 = vadd.xlane.f32.xlu1 %v2203_v40  ;;  %2174 = vadd.xlane.f32.xlu0 %v2173_v18  ;;  %v13900_v39 = vpack.c.bf16 %v1377_v30, %v1376_v50  ;;  %v2140_v40 = vmul.f32 %v13658_v7, %v13658_v7  ;;  %v9873_v7 = vld [vmem:[%s17982_s12 + $0x6] ss:$0 sm:$0xff] }
 0x20c   : > { %v13916_v1 = vpack.c.bf16 %v1379_v58, %v1378_v41  ;;  %v1382_v18 = vmul.f32 %v9873_v7, %v13570_v6  ;;  %v1383_v50 = vmul.f32 %v9873_v7, %v13560_v43 }
 0x20d   : > { %v2176_v30 = vsel %vm726_vm0, %v2140_v40, 0.0  ;;  %v18178_v40 = vld [vmem:[#allocation39_spill] sm:$0xff] }
 0x20f   : > { %2228 = vadd.xlane.f32.xlu1 %v2227_v31  ;;  %2171 = vadd.xlane.f32.xlu0 %v2170_v37  ;;  %v2148_v31 = vmul.f32 %v13662_v17, %v13662_v17  ;;  %v13974_v37 = vpack.c.bf16 %v1383_v50, %v1382_v18 }
 0x210   : > { %11124 = vmatmul.mubr.msk.f32.vlgmr.msra.gmra.mrb[24].mxu0 %vm726_vm0, %v13501_v8  ;;  %11152 = vmatmul.mubr.msk.f32.vlgmr.msra.gmra.mrb[8].mxu1 %vm726_vm0, %v13509_v12  ;;  %v2251_v8 = vsel %vm726_vm0, %v2165_v53, 0.0  ;;  %v1373_v12 = vmul.f32 %v9871_v55, %v13721_v48  ;;  %v2154_v55 = vmul.f32 %v13610_v21, %v13610_v21 }
 0x211   : > { %11126 = vmatprep.mubr.msk.f32.mxu0 %vm726_vm0, %v13533_v27  ;;  %11154 = vmatprep.mubr.msk.f32.mxu1 %vm726_vm0, %v13544_v35  ;;  %v1380_v27 = vmul.f32 %v9872_v25, %v13729_v45  ;;  %v1381_v35 = vmul.f32 %v9872_v25, %v13721_v48 }
 0x212   : > { %12152 = vmatpush3.bf16.xpose.msk.msra.mxu0 %vm13618_vm2, %v13645_v61  ;;  %12176 = vmatpush3.bf16.xpose.msk.msra.mxu1 %vm13618_vm2, %v13697_v36  ;;  %v13941_v61 = vld [vmem:[%s17982_s12 + $0x7] ss:$0 sm:$0xff]  ;;  %v2194_v36 = vsel %vm726_vm0, %v2146_v26, 0.0  ;;  %v13952_v25 = vpack.c.bf16 %v1373_v12, %v1372_v19 }
 0x213   : > { %2252 = vadd.xlane.f32.xlu1 %v2251_v8  ;;  %12155 = vmatprep.subr.msk.bf16.mxu0 %vm13618_vm2, %v13774_v29  ;;  %v13954_v3 = vpack.c.bf16 %v1381_v35, %v1380_v27  ;;  %v1390_v21 = vmul.f32 %v13941_v61, %v13570_v6  ;;  %v2162_v6 = vmul.f32 %v13676_v57, %v13676_v57  ;;  %v2200_v57 = vsel %vm726_vm0, %v2148_v31, 0.0  ;;  %v18182_v35 = vld [vmem:[#allocation28_spill] sm:$0xff]  ;;  %v18187_v31 = vld [vmem:[#allocation19_spill] sm:$0xff] }
 0x214   : > { %12179 = vmatprep.subr.msk.bf16.mxu1 %vm13618_vm2, %v13798_v60  ;;  %2195 = vadd.xlane.f32.xlu0 %v2194_v36  ;;  %v1392_v53 = vmul.f32 %v13941_v61, %v13627_v32  ;;  %v1394_v41 = vmul.f32 %v13941_v61, %v13686_v34  ;;  %v1395_v26 = vmul.f32 %v13941_v61, %v13672_v59 }
 0x215   : > { %11127 = vmatmul.mubr.msk.f32.gmra.mrb[26].mxu0 %vm726_vm0, %v13524_v22  ;;  %11155 = vmatmul.mubr.msk.f32.gmra.mrb[10].mxu1 %vm726_vm0, %v13528_v23  ;;  %v1391_v22 = vmul.f32 %v13941_v61, %v13560_v43  ;;  %v2218_v23 = vsel %vm726_vm0, %v2154_v55, 0.0  ;;  %v2156_v43 = vmul.f32 %v13756_v5, %v13756_v5  ;;  %v1384_v5 = vmul.f32 %v9873_v7, %v13627_v32  ;;  %v18184_v55 = vld [vmem:[#allocation27_spill] sm:$0xff] }
 0x216   : > { %11129 = vmatprep.mubr.msk.f32.mxu0 %vm726_vm0, %v13590_v14  ;;  %11157 = vmatprep.mubr.msk.f32.mxu1 %vm726_vm0, %v13594_v16  ;;  %v14012_v16 = vmul.f32 %v13650_v62, %v13497_v4  ;;  %v1396_v8 = vmul.f32 %v13941_v61, %v13729_v45  ;;  %v1397_v12 = vmul.f32 %v13941_v61, %v13721_v48 }
 0x217   : > { %2177 = vadd.xlane.f32.xlu1 %v2176_v30  ;;  %v13978_v14 = vpack.c.bf16 %v1391_v22, %v1390_v21  ;;  %v2224_v17 = vsel %vm726_vm0, %v2156_v43, 0.0  ;;  %v2142_v18 = vmul.f32 %v18184_v55, %v18184_v55  ;;  %v18186_v30 = vld [vmem:[#allocation35_spill] sm:$0xff]  ;;  %v18188_v43 = vld [vmem:[#allocation30_spill] sm:$0xff] }
 0x218   : > { %2219 = vadd.xlane.f32.xlu0 %v2218_v23  ;;  %v14077_v36 = vpack.c.bf16 %v1397_v12, %v1396_v8  ;;  %v2166_v22 = vmul.f32 %v18186_v30, %v18186_v30 }
 0x219   : > { %11130 = vmatmul.mubr.msk.f32.gmra.mrb[28].mxu0 %vm726_vm0, %v13575_v9  ;;  %11158 = vmatmul.mubr.msk.f32.gmra.mrb[12].mxu1 %vm726_vm0, %v13567_v0  ;;  %v2164_v0 = vmul.f32 %v13778_v51, %v13778_v51  ;;  %v14008_v9 = vmul.f32 %v13580_v10, %v13497_v4  ;;  %v2151_v4 = vmul.f32 %v13694_v54, %v13694_v54  ;;  %v2182_v21 = vsel %vm726_vm0, %v2142_v18, 0.0  ;;  %v18198_v18 = vld [vmem:[#allocation32_spill] sm:$0xff] }
 0x21a   : > { %11132 = vmatprep.mubr.msk.f32.mxu0 %vm726_vm0, %v13765_v33  ;;  %11160 = vmatprep.mubr.msk.f32.mxu1 %vm726_vm0, %v13794_v13  ;;  %v2242_v13 = vsel %vm726_vm0, %v2162_v6, 0.0  ;;  %v1385_v33 = vmul.f32 %v9873_v7, %v13613_v24  ;;  %v1387_v51 = vmul.f32 %v9873_v7, %v13672_v59  ;;  %v1393_v54 = vmul.f32 %v13941_v61, %v13613_v24  ;;  %v18185_v61 = vld [vmem:[#allocation33_spill] sm:$0xff] }
 0x21b   : > { %12158 = vmatpush3.bf16.xpose.msk.msra.mxu0 %vm13618_vm2, %v13774_v29  ;;  %12182 = vmatpush3.bf16.xpose.msk.msra.mxu1 %vm13618_vm2, %v13798_v60  ;;  %v2248_v60 = vsel %vm726_vm0, %v2164_v0, 0.0  ;;  %v1386_v29 = vmul.f32 %v9873_v7, %v13686_v34  ;;  %v2209_v32 = vsel %vm726_vm0, %v2151_v4, 0.0  ;;  %v14070_v59 = vpack.c.bf16 %v1395_v26, %v1394_v41  ;;  %18183 = vst [vmem:[#allocation28_spill] sm:$0xff] %v14077_v36  ;;  %v18190_v4 = vld [vmem:[#allocation29_spill] sm:$0xff] }
 0x21c   : > { %2201 = vadd.xlane.f32.xlu1 %v2200_v57  ;;  %12161 = vmatprep.subr.msk.bf16.mxu0 %vm13618_vm2, %v13821_v46  ;;  %v14038_v56 = vpack.c.bf16 %v1385_v33, %v1384_v5  ;;  %v14053_v58 = vpack.c.bf16 %v1393_v54, %v1392_v53  ;;  %v2158_v50 = vmul.f32 %v18185_v61, %v18185_v61  ;;  %v2254_v57 = vsel %vm726_vm0, %v2166_v22, 0.0  ;;  %v18191_v33 = vld [vmem:[#allocation20_spill] sm:$0xff]  ;;  %v18200_v22 = vld [vmem:[#allocation38_spill] sm:$0xff] }
 0x21d   : > { %12185 = vmatprep.subr.msk.bf16.mxu1 %vm13618_vm2, %v13830_v44  ;;  %2243 = vadd.xlane.f32.xlu0 %v2242_v13  ;;  %v14051_v24 = vpack.c.bf16 %v1387_v51, %v1386_v29  ;;  %v1303_v6 = vmul.f32 %v13650_v62, %v18187_v31  ;;  %v2153_v0 = vmul.f32 %v18188_v43, %v18188_v43  ;;  %v18189_v13 = vld [vmem:[#allocation21_spill] sm:$0xff] }
 0x21e   : > { %11133 = vmatmul.mubr.msk.f32.gmra.mrb[30].mxu0 %vm726_vm0, %v13606_v20  ;;  %11161 = vmatmul.mubr.msk.f32.gmra.mrb[14].mxu1 %vm726_vm0, %v13715_v52  ;;  %v2143_v20 = vmul.f32 %v13690_v63, %v13690_v63  ;;  %v2167_v52 = vmul.f32 %v13810_v42, %v13810_v42  ;;  %v1388_v63 = vmul.f32 %v9873_v7, %v13729_v45  ;;  %v2230_v23 = vsel %vm726_vm0, %v2158_v50, 0.0  ;;  %v18199_v50 = vld [vmem:[#allocation36_spill] sm:$0xff] }
 0x21f   : > { %11179 = vmatprep.mubr.msk.f32.mxu0 %vm726_vm0, %v14008_v9  ;;  %11207 = vmatprep.mubr.msk.f32.mxu1 %vm726_vm0, %v14012_v16  ;;  %v1389_v42 = vmul.f32 %v9873_v7, %v13721_v48  ;;  %18176 = vst [vmem:[#allocation40_spill] sm:$0xff] %v14051_v24  ;;  %18177 = vst [vmem:[#allocation41_spill] sm:$0xff] %v14053_v58  ;;  %v2150_v7 = vmul.f32 %v18182_v35, %v18182_v35 }
 0x220   : > { %2225 = vadd.xlane.f32.xlu1 %v2224_v17  ;;  %v2185_v34 = vsel %vm726_vm0, %v2143_v20, 0.0  ;;  %v2257_v27 = vsel %vm726_vm0, %v2167_v52, 0.0  ;;  %v14106_v17 = vmul.f32 %v13580_v10, %v18189_v13  ;;  %v2145_v20 = vmul.f32 %v18190_v4, %v18190_v4 }
 0x221   : > { %2249 = vadd.xlane.f32.xlu0 %v2248_v60  ;;  %v2206_v48 = vsel %vm726_vm0, %v2150_v7, 0.0  ;;  %v14110_v60 = vmul.f32 %v13650_v62, %v18189_v13  ;;  %v2215_v52 = vsel %vm726_vm0, %v2153_v0, 0.0  ;;  %v1297_v29 = vmul.f32 %v13580_v10, %v18191_v33  ;;  %v18197_v7 = vld [vmem:[#allocation24_spill] sm:$0xff] }
 0x222   : > { %v2191_v5 = vsel %vm726_vm0, %v2145_v20, 0.0  ;;  %v14129_v51 = vmul.f32 %v13650_v62, %v18191_v33  ;;  %v2169_v53 = vmul.f32 %v13851_v15, %v13851_v15  ;;  %v1309_v55 = vmul.f32 %v13650_v62, %v18197_v7 }
 0x223   : > { %12164 = vmatpush3.bf16.xpose.msk.msra.mxu0 %vm13618_vm2, %v13821_v46  ;;  %12188 = vmatpush3.bf16.xpose.msk.msra.mxu1 %vm13618_vm2, %v13830_v44  ;;  %v18179_v46 = vld [vmem:[#allocation34_spill] sm:$0xff]  ;;  %v14063_v44 = vpack.c.bf16 %v1389_v42, %v1388_v63  ;;  %v18193_v63 = vld [vmem:[#allocation37_spill] sm:$0xff] }
 0x224   : > { %2210 = vadd.xlane.f32.xlu1 %v2209_v32  ;;  %12167 = vmatprep.subr.msk.bf16.mxu0 %vm13618_vm2, %v18178_v40  ;;  %v2159_v19 = vmul.f32 %v18179_v46, %v18179_v46  ;;  %18181 = vst [vmem:[#allocation34_spill] sm:$0xff] %v14070_v59  ;;  %v2161_v42 = vmul.f32 %v18193_v63, %v18193_v63  ;;  %v2263_v15 = vsel %vm726_vm0, %v2169_v53, 0.0  ;;  %v18194_v32 = vld [vmem:[#allocation22_spill] sm:$0xff] }
 0x225   : > { %18180 = vst [vmem:[#allocation39_spill] sm:$0xff] %v14063_v44  ;;  %12191 = vmatprep.subr.msk.bf16.mxu1 %vm13618_vm2, %v13870_v49  ;;  %2186 = vadd.xlane.f32.xlu0 %v2185_v34  ;;  %v1299_v26 = vmul.f32 %v13580_v10, %v18194_v32 }
 0x226   : > { %v2233_v45 = vsel %vm726_vm0, %v2159_v19, 0.0  ;;  %v2239_v41 = vsel %vm726_vm0, %v2161_v42, 0.0  ;;  %v18196_v19 = vld [vmem:[#allocation31_spill] sm:$0xff] }
 0x227   : > { %v2144_v8 = vmul.f32 %v18196_v19, %v18196_v19  ;;  %v2031_v0 = vmul.f32 %v1299_v26, %v1299_v26 }
 0x228   : > { %2258 = vadd.xlane.f32.xlu1 %v2257_v27  ;;  %v2035_v27 = vmul.f32 %v1303_v6, %v1303_v6 }
 0x229   : > { %2234 = vadd.xlane.f32.xlu0 %v2233_v45  ;;  %v2188_v35 = vsel %vm726_vm0, %v2144_v8, 0.0  ;;  %v1301_v45 = vmul.f32 %v13580_v10, %v18197_v7  ;;  %v2105_v4 = vsel %vm726_vm0, %v2031_v0, 0.0 }
 0x22b   : > { %12170 = vmatpush3.bf16.xpose.msk.msra.mxu0 %vm13618_vm2, %v18178_v40  ;;  %12194 = vmatpush3.bf16.xpose.msk.msra.mxu1 %vm13618_vm2, %v13870_v49  ;;  %v1295_v49 = vmul.f32 %v13580_v10, %v18187_v31  ;;  %v1307_v40 = vmul.f32 %v13650_v62, %v18194_v32  ;;  %v2028_v31 = vmul.f32 %v14106_v17, %v14106_v17 }
 0x22c   : > { %2207 = vadd.xlane.f32.xlu1 %v2206_v48  ;;  %12196 = vmatprep.subr.bf16.mxu0 %v13872_v38  ;;  %v2152_v48 = vmul.f32 %v18198_v18, %v18198_v18  ;;  %v2033_v33 = vmul.f32 %v1301_v45, %v1301_v45 }
 0x22d   : > { %12212 = vmatprep.subr.bf16.mxu1 %v13882_v11  ;;  %2183 = vadd.xlane.f32.xlu0 %v2182_v21  ;;  %v2027_v34 = vmul.f32 %v1295_v49, %v1295_v49  ;;  %v2034_v21 = vmul.f32 %v14012_v16, %v14012_v16  ;;  %v2096_v16 = vsel %vm726_vm0, %v2028_v31, 0.0  ;;  %v2039_v20 = vmul.f32 %v1307_v40, %v1307_v40 }
 0x22e   : > { %v2111_v53 = vsel %vm726_vm0, %v2033_v33, 0.0 }
 0x22f   : > { %v2093_v12 = vsel %vm726_vm0, %v2027_v34, 0.0 }
 0x230   : > { %2231 = vadd.xlane.f32.xlu1 %v2230_v23  ;;  %v2114_v23 = vsel %vm726_vm0, %v2034_v21, 0.0 }
 0x231   : > { %2255 = vadd.xlane.f32.xlu0 %v2254_v57  ;;  %v2036_v57 = vmul.f32 %v14110_v60, %v14110_v60 }
 0x232   : > { %11180 = vmatmul.mubr.msk.f32.vlgmr.msra.gmra.mrb[32].mxu0 %vm726_vm0, %v1295_v49  ;;  %11208 = vmatmul.mubr.msk.f32.vlgmr.msra.gmra.mrb[16].mxu1 %vm726_vm0, %v1303_v6  ;;  %v2037_v6 = vmul.f32 %v14129_v51, %v14129_v51 }
 0x233   : > { %11182 = vmatprep.mubr.msk.f32.mxu0 %vm726_vm0, %v14106_v17  ;;  %11210 = vmatprep.mubr.msk.f32.mxu1 %vm726_vm0, %v14110_v60  ;;  %v2120_v13 = vsel %vm726_vm0, %v2036_v57, 0.0 }
 0x234   : > { %12198 = vmatpush3.bf16.msra.mxu0 %v13872_v38  ;;  %12214 = vmatpush3.bf16.msra.mxu1 %v13882_v11  ;;  %v18192_v38 = vld [vmem:[#allocation23_spill] sm:$0xff]  ;;  %v2123_v43 = vsel %vm726_vm0, %v2037_v6, 0.0 }
 0x235   : > { %2216 = vadd.xlane.f32.xlu1 %v2215_v52  ;;  %12200 = vmatprep.subr.bf16.mxu0 %v13894_v2  ;;  %v14136_v11 = vmul.f32 %v13580_v10, %v18192_v38  ;;  %v14140_v54 = vmul.f32 %v13650_v62, %v18192_v38  ;;  %v2041_v38 = vmul.f32 %v1309_v55, %v1309_v55 }
 0x236   : > { %12216 = vmatprep.subr.bf16.mxu1 %v13900_v39  ;;  %2192 = vadd.xlane.f32.xlu0 %v2191_v5  ;;  %v2129_v5 = vsel %vm726_vm0, %v2039_v20, 0.0 }
 0x237   : > { %11183 = vmatmul.mubr.msk.f32.gmra.mrb[34].mxu0 %vm726_vm0, %v1297_v29  ;;  %11211 = vmatmul.mubr.msk.f32.gmra.mrb[18].mxu1 %vm726_vm0, %v14129_v51  ;;  %v2030_v17 = vmul.f32 %v14136_v11, %v14136_v11  ;;  %v2038_v60 = vmul.f32 %v14140_v54, %v14140_v54  ;;  %v2135_v63 = vsel %vm726_vm0, %v2041_v38, 0.0 }
 0x238   : > { %11185 = vmatprep.mubr.msk.f32.mxu0 %vm726_vm0, %v14136_v11  ;;  %11213 = vmatprep.mubr.msk.f32.mxu1 %vm726_vm0, %v14140_v54 }
 0x239   : > { %12202 = vmatpush3.bf16.msra.mxu0 %v13894_v2  ;;  %12218 = vmatpush3.bf16.msra.mxu1 %v13900_v39  ;;  %v18195_v2 = vld [vmem:[#allocation26_spill] sm:$0xff]  ;;  %v2102_v52 = vsel %vm726_vm0, %v2030_v17, 0.0 }
 0x23a   : > { %2264 = vadd.xlane.f32.xlu1 %v2263_v15  ;;  %12204 = vmatprep.subr.bf16.mxu0 %v13914_v47  ;;  %v14163_v39 = vmul.f32 %v13580_v10, %v18195_v2  ;;  %v14167_v46 = vmul.f32 %v13650_v62, %v18195_v2  ;;  %v2029_v10 = vmul.f32 %v1297_v29, %v1297_v29  ;;  %v2212_v62 = vsel %vm726_vm0, %v2152_v48, 0.0 }
 0x23b   : > { %12220 = vmatprep.subr.bf16.mxu1 %v13916_v1  ;;  %2240 = vadd.xlane.f32.xlu0 %v2239_v41  ;;  %v2126_v29 = vsel %vm726_vm0, %v2038_v60, 0.0 }
 0x23c   : > { %11186 = vmatmul.mubr.msk.f32.gmra.mrb[36].mxu0 %vm726_vm0, %v1299_v26  ;;  %11214 = vmatmul.mubr.msk.f32.gmra.mrb[20].mxu1 %vm726_vm0, %v1307_v40  ;;  %v2099_v61 = vsel %vm726_vm0, %v2029_v10, 0.0  ;;  %v2032_v51 = vmul.f32 %v14163_v39, %v14163_v39  ;;  %v2040_v54 = vmul.f32 %v14167_v46, %v14167_v46 }
 0x23d   : > { %11188 = vmatprep.mubr.msk.f32.mxu0 %vm726_vm0, %v14163_v39  ;;  %11216 = vmatprep.mubr.msk.f32.mxu1 %vm726_vm0, %v14167_v46 }
 0x23e   : > { %12206 = vmatpush3.bf16.msra.mxu0 %v13914_v47  ;;  %12222 = vmatpush3.bf16.msra.mxu1 %v13916_v1  ;;  %v2117_v47 = vsel %vm726_vm0, %v2035_v27, 0.0  ;;  %v2026_v1 = vmul.f32 %v14008_v9, %v14008_v9  ;;  %v2168_v9 = vmul.f32 %v18200_v22, %v18200_v22  ;;  %v2108_v11 = vsel %vm726_vm0, %v2032_v51, 0.0 }
 0x23f   : > { %2094 = vadd.xlane.f32.xlu1 %v2093_v12  ;;  %12208 = vmatprep.subr.bf16.mxu0 %v13952_v25  ;;  %v2132_v42 = vsel %vm726_vm0, %v2040_v54, 0.0 }
 0x240   : > { %12224 = vmatprep.subr.bf16.mxu1 %v13954_v3  ;;  %2189 = vadd.xlane.f32.xlu0 %v2188_v35  ;;  %v2260_v49 = vsel %vm726_vm0, %v2168_v9, 0.0 }
 0x241   : > { %11189 = vmatmul.mubr.msk.f32.gmra.mrb[38].mxu0 %vm726_vm0, %v1301_v45  ;;  %11217 = vmatmul.mubr.msk.f32.gmra.mrb[22].mxu1 %vm726_vm0, %v1309_v55 }
 0x242   : > { %12210 = vmatpush3.bf16.msra.mxu0 %v13952_v25  ;;  %12226 = vmatpush3.bf16.msra.mxu1 %v13954_v3  ;;  %v2160_v25 = vmul.f32 %v18199_v50, %v18199_v50  ;;  %v2090_v3 = vsel %vm726_vm0, %v2026_v1, 0.0 }
 0x243   : > { %2118 = vadd.xlane.f32.xlu1 %v2117_v47  ;;  %12228 = vmatprep.subr.bf16.mxu0 %v13974_v37 }
 0x244   : > { %12244 = vmatprep.subr.bf16.mxu1 %v13978_v14  ;;  %2213 = vadd.xlane.f32.xlu0 %v2212_v62  ;;  %v2236_v30 = vsel %vm726_vm0, %v2160_v25, 0.0 }
 0x247   : > { %2100 = vadd.xlane.f32.xlu1 %v2099_v61 }
 0x248   : > { %2091 = vadd.xlane.f32.xlu0 %v2090_v3 }
 0x24b   : > { %2237 = vadd.xlane.f32.xlu1 %v2236_v30 }
 0x24c   : > { %2115 = vadd.xlane.f32.xlu0 %v2114_v23 }
 0x24f   : > { %2261 = vadd.xlane.f32.xlu1 %v2260_v49 }
 0x250   : > { %2097 = vadd.xlane.f32.xlu0 %v2096_v16  ;;  %v2298_v16 = vlaneseq }
 0x252   : > { %v2299_v0 = vand.u32 127, %v2298_v16 }
 0x253   : > { %2124 = vadd.xlane.f32.xlu1 %v2123_v43 }
 0x254   : > { %2121 = vadd.xlane.f32.xlu0 %v2120_v13  ;;  %v2311_v17 = vadd.s32 4294967280, %v2299_v0  ;;  %v2304_v60 = vadd.s32 4294967288, %v2299_v0  ;;  %v2318_v51 = vadd.s32 4294967272, %v2299_v0  ;;  %v2339_v36 = vadd.s32 4294967248, %v2299_v0 }
 0x255   : > { %v2346_v44 = vadd.s32 4294967240, %v2299_v0 }
 0x257   : > { %2106 = vadd.xlane.f32.xlu1 %v2105_v4  ;;  %v2301_v4 = vshrl.u32 %v2298_v16, 7 }
 0x258   : > { %2103 = vadd.xlane.f32.xlu0 %v2102_v52 }
 0x259   : > { %v14299_v33 = vsub.s32 %v2311_v17, %v2301_v4  ;;  %v14301_v38 = vsub.s32 %v2304_v60, %v2301_v4  ;;  %v14307_v16 = vsub.s32 %v2318_v51, %v2301_v4  ;;  %v2332_v17 = vadd.s32 4294967256, %v2299_v0 }
 0x25b   : > { %2130 = vadd.xlane.f32.xlu1 %v2129_v5  ;;  %v14297_v5 = vsub.s32 %v2299_v0, %v2301_v4  ;;  %18202 = vst [vmem:[#allocation33_spill] sm:$0xff] %v14299_v33  ;;  %18203 = vst [vmem:[#allocation35_spill] sm:$0xff] %v14301_v38 }
 0x25c   : > { %2127 = vadd.xlane.f32.xlu0 %v2126_v29  ;;  %v2325_v29 = vadd.s32 4294967264, %v2299_v0  ;;  %18205 = vst [vmem:[#allocation30_spill] sm:$0xff] %v14307_v16 }
 0x25d   : > { %18201 = vst [vmem:[#allocation27_spill] sm:$0xff] %v14297_v5 }
 0x25f   : > { %2112 = vadd.xlane.f32.xlu1 %v2111_v53 }
 0x260   : > { %2109 = vadd.xlane.f32.xlu0 %v2108_v11 }
 0x263   : > { %2136 = vadd.xlane.f32.xlu1 %v2135_v63 }
 0x264   : > { %2133 = vadd.xlane.f32.xlu0 %v2132_v42  ;;  %v14305_v42 = vsub.s32 %v2325_v29, %v2301_v4 }
 0x266   : > { %18204 = vst [vmem:[#allocation19_spill] sm:$0xff] %v14305_v42 }
 0x26f   : > { %v14235_v15 = vpop.xlane.xlu1 %2046 }
 0x270   : > { %v14237_v41 = vpop.xlane.xlu0 %2043 }
 0x273   : > { %v14239_v32 = vpop.xlane.xlu1 %2070 }
 0x274   : > { %v14241_v26 = vpop.xlane.xlu0 %2067 }
 0x277   : > { %v14243_v40 = vpop.xlane.xlu1 %2052 }
 0x278   : > { %v14245_v34 = vpop.xlane.xlu0 %2049 }
 0x27b   : > { %v14247_v2 = vpop.xlane.xlu1 %2076 }
 0x27c   : > { %v14249_v39 = vpop.xlane.xlu0 %2073 }
 0x27f   : > { %v14251_v46 = vpop.xlane.xlu1 %2082 }
 0x280   : > { %v14253_v19 = vpop.xlane.xlu0 %2058 }
 0x283   : > { %v14255_v8 = vpop.xlane.xlu1 %2064 }
 0x284   : > { %v14257_v12 = vpop.xlane.xlu0 %2055 }
 0x287   : > { %v14259_v27 = vpop.xlane.xlu1 %2198 }
 0x288   : > { %v14261_v35 = vpop.xlane.xlu0 %2079 }
 0x28b   : > { %v14263_v7 = vpop.xlane.xlu1 %2222 }
 0x28c   : > { %v14265_v45 = vpop.xlane.xlu0 %2088 }
 0x28f   : > { %v14267_v55 = vpop.xlane.xlu1 %2246 }
 0x290   : > { %v14269_v18 = vpop.xlane.xlu0 %2061 }
 0x293   : > { %v2181_v48 = vpop.xlane.xlu1 %2180 }
 0x294   : > { %v14271_v47 = vpop.xlane.xlu0 %2085  ;;  %v2322_v24 = vrot.slane %v2181_v48, %v14307_v16 }
 0x298   : > { %v14273_v10 = vpop.xlane.xlu1 %2204  ;;  %v2175_v62 = vpop.xlane.xlu0 %2174 }
 0x299   : > { %v2308_v28 = vrot.slane %v2175_v62, %v14301_v38  ;;  %v2360_v62 = vrot.slane %v14259_v27, %v14301_v38  ;;  %v2370_v27 = vrot.slane %v14273_v10, %v14307_v16 }
 0x29c   : > { %v14275_v1 = vpop.xlane.xlu1 %2228  ;;  %v2172_v61 = vpop.xlane.xlu0 %2171 }
 0x29d   : > { %v2303_v11 = vrot.slane %v2172_v61, %v14297_v5 }
 0x29f   : > { %v2310_v59 = vsel %vm2309_vm3, %v2308_v28, %v2303_v11  ;;  %v14322_v28 = vsub.s32 %v2332_v17, %v2301_v4 }
 0x2a0   : > { %v14277_v50 = vpop.xlane.xlu1 %2252 }
 0x2a1   : > { %v2196_v25 = vpop.xlane.xlu0 %2195  ;;  %18206 = vst [vmem:[#allocation21_spill] sm:$0xff] %v14322_v28 }
 0x2a2   : > { %v2356_v60 = vrot.slane %v2196_v25, %v14297_v5  ;;  %v14324_v25 = vsub.s32 %v2339_v36, %v2301_v4 }
 0x2a4   : > { %v2178_v3 = vpop.xlane.xlu1 %2177  ;;  %18207 = vst [vmem:[#allocation29_spill] sm:$0xff] %v14324_v25  ;;  %v2361_v0 = vsel %vm2309_vm3, %v2360_v62, %v2356_v60 }
 0x2a5   : > { %v14279_v21 = vpop.xlane.xlu0 %2219  ;;  %v2315_v63 = vrot.slane %v2178_v3, %v14299_v33 }
 0x2a7   : > { %v2317_v61 = vsel %vm2316_vm4, %v2315_v63, %v2310_v59 }
 0x2a8   : > { %v2324_v59 = vsel %vm2323_vm5, %v2322_v24, %v2317_v61 }
 0x2a9   : > { %v2202_v30 = vpop.xlane.xlu1 %2201 }
 0x2aa   : > { %v14281_v22 = vpop.xlane.xlu0 %2243  ;;  %v2365_v3 = vrot.slane %v2202_v30, %v14299_v33  ;;  %v14328_v30 = vsub.s32 %v2346_v44, %v2301_v4 }
 0x2ac   : > { %18208 = vst [vmem:[#allocation20_spill] sm:$0xff] %v14328_v30 }
 0x2ad   : > { %v14283_v9 = vpop.xlane.xlu1 %2225 }
 0x2ae   : > { %v14285_v23 = vpop.xlane.xlu0 %2249 }
 0x2b1   : > { %v14287_v31 = vpop.xlane.xlu1 %2210 }
 0x2b2   : > { %v2187_v49 = vpop.xlane.xlu0 %2186  ;;  %v2380_v10 = vrot.slane %v14287_v31, %v14322_v28 }
 0x2b3   : > { %v2336_v48 = vrot.slane %v2187_v49, %v14322_v28 }
 0x2b5   : > { %v14289_v6 = vpop.xlane.xlu1 %2258 }
 0x2b6   : > { %v14291_v57 = vpop.xlane.xlu0 %2234 }
 0x2b9   : > { %v2208_v43 = vpop.xlane.xlu1 %2207 }
 0x2ba   : > { %v2184_v13 = vpop.xlane.xlu0 %2183  ;;  %v2375_v11 = vrot.slane %v2208_v43, %v14305_v42 }
 0x2bb   : > { %v2329_v29 = vrot.slane %v2184_v13, %v14305_v42  ;;  %v2366_v13 = vsel %vm2316_vm4, %v2365_v3, %v2361_v0 }
 0x2bc   : > { %v2371_v44 = vsel %vm2323_vm5, %v2370_v27, %v2366_v13 }
 0x2bd   : > { %v14293_v20 = vpop.xlane.xlu1 %2231  ;;  %v2331_v63 = vsel %vm2330_vm6, %v2329_v29, %v2324_v59  ;;  %v2376_v60 = vsel %vm2330_vm6, %v2375_v11, %v2371_v44 }
 0x2be   : > { %v14295_v52 = vpop.xlane.xlu0 %2255  ;;  %v2338_v43 = vsel %vm2337_vm7, %v2336_v48, %v2331_v63  ;;  %v2381_v59 = vsel %vm2337_vm7, %v2380_v10, %v2376_v60 }
 0x2c2   : > { %v2217_v53 = vpop.xlane.xlu1 %2216 }
 0x2c3   : > { %v2193_v54 = vpop.xlane.xlu0 %2192 }
 0x2c4   : > { %v2350_v4 = vrot.slane %v2193_v54, %v14328_v30  ;;  %v2390_v54 = vrot.slane %v2217_v53, %v14328_v30 }
 0x2c7   : > { %v14312_v58 = vpop.xlane.xlu1 %2264 }
 0x2c8   : > { %v14317_v51 = vpop.xlane.xlu0 %2240 }
 0x2cc   : > { %v14336_v36 = vpop.xlane.xlu1 %2094 }
 0x2cd   : > { %v2190_v17 = vpop.xlane.xlu0 %2189 }
 0x2ce   : > { %v2343_v24 = vrot.slane %v2190_v17, %v14324_v25 }
 0x2d0   : > { %v2345_v61 = vsel %vm2344_vm8, %v2343_v24, %v2338_v43  ;;  %v14353_v0 = vpop.xlane.xlu1 %2118  ;;  %v2399_v43 = vrot.slane %v14263_v7, %v14301_v38 }
 0x2d1   : > { %v14347_v49 = vsel %vm2351_vm9, %v2350_v4, %v2345_v61  ;;  %v2214_v3 = vpop.xlane.xlu0 %2213  ;;  %v2409_v61 = vrot.slane %v14275_v1, %v14307_v16  ;;  %v2453_v1 = vrot.slane %v14295_v52, %v14305_v42  ;;  %v2458_v52 = vrot.slane %v14289_v6, %v14322_v28 }
 0x2d2   : > { %v2385_v29 = vrot.slane %v2214_v3, %v14324_v25  ;;  %v2505_v62 = vmul.f32 %v14347_v49, %v14235_v15  ;;  %v2504_v31 = vmul.f32 %v14347_v49, %v14237_v41  ;;  %v2507_v17 = vmul.f32 %v14347_v49, %v14243_v40 }
 0x2d3   : > { %v2395_v41 = vrot.slane %v14279_v21, %v14297_v5  ;;  %v2506_v44 = vmul.f32 %v14347_v49, %v14245_v34  ;;  %v2443_v21 = vrot.slane %v14285_v23, %v14299_v33  ;;  %v2509_v7 = vmul.f32 %v14347_v49, %v14253_v19 }
 0x2d4   : > { %v2386_v13 = vsel %vm2344_vm8, %v2385_v29, %v2381_v59  ;;  %v2537_v63 = vmax.f32 %v2505_v62, 1e-12  ;;  %v2536_v48 = vmax.f32 %v2504_v31, 1e-12  ;;  %v14368_v24 = vpop.xlane.xlu1 %2100  ;;  %v2539_v34 = vmax.f32 %v2507_v17, 1e-12 }
 0x2d5   : > { %v14360_v11 = vsel %vm2351_vm9, %v2390_v54, %v2386_v13  ;;  %v14384_v60 = vpop.xlane.xlu0 %2091  ;;  %v2538_v10 = vmax.f32 %v2506_v44, 1e-12  ;;  %v2448_v19 = vrot.slane %v14277_v50, %v14307_v16  ;;  %v2508_v59 = vmul.f32 %v14347_v49, %v14257_v12  ;;  %v2633_v12 = vld [vmem:[%s17981_s11 + $0x8] sm:$0xff] }
 0x2d6   : > { %v2513_v27 = vmul.f32 %v14360_v11, %v14239_v32  ;;  %v2512_v15 = vmul.f32 %v14360_v11, %v14241_v26  ;;  %12675 = vrsqrt.f32 %v2537_v63  ;;  %v2434_v32 = vrot.slane %v14281_v22, %v14297_v5 }
 0x2d7   : > { %v2404_v26 = vrot.slane %v14283_v9, %v14299_v33  ;;  %v2515_v40 = vmul.f32 %v14360_v11, %v14247_v2  ;;  %v2438_v22 = vrot.slane %v14267_v55, %v14301_v38  ;;  %v2514_v9 = vmul.f32 %v14360_v11, %v14249_v39 }
 0x2d8   : > { %v2545_v53 = vmax.f32 %v2513_v27, 1e-12  ;;  %v2544_v4 = vmax.f32 %v2512_v15, 1e-12  ;;  %v2400_v2 = vsel %vm2309_vm3, %v2399_v43, %v2395_v41  ;;  %v14397_v29 = vpop.xlane.xlu1 %2237  ;;  %v2414_v39 = vrot.slane %v14293_v20, %v14305_v42  ;;  %v9940_v43 = vld [vmem:[%s17981_s11 + $0x208] sm:$0xff] }
 0x2d9   : > { %v2439_v23 = vsel %vm2309_vm3, %v2438_v22, %v2434_v32  ;;  %v2405_v3 = vsel %vm2316_vm4, %v2404_v26, %v2400_v2  ;;  %v2547_v55 = vmax.f32 %v2515_v40, 1e-12  ;;  %v2546_v54 = vmax.f32 %v2514_v9, 1e-12  ;;  %v14409_v31 = vpop.xlane.xlu0 %2115 }
 0x2da   : > { %12677 = vrsqrt.f32 %v2545_v53  ;;  %v2444_v62 = vsel %vm2316_vm4, %v2443_v21, %v2439_v23  ;;  %v2410_v13 = vsel %vm2323_vm5, %v2409_v61, %v2405_v3  ;;  %v2517_v63 = vmul.f32 %v14360_v11, %v14251_v46  ;;  %v2632_v61 = vld [vmem:[%s17981_s11] sm:$0xff] }
 0x2db   : > { %12679 = vrsqrt.f32 %v2536_v48  ;;  %v2541_v20 = vmax.f32 %v2509_v7, 1e-12  ;;  %v2419_v50 = vrot.slane %v14291_v57, %v14322_v28  ;;  %v2449_v15 = vsel %vm2323_vm5, %v2448_v19, %v2444_v62 }
 0x2dc   : > { %12681 = vrsqrt.f32 %v2544_v4  ;;  %v2415_v46 = vsel %vm2330_vm6, %v2414_v39, %v2410_v13  ;;  %v2454_v41 = vsel %vm2330_vm6, %v2453_v1, %v2449_v15  ;;  %v2516_v6 = vmul.f32 %v14360_v11, %v14261_v35  ;;  %v2262_v57 = vpop.xlane.xlu1 %2261  ;;  %v2641_v4 = vld [vmem:[%s17981_s11 + $0x48] sm:$0xff]  ;;  %v9939_v13 = vld [vmem:[%s17981_s11 + $0x200] sm:$0xff] }
 0x2dd   : > { %12683 = vrsqrt.f32 %v2539_v34  ;;  %v2540_v21 = vmax.f32 %v2508_v59, 1e-12  ;;  %v2511_v34 = vmul.f32 %v14347_v49, %v14255_v8  ;;  %v2424_v35 = vrot.slane %v14397_v29, %v14324_v25  ;;  %v2098_v19 = vpop.xlane.xlu0 %2097 }
 0x2de   : > { %12685 = vrsqrt.f32 %v2538_v10  ;;  %v2549_v2 = vmax.f32 %v2517_v63, 1e-12  ;;  %v2420_v10 = vsel %vm2337_vm7, %v2419_v50, %v2415_v46  ;;  %v2459_v7 = vsel %vm2337_vm7, %v2458_v52, %v2454_v41 }
 0x2df   : > { %12687 = vrsqrt.f32 %v2547_v55  ;;  %v2519_v3 = vmul.f32 %v14360_v11, %v14265_v45  ;;  %v2463_v8 = vrot.slane %v2262_v57, %v14324_v25  ;;  %v2548_v39 = vmax.f32 %v2516_v6, 1e-12  ;;  %v9948_v45 = vld [vmem:[%s17981_s11 + $0x248] sm:$0xff] }
 0x2e0   : > { %v12676_v27 = vpop.eup %12675  ;;  %12689 = vrsqrt.f32 %v2546_v54  ;;  %v2543_v63 = vmax.f32 %v2511_v34, 1e-12  ;;  %v2425_v52 = vsel %vm2344_vm8, %v2424_v35, %v2420_v10 }
 0x2e1   : > { %12691 = vrsqrt.f32 %v2541_v20  ;;  %v2510_v20 = vmul.f32 %v14347_v49, %v14269_v18  ;;  %v2551_v18 = vmax.f32 %v2519_v3, 1e-12  ;;  %v2518_v49 = vmul.f32 %v14360_v11, %v14271_v47  ;;  %v9947_v3 = vld [vmem:[%s17981_s11 + $0x240] sm:$0xff] }
 0x2e2   : > { %12693 = vrsqrt.f32 %v2540_v21 }
 0x2e3   : > { %v11125_v53 = vpop.f32.mrb[24].mxu0  ;;  %v11153_v48 = vpop.f32.mrb[8].mxu1  ;;  %12695 = vrsqrt.f32 %v2549_v2  ;;  %v2542_v11 = vmax.f32 %v2510_v20, 1e-12 }
 0x2e4   : > { %v12678_v17 = vpop.eup %12677  ;;  %v2601_v44 = vmul.f32 %v12676_v27, %v11125_v53  ;;  %v1665_v32 = vpop.f32.mrb[9].mxu1  ;;  %12697 = vrsqrt.f32 %v2548_v39 }
 0x2e5   : > { %v2609_v26 = vmul.f32 %v12678_v17, %v11153_v48  ;;  %v1512_v40 = vpop.f32.mrb[25].mxu0  ;;  %v12680_v22 = vpop.eup %12679  ;;  %v2429_v48 = vrot.slane %v14317_v51, %v14328_v30  ;;  %v2640_v17 = vld [vmem:[%s17981_s11 + $0x40] sm:$0xff]  ;;  %12699 = vrsqrt.f32 %v2543_v63 }
 0x2e6   : > { %v2665_v9 = vmul.f32 %v2633_v12, %v2601_v44  ;;  %v2600_v23 = vmul.f32 %v12680_v22, %v1512_v40  ;;  %v12682_v1 = vpop.eup %12681  ;;  %v2464_v44 = vsel %vm2344_vm8, %v2463_v8, %v2459_v7  ;;  %v14479_v2 = vpop.xlane.xlu1 %2124  ;;  %v2634_v7 = vld [vmem:[%s17981_s11 + $0x10] sm:$0xff]  ;;  %12701 = vrsqrt.f32 %v2551_v18  ;;  %v9950_v18 = vld [vmem:[%s17981_s11 + $0x258] sm:$0xff] }
 0x2e7   : > { %v2673_v55 = vmul.f32 %v2641_v4, %v2609_v26  ;;  %v12684_v27 = vpop.eup %12683  ;;  %v2608_v50 = vmul.f32 %v12682_v1, %v1665_v32  ;;  %v2635_v32 = vld [vmem:[%s17981_s11 + $0x18] sm:$0xff]  ;;  %v2468_v4 = vrot.slane %v14312_v58, %v14328_v30  ;;  %v14474_v40 = vsel %vm2351_vm9, %v2429_v48, %v2425_v52  ;;  %v2637_v52 = vld [vmem:[%s17981_s11 + $0x28] sm:$0xff] }
 0x2e8   : > { %v11128_v62 = vpop.f32.mrb[26].mxu0  ;;  %v14443_v29 = vadd.f32 %v9940_v43, %v2665_v9  ;;  %v2664_v54 = vmul.f32 %v2632_v61, %v2600_v23  ;;  %v11156_v59 = vpop.f32.mrb[10].mxu1  ;;  %v2643_v58 = vld [vmem:[%s17981_s11 + $0x58] sm:$0xff]  ;;  %v2550_v1 = vmax.f32 %v2518_v49, 1e-12  ;;  %12703 = vrsqrt.f32 %v2542_v11 }
 0x2e9   : > { %v1675_v15 = vpop.f32.mrb[11].mxu1  ;;  %v1522_v53 = vpop.f32.mrb[27].mxu0  ;;  %v2603_v46 = vmul.f32 %v12684_v27, %v11128_v62  ;;  %v14469_v57 = vadd.f32 %v9948_v45, %v2673_v55  ;;  %v2672_v43 = vmul.f32 %v2640_v17, %v2608_v50  ;;  %v14477_v61 = vsel %vm2351_vm9, %v2468_v4, %v2464_v44 }
 0x2ea   : > { %v2764_v12 = vsel %vm726_vm0, %v14443_v29, -inf  ;;  %v12686_v41 = vpop.eup %12685  ;;  %v14467_v51 = vadd.f32 %v9939_v13, %v2664_v54  ;;  %v14492_v55 = vpop.xlane.xlu0 %2121  ;;  %v9942_v54 = vld [vmem:[%s17981_s11 + $0x218] sm:$0xff]  ;;  %v2642_v13 = vld [vmem:[%s17981_s11 + $0x50] sm:$0xff]  ;;  %v2521_v49 = vmul.f32 %v14474_v40, %v14336_v36  ;;  %12705 = vrsqrt.f32 %v2550_v1  ;;  %v2636_v36 = vld [vmem:[%s17981_s11 + $0x20] sm:$0xff] }
 0x2eb   : > { %2765 = vmax.xlane.f32.xlu1 %v2764_v12  ;;  %v12688_v26 = vpop.eup %12687  ;;  %v2602_v34 = vmul.f32 %v12686_v41, %v1522_v53  ;;  %v2667_v10 = vmul.f32 %v2635_v32, %v2603_v46  ;;  %v2788_v39 = vsel %vm726_vm0, %v14469_v57, -inf  ;;  %v2529_v53 = vmul.f32 %v14477_v61, %v14353_v0  ;;  %v9941_v46 = vld [vmem:[%s17981_s11 + $0x210] sm:$0xff]  ;;  %v2644_v1 = vld [vmem:[%s17981_s11 + $0x60] sm:$0xff] }
 0x2ec   : > { %v11159_v6 = vpop.f32.mrb[12].mxu1  ;;  %v11131_v47 = vpop.f32.mrb[28].mxu0  ;;  %v2611_v21 = vmul.f32 %v12688_v26, %v11156_v59  ;;  %v2761_v23 = vsel %vm726_vm0, %v14467_v51, -inf  ;;  %v14500_v59 = vmul.f32 %v14474_v40, %v2098_v19  ;;  %v14512_v19 = vadd.f32 %v9947_v3, %v2672_v43 }
 0x2ed   : > { %v1685_v22 = vpop.f32.mrb[13].mxu1  ;;  %v1532_v35 = vpop.f32.mrb[29].mxu0  ;;  %2762 = vmax.xlane.f32.xlu0 %v2761_v23  ;;  %v2666_v27 = vmul.f32 %v2634_v7, %v2602_v34  ;;  %v14516_v17 = vadd.f32 %v9942_v54, %v2667_v10  ;;  %v14528_v41 = vmul.f32 %v14477_v61, %v14409_v31  ;;  %v2520_v0 = vmul.f32 %v14474_v40, %v14384_v60  ;;  %v9949_v60 = vld [vmem:[%s17981_s11 + $0x250] sm:$0xff]  ;;  %v9944_v10 = vld [vmem:[%s17981_s11 + $0x228] sm:$0xff] }
 0x2ee   : > { %v12690_v9 = vpop.eup %12689  ;;  %v2675_v20 = vmul.f32 %v2643_v58, %v2611_v21  ;;  %v2785_v4 = vsel %vm726_vm0, %v14512_v19, -inf  ;;  %v2104_v34 = vpop.xlane.xlu0 %2103  ;;  %v2561_v58 = vmax.f32 %v2529_v53, 1e-12  ;;  %v2523_v7 = vmul.f32 %v14474_v40, %v14368_v24 }
 0x2ef   : > { %v12692_v8 = vpop.eup %12691  ;;  %v2610_v62 = vmul.f32 %v12690_v9, %v1675_v15  ;;  %2789 = vmax.xlane.f32.xlu1 %v2788_v39  ;;  %v2770_v31 = vsel %vm726_vm0, %v14516_v17, -inf  ;;  %v2554_v23 = vmax.f32 %v14500_v59, 1e-12 }
 0x2f0   : > { %v2605_v45 = vmul.f32 %v12692_v8, %v11131_v47  ;;  %v12694_v12 = vpop.eup %12693  ;;  %v2107_v47 = vpop.xlane.xlu1 %2106  ;;  %v14547_v9 = vadd.f32 %v9950_v18, %v2675_v20  ;;  %v2553_v8 = vmax.f32 %v2521_v49, 1e-12  ;;  %v2560_v20 = vmax.f32 %v14528_v41, 1e-12  ;;  %v9952_v18 = vld [vmem:[%s17981_s11 + $0x268] sm:$0xff] }
 0x2f1   : > { %v14505_v63 = vpop.f32.mrb[14].mxu1  ;;  %v11134_v50 = vpop.f32.mrb[30].mxu0  ;;  %v2674_v32 = vmul.f32 %v2642_v13, %v2610_v62  ;;  %v2604_v26 = vmul.f32 %v12694_v12, %v1532_v35  ;;  %2786 = vmax.xlane.f32.xlu0 %v2785_v4  ;;  %v2645_v35 = vld [vmem:[%s17981_s11 + $0x68] sm:$0xff]  ;;  %v2552_v62 = vmax.f32 %v2520_v0, 1e-12  ;;  %v2531_v12 = vmul.f32 %v14477_v61, %v14479_v2 }
 0x2f2   : > { %v14510_v15 = vpop.f32.mrb[15].mxu1  ;;  %v1542_v48 = vpop.f32.mrb[31].mxu0  ;;  %v2669_v43 = vmul.f32 %v2637_v52, %v2605_v45  ;;  %v9943_v52 = vld [vmem:[%s17981_s11 + $0x220] sm:$0xff]  ;;  %12707 = vrsqrt.f32 %v2561_v58  ;;  %v2555_v49 = vmax.f32 %v2523_v7, 1e-12  ;;  %v2525_v0 = vmul.f32 %v14474_v40, %v2107_v47 }
 0x2f3   : > { %v12696_v44 = vpop.eup %12695  ;;  %2771 = vmax.xlane.f32.xlu1 %v2770_v31  ;;  %v2668_v54 = vmul.f32 %v2636_v36, %v2604_v26  ;;  %v14560_v45 = vadd.f32 %v9949_v60, %v2674_v32  ;;  %12709 = vrsqrt.f32 %v2553_v8  ;;  %v2638_v36 = vld [vmem:[%s17981_s11 + $0x30] sm:$0xff]  ;;  %v2563_v60 = vmax.f32 %v2531_v12, 1e-12 }
 0x2f4   : > { %v2613_v11 = vmul.f32 %v12696_v44, %v11159_v6  ;;  %v12698_v21 = vpop.eup %12697  ;;  %v14545_v6 = vadd.f32 %v9941_v46, %v2666_v27  ;;  %v14565_v59 = vadd.f32 %v9944_v10, %v2669_v43  ;;  %v2530_v46 = vmul.f32 %v14477_v61, %v14492_v55  ;;  %v2131_v44 = vpop.xlane.xlu1 %2130 }
 0x2f5   : > { %v2612_v3 = vmul.f32 %v12698_v21, %v1685_v22  ;;  %v12700_v39 = vpop.eup %12699  ;;  %v2794_v22 = vsel %vm726_vm0, %v14547_v9, -inf  ;;  %v2128_v55 = vpop.xlane.xlu0 %2127  ;;  %v2791_v4 = vsel %vm726_vm0, %v14560_v45, -inf  ;;  %12711 = vrsqrt.f32 %v2552_v62  ;;  %v2647_v21 = vld [vmem:[%s17981_s11 + $0x78] sm:$0xff] }
 0x2f6   : > { %v2767_v13 = vsel %vm726_vm0, %v14545_v6, -inf  ;;  %v2677_v27 = vmul.f32 %v2645_v35, %v2613_v11  ;;  %v2607_v24 = vmul.f32 %v12700_v39, %v11134_v50  ;;  %v12702_v53 = vpop.eup %12701  ;;  %v2639_v50 = vld [vmem:[%s17981_s11 + $0x38] sm:$0xff]  ;;  %v14584_v11 = vadd.f32 %v9943_v52, %v2668_v54 }
 0x2f7   : > { %2768 = vmax.xlane.f32.xlu0 %v2767_v13  ;;  %2795 = vmax.xlane.f32.xlu1 %v2794_v22  ;;  %v12704_v41 = vpop.eup %12703  ;;  %v2676_v32 = vmul.f32 %v2644_v1, %v2612_v3  ;;  %v2615_v2 = vmul.f32 %v12702_v53, %v14505_v63  ;;  %v2776_v47 = vsel %vm726_vm0, %v14565_v59, -inf  ;;  %v9951_v63 = vld [vmem:[%s17981_s11 + $0x260] sm:$0xff]  ;;  %12713 = vrsqrt.f32 %v2560_v20  ;;  %v9946_v35 = vld [vmem:[%s17981_s11 + $0x238] sm:$0xff]  ;;  %v2646_v13 = vld [vmem:[%s17981_s11 + $0x70] sm:$0xff] }
 0x2f8   : > { %v2606_v26 = vmul.f32 %v12704_v41, %v1542_v48  ;;  %v2671_v43 = vmul.f32 %v2639_v50, %v2607_v24  ;;  %v14591_v31 = vadd.f32 %v9952_v18, %v2677_v27  ;;  %v12706_v48 = vpop.eup %12705  ;;  %12715 = vrsqrt.f32 %v2554_v23  ;;  %v2113_v1 = vpop.xlane.xlu1 %2112  ;;  %v9954_v24 = vld [vmem:[%s17981_s11 + $0x278] sm:$0xff] }
 0x2f9   : > { %v2562_v10 = vmax.f32 %v2530_v46, 1e-12  ;;  %v2524_v58 = vmul.f32 %v14474_v40, %v2104_v34  ;;  %v2614_v7 = vmul.f32 %v12706_v48, %v14510_v15  ;;  %v2773_v8 = vsel %vm726_vm0, %v14584_v11, -inf  ;;  %v9945_v15 = vld [vmem:[%s17981_s11 + $0x230] sm:$0xff]  ;;  %v2110_v27 = vpop.xlane.xlu0 %2109 }
 0x2fa   : > { %v2670_v3 = vmul.f32 %v2638_v36, %v2606_v26  ;;  %v14606_v62 = vadd.f32 %v9951_v63, %v2676_v32  ;;  %12717 = vrsqrt.f32 %v2555_v49  ;;  %v2557_v39 = vmax.f32 %v2525_v0, 1e-12  ;;  %v2657_v36 = vld [vmem:[%s17981_s11 + $0xc8] sm:$0xff] }
 0x2fb   : > { %2792 = vmax.xlane.f32.xlu0 %v2791_v4  ;;  %2777 = vmax.xlane.f32.xlu1 %v2776_v47  ;;  %v2679_v54 = vmul.f32 %v2647_v21, %v2615_v2  ;;  %v2800_v34 = vsel %vm726_vm0, %v14591_v31, -inf  ;;  %v14613_v23 = vadd.f32 %v9946_v35, %v2671_v43  ;;  %12719 = vrsqrt.f32 %v2563_v60  ;;  %v9953_v2 = vld [vmem:[%s17981_s11 + $0x270] sm:$0xff]  ;;  %v2648_v60 = vld [vmem:[%s17981_s11 + $0x80] sm:$0xff] }
 0x2fc   : > { %v2533_v20 = vmul.f32 %v14477_v61, %v2131_v44  ;;  %v2556_v22 = vmax.f32 %v2524_v58, 1e-12  ;;  %v12708_v52 = vpop.eup %12707  ;;  %12721 = vrsqrt.f32 %v2562_v10  ;;  %v2678_v53 = vmul.f32 %v2646_v13, %v2614_v7  ;;  %v2649_v44 = vld [vmem:[%s17981_s11 + $0x88] sm:$0xff]  ;;  %v2137_v10 = vpop.xlane.xlu1 %2136  ;;  %v9955_v13 = vld [vmem:[%s17981_s11 + $0x280] sm:$0xff] }
 0x2fd   : > { %v2797_v12 = vsel %vm726_vm0, %v14606_v62, -inf  ;;  %v14624_v46 = vadd.f32 %v9945_v15, %v2670_v3  ;;  %v12710_v50 = vpop.eup %12709  ;;  %12723 = vrsqrt.f32 %v2557_v39  ;;  %v2532_v18 = vmul.f32 %v14477_v61, %v2128_v55  ;;  %v9956_v7 = vld [vmem:[%s17981_s11 + $0x288] sm:$0xff]  ;;  %v2134_v3 = vpop.xlane.xlu0 %2133 }
 0x2fe   : > { %v2782_v41 = vsel %vm726_vm0, %v14613_v23, -inf  ;;  %v14632_v32 = vadd.f32 %v9954_v24, %v2679_v54  ;;  %v2565_v4 = vmax.f32 %v2533_v20, 1e-12  ;;  %v2527_v55 = vmul.f32 %v14474_v40, %v2113_v1  ;;  %v2656_v20 = vld [vmem:[%s17981_s11 + $0xc0] sm:$0xff] }
 0x2ff   : > { %2774 = vmax.xlane.f32.xlu0 %v2773_v8  ;;  %2801 = vmax.xlane.f32.xlu1 %v2800_v34  ;;  %v12712_v26 = vpop.eup %12711  ;;  %12725 = vrsqrt.f32 %v2556_v22  ;;  %v2526_v35 = vmul.f32 %v14474_v40, %v2110_v27  ;;  %v2779_v1 = vsel %vm726_vm0, %v14624_v46, -inf  ;;  %v14650_v54 = vadd.f32 %v9953_v2, %v2678_v53 }
 0x300   : > { %v2564_v40 = vmax.f32 %v2532_v18, 1e-12  ;;  %v2806_v24 = vsel %vm726_vm0, %v14632_v32, -inf  ;;  %12727 = vrsqrt.f32 %v2565_v4  ;;  %v2535_v53 = vmul.f32 %v14477_v61, %v2137_v10  ;;  %v2651_v18 = vld [vmem:[%s17981_s11 + $0x98] sm:$0xff]  ;;  %v9963_v10 = vld [vmem:[%s17981_s11 + $0x2c0] sm:$0xff] }
 0x301   : > { %v12714_v21 = vpop.eup %12713 }
 0x302   : > { %v12716_v34 = vpop.eup %12715  ;;  %12729 = vrsqrt.f32 %v2564_v40 }
 0x303   : > { %2798 = vmax.xlane.f32.xlu0 %v2797_v12  ;;  %2783 = vmax.xlane.f32.xlu1 %v2782_v41  ;;  %v9964_v41 = vld [vmem:[%s17981_s11 + $0x2c8] sm:$0xff] }
 0x304   : > { %v12718_v22 = vpop.eup %12717 }
 0x305   : > { %v11209_v49 = vpop.f32.mrb[16].mxu1  ;;  %v11181_v0 = vpop.f32.mrb[32].mxu0 }
 0x306   : > { %v2625_v43 = vmul.f32 %v12708_v52, %v11209_v49  ;;  %v2617_v47 = vmul.f32 %v12710_v50, %v11181_v0  ;;  %v1971_v63 = vpop.f32.mrb[17].mxu1  ;;  %v1818_v48 = vpop.f32.mrb[33].mxu0  ;;  %v2559_v52 = vmax.f32 %v2527_v55, 1e-12  ;;  %v2558_v0 = vmax.f32 %v2526_v35, 1e-12 }
 0x307   : > { %v2616_v58 = vmul.f32 %v12712_v26, %v1818_v48  ;;  %v2624_v39 = vmul.f32 %v12714_v21, %v1971_v63  ;;  %2780 = vmax.xlane.f32.xlu0 %v2779_v1  ;;  %2807 = vmax.xlane.f32.xlu1 %v2806_v24 }
 0x308   : > { %v2681_v8 = vmul.f32 %v2649_v44, %v2617_v47  ;;  %v2689_v15 = vmul.f32 %v2657_v36, %v2625_v43  ;;  %v2534_v44 = vmul.f32 %v14477_v61, %v2134_v3  ;;  %v12720_v43 = vpop.eup %12719  ;;  %v2803_v47 = vsel %vm726_vm0, %v14650_v54, -inf  ;;  %v2650_v61 = vld [vmem:[%s17981_s11 + $0x90] sm:$0xff]  ;;  %v2659_v3 = vld [vmem:[%s17981_s11 + $0xd8] sm:$0xff] }
 0x309   : > { %v2680_v27 = vmul.f32 %v2648_v60, %v2616_v58  ;;  %v2688_v36 = vmul.f32 %v2656_v20, %v2624_v39  ;;  %v12722_v58 = vpop.eup %12721  ;;  %12731 = vrsqrt.f32 %v2559_v52  ;;  %v9958_v39 = vld [vmem:[%s17981_s11 + $0x298] sm:$0xff] }
 0x30a   : > { %v11212_v12 = vpop.f32.mrb[18].mxu1  ;;  %v11184_v50 = vpop.f32.mrb[34].mxu0  ;;  %v14664_v49 = vadd.f32 %v9956_v7, %v2681_v8  ;;  %v14679_v35 = vadd.f32 %v9964_v41, %v2689_v15  ;;  %v2567_v7 = vmax.f32 %v2535_v53, 1e-12  ;;  %12733 = vrsqrt.f32 %v2558_v0  ;;  %v9957_v0 = vld [vmem:[%s17981_s11 + $0x290] sm:$0xff] }
 0x30b   : > { %v2619_v2 = vmul.f32 %v12718_v22, %v11184_v50  ;;  %v1981_v26 = vpop.f32.mrb[19].mxu1  ;;  %v1828_v4 = vpop.f32.mrb[35].mxu0  ;;  %v14670_v55 = vadd.f32 %v9955_v13, %v2680_v27  ;;  %v2627_v60 = vmul.f32 %v12720_v43, %v11212_v12  ;;  %2804 = vmax.xlane.f32.xlu0 %v2803_v47  ;;  %v2566_v13 = vmax.f32 %v2534_v44, 1e-12  ;;  %v2658_v12 = vld [vmem:[%s17981_s11 + $0xd0] sm:$0xff]  ;;  %v2653_v44 = vld [vmem:[%s17981_s11 + $0xa8] sm:$0xff] }
 0x30c   : > { %v2618_v63 = vmul.f32 %v12716_v34, %v1828_v4  ;;  %v2812_v48 = vsel %vm726_vm0, %v14664_v49, -inf  ;;  %v12724_v1 = vpop.eup %12723  ;;  %v2626_v15 = vmul.f32 %v12722_v58, %v1981_v26  ;;  %v14692_v22 = vadd.f32 %v9963_v10, %v2688_v36 }
 0x30d   : > { %v2683_v21 = vmul.f32 %v2651_v18, %v2619_v2  ;;  %2813 = vmax.xlane.f32.xlu1 %v2812_v48  ;;  %v2809_v8 = vsel %vm726_vm0, %v14670_v55, -inf  ;;  %v12726_v52 = vpop.eup %12725  ;;  %v2691_v53 = vmul.f32 %v2659_v3, %v2627_v60  ;;  %v2836_v18 = vsel %vm726_vm0, %v14679_v35, -inf  ;;  %v9966_v2 = vld [vmem:[%s17981_s11 + $0x2d8] sm:$0xff] }
 0x30e   : > { %v2682_v20 = vmul.f32 %v2650_v61, %v2618_v63  ;;  %12735 = vrsqrt.f32 %v2567_v7  ;;  %v12728_v26 = vpop.eup %12727  ;;  %v2690_v4 = vmul.f32 %v2658_v12, %v2626_v15  ;;  %v2833_v63 = vsel %vm726_vm0, %v14692_v22, -inf  ;;  %v2652_v61 = vld [vmem:[%s17981_s11 + $0xa0] sm:$0xff] }
 0x30f   : > { %v11215_v34 = vpop.f32.mrb[20].mxu1  ;;  %v11187_v40 = vpop.f32.mrb[36].mxu0  ;;  %2810 = vmax.xlane.f32.xlu0 %v2809_v8  ;;  %v14699_v41 = vadd.f32 %v9958_v39, %v2683_v21  ;;  %12737 = vrsqrt.f32 %v2566_v13  ;;  %v14719_v3 = vadd.f32 %v9966_v2, %v2691_v53  ;;  %v9965_v8 = vld [vmem:[%s17981_s11 + $0x2d0] sm:$0xff]  ;;  %v2661_v39 = vld [vmem:[%s17981_s11 + $0xe8] sm:$0xff]  ;;  %v2660_v53 = vld [vmem:[%s17981_s11 + $0xe0] sm:$0xff] }
 0x310   : > { %v1991_v27 = vpop.f32.mrb[21].mxu1  ;;  %v1838_v24 = vpop.f32.mrb[37].mxu0  ;;  %v2621_v50 = vmul.f32 %v12724_v1, %v11187_v40  ;;  %v14712_v48 = vadd.f32 %v9957_v0, %v2682_v20  ;;  %v2629_v60 = vmul.f32 %v12728_v26, %v11215_v34  ;;  %v9960_v1 = vld [vmem:[%s17981_s11 + $0x2a8] sm:$0xff] }
 0x311   : > { %2837 = vmax.xlane.f32.xlu1 %v2836_v18  ;;  %v2620_v43 = vmul.f32 %v12726_v52, %v1838_v24  ;;  %v2818_v7 = vsel %vm726_vm0, %v14699_v41, -inf  ;;  %v12730_v13 = vpop.eup %12729  ;;  %v14732_v24 = vadd.f32 %v9965_v8, %v2690_v4  ;;  %v9968_v2 = vld [vmem:[%s17981_s11 + $0x2e8] sm:$0xff] }
 0x312   : > { %v2685_v21 = vmul.f32 %v2653_v44, %v2621_v50  ;;  %v2628_v40 = vmul.f32 %v12730_v13, %v1991_v27  ;;  %v2815_v20 = vsel %vm726_vm0, %v14712_v48, -inf  ;;  %v2693_v52 = vmul.f32 %v2661_v39, %v2629_v60  ;;  %v9959_v27 = vld [vmem:[%s17981_s11 + $0x2a0] sm:$0xff]  ;;  %v2655_v44 = vld [vmem:[%s17981_s11 + $0xb8] sm:$0xff] }
 0x313   : > { %2834 = vmax.xlane.f32.xlu0 %v2833_v63  ;;  %v12732_v34 = vpop.eup %12731  ;;  %v2684_v15 = vmul.f32 %v2652_v61, %v2620_v43  ;;  %v2842_v50 = vsel %vm726_vm0, %v14719_v3, -inf }
 0x314   : > { %v11218_v36 = vpop.f32.mrb[22].mxu1  ;;  %v11190_v47 = vpop.f32.mrb[38].mxu0  ;;  %v14739_v18 = vadd.f32 %v9960_v1, %v2685_v21  ;;  %v2692_v4 = vmul.f32 %v2660_v53, %v2628_v40  ;;  %v14759_v39 = vadd.f32 %v9968_v2, %v2693_v52  ;;  %v2663_v1 = vld [vmem:[%s17981_s11 + $0xf8] sm:$0xff]  ;;  %v2662_v52 = vld [vmem:[%s17981_s11 + $0xf0] sm:$0xff] }
 0x315   : > { %v2001_v10 = vpop.f32.mrb[23].mxu1  ;;  %v1848_v58 = vpop.f32.mrb[39].mxu0  ;;  %2819 = vmax.xlane.f32.xlu1 %v2818_v7  ;;  %v2623_v12 = vmul.f32 %v12732_v34, %v11190_v47  ;;  %v2839_v47 = vsel %vm726_vm0, %v14732_v24, -inf  ;;  %v14752_v63 = vadd.f32 %v9959_v27, %v2684_v15  ;;  %v2654_v7 = vld [vmem:[%s17981_s11 + $0xb0] sm:$0xff] }
 0x316   : > { %v12734_v0 = vpop.eup %12733  ;;  %v2824_v8 = vsel %vm726_vm0, %v14739_v18, -inf  ;;  %v2848_v53 = vsel %vm726_vm0, %v14759_v39, -inf }
 0x317   : > { %2816 = vmax.xlane.f32.xlu0 %v2815_v20  ;;  %v2622_v43 = vmul.f32 %v12734_v0, %v1848_v58  ;;  %v2687_v61 = vmul.f32 %v2655_v44, %v2623_v12  ;;  %v9967_v58 = vld [vmem:[%s17981_s11 + $0x2e0] sm:$0xff]  ;;  %v2821_v40 = vsel %vm726_vm0, %v14752_v63, -inf }
 0x318   : > { %v12736_v26 = vpop.eup %12735  ;;  %v14772_v15 = vadd.f32 %v9967_v58, %v2692_v4  ;;  %v9969_v4 = vld [vmem:[%s17981_s11 + $0x2f0] sm:$0xff] }
 0x319   : > { %2843 = vmax.xlane.f32.xlu1 %v2842_v50  ;;  %v12738_v60 = vpop.eup %12737  ;;  %v2631_v21 = vmul.f32 %v12736_v26, %v11218_v36  ;;  %v9962_v36 = vld [vmem:[%s17981_s11 + $0x2b8] sm:$0xff]  ;;  %v2686_v34 = vmul.f32 %v2654_v7, %v2622_v43 }
 0x31a   : > { %v2630_v13 = vmul.f32 %v12738_v60, %v2001_v10  ;;  %v14779_v12 = vadd.f32 %v9962_v36, %v2687_v61  ;;  %v9961_v10 = vld [vmem:[%s17981_s11 + $0x2b0] sm:$0xff]  ;;  %v9970_v50 = vld [vmem:[%s17981_s11 + $0x2f8] sm:$0xff]  ;;  %v2845_v0 = vsel %vm726_vm0, %v14772_v15, -inf }
 0x31b   : > { %2840 = vmax.xlane.f32.xlu0 %v2839_v47  ;;  %v2695_v20 = vmul.f32 %v2663_v1, %v2631_v21  ;;  %v14789_v44 = vadd.f32 %v9961_v10, %v2686_v34 }
 0x31c   : > { %v2694_v27 = vmul.f32 %v2662_v52, %v2630_v13  ;;  %v2830_v2 = vsel %vm726_vm0, %v14779_v12, -inf }
 0x31d   : > { %2825 = vmax.xlane.f32.xlu1 %v2824_v8  ;;  %v14793_v26 = vadd.f32 %v9970_v50, %v2695_v20  ;;  %v2827_v43 = vsel %vm726_vm0, %v14789_v44, -inf }
 0x31e   : > { %v14800_v47 = vadd.f32 %v9969_v4, %v2694_v27 }
 0x31f   : > { %2822 = vmax.xlane.f32.xlu0 %v2821_v40  ;;  %v2854_v60 = vsel %vm726_vm0, %v14793_v26, -inf }
 0x320   : > { %v2851_v21 = vsel %vm726_vm0, %v14800_v47, -inf }
 0x321   : > { %2849 = vmax.xlane.f32.xlu1 %v2848_v53 }
 0x323   : > { %2846 = vmax.xlane.f32.xlu0 %v2845_v0 }
 0x325   : > { %2831 = vmax.xlane.f32.xlu1 %v2830_v2 }
 0x327   : > { %2828 = vmax.xlane.f32.xlu0 %v2827_v43 }
 0x329   : > { %2855 = vmax.xlane.f32.xlu1 %v2854_v60 }
 0x32b   : > { %2852 = vmax.xlane.f32.xlu0 %v2851_v21 }
 0x378   : > { %v2766_v61 = vpop.xlane.xlu1 %2765 }
 0x379   : > { %v2858_v7 = vsub.f32 %v14443_v29, %v2766_v61 }
 0x37a   : > { %v2763_v58 = vpop.xlane.xlu0 %2762 }
 0x37b   : > { %v2891_v8 = vmul.f32 1.442695, %v2858_v7  ;;  %v2857_v1 = vsub.f32 %v14467_v51, %v2763_v58 }
 0x37c   : > { %v2790_v36 = vpop.xlane.xlu1 %2789 }
 0x37d   : > { %12739 = vpow2.f32 %v2891_v8  ;;  %v2866_v13 = vsub.f32 %v14469_v57, %v2790_v36  ;;  %v2889_v34 = vmul.f32 1.442695, %v2857_v1 }
 0x37e   : > { %v2787_v20 = vpop.xlane.xlu0 %2786 }
 0x37f   : > { %v2907_v40 = vmul.f32 1.442695, %v2866_v13  ;;  %12741 = vpow2.f32 %v2889_v34  ;;  %v2865_v52 = vsub.f32 %v14512_v19, %v2787_v20 }
 0x380   : > { %v2772_v53 = vpop.xlane.xlu1 %2771 }
 0x381   : > { %12743 = vpow2.f32 %v2907_v40  ;;  %v2860_v10 = vsub.f32 %v14516_v17, %v2772_v53  ;;  %v2905_v50 = vmul.f32 1.442695, %v2865_v52 }
 0x383   : > { %v2895_v29 = vmul.f32 1.442695, %v2860_v10  ;;  %12745 = vpow2.f32 %v2905_v50 }
 0x384   : > { %v2769_v27 = vpop.xlane.xlu0 %2768  ;;  %v2796_v2 = vpop.xlane.xlu1 %2795 }
 0x385   : > { %v2859_v51 = vsub.f32 %v14545_v6, %v2769_v27  ;;  %12747 = vpow2.f32 %v2895_v29  ;;  %v2868_v57 = vsub.f32 %v14547_v9, %v2796_v2 }
 0x387   : > { %v14811_v0 = vpop.eup %12739  ;;  %v2893_v43 = vmul.f32 1.442695, %v2859_v51  ;;  %v2911_v19 = vmul.f32 1.442695, %v2868_v57 }
 0x388   : > { %v2956_v4 = vsel %vm726_vm0, %v14811_v0, 0.0  ;;  %v2793_v60 = vpop.xlane.xlu0 %2792  ;;  %v2778_v21 = vpop.xlane.xlu1 %2777 }
 0x389   : > { %2957 = vadd.xlane.f32.xlu1 %v2956_v4  ;;  %12749 = vpow2.f32 %v2893_v43  ;;  %v2867_v17 = vsub.f32 %v14560_v45, %v2793_v60  ;;  %v14818_v61 = vpop.eup %12741  ;;  %v2862_v6 = vsub.f32 %v14565_v59, %v2778_v21 }
 0x38a   : > { %12751 = vpow2.f32 %v2911_v19  ;;  %v2953_v9 = vsel %vm726_vm0, %v14818_v61, 0.0 }
 0x38b   : > { %v14821_v7 = vpop.eup %12743  ;;  %v2909_v8 = vmul.f32 1.442695, %v2867_v17  ;;  %v2899_v58 = vmul.f32 1.442695, %v2862_v6  ;;  %2954 = vadd.xlane.f32.xlu0 %v2953_v9 }
 0x38c   : > { %v2775_v1 = vpop.xlane.xlu0 %2774  ;;  %v2980_v36 = vsel %vm726_vm0, %v14821_v7, 0.0  ;;  %v2802_v13 = vpop.xlane.xlu1 %2801 }
 0x38d   : > { %12753 = vpow2.f32 %v2909_v8  ;;  %v2861_v45 = vsub.f32 %v14584_v11, %v2775_v1  ;;  %2981 = vadd.xlane.f32.xlu1 %v2980_v36  ;;  %v2870_v59 = vsub.f32 %v14591_v31, %v2802_v13  ;;  %v14829_v34 = vpop.eup %12745 }
 0x38e   : > { %12755 = vpow2.f32 %v2899_v58  ;;  %v2977_v10 = vsel %vm726_vm0, %v14829_v34, 0.0 }
 0x38f   : > { %v2897_v40 = vmul.f32 1.442695, %v2861_v45  ;;  %v14831_v20 = vpop.eup %12747  ;;  %v2915_v52 = vmul.f32 1.442695, %v2870_v59  ;;  %2978 = vadd.xlane.f32.xlu0 %v2977_v10 }
 0x390   : > { %v2799_v53 = vpop.xlane.xlu0 %2798  ;;  %v2784_v11 = vpop.xlane.xlu1 %2783  ;;  %v2962_v29 = vsel %vm726_vm0, %v14831_v20, 0.0 }
 0x391   : > { %12757 = vpow2.f32 %v2897_v40  ;;  %v2869_v50 = vsub.f32 %v14606_v62, %v2799_v53  ;;  %v2864_v31 = vsub.f32 %v14613_v23, %v2784_v11  ;;  %2963 = vadd.xlane.f32.xlu1 %v2962_v29 }
 0x392   : > { %12759 = vpow2.f32 %v2915_v52 }
 0x393   : > { %v14839_v27 = vpop.eup %12749  ;;  %v2913_v51 = vmul.f32 1.442695, %v2869_v50  ;;  %v2903_v57 = vmul.f32 1.442695, %v2864_v31 }
 0x394   : > { %v14841_v2 = vpop.eup %12751  ;;  %v2781_v4 = vpop.xlane.xlu0 %2780  ;;  %v2959_v43 = vsel %vm726_vm0, %v14839_v27, 0.0 }
 0x395   : > { %12761 = vpow2.f32 %v2913_v51  ;;  %v2863_v62 = vsub.f32 %v14624_v46, %v2781_v4  ;;  %2960 = vadd.xlane.f32.xlu0 %v2959_v43  ;;  %v2808_v19 = vpop.xlane.xlu1 %2807  ;;  %v2986_v60 = vsel %vm726_vm0, %v14841_v2, 0.0 }
 0x396   : > { %12763 = vpow2.f32 %v2903_v57  ;;  %v2872_v23 = vsub.f32 %v14632_v32, %v2808_v19  ;;  %2987 = vadd.xlane.f32.xlu1 %v2986_v60 }
 0x397   : > { %v14849_v17 = vpop.eup %12753  ;;  %v2901_v21 = vmul.f32 1.442695, %v2863_v62 }
 0x398   : > { %v14851_v6 = vpop.eup %12755  ;;  %v2919_v8 = vmul.f32 1.442695, %v2872_v23  ;;  %v2805_v9 = vpop.xlane.xlu0 %2804  ;;  %v2983_v58 = vsel %vm726_vm0, %v14849_v17, 0.0 }
 0x399   : > { %12765 = vpow2.f32 %v2901_v21  ;;  %v2871_v46 = vsub.f32 %v14650_v54, %v2805_v9  ;;  %2984 = vadd.xlane.f32.xlu0 %v2983_v58  ;;  %v2968_v36 = vsel %vm726_vm0, %v14851_v6, 0.0 }
 0x39a   : > { %v2814_v1 = vpop.xlane.xlu1 %2813  ;;  %12767 = vpow2.f32 %v2919_v8  ;;  %2969 = vadd.xlane.f32.xlu1 %v2968_v36 }
 0x39b   : > { %v2874_v32 = vsub.f32 %v14664_v49, %v2814_v1  ;;  %v14859_v45 = vpop.eup %12757  ;;  %v2917_v13 = vmul.f32 1.442695, %v2871_v46 }
 0x39c   : > { %v14861_v59 = vpop.eup %12759  ;;  %v2811_v52 = vpop.xlane.xlu0 %2810  ;;  %v2965_v53 = vsel %vm726_vm0, %v14859_v45, 0.0 }
 0x39d   : > { %v2923_v40 = vmul.f32 1.442695, %v2874_v32  ;;  %12769 = vpow2.f32 %v2917_v13  ;;  %v2873_v54 = vsub.f32 %v14670_v55, %v2811_v52  ;;  %2966 = vadd.xlane.f32.xlu0 %v2965_v53  ;;  %v2992_v50 = vsel %vm726_vm0, %v14861_v59, 0.0 }
 0x39e   : > { %v2838_v10 = vpop.xlane.xlu1 %2837  ;;  %2993 = vadd.xlane.f32.xlu1 %v2992_v50 }
 0x39f   : > { %12771 = vpow2.f32 %v2923_v40  ;;  %v2882_v49 = vsub.f32 %v14679_v35, %v2838_v10  ;;  %v14869_v11 = vpop.eup %12761  ;;  %v2921_v29 = vmul.f32 1.442695, %v2873_v54 }
 0x3a0   : > { %v14871_v31 = vpop.eup %12763  ;;  %v2835_v57 = vpop.xlane.xlu0 %2834  ;;  %v2989_v4 = vsel %vm726_vm0, %v14869_v11, 0.0 }
 0x3a1   : > { %v2939_v51 = vmul.f32 1.442695, %v2882_v49  ;;  %12773 = vpow2.f32 %v2921_v29  ;;  %v2881_v55 = vsub.f32 %v14692_v22, %v2835_v57  ;;  %2990 = vadd.xlane.f32.xlu0 %v2989_v4  ;;  %v2974_v62 = vsel %vm726_vm0, %v14871_v31, 0.0 }
 0x3a2   : > { %v2820_v43 = vpop.xlane.xlu1 %2819  ;;  %2975 = vadd.xlane.f32.xlu1 %v2974_v62 }
 0x3a3   : > { %12775 = vpow2.f32 %v2939_v51  ;;  %v2876_v35 = vsub.f32 %v14699_v41, %v2820_v43  ;;  %v14879_v19 = vpop.eup %12765  ;;  %v2937_v60 = vmul.f32 1.442695, %v2881_v55 }
 0x3a4   : > { %v14881_v23 = vpop.eup %12767  ;;  %v2817_v8 = vpop.xlane.xlu0 %2816  ;;  %v2971_v9 = vsel %vm726_vm0, %v14879_v19, 0.0 }
 0x3a5   : > { %v2927_v21 = vmul.f32 1.442695, %v2876_v35  ;;  %12777 = vpow2.f32 %v2937_v60  ;;  %v2875_v22 = vsub.f32 %v14712_v48, %v2817_v8  ;;  %2972 = vadd.xlane.f32.xlu0 %v2971_v9  ;;  %v2998_v46 = vsel %vm726_vm0, %v14881_v23, 0.0 }
 0x3a6   : > { %v2844_v58 = vpop.xlane.xlu1 %2843  ;;  %2999 = vadd.xlane.f32.xlu1 %v2998_v46 }
 0x3a7   : > { %12779 = vpow2.f32 %v2927_v21  ;;  %v2884_v41 = vsub.f32 %v14719_v3, %v2844_v58  ;;  %v14889_v1 = vpop.eup %12769  ;;  %v2925_v36 = vmul.f32 1.442695, %v2875_v22 }
 0x3a8   : > { %v2841_v40 = vpop.xlane.xlu0 %2840  ;;  %v2995_v52 = vsel %vm726_vm0, %v14889_v1, 0.0 }
 0x3a9   : > { %v14891_v32 = vpop.eup %12771  ;;  %v2943_v13 = vmul.f32 1.442695, %v2884_v41  ;;  %12781 = vpow2.f32 %v2925_v36  ;;  %v2883_v48 = vsub.f32 %v14732_v24, %v2841_v40  ;;  %2996 = vadd.xlane.f32.xlu0 %v2995_v52 }
 0x3aa   : > { %v2826_v53 = vpop.xlane.xlu1 %2825  ;;  %v3004_v54 = vsel %vm726_vm0, %v14891_v32, 0.0 }
 0x3ab   : > { %12783 = vpow2.f32 %v2943_v13  ;;  %v2878_v3 = vsub.f32 %v14739_v18, %v2826_v53  ;;  %3005 = vadd.xlane.f32.xlu1 %v3004_v54  ;;  %v14899_v10 = vpop.eup %12773  ;;  %v2941_v50 = vmul.f32 1.442695, %v2883_v48 }
 0x3ac   : > { %v2823_v51 = vpop.xlane.xlu0 %2822  ;;  %v3001_v57 = vsel %vm726_vm0, %v14899_v10, 0.0 }
 0x3ad   : > { %v14901_v49 = vpop.eup %12775  ;;  %v2931_v29 = vmul.f32 1.442695, %v2878_v3  ;;  %12785 = vpow2.f32 %v2941_v50  ;;  %v2877_v24 = vsub.f32 %v14752_v63, %v2823_v51  ;;  %3002 = vadd.xlane.f32.xlu0 %v3001_v57 }
 0x3ae   : > { %v2850_v4 = vpop.xlane.xlu1 %2849  ;;  %v3028_v55 = vsel %vm726_vm0, %v14901_v49, 0.0 }
 0x3af   : > { %12787 = vpow2.f32 %v2931_v29  ;;  %v2886_v18 = vsub.f32 %v14759_v39, %v2850_v4  ;;  %3029 = vadd.xlane.f32.xlu1 %v3028_v55  ;;  %v14909_v43 = vpop.eup %12777  ;;  %v2929_v62 = vmul.f32 1.442695, %v2877_v24 }
 0x3b0   : > { %v2847_v21 = vpop.xlane.xlu0 %2846  ;;  %v3025_v8 = vsel %vm726_vm0, %v14909_v43, 0.0 }
 0x3b1   : > { %v14911_v35 = vpop.eup %12779  ;;  %v2947_v60 = vmul.f32 1.442695, %v2886_v18  ;;  %12789 = vpow2.f32 %v2929_v62  ;;  %v2885_v63 = vsub.f32 %v14772_v15, %v2847_v21  ;;  %3026 = vadd.xlane.f32.xlu0 %v3025_v8 }
 0x3b2   : > { %v2832_v9 = vpop.xlane.xlu1 %2831  ;;  %v3010_v22 = vsel %vm726_vm0, %v14911_v35, 0.0 }
 0x3b3   : > { %12791 = vpow2.f32 %v2947_v60  ;;  %v2880_v39 = vsub.f32 %v14779_v12, %v2832_v9  ;;  %3011 = vadd.xlane.f32.xlu1 %v3010_v22  ;;  %v14919_v58 = vpop.eup %12781  ;;  %v2945_v46 = vmul.f32 1.442695, %v2885_v63 }
 0x3b4   : > { %v2829_v13 = vpop.xlane.xlu0 %2828  ;;  %v3007_v40 = vsel %vm726_vm0, %v14919_v58, 0.0 }
 0x3b5   : > { %v14921_v41 = vpop.eup %12783  ;;  %v2935_v36 = vmul.f32 1.442695, %v2880_v39  ;;  %12793 = vpow2.f32 %v2945_v46  ;;  %v2879_v15 = vsub.f32 %v14789_v44, %v2829_v13  ;;  %3008 = vadd.xlane.f32.xlu0 %v3007_v40 }
 0x3b6   : > { %v2856_v52 = vpop.xlane.xlu1 %2855  ;;  %v3034_v48 = vsel %vm726_vm0, %v14921_v41, 0.0 }
 0x3b7   : > { %12795 = vpow2.f32 %v2935_v36  ;;  %v2888_v12 = vsub.f32 %v14793_v26, %v2856_v52  ;;  %3035 = vadd.xlane.f32.xlu1 %v3034_v48  ;;  %v14929_v53 = vpop.eup %12785  ;;  %v2933_v54 = vmul.f32 1.442695, %v2879_v15 }
 0x3b8   : > { %v2853_v29 = vpop.xlane.xlu0 %2852  ;;  %v3031_v51 = vsel %vm726_vm0, %v14929_v53, 0.0 }
 0x3b9   : > { %v14931_v3 = vpop.eup %12787  ;;  %v2951_v50 = vmul.f32 1.442695, %v2888_v12  ;;  %12797 = vpow2.f32 %v2933_v54  ;;  %v2887_v44 = vsub.f32 %v14800_v47, %v2853_v29  ;;  %3032 = vadd.xlane.f32.xlu0 %v3031_v51 }
 0x3ba   : > { %v3016_v57 = vsel %vm726_vm0, %v14931_v3, 0.0 }
 0x3bb   : > { %12799 = vpow2.f32 %v2951_v50  ;;  %3017 = vadd.xlane.f32.xlu1 %v3016_v57  ;;  %v14938_v26 = vpop.eup %12789  ;;  %v2949_v24 = vmul.f32 1.442695, %v2887_v44 }
 0x3bc   : > { %v3013_v55 = vsel %vm726_vm0, %v14938_v26, 0.0 }
 0x3bd   : > { %v14940_v4 = vpop.eup %12791  ;;  %12801 = vpow2.f32 %v2949_v24  ;;  %3014 = vadd.xlane.f32.xlu0 %v3013_v55 }
 0x3be   : > { %v3040_v18 = vsel %vm726_vm0, %v14940_v4, 0.0 }
 0x3bf   : > { %3041 = vadd.xlane.f32.xlu1 %v3040_v18  ;;  %v14946_v47 = vpop.eup %12793 }
 0x3c0   : > { %v3037_v60 = vsel %vm726_vm0, %v14946_v47, 0.0 }
 0x3c1   : > { %v14948_v62 = vpop.eup %12795  ;;  %3038 = vadd.xlane.f32.xlu0 %v3037_v60 }
 0x3c2   : > { %v3022_v21 = vsel %vm726_vm0, %v14948_v62, 0.0 }
 0x3c3   : > { %3023 = vadd.xlane.f32.xlu1 %v3022_v21  ;;  %v14954_v8 = vpop.eup %12797 }
 0x3c4   : > { %v3019_v9 = vsel %vm726_vm0, %v14954_v8, 0.0 }
 0x3c5   : > { %v14956_v63 = vpop.eup %12799  ;;  %3020 = vadd.xlane.f32.xlu0 %v3019_v9 }
 0x3c6   : > { %v3046_v22 = vsel %vm726_vm0, %v14956_v63, 0.0 }
 0x3c7   : > { %3047 = vadd.xlane.f32.xlu1 %v3046_v22  ;;  %v14962_v39 = vpop.eup %12801 }
 0x3c8   : > { %v3043_v46 = vsel %vm726_vm0, %v14962_v39, 0.0 }
 0x3c9   : > { %3044 = vadd.xlane.f32.xlu0 %v3043_v46  ;;  %v18210_v46 = vld [vmem:[#allocation41_spill] sm:$0xff] }
 0x416   : > { %v2958_v36 = vpop.xlane.xlu1 %2957 }
 0x417   : > { %12803 = vrcp.f32 %v2958_v36 }
 0x418   : > { %v2955_v13 = vpop.xlane.xlu0 %2954 }
 0x419   : > { %12805 = vrcp.f32 %v2955_v13 }
 0x41a   : > { %v2982_v40 = vpop.xlane.xlu1 %2981 }
 0x41b   : > { %12807 = vrcp.f32 %v2982_v40 }
 0x41c   : > { %v2979_v15 = vpop.xlane.xlu0 %2978 }
 0x41d   : > { %12809 = vrcp.f32 %v2979_v15  ;;  %v18212_v15 = vld [vmem:[#allocation34_spill] sm:$0xff] }
 0x41e   : > { %v2964_v52 = vpop.xlane.xlu1 %2963 }
 0x41f   : > { %12811 = vrcp.f32 %v2964_v52 }
 0x421   : > { %v12804_v12 = vpop.eup %12803 }
 0x422   : > { %v2961_v48 = vpop.xlane.xlu0 %2960  ;;  %v3082_v51 = vmul.f32 %v12804_v12, %v14811_v0 }
 0x423   : > { %12813 = vrcp.f32 %v2961_v48  ;;  %v2988_v54 = vpop.xlane.xlu1 %2987  ;;  %v12806_v50 = vpop.eup %12805 }
 0x424   : > { %v3081_v29 = vmul.f32 %v12806_v50, %v14818_v61  ;;  %12815 = vrcp.f32 %v2988_v54  ;;  %v18213_v50 = vld [vmem:[#allocation28_spill] sm:$0xff] }
 0x425   : > { %v12808_v24 = vpop.eup %12807 }
 0x426   : > { %v2985_v44 = vpop.xlane.xlu0 %2984  ;;  %11235 = vmatprep.mubr.msk.f32.mxu0 %vm726_vm0, %v3081_v29  ;;  %v3090_v0 = vmul.f32 %v12808_v24, %v14821_v7 }
 0x427   : > { %12817 = vrcp.f32 %v2985_v44  ;;  %v2970_v57 = vpop.xlane.xlu1 %2969  ;;  %11236 = vmatmul.mubr.msk.f32.vlgmr.msra.gmra.mrb[40].mxu0 %vm726_vm0, %v3082_v51  ;;  %v12810_v55 = vpop.eup %12809 }
 0x428   : > { %12230 = vmatpush3.bf16.msra.mxu0 %v13974_v37  ;;  %12819 = vrcp.f32 %v2970_v57  ;;  %v3089_v61 = vmul.f32 %v12810_v55, %v14829_v34  ;;  %v18209_v37 = vld [vmem:[#allocation40_spill] sm:$0xff] }
 0x429   : > { %12232 = vmatprep.subr.bf16.mxu0 %v14038_v56  ;;  %v12812_v21 = vpop.eup %12811 }
 0x42a   : > { %v2967_v18 = vpop.xlane.xlu0 %2966  ;;  %11263 = vmatprep.mubr.msk.f32.mxu1 %vm726_vm0, %v3089_v61  ;;  %v3084_v36 = vmul.f32 %v12812_v21, %v14831_v20 }
 0x42b   : > { %12821 = vrcp.f32 %v2967_v18  ;;  %v2994_v60 = vpop.xlane.xlu1 %2993  ;;  %11264 = vmatmul.mubr.msk.f32.vlgmr.msra.gmra.mrb[24].mxu1 %vm726_vm0, %v3090_v0 }
 0x42c   : > { %12234 = vmatpush3.bf16.msra.mxu0 %v14038_v56  ;;  %12823 = vrcp.f32 %v2994_v60  ;;  %12246 = vmatpush3.bf16.msra.mxu1 %v13978_v14 }
 0x42d   : > { %v12814_v9 = vpop.eup %12813  ;;  %12236 = vmatprep.subr.bf16.mxu0 %v18209_v37  ;;  %12248 = vmatprep.subr.bf16.mxu1 %v18210_v46 }
 0x42e   : > { %v2991_v22 = vpop.xlane.xlu0 %2990  ;;  %v3083_v34 = vmul.f32 %v12814_v9, %v14839_v27  ;;  %v12816_v13 = vpop.eup %12815  ;;  %v18211_v27 = vld [vmem:[#allocation39_spill] sm:$0xff] }
 0x42f   : > { %12825 = vrcp.f32 %v2991_v22  ;;  %v2976_v7 = vpop.xlane.xlu1 %2975  ;;  %v3092_v52 = vmul.f32 %v12816_v13, %v14841_v2 }
 0x430   : > { %11238 = vmatprep.mubr.msk.f32.mxu0 %vm726_vm0, %v3083_v34  ;;  %12827 = vrcp.f32 %v2976_v7  ;;  %12238 = vmatpush3.bf16.msra.mxu0 %v18209_v37 }
 0x431   : > { %v12818_v40 = vpop.eup %12817  ;;  %11239 = vmatmul.mubr.msk.f32.gmra.mrb[42].mxu0 %vm726_vm0, %v3084_v36  ;;  %12250 = vmatpush3.bf16.msra.mxu1 %v18210_v46 }
 0x432   : > { %v2973_v14 = vpop.xlane.xlu0 %2972  ;;  %v3091_v56 = vmul.f32 %v12818_v40, %v14849_v17  ;;  %12240 = vmatprep.subr.bf16.mxu0 %v18211_v27  ;;  %12252 = vmatprep.subr.bf16.mxu1 %v18212_v15  ;;  %v12820_v48 = vpop.eup %12819 }
 0x433   : > { %12829 = vrcp.f32 %v2973_v14  ;;  %v3000_v20 = vpop.xlane.xlu1 %2999  ;;  %v3086_v2 = vmul.f32 %v12820_v48, %v14851_v6 }
 0x434   : > { %11266 = vmatprep.mubr.msk.f32.mxu1 %vm726_vm0, %v3091_v56  ;;  %12831 = vrcp.f32 %v3000_v20  ;;  %12242 = vmatpush3.bf16.msra.mxu0 %v18211_v27 }
 0x435   : > { %v12822_v12 = vpop.eup %12821  ;;  %11267 = vmatmul.mubr.msk.f32.gmra.mrb[26].mxu1 %vm726_vm0, %v3092_v52 }
 0x436   : > { %12254 = vmatpush3.bf16.msra.mxu1 %v18212_v15  ;;  %v2997_v17 = vpop.xlane.xlu0 %2996  ;;  %v3085_v54 = vmul.f32 %v12822_v12, %v14859_v45  ;;  %v12824_v51 = vpop.eup %12823 }
 0x437   : > { %12256 = vmatprep.subr.bf16.mxu1 %v18213_v50  ;;  %12833 = vrcp.f32 %v2997_v17  ;;  %v3094_v55 = vmul.f32 %v12824_v51, %v14861_v59 }
 0x438   : > { %v3006_v29 = vpop.xlane.xlu1 %3005  ;;  %11241 = vmatprep.mubr.msk.f32.mxu0 %vm726_vm0, %v3085_v54 }
 0x439   : > { %v12826_v44 = vpop.eup %12825  ;;  %11242 = vmatmul.mubr.msk.f32.gmra.mrb[44].mxu0 %vm726_vm0, %v3086_v2  ;;  %12835 = vrcp.f32 %v3006_v29 }
 0x43a   : > { %12258 = vmatpush3.bf16.msra.mxu1 %v18213_v50  ;;  %v3003_v57 = vpop.xlane.xlu0 %3002  ;;  %v3093_v24 = vmul.f32 %v12826_v44, %v14869_v11  ;;  %v12828_v18 = vpop.eup %12827 }
 0x43b   : > { %12837 = vrcp.f32 %v3003_v57  ;;  %v3088_v21 = vmul.f32 %v12828_v18, %v14871_v31 }
 0x43c   : > { %v3030_v45 = vpop.xlane.xlu1 %3029  ;;  %11269 = vmatprep.mubr.msk.f32.mxu1 %vm726_vm0, %v3093_v24 }
 0x43d   : > { %v12830_v6 = vpop.eup %12829  ;;  %11270 = vmatmul.mubr.msk.f32.gmra.mrb[28].mxu1 %vm726_vm0, %v3094_v55  ;;  %12839 = vrcp.f32 %v3030_v45 }
 0x43e   : > { %v3027_v61 = vpop.xlane.xlu0 %3026  ;;  %v3087_v0 = vmul.f32 %v12830_v6, %v14879_v19  ;;  %v12832_v9 = vpop.eup %12831 }
 0x43f   : > { %12841 = vrcp.f32 %v3027_v61  ;;  %v3096_v34 = vmul.f32 %v12832_v9, %v14881_v23  ;;  %v3691_v9 = vld [vmem:[%s18214_s22 + $0x30] sm:$0xff] }
 0x440   : > { %v3012_v60 = vpop.xlane.xlu1 %3011  ;;  %11244 = vmatprep.mubr.msk.f32.mxu0 %vm726_vm0, %v3087_v0  ;;  %v3689_v0 = vld [vmem:[%s18214_s22 + $0x20] sm:$0xff] }
 0x441   : > { %v12834_v11 = vpop.eup %12833  ;;  %11245 = vmatmul.mubr.msk.f32.gmra.mrb[46].mxu0 %vm726_vm0, %v3088_v21  ;;  %12843 = vrcp.f32 %v3012_v60  ;;  %v3690_v60 = vld [vmem:[%s18214_s22 + $0x28] sm:$0xff] }
 0x442   : > { %v3009_v59 = vpop.xlane.xlu0 %3008  ;;  %v3095_v37 = vmul.f32 %v12834_v11, %v14889_v1  ;;  %v12267_v21 = vpack.c.bf16 %v3690_v60, %v3689_v0  ;;  %v3692_v11 = vld [vmem:[%s18214_s22 + $0x38] sm:$0xff] }
 0x443   : > { %12845 = vrcp.f32 %v3009_v59  ;;  %v12836_v46 = vpop.eup %12835  ;;  %v12271_v59 = vpack.c.bf16 %v3692_v11, %v3691_v9 }
 0x444   : > { %v3036_v22 = vpop.xlane.xlu1 %3035  ;;  %11272 = vmatprep.mubr.msk.f32.mxu1 %vm726_vm0, %v3095_v37  ;;  %v3098_v36 = vmul.f32 %v12836_v46, %v14891_v32 }
 0x445   : > { %v12838_v19 = vpop.eup %12837  ;;  %11273 = vmatmul.mubr.msk.f32.gmra.mrb[30].mxu1 %vm726_vm0, %v3096_v34  ;;  %12847 = vrcp.f32 %v3036_v22 }
 0x446   : > { %v3033_v31 = vpop.xlane.xlu0 %3032  ;;  %v3097_v7 = vmul.f32 %v12838_v19, %v14899_v10 }
 0x447   : > { %12849 = vrcp.f32 %v3033_v31  ;;  %v12840_v40 = vpop.eup %12839 }
 0x448   : > { %v3018_v13 = vpop.xlane.xlu1 %3017  ;;  %11291 = vmatprep.mubr.msk.f32.mxu0 %vm726_vm0, %v3097_v7  ;;  %v3106_v56 = vmul.f32 %v12840_v40, %v14901_v49 }
 0x449   : > { %v12842_v1 = vpop.eup %12841  ;;  %11292 = vmatmul.mubr.msk.f32.vlgmr.msra.gmra.mrb[48].mxu0 %vm726_vm0, %v3098_v36  ;;  %12851 = vrcp.f32 %v3018_v13 }
 0x44a   : > { %v3015_v23 = vpop.xlane.xlu0 %3014  ;;  %v3105_v14 = vmul.f32 %v12842_v1, %v14909_v43 }
 0x44b   : > { %12853 = vrcp.f32 %v3015_v23  ;;  %v12844_v15 = vpop.eup %12843 }
 0x44c   : > { %v3042_v27 = vpop.xlane.xlu1 %3041  ;;  %11319 = vmatprep.mubr.msk.f32.mxu1 %vm726_vm0, %v3105_v14  ;;  %v3100_v48 = vmul.f32 %v12844_v15, %v14911_v35 }
 0x44d   : > { %v12846_v32 = vpop.eup %12845  ;;  %11320 = vmatmul.mubr.msk.f32.vlgmr.msra.gmra.mrb[32].mxu1 %vm726_vm0, %v3106_v56  ;;  %12855 = vrcp.f32 %v3042_v27 }
 0x44e   : > { %v3039_v10 = vpop.xlane.xlu0 %3038  ;;  %v3099_v20 = vmul.f32 %v12846_v32, %v14919_v58 }
 0x44f   : > { %12857 = vrcp.f32 %v3039_v10  ;;  %v12848_v12 = vpop.eup %12847 }
 0x450   : > { %v3024_v52 = vpop.xlane.xlu1 %3023  ;;  %11294 = vmatprep.mubr.msk.f32.mxu0 %vm726_vm0, %v3099_v20  ;;  %v3108_v50 = vmul.f32 %v12848_v12, %v14921_v41 }
 0x451   : > { %v12850_v49 = vpop.eup %12849  ;;  %11295 = vmatmul.mubr.msk.f32.gmra.mrb[50].mxu0 %vm726_vm0, %v3100_v48  ;;  %12859 = vrcp.f32 %v3024_v52 }
 0x452   : > { %v3021_v43 = vpop.xlane.xlu0 %3020  ;;  %v3107_v17 = vmul.f32 %v12850_v49, %v14929_v53 }
 0x453   : > { %12861 = vrcp.f32 %v3021_v43  ;;  %v12852_v29 = vpop.eup %12851 }
 0x454   : > { %v3048_v54 = vpop.xlane.xlu1 %3047  ;;  %11322 = vmatprep.mubr.msk.f32.mxu1 %vm726_vm0, %v3107_v17  ;;  %v3102_v51 = vmul.f32 %v12852_v29, %v14931_v3 }
 0x455   : > { %v12854_v58 = vpop.eup %12853  ;;  %11323 = vmatmul.mubr.msk.f32.gmra.mrb[34].mxu1 %vm726_vm0, %v3108_v50  ;;  %12863 = vrcp.f32 %v3048_v54 }
 0x456   : > { %v3045_v35 = vpop.xlane.xlu0 %3044  ;;  %v3101_v2 = vmul.f32 %v12854_v58, %v14938_v26 }
 0x457   : > { %12865 = vrcp.f32 %v3045_v35  ;;  %v12856_v44 = vpop.eup %12855 }
 0x458   : > { %11297 = vmatprep.mubr.msk.f32.mxu0 %vm726_vm0, %v3101_v2  ;;  %v3110_v57 = vmul.f32 %v12856_v44, %v14940_v4 }
 0x459   : > { %v12858_v53 = vpop.eup %12857  ;;  %11298 = vmatmul.mubr.msk.f32.gmra.mrb[52].mxu0 %vm726_vm0, %v3102_v51 }
 0x45a   : > { %v3109_v41 = vmul.f32 %v12858_v53, %v14946_v47 }
 0x45b   : > { %v12860_v24 = vpop.eup %12859 }
 0x45c   : > { %11325 = vmatprep.mubr.msk.f32.mxu1 %vm726_vm0, %v3109_v41  ;;  %v3104_v3 = vmul.f32 %v12860_v24, %v14948_v62  ;;  %v3686_v62 = vld [vmem:[%s18214_s22 + $0x8] sm:$0xff] }
 0x45d   : > { %v12862_v45 = vpop.eup %12861  ;;  %11326 = vmatmul.mubr.msk.f32.gmra.mrb[36].mxu1 %vm726_vm0, %v3110_v57 }
 0x45e   : > { %v3103_v26 = vmul.f32 %v12862_v45, %v14954_v8  ;;  %v3685_v8 = vld [vmem:[%s18214_s22] sm:$0xff] }
 0x45f   : > { %v12864_v55 = vpop.eup %12863  ;;  %v12259_v6 = vpack.c.bf16 %v3686_v62, %v3685_v8 }
 0x460   : > { %11300 = vmatprep.mubr.msk.f32.mxu0 %vm726_vm0, %v3103_v26  ;;  %v3112_v4 = vmul.f32 %v12864_v55, %v14956_v63  ;;  %v3688_v63 = vld [vmem:[%s18214_s22 + $0x18] sm:$0xff] }
 0x461   : > { %v12866_v18 = vpop.eup %12865  ;;  %11301 = vmatmul.mubr.msk.f32.gmra.mrb[54].mxu0 %vm726_vm0, %v3104_v3  ;;  %12260 = vmatprep.subr.bf16.mxu0 %v12259_v6 }
 0x462   : > { %v3111_v47 = vmul.f32 %v12866_v18, %v14962_v39  ;;  %12262 = vmatpush3.bf16.msra.mxu0 %v12259_v6  ;;  %v3687_v39 = vld [vmem:[%s18214_s22 + $0x10] sm:$0xff] }
 0x463   : > { %v12263_v61 = vpack.c.bf16 %v3688_v63, %v3687_v39 }
 0x464   : > { %11328 = vmatprep.mubr.msk.f32.mxu1 %vm726_vm0, %v3111_v47 }
 0x465   : > { %11329 = vmatmul.mubr.msk.f32.gmra.mrb[38].mxu1 %vm726_vm0, %v3112_v4  ;;  %12264 = vmatprep.subr.bf16.mxu0 %v12263_v61 }
 0x466   : > { %12266 = vmatpush3.bf16.msra.mxu0 %v12263_v61 }
 0x467   : > { %12268 = vmatprep.subr.bf16.mxu0 %v12267_v21 }
 0x46a   : > { %12270 = vmatpush3.bf16.msra.mxu0 %v12267_v21 }
 0x46b   : > { %12272 = vmatprep.subr.bf16.mxu0 %v12271_v59 }
 0x46e   : > { %12274 = vmatpush3.bf16.msra.mxu0 %v12271_v59 }
 0x4fa   : > { %v11237_v37 = vpop.f32.mrb[40].mxu0 }
 0x4fb   : > { %v3203_v22 = vpop.f32.mrb[41].mxu0  ;;  %v3636_v46 = vsel %vm726_vm0, %v11237_v37, 0.0 }
 0x4fc   : > { %v3629_v7 = vsel %vm726_vm0, %v3203_v22, 0.0 }
 0x4fe   : > { %v11265_v34 = vpop.f32.mrb[24].mxu1 }
 0x4ff   : > { %v3637_v19 = vsel %vm726_vm0, %v11265_v34, 0.0  ;;  %v3332_v31 = vpop.f32.mrb[25].mxu1 }
 0x500   : > { %v3638_v36 = vadd.f32 %v3637_v19, %v3636_v46  ;;  %v3630_v13 = vsel %vm726_vm0, %v3332_v31, 0.0 }
 0x501   : > { %v3631_v40 = vadd.f32 %v3630_v13, %v3629_v7 }
 0x504   : > { %v11240_v1 = vpop.f32.mrb[42].mxu0 }
 0x505   : > { %v3213_v23 = vpop.f32.mrb[43].mxu0  ;;  %v3650_v56 = vsel %vm726_vm0, %v11240_v1, 0.0 }
 0x506   : > { %v3643_v32 = vsel %vm726_vm0, %v3213_v23, 0.0 }
 0x508   : > { %v11268_v14 = vpop.f32.mrb[26].mxu1 }
 0x509   : > { %v3651_v27 = vsel %vm726_vm0, %v11268_v14, 0.0  ;;  %v3342_v15 = vpop.f32.mrb[27].mxu1 }
 0x50a   : > { %v3652_v10 = vadd.f32 %v3651_v27, %v3650_v56  ;;  %v3644_v20 = vsel %vm726_vm0, %v3342_v15, 0.0 }
 0x50b   : > { %v3645_v52 = vadd.f32 %v3644_v20, %v3643_v32 }
 0x50c   : > { %v11243_v48 = vpop.f32.mrb[44].mxu0 }
 0x50d   : > { %v3223_v12 = vpop.f32.mrb[45].mxu0  ;;  %v3664_v43 = vsel %vm726_vm0, %v11243_v48, 0.0 }
 0x50e   : > { %v3657_v50 = vsel %vm726_vm0, %v3223_v12, 0.0 }
 0x510   : > { %v11271_v49 = vpop.f32.mrb[28].mxu1 }
 0x511   : > { %v3665_v17 = vsel %vm726_vm0, %v11271_v49, 0.0  ;;  %v3352_v54 = vpop.f32.mrb[29].mxu1 }
 0x512   : > { %v3666_v29 = vadd.f32 %v3665_v17, %v3664_v43  ;;  %v3658_v58 = vsel %vm726_vm0, %v3352_v54, 0.0 }
 0x513   : > { %v3659_v35 = vadd.f32 %v3658_v58, %v3657_v50 }
 0x514   : > { %v11246_v2 = vpop.f32.mrb[46].mxu0 }
 0x515   : > { %v3233_v51 = vpop.f32.mrb[47].mxu0  ;;  %v3678_v53 = vsel %vm726_vm0, %v11246_v2, 0.0 }
 0x516   : > { %v3671_v24 = vsel %vm726_vm0, %v3233_v51, 0.0 }
 0x518   : > { %v11274_v44 = vpop.f32.mrb[30].mxu1 }
 0x519   : > { %v3679_v41 = vsel %vm726_vm0, %v11274_v44, 0.0  ;;  %v3362_v57 = vpop.f32.mrb[31].mxu1  ;;  %v10003_v44 = vld [vmem:[%s17979_s9] ss:$0 sm:$0xff] }
 0x51a   : > { %v3680_v45 = vadd.f32 %v3679_v41, %v3678_v53  ;;  %v3672_v26 = vsel %vm726_vm0, %v3362_v57, 0.0 }
 0x51b   : > { %v3673_v3 = vadd.f32 %v3672_v26, %v3671_v24 }
 0x51c   : > { %v11293_v55 = vpop.f32.mrb[48].mxu0 }
 0x51d   : > { %v3639_v18 = vsel %vm726_vm0, %v11293_v55, 0.0  ;;  %v3461_v47 = vpop.f32.mrb[49].mxu0 }
 0x51e   : > { %v3640_v4 = vadd.f32 %v3639_v18, %v3638_v36  ;;  %v3632_v8 = vsel %vm726_vm0, %v3461_v47, 0.0 }
 0x51f   : > { %v3633_v62 = vadd.f32 %v3632_v8, %v3631_v40 }
 0x520   : > { %v11321_v6 = vpop.f32.mrb[32].mxu1 }
 0x521   : > { %v3641_v39 = vsel %vm726_vm0, %v11321_v6, 0.0  ;;  %v3590_v63 = vpop.f32.mrb[33].mxu1 }
 0x522   : > { %v3642_v61 = vadd.f32 %v3641_v39, %v3640_v4  ;;  %v3634_v0 = vsel %vm726_vm0, %v3590_v63, 0.0 }
 0x523   : > { %v3635_v60 = vadd.f32 %v3634_v0, %v3633_v62 }
 0x524   : > { %v11296_v21 = vpop.f32.mrb[50].mxu0 }
 0x525   : > { %v3653_v9 = vsel %vm726_vm0, %v11296_v21, 0.0  ;;  %v3471_v11 = vpop.f32.mrb[51].mxu0  ;;  %11347 = vmatprep.mubr.msk.f32.mxu0 %vm726_vm0, %v3635_v60 }
 0x526   : > { %v3654_v59 = vadd.f32 %v3653_v9, %v3652_v10  ;;  %v3646_v37 = vsel %vm726_vm0, %v3471_v11, 0.0  ;;  %11348 = vmatmul.mubr.msk.f32.vlgmr.msra.gmra.mrb[56].mxu0 %vm726_vm0, %v3642_v61 }
 0x527   : > { %v3647_v22 = vadd.f32 %v3646_v37, %v3645_v52 }
 0x528   : > { %v11324_v34 = vpop.f32.mrb[34].mxu1 }
 0x529   : > { %v3655_v46 = vsel %vm726_vm0, %v11324_v34, 0.0  ;;  %v3600_v19 = vpop.f32.mrb[35].mxu1 }
 0x52a   : > { %v3656_v31 = vadd.f32 %v3655_v46, %v3654_v59  ;;  %v3648_v7 = vsel %vm726_vm0, %v3600_v19, 0.0 }
 0x52b   : > { %v3649_v36 = vadd.f32 %v3648_v7, %v3647_v22 }
 0x52c   : > { %v11299_v13 = vpop.f32.mrb[52].mxu0 }
 0x52d   : > { %v3667_v40 = vsel %vm726_vm0, %v11299_v13, 0.0  ;;  %v3481_v1 = vpop.f32.mrb[53].mxu0  ;;  %11350 = vmatprep.mubr.msk.f32.mxu0 %vm726_vm0, %v3649_v36 }
 0x52e   : > { %v3668_v23 = vadd.f32 %v3667_v40, %v3666_v29  ;;  %v3660_v14 = vsel %vm726_vm0, %v3481_v1, 0.0  ;;  %11351 = vmatmul.mubr.msk.f32.gmra.mrb[58].mxu0 %vm726_vm0, %v3656_v31 }
 0x52f   : > { %v3661_v56 = vadd.f32 %v3660_v14, %v3659_v35 }
 0x530   : > { %v11327_v27 = vpop.f32.mrb[36].mxu1 }
 0x531   : > { %v3669_v15 = vsel %vm726_vm0, %v11327_v27, 0.0  ;;  %v3610_v32 = vpop.f32.mrb[37].mxu1 }
 0x532   : > { %v3670_v10 = vadd.f32 %v3669_v15, %v3668_v23  ;;  %v3662_v20 = vsel %vm726_vm0, %v3610_v32, 0.0 }
 0x533   : > { %v3663_v52 = vadd.f32 %v3662_v20, %v3661_v56 }
 0x534   : > { %v11302_v48 = vpop.f32.mrb[54].mxu0 }
 0x535   : > { %v3681_v12 = vsel %vm726_vm0, %v11302_v48, 0.0  ;;  %v3491_v49 = vpop.f32.mrb[55].mxu0  ;;  %11353 = vmatprep.mubr.msk.f32.mxu0 %vm726_vm0, %v3663_v52 }
 0x536   : > { %v3682_v43 = vadd.f32 %v3681_v12, %v3680_v45  ;;  %v3674_v17 = vsel %vm726_vm0, %v3491_v49, 0.0  ;;  %11354 = vmatmul.mubr.msk.f32.gmra.mrb[60].mxu0 %vm726_vm0, %v3670_v10 }
 0x537   : > { %v3675_v54 = vadd.f32 %v3674_v17, %v3673_v3 }
 0x538   : > { %v11330_v50 = vpop.f32.mrb[38].mxu1 }
 0x539   : > { %v3683_v29 = vsel %vm726_vm0, %v11330_v50, 0.0  ;;  %v3620_v58 = vpop.f32.mrb[39].mxu1 }
 0x53a   : > { %v3684_v35 = vadd.f32 %v3683_v29, %v3682_v43  ;;  %v3676_v2 = vsel %vm726_vm0, %v3620_v58, 0.0 }
 0x53b   : > { %v3677_v51 = vadd.f32 %v3676_v2, %v3675_v54 }
 0x53d   : > { %11356 = vmatprep.mubr.msk.f32.mxu0 %vm726_vm0, %v3677_v51 }
 0x53e   : > { %11357 = vmatmul.mubr.msk.f32.gmra.mrb[62].mxu0 %vm726_vm0, %v3684_v35 }
 0x5f9   : > { %v11349_v53 = vpop.f32.mrb[56].mxu0 }
 0x5fa   : > { %v3794_v41 = vadd.f32 %v11349_v53, %v10003_v44  ;;  %v3788_v57 = vpop.f32.mrb[57].mxu0 }
 0x5fb   : > { %v3789_v24 = vadd.f32 %v10003_v44, %v3788_v57 }
 0x5fc   : > { %v3832_v45 = vsel %vm978_vm1, %v3794_v41, 0.0 }
 0x5fd   : > { %3833 = vadd.xlane.f32.xlu1 %v3832_v45  ;;  %v3829_v26 = vsel %vm978_vm1, %v3789_v24, 0.0 }
 0x5fe   : > { %3830 = vadd.xlane.f32.xlu0 %v3829_v26 }
 0x601   : > { %v11352_v3 = vpop.f32.mrb[58].mxu0 }
 0x602   : > { %v3804_v55 = vadd.f32 %v11352_v3, %v10003_v44  ;;  %v3798_v18 = vpop.f32.mrb[59].mxu0 }
 0x603   : > { %v3799_v47 = vadd.f32 %v10003_v44, %v3798_v18  ;;  %v3966_v18 = vld [vmem:[%s17976_s6] sm:$0xff] }
 0x604   : > { %v3838_v4 = vsel %vm978_vm1, %v3804_v55, 0.0 }
 0x605   : > { %3839 = vadd.xlane.f32.xlu1 %v3838_v4  ;;  %v3835_v8 = vsel %vm978_vm1, %v3799_v47, 0.0  ;;  %v3968_v4 = vld [vmem:[%s17976_s6 + $0x10] sm:$0xff] }
 0x606   : > { %3836 = vadd.xlane.f32.xlu0 %v3835_v8 }
 0x609   : > { %v11355_v62 = vpop.f32.mrb[60].mxu0 }
 0x60a   : > { %v3814_v6 = vadd.f32 %v11355_v62, %v10003_v44  ;;  %v3808_v39 = vpop.f32.mrb[61].mxu0  ;;  %v3969_v62 = vld [vmem:[%s17976_s6 + $0x18] sm:$0xff] }
 0x60b   : > { %v3809_v63 = vadd.f32 %v10003_v44, %v3808_v39  ;;  %v4146_v39 = vld [vmem:[%s17977_s7] sm:$0xff] }
 0x60c   : > { %v3844_v61 = vsel %vm978_vm1, %v3814_v6, 0.0 }
 0x60d   : > { %3845 = vadd.xlane.f32.xlu1 %v3844_v61  ;;  %v3841_v0 = vsel %vm978_vm1, %v3809_v63, 0.0  ;;  %v4148_v61 = vld [vmem:[%s17977_s7 + $0x10] sm:$0xff] }
 0x60e   : > { %3842 = vadd.xlane.f32.xlu0 %v3841_v0 }
 0x611   : > { %v11358_v60 = vpop.f32.mrb[62].mxu0 }
 0x612   : > { %v3824_v21 = vadd.f32 %v11358_v60, %v10003_v44  ;;  %v3818_v9 = vpop.f32.mrb[63].mxu0  ;;  %v4149_v60 = vld [vmem:[%s17977_s7 + $0x18] sm:$0xff] }
 0x613   : > { %v3819_v11 = vadd.f32 %v10003_v44, %v3818_v9  ;;  %v4150_v9 = vld [vmem:[%s17977_s7 + $0x20] sm:$0xff] }
 0x614   : > { %v3850_v59 = vsel %vm978_vm1, %v3824_v21, 0.0 }
 0x615   : > { %3851 = vadd.xlane.f32.xlu1 %v3850_v59  ;;  %v3847_v37 = vsel %vm978_vm1, %v3819_v11, 0.0 }
 0x616   : > { %3848 = vadd.xlane.f32.xlu0 %v3847_v37 }
 0x68a   : > { %v3834_v22 = vpop.xlane.xlu1 %3833 }
 0x68b   : > { %v3855_v34 = vmul.f32 0.03125, %v3834_v22  ;;  %v3831_v46 = vpop.xlane.xlu0 %3830 }
 0x68c   : > { %v3854_v19 = vmul.f32 0.03125, %v3831_v46 }
 0x68d   : > { %v15119_v31 = vsub.f32 %v3794_v41, %v3855_v34 }
 0x68e   : > { %v15121_v7 = vsub.f32 %v3789_v24, %v3854_v19 }
 0x68f   : > { %v3871_v36 = vmul.f32 %v15119_v31, %v15119_v31 }
 0x690   : > { %v3870_v13 = vmul.f32 %v15121_v7, %v15121_v7 }
 0x691   : > { %v3881_v40 = vsel %vm978_vm1, %v3871_v36, 0.0 }
 0x692   : > { %v3840_v1 = vpop.xlane.xlu1 %3839  ;;  %3882 = vadd.xlane.f32.xlu1 %v3881_v40  ;;  %v3878_v23 = vsel %vm978_vm1, %v3870_v13, 0.0 }
 0x693   : > { %v3857_v14 = vmul.f32 0.03125, %v3840_v1  ;;  %3879 = vadd.xlane.f32.xlu0 %v3878_v23  ;;  %v3837_v56 = vpop.xlane.xlu0 %3836 }
 0x694   : > { %v3856_v27 = vmul.f32 0.03125, %v3837_v56 }
 0x695   : > { %v15129_v15 = vsub.f32 %v3804_v55, %v3857_v14 }
 0x696   : > { %v15131_v32 = vsub.f32 %v3799_v47, %v3856_v27  ;;  %v3967_v47 = vld [vmem:[%s17976_s6 + $0x8] sm:$0xff] }
 0x697   : > { %v3873_v10 = vmul.f32 %v15129_v15, %v15129_v15  ;;  %v12275_v8 = vpack.c.bf16 %v3967_v47, %v3966_v18 }
 0x698   : > { %v3872_v20 = vmul.f32 %v15131_v32, %v15131_v32 }
 0x699   : > { %v3887_v52 = vsel %vm978_vm1, %v3873_v10, 0.0  ;;  %12276 = vmatprep.subr.bf16.mxu1 %v12275_v8  ;;  %v10012_v10 = vld [vmem:[%s17979_s9 + $0x1] ss:$0 sm:$0xff] }
 0x69a   : > { %v3846_v48 = vpop.xlane.xlu1 %3845  ;;  %3888 = vadd.xlane.f32.xlu1 %v3887_v52  ;;  %v3884_v12 = vsel %vm978_vm1, %v3872_v20, 0.0  ;;  %12278 = vmatpush3.bf16.msra.mxu1 %v12275_v8 }
 0x69b   : > { %v3859_v49 = vmul.f32 0.03125, %v3846_v48  ;;  %3885 = vadd.xlane.f32.xlu0 %v3884_v12  ;;  %v3843_v43 = vpop.xlane.xlu0 %3842  ;;  %v10013_v12 = vld [vmem:[%s17979_s9 + $0x2] ss:$0 sm:$0xff] }
 0x69c   : > { %v3858_v17 = vmul.f32 0.03125, %v3843_v43 }
 0x69d   : > { %v15139_v54 = vsub.f32 %v3814_v6, %v3859_v49  ;;  %v12279_v6 = vpack.c.bf16 %v3969_v62, %v3968_v4 }
 0x69e   : > { %v15141_v50 = vsub.f32 %v3809_v63, %v3858_v17  ;;  %v4147_v63 = vld [vmem:[%s17977_s7 + $0x8] sm:$0xff] }
 0x69f   : > { %v3875_v29 = vmul.f32 %v15139_v54, %v15139_v54  ;;  %12280 = vmatprep.subr.bf16.mxu1 %v12279_v6  ;;  %v12283_v0 = vpack.c.bf16 %v4147_v63, %v4146_v39 }
 0x6a0   : > { %v3874_v58 = vmul.f32 %v15141_v50, %v15141_v50  ;;  %12282 = vmatpush3.bf16.msra.mxu1 %v12279_v6 }
 0x6a1   : > { %v3893_v35 = vsel %vm978_vm1, %v3875_v29, 0.0  ;;  %12284 = vmatprep.subr.bf16.mxu0 %v12283_v0 }
 0x6a2   : > { %3894 = vadd.xlane.f32.xlu1 %v3893_v35  ;;  %v3852_v2 = vpop.xlane.xlu1 %3851  ;;  %v3890_v51 = vsel %vm978_vm1, %v3874_v58, 0.0  ;;  %12286 = vmatpush3.bf16.msra.mxu0 %v12283_v0 }
 0x6a3   : > { %v3861_v44 = vmul.f32 0.03125, %v3852_v2  ;;  %3891 = vadd.xlane.f32.xlu0 %v3890_v51  ;;  %v3849_v53 = vpop.xlane.xlu0 %3848 }
 0x6a4   : > { %v3860_v41 = vmul.f32 0.03125, %v3849_v53 }
 0x6a5   : > { %v15149_v57 = vsub.f32 %v3824_v21, %v3861_v44  ;;  %v12287_v21 = vpack.c.bf16 %v4149_v60, %v4148_v61 }
 0x6a6   : > { %v15151_v24 = vsub.f32 %v3819_v11, %v3860_v41  ;;  %v4151_v11 = vld [vmem:[%s17977_s7 + $0x28] sm:$0xff] }
 0x6a7   : > { %v3877_v45 = vmul.f32 %v15149_v57, %v15149_v57  ;;  %12288 = vmatprep.subr.bf16.mxu0 %v12287_v21  ;;  %v12291_v59 = vpack.c.bf16 %v4151_v11, %v4150_v9 }
 0x6a8   : > { %v3876_v26 = vmul.f32 %v15151_v24, %v15151_v24  ;;  %12290 = vmatpush3.bf16.msra.mxu0 %v12287_v21  ;;  %v18217_v21 = vld [vmem:[#allocation6_spill] sm:$0xff] }
 0x6a9   : > { %v3899_v3 = vsel %vm978_vm1, %v3877_v45, 0.0  ;;  %12292 = vmatprep.subr.bf16.mxu0 %v12291_v59 }
 0x6aa   : > { %3900 = vadd.xlane.f32.xlu1 %v3899_v3  ;;  %v3896_v55 = vsel %vm978_vm1, %v3876_v26, 0.0 }
 0x6ab   : > { %3897 = vadd.xlane.f32.xlu0 %v3896_v55  ;;  %v18216_v55 = vld [vmem:[#allocation3_spill] sm:$0xff] }
 0x6ac   : > { %12294 = vmatpush3.bf16.msra.mxu0 %v12291_v59  ;;  %v18218_v59 = vld [vmem:[#allocation5_spill] sm:$0xff] }
 0x71f   : > { %v3883_v37 = vpop.xlane.xlu1 %3882 }
 0x720   : > { %v3903_v22 = vmul.f32 0.03125, %v3883_v37  ;;  %v3880_v34 = vpop.xlane.xlu0 %3879 }
 0x721   : > { %v3902_v46 = vmul.f32 0.03125, %v3880_v34 }
 0x722   : > { %v3911_v19 = vadd.f32 1e-05, %v3903_v22 }
 0x723   : > { %v3910_v36 = vadd.f32 1e-05, %v3902_v46 }
 0x724   : > { %12867 = vrsqrt.f32 %v3911_v19 }
 0x725   : > { %12869 = vrsqrt.f32 %v3910_v36 }
 0x727   : > { %v3889_v13 = vpop.xlane.xlu1 %3888 }
 0x728   : > { %v3905_v40 = vmul.f32 0.03125, %v3889_v13  ;;  %v3886_v1 = vpop.xlane.xlu0 %3885 }
 0x729   : > { %v3904_v23 = vmul.f32 0.03125, %v3886_v1 }
 0x72a   : > { %v3913_v14 = vadd.f32 1e-05, %v3905_v40  ;;  %v18219_v40 = vld [vmem:[#allocation8_spill] sm:$0xff] }
 0x72b   : > { %v3912_v56 = vadd.f32 1e-05, %v3904_v23 }
 0x72c   : > { %12871 = vrsqrt.f32 %v3913_v14  ;;  %v18220_v14 = vld [vmem:[#allocation7_spill] sm:$0xff] }
 0x72d   : > { %12873 = vrsqrt.f32 %v3912_v56 }
 0x72e   : > { %v12868_v27 = vpop.eup %12867 }
 0x72f   : > { %v12870_v20 = vpop.eup %12869  ;;  %v3927_v52 = vmul.f32 %v12868_v27, %v15119_v31  ;;  %v3895_v48 = vpop.xlane.xlu1 %3894  ;;  %v18215_v31 = vld [vmem:[#allocation4_spill] sm:$0xff] }
 0x730   : > { %v3907_v49 = vmul.f32 0.03125, %v3895_v48  ;;  %v3892_v43 = vpop.xlane.xlu0 %3891  ;;  %v3926_v17 = vmul.f32 %v12870_v20, %v15121_v7 }
 0x731   : > { %v3939_v29 = vmul.f32 %v10012_v10, %v3927_v52  ;;  %v3906_v58 = vmul.f32 0.03125, %v3892_v43 }
 0x732   : > { %v3915_v35 = vadd.f32 1e-05, %v3907_v49  ;;  %v3938_v2 = vmul.f32 %v10012_v10, %v3926_v17  ;;  %v18221_v49 = vld [vmem:[#allocation10_spill] sm:$0xff]  ;;  %v18222_v17 = vld [vmem:[#allocation9_spill] sm:$0xff] }
 0x733   : > { %v3951_v51 = vadd.f32 %v10013_v12, %v3939_v29  ;;  %v3914_v44 = vadd.f32 1e-05, %v3906_v58  ;;  %v4155_v58 = vld [vmem:[%s17977_s7 + $0x48] sm:$0xff] }
 0x734   : > { %12875 = vrsqrt.f32 %v3915_v35  ;;  %v3950_v53 = vadd.f32 %v10013_v12, %v3938_v2  ;;  %v4156_v2 = vld [vmem:[%s17977_s7 + $0x50] sm:$0xff] }
 0x735   : > { %12877 = vrsqrt.f32 %v3914_v44  ;;  %v15201_v18 = vadd.f32 %v18216_v55, %v3951_v51  ;;  %v4157_v51 = vld [vmem:[%s17977_s7 + $0x58] sm:$0xff]  ;;  %v4158_v44 = vld [vmem:[%s17977_s7 + $0x60] sm:$0xff] }
 0x736   : > { %v12872_v41 = vpop.eup %12871  ;;  %v15198_v45 = vadd.f32 %v3950_v53, %v18215_v31  ;;  %v12303_v53 = vpack.c.bf16 %v4157_v51, %v4156_v2 }
 0x737   : > { %v12874_v26 = vpop.eup %12873  ;;  %v3901_v3 = vpop.xlane.xlu1 %3900  ;;  %v3929_v7 = vmul.f32 %v12872_v41, %v15129_v15  ;;  %v4159_v41 = vld [vmem:[%s17977_s7 + $0x68] sm:$0xff] }
 0x738   : > { %v3909_v47 = vmul.f32 0.03125, %v3901_v3  ;;  %11367 = vmatprep.mubr.msk.f32.mxu1 %vm978_vm1, %v15198_v45  ;;  %v3898_v4 = vpop.xlane.xlu0 %3897  ;;  %v3928_v8 = vmul.f32 %v12874_v26, %v15131_v32  ;;  %v12307_v31 = vpack.c.bf16 %v4159_v41, %v4158_v44  ;;  %v4160_v26 = vld [vmem:[%s17977_s7 + $0x70] sm:$0xff]  ;;  %v4161_v3 = vld [vmem:[%s17977_s7 + $0x78] sm:$0xff] }
 0x739   : > { %v3908_v62 = vmul.f32 0.03125, %v3898_v4  ;;  %11368 = vmatmul.mubr.msk.f32.vlgmr.msra.gmra.mrb[40].mxu1 %vm978_vm1, %v15201_v18  ;;  %v3941_v6 = vmul.f32 %v10012_v10, %v3929_v7  ;;  %v12311_v55 = vpack.c.bf16 %v4161_v3, %v4160_v26  ;;  %v10014_v7 = vld [vmem:[%s17980_s10] ss:$0 sm:$0xff] }
 0x73a   : > { %v3917_v39 = vadd.f32 1e-05, %v3909_v47  ;;  %v3940_v63 = vmul.f32 %v10012_v10, %v3928_v8 }
 0x73b   : > { %v3916_v61 = vadd.f32 1e-05, %v3908_v62  ;;  %v3953_v0 = vadd.f32 %v10013_v12, %v3941_v6 }
 0x73c   : > { %12879 = vrsqrt.f32 %v3917_v39  ;;  %v3952_v60 = vadd.f32 %v10013_v12, %v3940_v63 }
 0x73d   : > { %12881 = vrsqrt.f32 %v3916_v61  ;;  %v15213_v37 = vadd.f32 %v18218_v59, %v3953_v0 }
 0x73e   : > { %v12876_v15 = vpop.eup %12875  ;;  %v15210_v9 = vadd.f32 %v3952_v60, %v18217_v21 }
 0x73f   : > { %v12878_v11 = vpop.eup %12877  ;;  %v3931_v32 = vmul.f32 %v12876_v15, %v15139_v54 }
 0x740   : > { %11370 = vmatprep.mubr.msk.f32.mxu1 %vm978_vm1, %v15210_v9  ;;  %v3930_v22 = vmul.f32 %v12878_v11, %v15141_v50 }
 0x741   : > { %11371 = vmatmul.mubr.msk.f32.gmra.mrb[42].mxu1 %vm978_vm1, %v15213_v37  ;;  %v3943_v34 = vmul.f32 %v10012_v10, %v3931_v32 }
 0x742   : > { %v3942_v46 = vmul.f32 %v10012_v10, %v3930_v22 }
 0x743   : > { %v3955_v19 = vadd.f32 %v10013_v12, %v3943_v34 }
 0x744   : > { %v3954_v36 = vadd.f32 %v10013_v12, %v3942_v46 }
 0x745   : > { %v15225_v56 = vadd.f32 %v18220_v14, %v3955_v19 }
 0x746   : > { %v12880_v13 = vpop.eup %12879  ;;  %v15222_v1 = vadd.f32 %v3954_v36, %v18219_v40 }
 0x747   : > { %v12882_v23 = vpop.eup %12881  ;;  %v3933_v54 = vmul.f32 %v12880_v13, %v15149_v57  ;;  %v4152_v57 = vld [vmem:[%s17977_s7 + $0x30] sm:$0xff] }
 0x748   : > { %11373 = vmatprep.mubr.msk.f32.mxu1 %vm978_vm1, %v15222_v1  ;;  %v3932_v50 = vmul.f32 %v12882_v23, %v15151_v24  ;;  %v4153_v24 = vld [vmem:[%s17977_s7 + $0x38] sm:$0xff] }
 0x749   : > { %11374 = vmatmul.mubr.msk.f32.gmra.mrb[44].mxu1 %vm978_vm1, %v15225_v56  ;;  %v3945_v27 = vmul.f32 %v10012_v10, %v3933_v54 }
 0x74a   : > { %v3944_v20 = vmul.f32 %v10012_v10, %v3932_v50  ;;  %v4154_v10 = vld [vmem:[%s17977_s7 + $0x40] sm:$0xff] }
 0x74b   : > { %v3957_v52 = vadd.f32 %v10013_v12, %v3945_v27  ;;  %v12299_v35 = vpack.c.bf16 %v4155_v58, %v4154_v10 }
 0x74c   : > { %v3956_v48 = vadd.f32 %v10013_v12, %v3944_v20  ;;  %v12295_v12 = vpack.c.bf16 %v4153_v24, %v4152_v57 }
 0x74d   : > { %v15237_v29 = vadd.f32 %v18222_v17, %v3957_v52 }
 0x74e   : > { %v15234_v43 = vadd.f32 %v3956_v48, %v18221_v49  ;;  %12296 = vmatprep.subr.bf16.mxu0 %v12295_v12 }
 0x74f   : > { %12298 = vmatpush3.bf16.msra.mxu0 %v12295_v12 }
 0x750   : > { %11376 = vmatprep.mubr.msk.f32.mxu1 %vm978_vm1, %v15234_v43  ;;  %12300 = vmatprep.subr.bf16.mxu0 %v12299_v35 }
 0x751   : > { %11377 = vmatmul.mubr.msk.f32.gmra.mrb[46].mxu1 %vm978_vm1, %v15237_v29 }
 0x753   : > { %12302 = vmatpush3.bf16.msra.mxu0 %v12299_v35 }
 0x754   : > { %12304 = vmatprep.subr.bf16.mxu0 %v12303_v53 }
 0x757   : > { %12306 = vmatpush3.bf16.msra.mxu0 %v12303_v53 }
 0x758   : > { %12308 = vmatprep.subr.bf16.mxu0 %v12307_v31 }
 0x75b   : > { %12310 = vmatpush3.bf16.msra.mxu0 %v12307_v31 }
 0x75c   : > { %12312 = vmatprep.subr.bf16.mxu0 %v12311_v55 }
 0x75f   : > { %12314 = vmatpush3.bf16.msra.mxu0 %v12311_v55 }
 0x80c   : > { %v11369_v47 = vpop.f32.mrb[40].mxu1 }
 0x80d   : > { %v4073_v4 = vadd.f32 %v11369_v47, %v10014_v7  ;;  %v4067_v8 = vpop.f32.mrb[41].mxu1 }
 0x80e   : > { %v4068_v62 = vadd.f32 %v10014_v7, %v4067_v8 }
 0x80f   : > { %v4115_v6 = vmul.f32 0.70710677, %v4073_v4  ;;  %v4107_v13 = vmul.f32 0.5, %v4073_v4 }
 0x810   : > { %v4114_v39 = vmul.f32 0.70710677, %v4068_v62  ;;  %v4106_v34 = vmul.f32 0.5, %v4068_v62 }
 0x811   : > { %12883 = verf.f32 %v4115_v6 }
 0x812   : > { %12885 = verf.f32 %v4114_v39 }
 0x814   : > { %v11372_v63 = vpop.f32.mrb[42].mxu1 }
 0x815   : > { %v4083_v61 = vadd.f32 %v11372_v63, %v10014_v7  ;;  %v4077_v0 = vpop.f32.mrb[43].mxu1 }
 0x816   : > { %v4078_v60 = vadd.f32 %v10014_v7, %v4077_v0  ;;  %v10023_v0 = vld [vmem:[%s17979_s9 + $0x7] ss:$0 sm:$0xff] }
 0x817   : > { %v4117_v15 = vmul.f32 0.70710677, %v4083_v61  ;;  %v4109_v10 = vmul.f32 0.5, %v4083_v61 }
 0x818   : > { %v4116_v21 = vmul.f32 0.70710677, %v4078_v60  ;;  %v4108_v49 = vmul.f32 0.5, %v4078_v60 }
 0x819   : > { %12887 = verf.f32 %v4117_v15 }
 0x81a   : > { %12889 = verf.f32 %v4116_v21 }
 0x81b   : > { %v12884_v11 = vpop.eup %12883 }
 0x81c   : > { %v12886_v59 = vpop.eup %12885  ;;  %v4131_v32 = vadd.f32 1.0, %v12884_v11  ;;  %v11375_v22 = vpop.f32.mrb[44].mxu1 }
 0x81d   : > { %v4130_v46 = vadd.f32 1.0, %v12886_v59  ;;  %v4093_v19 = vadd.f32 %v11375_v22, %v10014_v7  ;;  %v4087_v36 = vpop.f32.mrb[45].mxu1 }
 0x81e   : > { %v4088_v40 = vadd.f32 %v10014_v7, %v4087_v36  ;;  %v4139_v54 = vmul.f32 %v4131_v32, %v4107_v13 }
 0x81f   : > { %v4119_v23 = vmul.f32 0.70710677, %v4093_v19  ;;  %v4138_v14 = vmul.f32 %v4130_v46, %v4106_v34  ;;  %v4111_v3 = vmul.f32 0.5, %v4093_v19 }
 0x820   : > { %v4118_v50 = vmul.f32 0.70710677, %v4088_v40  ;;  %v4110_v31 = vmul.f32 0.5, %v4088_v40 }
 0x821   : > { %12891 = verf.f32 %v4119_v23  ;;  %11411 = vmatprep.mubr.f32.mxu0 %v4138_v14 }
 0x822   : > { %12893 = verf.f32 %v4118_v50  ;;  %11412 = vmatmul.mubr.f32.vlgmr.msra.gmra.mrb[64].mxu0 %v4139_v54 }
 0x823   : > { %v12888_v27 = vpop.eup %12887 }
 0x824   : > { %v12890_v20 = vpop.eup %12889  ;;  %v4133_v52 = vadd.f32 1.0, %v12888_v27  ;;  %v11378_v48 = vpop.f32.mrb[46].mxu1 }
 0x825   : > { %v4132_v17 = vadd.f32 1.0, %v12890_v20  ;;  %v4103_v57 = vadd.f32 %v11378_v48, %v10014_v7  ;;  %v4097_v24 = vpop.f32.mrb[47].mxu1 }
 0x826   : > { %v4098_v12 = vadd.f32 %v10014_v7, %v4097_v24  ;;  %v4141_v51 = vmul.f32 %v4133_v52, %v4109_v10  ;;  %v18223_v24 = vld [vmem:[#allocation11_spill] sm:$0xff] }
 0x827   : > { %v4121_v58 = vmul.f32 0.70710677, %v4103_v57  ;;  %v4140_v35 = vmul.f32 %v4132_v17, %v4108_v49  ;;  %v4113_v39 = vmul.f32 0.5, %v4103_v57  ;;  %v4415_v10 = vsel %vm978_vm1, %v18223_v24, 0.0 }
 0x828   : > { %v4120_v2 = vmul.f32 0.70710677, %v4098_v12  ;;  %v4112_v62 = vmul.f32 0.5, %v4098_v12  ;;  %v18224_v12 = vld [vmem:[#allocation12_spill] sm:$0xff] }
 0x829   : > { %12895 = verf.f32 %v4121_v58  ;;  %11414 = vmatprep.mubr.f32.mxu0 %v4140_v35  ;;  %v4412_v58 = vsel %vm978_vm1, %v18224_v12, 0.0  ;;  %v18225_v35 = vld [vmem:[#allocation13_spill] sm:$0xff] }
 0x82a   : > { %12897 = verf.f32 %v4120_v2  ;;  %11415 = vmatmul.mubr.f32.gmra.mrb[66].mxu0 %v4141_v51  ;;  %v4421_v2 = vsel %vm978_vm1, %v18225_v35, 0.0  ;;  %v18226_v51 = vld [vmem:[#allocation14_spill] sm:$0xff] }
 0x82b   : > { %v12892_v44 = vpop.eup %12891 }
 0x82c   : > { %v12894_v53 = vpop.eup %12893  ;;  %v4135_v41 = vadd.f32 1.0, %v12892_v44  ;;  %v4418_v44 = vsel %vm978_vm1, %v18226_v51, 0.0 }
 0x82d   : > { %v4134_v26 = vadd.f32 1.0, %v12894_v53  ;;  %v18227_v53 = vld [vmem:[#allocation15_spill] sm:$0xff] }
 0x82e   : > { %v4143_v47 = vmul.f32 %v4135_v41, %v4111_v3  ;;  %v4427_v41 = vsel %vm978_vm1, %v18227_v53, 0.0  ;;  %v18229_v3 = vld [vmem:[#allocation17_spill] sm:$0xff] }
 0x82f   : > { %v4142_v55 = vmul.f32 %v4134_v26, %v4110_v31  ;;  %v18228_v31 = vld [vmem:[#allocation16_spill] sm:$0xff] }
 0x830   : > { %v4424_v26 = vsel %vm978_vm1, %v18228_v31, 0.0 }
 0x831   : > { %11417 = vmatprep.mubr.f32.mxu0 %v4142_v55  ;;  %v4433_v55 = vsel %vm978_vm1, %v18229_v3, 0.0 }
 0x832   : > { %11418 = vmatmul.mubr.f32.gmra.mrb[68].mxu0 %v4143_v47  ;;  %v18230_v47 = vld [vmem:[#allocation18_spill] sm:$0xff] }
 0x833   : > { %v12896_v4 = vpop.eup %12895 }
 0x834   : > { %v12898_v7 = vpop.eup %12897  ;;  %v4137_v8 = vadd.f32 1.0, %v12896_v4  ;;  %v4430_v4 = vsel %vm978_vm1, %v18230_v47, 0.0 }
 0x835   : > { %v4136_v6 = vadd.f32 1.0, %v12898_v7 }
 0x836   : > { %v4145_v61 = vmul.f32 %v4137_v8, %v4113_v39 }
 0x837   : > { %v4144_v63 = vmul.f32 %v4136_v6, %v4112_v62 }
 0x839   : > { %11420 = vmatprep.mubr.f32.mxu0 %v4144_v63 }
 0x83a   : > { %11421 = vmatmul.mubr.f32.gmra.mrb[70].mxu0 %v4145_v61 }
 0x8f5   : > { %v11413_v60 = vpop.f32.mrb[64].mxu0 }
 0x8f6   : > { %v4239_v15 = vadd.f32 %v11413_v60, %v10023_v0  ;;  %v4233_v21 = vpop.f32.mrb[65].mxu0 }
 0x8f7   : > { %v4234_v11 = vadd.f32 %v10023_v0, %v4233_v21 }
 0x8f8   : > { %v4277_v59 = vsel %vm978_vm1, %v4239_v15, 0.0 }
 0x8f9   : > { %4278 = vadd.xlane.f32.xlu1 %v4277_v59  ;;  %v4274_v32 = vsel %vm978_vm1, %v4234_v11, 0.0 }
 0x8fa   : > { %4275 = vadd.xlane.f32.xlu0 %v4274_v32 }
 0x8fd   : > { %v11416_v22 = vpop.f32.mrb[66].mxu0 }
 0x8fe   : > { %v4249_v34 = vadd.f32 %v11416_v22, %v10023_v0  ;;  %v4243_v46 = vpop.f32.mrb[67].mxu0 }
 0x8ff   : > { %v4244_v19 = vadd.f32 %v10023_v0, %v4243_v46 }
 0x900   : > { %v4283_v36 = vsel %vm978_vm1, %v4249_v34, 0.0 }
 0x901   : > { %4284 = vadd.xlane.f32.xlu1 %v4283_v36  ;;  %v4280_v13 = vsel %vm978_vm1, %v4244_v19, 0.0 }
 0x902   : > { %4281 = vadd.xlane.f32.xlu0 %v4280_v13 }
 0x905   : > { %v11419_v40 = vpop.f32.mrb[68].mxu0 }
 0x906   : > { %v4259_v23 = vadd.f32 %v11419_v40, %v10023_v0  ;;  %v4253_v14 = vpop.f32.mrb[69].mxu0 }
 0x907   : > { %v4254_v54 = vadd.f32 %v10023_v0, %v4253_v14 }
 0x908   : > { %v4289_v50 = vsel %vm978_vm1, %v4259_v23, 0.0 }
 0x909   : > { %4290 = vadd.xlane.f32.xlu1 %v4289_v50  ;;  %v4286_v27 = vsel %vm978_vm1, %v4254_v54, 0.0 }
 0x90a   : > { %4287 = vadd.xlane.f32.xlu0 %v4286_v27 }
 0x90d   : > { %v11422_v20 = vpop.f32.mrb[70].mxu0 }
 0x90e   : > { %v15285_v52 = vadd.f32 %v11422_v20, %v10023_v0  ;;  %v4263_v48 = vpop.f32.mrb[71].mxu0 }
 0x90f   : > { %v4264_v49 = vadd.f32 %v10023_v0, %v4263_v48 }
 0x910   : > { %v4295_v17 = vsel %vm978_vm1, %v15285_v52, 0.0 }
 0x911   : > { %4296 = vadd.xlane.f32.xlu1 %v4295_v17  ;;  %v4292_v57 = vsel %vm978_vm1, %v4264_v49, 0.0 }
 0x912   : > { %4293 = vadd.xlane.f32.xlu0 %v4292_v57 }
 0x915   : > { %4416 = vadd.xlane.f32.xlu1 %v4415_v10 }
 0x916   : > { %4413 = vadd.xlane.f32.xlu0 %v4412_v58 }
 0x919   : > { %4422 = vadd.xlane.f32.xlu1 %v4421_v2 }
 0x91a   : > { %4419 = vadd.xlane.f32.xlu0 %v4418_v44 }
 0x91d   : > { %4428 = vadd.xlane.f32.xlu1 %v4427_v41 }
 0x91e   : > { %4425 = vadd.xlane.f32.xlu0 %v4424_v26 }
 0x921   : > { %4434 = vadd.xlane.f32.xlu1 %v4433_v55 }
 0x922   : > { %4431 = vadd.xlane.f32.xlu0 %v4430_v4 }
 0x986   : > { %v4279_v7 = vpop.xlane.xlu1 %4278 }
 0x987   : > { %v4299_v8 = vmul.f32 0.03125, %v4279_v7  ;;  %v4276_v62 = vpop.xlane.xlu0 %4275 }
 0x988   : > { %v4298_v6 = vmul.f32 0.03125, %v4276_v62 }
 0x989   : > { %v15306_v39 = vsub.f32 %v4239_v15, %v4299_v8 }
 0x98a   : > { %v15308_v63 = vsub.f32 %v4234_v11, %v4298_v6 }
 0x98b   : > { %v4315_v61 = vmul.f32 %v15306_v39, %v15306_v39 }
 0x98c   : > { %v4314_v0 = vmul.f32 %v15308_v63, %v15308_v63 }
 0x98d   : > { %v4325_v60 = vsel %vm978_vm1, %v4315_v61, 0.0 }
 0x98e   : > { %v4285_v21 = vpop.xlane.xlu1 %4284  ;;  %4326 = vadd.xlane.f32.xlu1 %v4325_v60  ;;  %v4322_v59 = vsel %vm978_vm1, %v4314_v0, 0.0 }
 0x98f   : > { %v4301_v32 = vmul.f32 0.03125, %v4285_v21  ;;  %4323 = vadd.xlane.f32.xlu0 %v4322_v59  ;;  %v4282_v22 = vpop.xlane.xlu0 %4281 }
 0x990   : > { %v4300_v46 = vmul.f32 0.03125, %v4282_v22 }
 0x991   : > { %v15316_v15 = vsub.f32 %v4249_v34, %v4301_v32 }
 0x992   : > { %v15318_v11 = vsub.f32 %v4244_v19, %v4300_v46 }
 0x993   : > { %v4317_v36 = vmul.f32 %v15316_v15, %v15316_v15 }
 0x994   : > { %v4316_v13 = vmul.f32 %v15318_v11, %v15318_v11 }
 0x995   : > { %v4331_v40 = vsel %vm978_vm1, %v4317_v36, 0.0 }
 0x996   : > { %v4291_v14 = vpop.xlane.xlu1 %4290  ;;  %4332 = vadd.xlane.f32.xlu1 %v4331_v40  ;;  %v4328_v50 = vsel %vm978_vm1, %v4316_v13, 0.0 }
 0x997   : > { %v4303_v27 = vmul.f32 0.03125, %v4291_v14  ;;  %4329 = vadd.xlane.f32.xlu0 %v4328_v50  ;;  %v4288_v20 = vpop.xlane.xlu0 %4287 }
 0x998   : > { %v4302_v48 = vmul.f32 0.03125, %v4288_v20 }
 0x999   : > { %v15326_v34 = vsub.f32 %v4259_v23, %v4303_v27 }
 0x99a   : > { %v15328_v19 = vsub.f32 %v4254_v54, %v4302_v48 }
 0x99b   : > { %v4319_v17 = vmul.f32 %v15326_v34, %v15326_v34 }
 0x99c   : > { %v4318_v57 = vmul.f32 %v15328_v19, %v15328_v19 }
 0x99d   : > { %v4337_v10 = vsel %vm978_vm1, %v4319_v17, 0.0 }
 0x99e   : > { %4338 = vadd.xlane.f32.xlu1 %v4337_v10  ;;  %v4297_v58 = vpop.xlane.xlu1 %4296  ;;  %v4334_v2 = vsel %vm978_vm1, %v4318_v57, 0.0 }
 0x99f   : > { %v4305_v44 = vmul.f32 0.03125, %v4297_v58  ;;  %4335 = vadd.xlane.f32.xlu0 %v4334_v2  ;;  %v4294_v41 = vpop.xlane.xlu0 %4293 }
 0x9a0   : > { %v4304_v26 = vmul.f32 0.03125, %v4294_v41 }
 0x9a1   : > { %v15337_v23 = vsub.f32 %v15285_v52, %v4305_v44 }
 0x9a2   : > { %v15339_v54 = vsub.f32 %v4264_v49, %v4304_v26  ;;  %v4417_v55 = vpop.xlane.xlu1 %4416 }
 0x9a3   : > { %v4437_v4 = vmul.f32 0.03125, %v4417_v55  ;;  %v4414_v7 = vpop.xlane.xlu0 %4413  ;;  %v4321_v8 = vmul.f32 %v15337_v23, %v15337_v23 }
 0x9a4   : > { %v4436_v62 = vmul.f32 0.03125, %v4414_v7  ;;  %v4320_v6 = vmul.f32 %v15339_v54, %v15339_v54 }
 0x9a5   : > { %v15346_v61 = vsub.f32 %v18223_v24, %v4437_v4  ;;  %v4343_v0 = vsel %vm978_vm1, %v4321_v8, 0.0 }
 0x9a6   : > { %v15350_v52 = vsub.f32 %v18224_v12, %v4436_v62  ;;  %4344 = vadd.xlane.f32.xlu1 %v4343_v0  ;;  %v4423_v49 = vpop.xlane.xlu1 %4422  ;;  %v4340_v60 = vsel %vm978_vm1, %v4320_v6, 0.0  ;;  %v10052_v6 = vld [vmem:[%s18135_s0 + $0x20] sm:$0xff]  ;;  %v10053_v0 = vld [vmem:[%s18135_s0 + $0x28] sm:$0xff] }
 0x9a7   : > { %v4439_v21 = vmul.f32 0.03125, %v4423_v49  ;;  %4341 = vadd.xlane.f32.xlu0 %v4340_v60  ;;  %v4420_v59 = vpop.xlane.xlu0 %4419  ;;  %v4453_v32 = vmul.f32 %v15346_v61, %v15346_v61  ;;  %v10054_v49 = vld [vmem:[%s18135_s0 + $0x30] sm:$0xff]  ;;  %v12347_v60 = vpack.c.bf16 %v10053_v0, %v10052_v6 }
 0x9a8   : > { %v4438_v22 = vmul.f32 0.03125, %v4420_v59  ;;  %v4452_v24 = vmul.f32 %v15350_v52, %v15350_v52 }
 0x9a9   : > { %v15358_v46 = vsub.f32 %v18225_v35, %v4439_v21  ;;  %v4463_v12 = vsel %vm978_vm1, %v4453_v32, 0.0  ;;  %v10055_v21 = vld [vmem:[%s18135_s0 + $0x38] sm:$0xff]  ;;  %12348 = vmatprep.subr.bf16.mxu0 %v12347_v60 }
 0x9aa   : > { %v15362_v36 = vsub.f32 %v18226_v51, %v4438_v22  ;;  %4464 = vadd.xlane.f32.xlu1 %v4463_v12  ;;  %v4429_v13 = vpop.xlane.xlu1 %4428  ;;  %v4460_v40 = vsel %vm978_vm1, %v4452_v24, 0.0  ;;  %v12351_v59 = vpack.c.bf16 %v10055_v21, %v10054_v49  ;;  %12350 = vmatpush3.bf16.msra.mxu0 %v12347_v60 }
 0x9ab   : > { %v4441_v14 = vmul.f32 0.03125, %v4429_v13  ;;  %4461 = vadd.xlane.f32.xlu0 %v4460_v40  ;;  %v4426_v50 = vpop.xlane.xlu0 %4425  ;;  %v4455_v27 = vmul.f32 %v15358_v46, %v15358_v46 }
 0x9ac   : > { %v4440_v20 = vmul.f32 0.03125, %v4426_v50  ;;  %v4454_v35 = vmul.f32 %v15362_v36, %v15362_v36  ;;  %12352 = vmatprep.subr.bf16.mxu0 %v12351_v59 }
 0x9ad   : > { %v15370_v48 = vsub.f32 %v18227_v53, %v4441_v14  ;;  %v4469_v51 = vsel %vm978_vm1, %v4455_v27, 0.0 }
 0x9ae   : > { %v15374_v17 = vsub.f32 %v18228_v31, %v4440_v20  ;;  %4470 = vadd.xlane.f32.xlu1 %v4469_v51  ;;  %v4435_v57 = vpop.xlane.xlu1 %4434  ;;  %v4466_v10 = vsel %vm978_vm1, %v4454_v35, 0.0  ;;  %12354 = vmatpush3.bf16.msra.mxu0 %v12351_v59 }
 0x9af   : > { %v4443_v58 = vmul.f32 0.03125, %v4435_v57  ;;  %4467 = vadd.xlane.f32.xlu0 %v4466_v10  ;;  %v4432_v2 = vpop.xlane.xlu0 %4431  ;;  %v4457_v44 = vmul.f32 %v15370_v48, %v15370_v48  ;;  %v15417_v10 = vld [vmem:[%s17979_s9 + $0x5] ss:$0 sm:$0xff] }
 0x9b0   : > { %v4442_v41 = vmul.f32 0.03125, %v4432_v2  ;;  %v4456_v53 = vmul.f32 %v15374_v17, %v15374_v17 }
 0x9b1   : > { %v15382_v26 = vsub.f32 %v18229_v3, %v4443_v58  ;;  %v4475_v31 = vsel %vm978_vm1, %v4457_v44, 0.0 }
 0x9b2   : > { %v15386_v55 = vsub.f32 %v18230_v47, %v4442_v41  ;;  %4476 = vadd.xlane.f32.xlu1 %v4475_v31  ;;  %v4472_v4 = vsel %vm978_vm1, %v4456_v53, 0.0  ;;  %v15398_v47 = vld [vmem:[%s18132_s3 + $0x40] sm:$0xff] }
 0x9b3   : > { %4473 = vadd.xlane.f32.xlu0 %v4472_v4  ;;  %v4459_v7 = vmul.f32 %v15382_v26, %v15382_v26  ;;  %11439 = vmatprep.mubr.msk.f32.mxu1 %vm726_vm0, %v15398_v47  ;;  %v15423_v31 = vld [vmem:[%s17979_s9 + $0x6] ss:$0 sm:$0xff] }
 0x9b4   : > { %v4458_v8 = vmul.f32 %v15386_v55, %v15386_v55 }
 0x9b5   : > { %v4481_v62 = vsel %vm978_vm1, %v4459_v7, 0.0 }
 0x9b6   : > { %4482 = vadd.xlane.f32.xlu1 %v4481_v62  ;;  %v4478_v3 = vsel %vm978_vm1, %v4458_v8, 0.0 }
 0x9b7   : > { %4479 = vadd.xlane.f32.xlu0 %v4478_v3 }
 0xa1b   : > { %v4327_v32 = vpop.xlane.xlu1 %4326 }
 0xa1c   : > { %v4347_v22 = vmul.f32 0.03125, %v4327_v32  ;;  %v4324_v24 = vpop.xlane.xlu0 %4323 }
 0xa1d   : > { %v4346_v12 = vmul.f32 0.03125, %v4324_v24 }
 0xa1e   : > { %v4355_v13 = vadd.f32 1e-05, %v4347_v22 }
 0xa1f   : > { %v4354_v40 = vadd.f32 1e-05, %v4346_v12 }
 0xa20   : > { %12899 = vrsqrt.f32 %v4355_v13 }
 0xa21   : > { %12901 = vrsqrt.f32 %v4354_v40 }
 0xa23   : > { %v4333_v14 = vpop.xlane.xlu1 %4332 }
 0xa24   : > { %v4349_v50 = vmul.f32 0.03125, %v4333_v14  ;;  %v4330_v27 = vpop.xlane.xlu0 %4329 }
 0xa25   : > { %v4348_v20 = vmul.f32 0.03125, %v4330_v27 }
 0xa26   : > { %v4357_v35 = vadd.f32 1e-05, %v4349_v50 }
 0xa27   : > { %v4356_v51 = vadd.f32 1e-05, %v4348_v20 }
 0xa28   : > { %12903 = vrsqrt.f32 %v4357_v35 }
 0xa29   : > { %12905 = vrsqrt.f32 %v4356_v51 }
 0xa2a   : > { %v12900_v57 = vpop.eup %12899 }
 0xa2b   : > { %v12902_v58 = vpop.eup %12901  ;;  %v4339_v2 = vpop.xlane.xlu1 %4338  ;;  %v4371_v44 = vmul.f32 %v12900_v57, %v15306_v39 }
 0xa2c   : > { %v4351_v41 = vmul.f32 0.03125, %v4339_v2  ;;  %v4336_v53 = vpop.xlane.xlu0 %4335  ;;  %v4370_v4 = vmul.f32 %v12902_v58, %v15308_v63 }
 0xa2d   : > { %v4350_v7 = vmul.f32 0.03125, %v4336_v53  ;;  %v4383_v8 = vmul.f32 %v15417_v10, %v4371_v44 }
 0xa2e   : > { %v4359_v62 = vadd.f32 1e-05, %v4351_v41  ;;  %v4382_v3 = vmul.f32 %v15417_v10, %v4370_v4 }
 0xa2f   : > { %v4358_v6 = vadd.f32 1e-05, %v4350_v7  ;;  %v4395_v0 = vadd.f32 %v15423_v31, %v4383_v8 }
 0xa30   : > { %12907 = vrsqrt.f32 %v4359_v62  ;;  %v4394_v39 = vadd.f32 %v15423_v31, %v4382_v3 }
 0xa31   : > { %12909 = vrsqrt.f32 %v4358_v6  ;;  %v4403_v49 = vadd.f32 %v4395_v0, %v15201_v18 }
 0xa32   : > { %v12904_v60 = vpop.eup %12903  ;;  %v4402_v21 = vadd.f32 %v4394_v39, %v15198_v45 }
 0xa33   : > { %v12906_v59 = vpop.eup %12905  ;;  %v4345_v63 = vpop.xlane.xlu1 %4344  ;;  %v4373_v32 = vmul.f32 %v12904_v60, %v15316_v15 }
 0xa34   : > { %v4353_v22 = vmul.f32 0.03125, %v4345_v63  ;;  %v4342_v24 = vpop.xlane.xlu0 %4341  ;;  %v12315_v12 = vpack.c.bf16 %v4403_v49, %v4402_v21  ;;  %v4372_v13 = vmul.f32 %v12906_v59, %v15318_v11 }
 0xa35   : > { %v4352_v40 = vmul.f32 0.03125, %v4342_v24  ;;  %v4385_v14 = vmul.f32 %v15417_v10, %v4373_v32 }
 0xa36   : > { %v4361_v50 = vadd.f32 1e-05, %v4353_v22  ;;  %12316 = vmatprep.subr.bf16.mxu1 %v12315_v12  ;;  %v4384_v27 = vmul.f32 %v15417_v10, %v4372_v13 }
 0xa37   : > { %v4360_v18 = vadd.f32 1e-05, %v4352_v40  ;;  %v4465_v20 = vpop.xlane.xlu1 %4464  ;;  %12318 = vmatpush3.bf16.msra.mxu1 %v12315_v12  ;;  %v4397_v45 = vadd.f32 %v15423_v31, %v4385_v14 }
 0xa38   : > { %12911 = vrsqrt.f32 %v4361_v50  ;;  %v4485_v35 = vmul.f32 0.03125, %v4465_v20  ;;  %v4462_v15 = vpop.xlane.xlu0 %4461  ;;  %v4396_v51 = vadd.f32 %v15423_v31, %v4384_v27 }
 0xa39   : > { %12913 = vrsqrt.f32 %v4360_v18  ;;  %v4484_v57 = vmul.f32 0.03125, %v4462_v15  ;;  %v4405_v11 = vadd.f32 %v4397_v45, %v15213_v37 }
 0xa3a   : > { %v12908_v58 = vpop.eup %12907  ;;  %v4493_v2 = vadd.f32 1e-05, %v4485_v35  ;;  %v4404_v44 = vadd.f32 %v4396_v51, %v15210_v9 }
 0xa3b   : > { %v12910_v41 = vpop.eup %12909  ;;  %v4492_v53 = vadd.f32 1e-05, %v4484_v57  ;;  %v4471_v4 = vpop.xlane.xlu1 %4470  ;;  %v4375_v7 = vmul.f32 %v12908_v58, %v15326_v34  ;;  %v10026_v57 = vld [vmem:[%s17979_s9 + $0x3] ss:$0 sm:$0xff] }
 0xa3c   : > { %12915 = vrsqrt.f32 %v4493_v2  ;;  %v4487_v8 = vmul.f32 0.03125, %v4471_v4  ;;  %v4468_v62 = vpop.xlane.xlu0 %4467  ;;  %v12319_v3 = vpack.c.bf16 %v4405_v11, %v4404_v44  ;;  %v4374_v6 = vmul.f32 %v12910_v41, %v15328_v19  ;;  %v10027_v44 = vld [vmem:[%s17979_s9 + $0x4] ss:$0 sm:$0xff] }
 0xa3d   : > { %12917 = vrsqrt.f32 %v4492_v53  ;;  %v4486_v0 = vmul.f32 0.03125, %v4468_v62  ;;  %v4387_v39 = vmul.f32 %v15417_v10, %v4375_v7 }
 0xa3e   : > { %v4495_v37 = vadd.f32 1e-05, %v4487_v8  ;;  %12320 = vmatprep.subr.bf16.mxu1 %v12319_v3  ;;  %v4386_v49 = vmul.f32 %v15417_v10, %v4374_v6 }
 0xa3f   : > { %v4494_v9 = vadd.f32 1e-05, %v4486_v0  ;;  %v4477_v60 = vpop.xlane.xlu1 %4476  ;;  %12322 = vmatpush3.bf16.msra.mxu1 %v12319_v3  ;;  %v4399_v21 = vadd.f32 %v15423_v31, %v4387_v39 }
 0xa40   : > { %12919 = vrsqrt.f32 %v4495_v37  ;;  %v4489_v34 = vmul.f32 0.03125, %v4477_v60  ;;  %v4474_v59 = vpop.xlane.xlu0 %4473  ;;  %v4398_v63 = vadd.f32 %v15423_v31, %v4386_v49 }
 0xa41   : > { %12921 = vrsqrt.f32 %v4494_v9  ;;  %v4488_v19 = vmul.f32 0.03125, %v4474_v59  ;;  %v4407_v32 = vadd.f32 %v4399_v21, %v15225_v56 }
 0xa42   : > { %v12912_v22 = vpop.eup %12911  ;;  %v4497_v24 = vadd.f32 1e-05, %v4489_v34  ;;  %v4406_v12 = vadd.f32 %v4398_v63, %v15222_v1 }
 0xa43   : > { %v12914_v13 = vpop.eup %12913  ;;  %v4496_v40 = vadd.f32 1e-05, %v4488_v19  ;;  %v4483_v14 = vpop.xlane.xlu1 %4482  ;;  %v4377_v50 = vmul.f32 %v12912_v22, %v15337_v23 }
 0xa44   : > { %12923 = vrsqrt.f32 %v4497_v24  ;;  %v4491_v27 = vmul.f32 0.03125, %v4483_v14  ;;  %v4480_v18 = vpop.xlane.xlu0 %4479  ;;  %v12323_v20 = vpack.c.bf16 %v4407_v32, %v4406_v12  ;;  %v4376_v45 = vmul.f32 %v12914_v13, %v15339_v54 }
 0xa45   : > { %12925 = vrsqrt.f32 %v4496_v40  ;;  %v4490_v35 = vmul.f32 0.03125, %v4480_v18  ;;  %v4389_v15 = vmul.f32 %v15417_v10, %v4377_v50 }
 0xa46   : > { %v12916_v56 = vpop.eup %12915  ;;  %v4499_v51 = vadd.f32 1e-05, %v4491_v27  ;;  %12324 = vmatprep.subr.bf16.mxu1 %v12323_v20  ;;  %v4388_v1 = vmul.f32 %v15417_v10, %v4376_v45  ;;  %v10035_v45 = vld [vmem:[%s18132_s3 + $0x78] sm:$0xff] }
 0xa47   : > { %v12918_v23 = vpop.eup %12917  ;;  %v4498_v11 = vadd.f32 1e-05, %v4490_v35  ;;  %12326 = vmatpush3.bf16.msra.mxu1 %v12323_v20  ;;  %v4401_v58 = vadd.f32 %v15423_v31, %v4389_v15  ;;  %v4509_v54 = vmul.f32 %v12916_v56, %v15346_v61  ;;  %v10034_v20 = vld [vmem:[%s18132_s3 + $0x70] sm:$0xff]  ;;  %v10066_v35 = vld [vmem:[%s18136_s1 + $0x20] sm:$0xff] }
 0xa48   : > { %12927 = vrsqrt.f32 %v4499_v51  ;;  %v4400_v2 = vadd.f32 %v15423_v31, %v4388_v1  ;;  %v4508_v10 = vmul.f32 %v12918_v23, %v15350_v52  ;;  %v10068_v56 = vld [vmem:[%s18136_s1 + $0x30] sm:$0xff]  ;;  %v10069_v51 = vld [vmem:[%s18136_s1 + $0x38] sm:$0xff] }
 0xa49   : > { %12929 = vrsqrt.f32 %v4498_v11  ;;  %v4409_v41 = vadd.f32 %v4401_v58, %v15237_v29  ;;  %v4521_v53 = vmul.f32 %v10026_v57, %v4509_v54  ;;  %v12359_v1 = vpack.c.bf16 %v10069_v51, %v10068_v56 }
 0xa4a   : > { %v12920_v4 = vpop.eup %12919  ;;  %v4408_v7 = vadd.f32 %v4400_v2, %v15234_v43  ;;  %v4520_v8 = vmul.f32 %v10026_v57, %v4508_v10  ;;  %v10029_v43 = vld [vmem:[%s18132_s3 + $0x48] sm:$0xff] }
 0xa4b   : > { %v12922_v62 = vpop.eup %12921  ;;  %v4533_v3 = vadd.f32 %v10027_v44, %v4521_v53  ;;  %v4511_v61 = vmul.f32 %v12920_v4, %v15358_v46 }
 0xa4c   : > { %v12327_v6 = vpack.c.bf16 %v4409_v41, %v4408_v7  ;;  %v4532_v31 = vadd.f32 %v10027_v44, %v4520_v8  ;;  %v4510_v0 = vmul.f32 %v12922_v62, %v15362_v36  ;;  %v10030_v36 = vld [vmem:[%s18132_s3 + $0x50] sm:$0xff] }
 0xa4d   : > { %v4523_v39 = vmul.f32 %v10026_v57, %v4511_v61 }
 0xa4e   : > { %v12924_v37 = vpop.eup %12923  ;;  %12328 = vmatprep.subr.bf16.mxu1 %v12327_v6  ;;  %v12331_v52 = vpack.c.bf16 %v4533_v3, %v4532_v31  ;;  %v4522_v49 = vmul.f32 %v10026_v57, %v4510_v0 }
 0xa4f   : > { %v12926_v9 = vpop.eup %12925  ;;  %12330 = vmatpush3.bf16.msra.mxu1 %v12327_v6  ;;  %v4535_v29 = vadd.f32 %v10027_v44, %v4523_v39  ;;  %v4513_v60 = vmul.f32 %v12924_v37, %v15370_v48  ;;  %v10031_v48 = vld [vmem:[%s18132_s3 + $0x58] sm:$0xff]  ;;  %v15586_v6 = vld [vmem:[%s17978_s8 + $0x2] ss:$0 sm:$0xff] }
 0xa50   : > { %12332 = vmatprep.subr.bf16.mxu1 %v12331_v52  ;;  %v4534_v46 = vadd.f32 %v10027_v44, %v4522_v49  ;;  %v4512_v21 = vmul.f32 %v12926_v9, %v15374_v17  ;;  %v10032_v17 = vld [vmem:[%s18132_s3 + $0x60] sm:$0xff] }
 0xa51   : > { %v4525_v34 = vmul.f32 %v10026_v57, %v4513_v60  ;;  %v15598_v60 = vld [vmem:[%s17982_s12] ss:$0 sm:$0xff] }
 0xa52   : > { %v12928_v59 = vpop.eup %12927  ;;  %11440 = vmatmul.mubr.msk.f32.vlgmr.msra.gmra.mrb[48].mxu1 %vm726_vm0, %v10029_v43  ;;  %v12335_v63 = vpack.c.bf16 %v4535_v29, %v4534_v46  ;;  %v4524_v19 = vmul.f32 %v10026_v57, %v4512_v21 }
 0xa53   : > { %v12930_v32 = vpop.eup %12929  ;;  %12334 = vmatpush3.bf16.msra.mxu1 %v12331_v52  ;;  %11442 = vmatprep.mubr.msk.f32.mxu1 %vm726_vm0, %v10030_v36  ;;  %v4537_v22 = vadd.f32 %v10027_v44, %v4525_v34  ;;  %v4515_v24 = vmul.f32 %v12928_v59, %v15382_v26  ;;  %v10033_v26 = vld [vmem:[%s18132_s3 + $0x68] sm:$0xff]  ;;  %v15610_v34 = vld [vmem:[%s17982_s12 + $0x1] ss:$0 sm:$0xff] }
 0xa54   : > { %12336 = vmatprep.subr.bf16.mxu1 %v12335_v63  ;;  %v4536_v12 = vadd.f32 %v10027_v44, %v4524_v19  ;;  %v4514_v13 = vmul.f32 %v12930_v32, %v15386_v55 }
 0xa55   : > { %v4527_v40 = vmul.f32 %v10026_v57, %v4515_v24 }
 0xa56   : > { %11443 = vmatmul.mubr.msk.f32.gmra.mrb[50].mxu1 %vm726_vm0, %v10031_v48  ;;  %v12339_v14 = vpack.c.bf16 %v4537_v22, %v4536_v12  ;;  %v4526_v50 = vmul.f32 %v10026_v57, %v4514_v13 }
 0xa57   : > { %12338 = vmatpush3.bf16.msra.mxu1 %v12335_v63  ;;  %11445 = vmatprep.mubr.msk.f32.mxu1 %vm726_vm0, %v10032_v17  ;;  %v4539_v27 = vadd.f32 %v10027_v44, %v4527_v40 }
 0xa58   : > { %12340 = vmatprep.subr.bf16.mxu1 %v12339_v14  ;;  %v4538_v18 = vadd.f32 %v10027_v44, %v4526_v50 }
 0xa5a   : > { %11446 = vmatmul.mubr.msk.f32.gmra.mrb[52].mxu1 %vm726_vm0, %v10033_v26  ;;  %v12343_v55 = vpack.c.bf16 %v4539_v27, %v4538_v18 }
 0xa5b   : > { %12342 = vmatpush3.bf16.msra.mxu1 %v12339_v14  ;;  %11448 = vmatprep.mubr.msk.f32.mxu1 %vm726_vm0, %v10034_v20 }
 0xa5c   : > { %12344 = vmatprep.subr.bf16.mxu1 %v12343_v55 }
 0xa5e   : > { %11449 = vmatmul.mubr.msk.f32.gmra.mrb[54].mxu1 %vm726_vm0, %v10035_v45 }
 0xa5f   : > { %12346 = vmatpush3.bf16.msra.mxu1 %v12343_v55  ;;  %11467 = vmatprep.mubr.msk.f32.mxu1 %vm726_vm0, %v15398_v47  ;;  %v10067_v47 = vld [vmem:[%s18136_s1 + $0x28] sm:$0xff] }
 0xa60   : > { %v12355_v15 = vpack.c.bf16 %v10067_v47, %v10066_v35 }
 0xa62   : > { %11468 = vmatmul.mubr.msk.f32.vlgmr.msra.gmra.mrb[56].mxu1 %vm726_vm0, %v10029_v43  ;;  %12356 = vmatprep.subr.bf16.mxu1 %v12355_v15 }
 0xa63   : > { %11470 = vmatprep.mubr.msk.f32.mxu1 %vm726_vm0, %v10030_v36  ;;  %12358 = vmatpush3.bf16.msra.mxu1 %v12355_v15 }
 0xa64   : > { %12360 = vmatprep.subr.bf16.mxu1 %v12359_v1 }
 0xa66   : > { %11471 = vmatmul.mubr.msk.f32.gmra.mrb[58].mxu1 %vm726_vm0, %v10031_v48 }
 0xa67   : > { %11473 = vmatprep.mubr.msk.f32.mxu1 %vm726_vm0, %v10032_v17  ;;  %12362 = vmatpush3.bf16.msra.mxu1 %v12359_v1 }
 0xa6a   : > { %11474 = vmatmul.mubr.msk.f32.gmra.mrb[60].mxu1 %vm726_vm0, %v10033_v26 }
 0xa6b   : > { %11476 = vmatprep.mubr.msk.f32.mxu1 %vm726_vm0, %v10034_v20 }
 0xa6e   : > { %11477 = vmatmul.mubr.msk.f32.gmra.mrb[62].mxu1 %vm726_vm0, %v10035_v45 }
 0xb25   : > { %v15519_v57 = vpop.f32.mrb[48].mxu1 }
 0xb26   : > { %18231 = vst [vmem:[#allocation23_spill] sm:$0xff] %v15519_v57  ;;  %v15521_v23 = vpop.f32.mrb[49].mxu1 }
 0xb27   : > { %18232 = vst [vmem:[#allocation37_spill] sm:$0xff] %v15521_v23  ;;  %11487 = vmatprep.mubr.msk.f32.mxu0 %vm978_vm1, %v15521_v23 }
 0xb28   : > { %11488 = vmatmul.mubr.msk.f32.vlgmr.msra.gmra.mrb[72].mxu0 %vm978_vm1, %v15519_v57 }
 0xb29   : > { %v15527_v11 = vpop.f32.mrb[50].mxu1 }
 0xb2a   : > { %18233 = vst [vmem:[#allocation22_spill] sm:$0xff] %v15527_v11  ;;  %v15529_v58 = vpop.f32.mrb[51].mxu1 }
 0xb2b   : > { %18234 = vst [vmem:[#allocation26_spill] sm:$0xff] %v15529_v58  ;;  %11490 = vmatprep.mubr.msk.f32.mxu0 %vm978_vm1, %v15529_v58 }
 0xb2c   : > { %11491 = vmatmul.mubr.msk.f32.gmra.mrb[74].mxu0 %vm978_vm1, %v15527_v11  ;;  %v15804_v11 = vld [vmem:[%s17982_s12 + $0x2] ss:$0 sm:$0xff] }
 0xb2d   : > { %v15535_v54 = vpop.f32.mrb[52].mxu1 }
 0xb2e   : > { %18235 = vst [vmem:[#allocation31_spill] sm:$0xff] %v15535_v54  ;;  %v15537_v2 = vpop.f32.mrb[53].mxu1 }
 0xb2f   : > { %18236 = vst [vmem:[#allocation24_spill] sm:$0xff] %v15537_v2  ;;  %11493 = vmatprep.mubr.msk.f32.mxu0 %vm978_vm1, %v15537_v2 }
 0xb30   : > { %11494 = vmatmul.mubr.msk.f32.gmra.mrb[76].mxu0 %vm978_vm1, %v15535_v54 }
 0xb31   : > { %v15543_v44 = vpop.f32.mrb[54].mxu1 }
 0xb32   : > { %18237 = vst [vmem:[#allocation32_spill] sm:$0xff] %v15543_v44  ;;  %v15545_v10 = vpop.f32.mrb[55].mxu1 }
 0xb33   : > { %18238 = vst [vmem:[#allocation36_spill] sm:$0xff] %v15545_v10  ;;  %11496 = vmatprep.mubr.msk.f32.mxu0 %vm978_vm1, %v15545_v10 }
 0xb34   : > { %11497 = vmatmul.mubr.msk.f32.gmra.mrb[78].mxu0 %vm978_vm1, %v15543_v44 }
 0xb35   : > { %v15551_v41 = vpop.f32.mrb[56].mxu1 }
 0xb36   : > { %18239 = vst [vmem:[#allocation38_spill] sm:$0xff] %v15551_v41  ;;  %v15553_v53 = vpop.f32.mrb[57].mxu1 }
 0xb37   : > { %18240 = vst [vmem:[#allocation40_spill] sm:$0xff] %v15553_v53  ;;  %11507 = vmatprep.mubr.msk.f32.mxu1 %vm978_vm1, %v15553_v53 }
 0xb38   : > { %11508 = vmatmul.mubr.msk.f32.vlgmr.msra.gmra.mrb[64].mxu1 %vm978_vm1, %v15551_v41 }
 0xb39   : > { %v15559_v4 = vpop.f32.mrb[58].mxu1 }
 0xb3a   : > { %18241 = vst [vmem:[#allocation41_spill] sm:$0xff] %v15559_v4  ;;  %v15561_v7 = vpop.f32.mrb[59].mxu1 }
 0xb3b   : > { %18242 = vst [vmem:[#allocation39_spill] sm:$0xff] %v15561_v7  ;;  %11510 = vmatprep.mubr.msk.f32.mxu1 %vm978_vm1, %v15561_v7 }
 0xb3c   : > { %11511 = vmatmul.mubr.msk.f32.gmra.mrb[66].mxu1 %vm978_vm1, %v15559_v4 }
 0xb3d   : > { %v15567_v8 = vpop.f32.mrb[60].mxu1 }
 0xb3e   : > { %18243 = vst [vmem:[#allocation34_spill] sm:$0xff] %v15567_v8  ;;  %v15569_v62 = vpop.f32.mrb[61].mxu1 }
 0xb3f   : > { %18244 = vst [vmem:[#allocation28_spill] sm:$0xff] %v15569_v62  ;;  %11513 = vmatprep.mubr.msk.f32.mxu1 %vm978_vm1, %v15569_v62 }
 0xb40   : > { %11514 = vmatmul.mubr.msk.f32.gmra.mrb[68].mxu1 %vm978_vm1, %v15567_v8 }
 0xb41   : > { %v15575_v3 = vpop.f32.mrb[62].mxu1 }
 0xb42   : > { %18245 = vst [vmem:[#allocation4_spill] sm:$0xff] %v15575_v3  ;;  %v15577_v61 = vpop.f32.mrb[63].mxu1 }
 0xb43   : > { %18246 = vst [vmem:[#allocation3_spill] sm:$0xff] %v15577_v61  ;;  %11516 = vmatprep.mubr.msk.f32.mxu1 %vm978_vm1, %v15577_v61 }
 0xb44   : > { %11517 = vmatmul.mubr.msk.f32.gmra.mrb[70].mxu1 %vm978_vm1, %v15575_v3 }
 0xbfb   : > { %v11489_v31 = vpop.f32.mrb[72].mxu0 }
 0xbfc   : > { %v4890_v0 = vadd.f32 %v11489_v31, %v15586_v6  ;;  %v4884_v39 = vpop.f32.mrb[73].mxu0  ;;  %v15658_v31 = vld [vmem:[%s17978_s8 + $0x3] ss:$0 sm:$0xff] }
 0xbfd   : > { %v4885_v37 = vadd.f32 %v15586_v6, %v4884_v39 }
 0xbfe   : > { %v15590_v52 = vmul.f32 0.35355338, %v4890_v0 }
 0xbff   : > { %v15592_v49 = vmul.f32 0.35355338, %v4885_v37  ;;  %v11492_v9 = vpop.f32.mrb[74].mxu0 }
 0xc00   : > { %18247 = vst [vmem:[#allocation6_spill] sm:$0xff] %v15590_v52  ;;  %v4900_v43 = vadd.f32 %v11492_v9, %v15586_v6  ;;  %v4894_v29 = vpop.f32.mrb[75].mxu0  ;;  %v15602_v46 = vmul.f32 %v15598_v60, %v15590_v52  ;;  %v15616_v63 = vmul.f32 %v15610_v34, %v15590_v52 }
 0xc01   : > { %v4895_v36 = vadd.f32 %v15586_v6, %v4894_v29  ;;  %v5070_v21 = vmul.f32 %v15598_v60, %v15592_v49  ;;  %v5078_v59 = vmul.f32 %v15610_v34, %v15592_v49 }
 0xc02   : > { %v15618_v19 = vmul.f32 0.35355338, %v4900_v43  ;;  %v5779_v32 = vmul.f32 %v15602_v46, %v15602_v46  ;;  %v5787_v40 = vmul.f32 %v15616_v63, %v15616_v63 }
 0xc03   : > { %v15622_v48 = vmul.f32 0.35355338, %v4895_v36  ;;  %v11495_v22 = vpop.f32.mrb[76].mxu0  ;;  %11535 = vmatprep.mubr.msk.f32.mxu0 %vm726_vm0, %v5070_v21  ;;  %11563 = vmatprep.mubr.msk.f32.mxu1 %vm726_vm0, %v5078_v59  ;;  %v5778_v24 = vmul.f32 %v5070_v21, %v5070_v21  ;;  %v5786_v26 = vmul.f32 %v5078_v59, %v5078_v59 }
 0xc04   : > { %18248 = vst [vmem:[#allocation5_spill] sm:$0xff] %v15618_v19  ;;  %v4910_v12 = vadd.f32 %v11495_v22, %v15586_v6  ;;  %v4904_v17 = vpop.f32.mrb[77].mxu0  ;;  %v5813_v13 = vsel %vm726_vm0, %v5779_v32, 0.0  ;;  %v15632_v14 = vmul.f32 %v15598_v60, %v15618_v19  ;;  %v15644_v45 = vmul.f32 %v15610_v34, %v15618_v19 }
 0xc05   : > { %18249 = vst [vmem:[#allocation8_spill] sm:$0xff] %v15622_v48  ;;  %5814 = vadd.xlane.f32.xlu1 %v5813_v13  ;;  %v5810_v50 = vsel %vm726_vm0, %v5778_v24, 0.0  ;;  %v15637_v27 = vmul.f32 %v15598_v60, %v15622_v48  ;;  %v4905_v18 = vadd.f32 %v15586_v6, %v4904_v17  ;;  %v5837_v56 = vsel %vm726_vm0, %v5787_v40, 0.0 }
 0xc06   : > { %5811 = vadd.xlane.f32.xlu0 %v5810_v50  ;;  %v5781_v55 = vmul.f32 %v15632_v14, %v15632_v14  ;;  %v15646_v35 = vmul.f32 0.35355338, %v4910_v12  ;;  %v15652_v51 = vmul.f32 %v15610_v34, %v15622_v48  ;;  %v5834_v1 = vsel %vm726_vm0, %v5786_v26, 0.0 }
 0xc07   : > { %v11498_v20 = vpop.f32.mrb[78].mxu0  ;;  %v5780_v0 = vmul.f32 %v15637_v27, %v15637_v27  ;;  %v15662_v39 = vmul.f32 0.35355338, %v4905_v18  ;;  %v5789_v43 = vmul.f32 %v15644_v45, %v15644_v45 }
 0xc08   : > { %18250 = vst [vmem:[#allocation7_spill] sm:$0xff] %v15646_v35  ;;  %v4920_v47 = vadd.f32 %v11498_v20, %v15586_v6  ;;  %v4914_v15 = vpop.f32.mrb[79].mxu0  ;;  %v5819_v9 = vsel %vm726_vm0, %v5781_v55, 0.0  ;;  %v5788_v59 = vmul.f32 %v15652_v51, %v15652_v51  ;;  %v15676_v32 = vmul.f32 %v15610_v34, %v15646_v35 }
 0xc09   : > { %5838 = vadd.xlane.f32.xlu1 %v5837_v56  ;;  %18251 = vst [vmem:[#allocation10_spill] sm:$0xff] %v15662_v39  ;;  %v5816_v24 = vsel %vm726_vm0, %v5780_v0, 0.0  ;;  %v15684_v12 = vmul.f32 %v15598_v60, %v15646_v35  ;;  %v5843_v50 = vsel %vm726_vm0, %v5789_v43, 0.0  ;;  %v15703_v20 = vmul.f32 %v15598_v60, %v15662_v39 }
 0xc0a   : > { %5835 = vadd.xlane.f32.xlu0 %v5834_v1  ;;  %v15667_v29 = vmul.f32 0.35355338, %v4920_v47  ;;  %v5840_v56 = vsel %vm726_vm0, %v5788_v59, 0.0  ;;  %v5791_v1 = vmul.f32 %v15676_v32, %v15676_v32  ;;  %v4915_v59 = vadd.f32 %v15586_v6, %v4914_v15 }
 0xc0b   : > { %v11509_v37 = vpop.f32.mrb[64].mxu1  ;;  %v5782_v61 = vmul.f32 %v15703_v20, %v15703_v20 }
 0xc0c   : > { %18252 = vst [vmem:[#allocation9_spill] sm:$0xff] %v15667_v29  ;;  %v15670_v36 = vadd.f32 %v11509_v37, %v15658_v31  ;;  %v5031_v21 = vpop.f32.mrb[65].mxu1  ;;  %v15713_v0 = vmul.f32 %v15598_v60, %v15667_v29  ;;  %v5849_v3 = vsel %vm726_vm0, %v5791_v1, 0.0  ;;  %v15768_v1 = vmul.f32 0.35355338, %v4915_v59 }
 0xc0d   : > { %v15679_v22 = vadd.f32 %v15658_v31, %v5031_v21  ;;  %5820 = vadd.xlane.f32.xlu1 %v5819_v9  ;;  %v5783_v21 = vmul.f32 %v15684_v12, %v15684_v12  ;;  %v15795_v44 = vmul.f32 %v15610_v34, %v15667_v29 }
 0xc0e   : > { %5817 = vadd.xlane.f32.xlu0 %v5816_v24  ;;  %v5103_v17 = vmul.f32 %v15598_v60, %v15670_v36  ;;  %v15690_v13 = vmul.f32 %v15610_v34, %v15670_v36  ;;  %v5785_v8 = vmul.f32 %v15713_v0, %v15713_v0  ;;  %18254 = vst [vmem:[#allocation11_spill] sm:$0xff] %v15768_v1 }
 0xc0f   : > { %v11512_v40 = vpop.f32.mrb[66].mxu1  ;;  %v15695_v26 = vmul.f32 %v15598_v60, %v15679_v22  ;;  %v15699_v18 = vmul.f32 %v15610_v34, %v15679_v22  ;;  %v5825_v4 = vsel %vm726_vm0, %v5783_v21, 0.0  ;;  %v5119_v58 = vmul.f32 %v15804_v11, %v15670_v36 }
 0xc10   : > { %v15706_v55 = vadd.f32 %v11512_v40, %v15658_v31  ;;  %v5041_v47 = vpop.f32.mrb[67].mxu1  ;;  %v5831_v10 = vsel %vm726_vm0, %v5785_v8, 0.0  ;;  %v5907_v54 = vmul.f32 %v5103_v17, %v5103_v17  ;;  %v5915_v42 = vmul.f32 %v15690_v13, %v15690_v13 }
 0xc11   : > { %5844 = vadd.xlane.f32.xlu1 %v5843_v50  ;;  %v15716_v37 = vadd.f32 %v15658_v31, %v5041_v47  ;;  %v12363_v9 = vpack.c.bf16 %v5103_v17, %v15695_v26  ;;  %v12387_v43 = vpack.c.bf16 %v15690_v13, %v15699_v18  ;;  %v15734_v50 = vmul.f32 %v15610_v34, %v15662_v39  ;;  %v18273_v47 = vld [vmem:[#allocation6_spill] sm:$0xff] }
 0xc12   : > { %5841 = vadd.xlane.f32.xlu0 %v5840_v56  ;;  %v15726_v24 = vmul.f32 %v15598_v60, %v15706_v55  ;;  %v15730_v40 = vmul.f32 %v15610_v34, %v15706_v55  ;;  %v5941_v16 = vsel %vm726_vm0, %v5907_v54, 0.0  ;;  %v15857_v38 = vmul.f32 %v15598_v60, %v15768_v1 }
 0xc13   : > { %12365 = vmatprep.subr.msk.bf16.mxu0 %vm13618_vm2, %v12363_v9  ;;  %12389 = vmatprep.subr.msk.bf16.mxu1 %vm13618_vm2, %v12387_v43  ;;  %v11515_v6 = vpop.f32.mrb[68].mxu1  ;;  %v15742_v15 = vmul.f32 %v15598_v60, %v15716_v37  ;;  %v15746_v56 = vmul.f32 %v15610_v34, %v15716_v37  ;;  %v15893_v29 = vmul.f32 %v15610_v34, %v15768_v1 }
 0xc14   : > { %12368 = vmatpush3.bf16.xpose.msk.msra.mxu0 %vm13618_vm2, %v12363_v9  ;;  %12392 = vmatpush3.bf16.xpose.msk.msra.mxu1 %vm13618_vm2, %v12387_v43  ;;  %v15756_v62 = vadd.f32 %v11515_v6, %v15658_v31  ;;  %v5051_v7 = vpop.f32.mrb[69].mxu1  ;;  %v5790_v6 = vmul.f32 %v15734_v50, %v15734_v50  ;;  %v5784_v35 = vmul.f32 %v15857_v38, %v15857_v38 }
 0xc15   : > { %5850 = vadd.xlane.f32.xlu1 %v5849_v3  ;;  %v12369_v53 = vpack.c.bf16 %v15726_v24, %v15742_v15  ;;  %v12393_v9 = vpack.c.bf16 %v15730_v40, %v15746_v56  ;;  %v15766_v43 = vadd.f32 %v15658_v31, %v5051_v7  ;;  %v5822_v7 = vsel %vm726_vm0, %v5782_v61, 0.0 }
 0xc16   : > { %5826 = vadd.xlane.f32.xlu0 %v5825_v4  ;;  %v15774_v3 = vmul.f32 %v15598_v60, %v15756_v62  ;;  %v15778_v21 = vmul.f32 %v15610_v34, %v15756_v62  ;;  %v5846_v5 = vsel %vm726_vm0, %v5790_v6, 0.0  ;;  %v5792_v1 = vmul.f32 %v15893_v29, %v15893_v29 }
 0xc17   : > { %12371 = vmatprep.subr.msk.bf16.mxu0 %vm13618_vm2, %v12369_v53  ;;  %12395 = vmatprep.subr.msk.bf16.mxu1 %vm13618_vm2, %v12393_v9  ;;  %v11518_v4 = vpop.f32.mrb[70].mxu1  ;;  %v15787_v59 = vmul.f32 %v15598_v60, %v15766_v43  ;;  %v15791_v41 = vmul.f32 %v15610_v34, %v15766_v43  ;;  %v5906_v52 = vmul.f32 %v15695_v26, %v15695_v26  ;;  %v13208_v26 = vld [vmem:[%s17982_s12 + $0x5] ss:$0 sm:$0xff] }
 0xc18   : > { %v15799_v2 = vadd.f32 %v11518_v4, %v15658_v31  ;;  %v5061_v61 = vpop.f32.mrb[71].mxu1  ;;  %v15818_v4 = vld [vmem:[%s17982_s12 + $0x3] ss:$0 sm:$0xff] }
 0xc19   : > { %18255 = vst [vmem:[#allocation12_spill] sm:$0xff] %v15787_v59  ;;  %5832 = vadd.xlane.f32.xlu1 %v5831_v10  ;;  %v12375_v57 = vpack.c.bf16 %v15774_v3, %v15787_v59  ;;  %v12399_v8 = vpack.c.bf16 %v15778_v21, %v15791_v41  ;;  %v15813_v17 = vadd.f32 %v15658_v31, %v5061_v61 }
 0xc1a   : > { %v5127_v23 = vmul.f32 %v15818_v4, %v15670_v36  ;;  %5823 = vadd.xlane.f32.xlu0 %v5822_v7  ;;  %v15824_v10 = vmul.f32 %v15598_v60, %v15799_v2  ;;  %v15828_v30 = vmul.f32 %v15610_v34, %v15799_v2  ;;  %v15832_v31 = vmul.f32 %v15804_v11, %v15679_v22 }
 0xc1b   : > { %v5793_v61 = vmul.f32 %v15795_v44, %v15795_v44  ;;  %v15838_v25 = vmul.f32 %v15598_v60, %v15813_v17  ;;  %v15842_v7 = vmul.f32 %v15610_v34, %v15813_v17  ;;  %v15846_v28 = vmul.f32 %v15818_v4, %v15679_v22 }
 0xc1c   : > { %18256 = vst [vmem:[#allocation13_spill] sm:$0xff] %v15824_v10  ;;  %18257 = vst [vmem:[#allocation14_spill] sm:$0xff] %v15828_v30  ;;  %12374 = vmatpush3.bf16.xpose.msk.msra.mxu0 %vm13618_vm2, %v12369_v53  ;;  %12398 = vmatpush3.bf16.xpose.msk.msra.mxu1 %vm13618_vm2, %v12393_v9  ;;  %v15860_v33 = vpack.c.bf16 %v5119_v58, %v15832_v31  ;;  %v15880_v60 = vmul.f32 %v15804_v11, %v15716_v37 }
 0xc1d   : > { %18258 = vst [vmem:[#allocation15_spill] sm:$0xff] %v15838_v25  ;;  %18259 = vst [vmem:[#allocation16_spill] sm:$0xff] %v15842_v7  ;;  %5942 = vadd.xlane.f32.xlu1 %v5941_v16  ;;  %12377 = vmatprep.subr.msk.bf16.mxu0 %vm13618_vm2, %v12375_v57  ;;  %v12381_v53 = vpack.c.bf16 %v15824_v10, %v15838_v25  ;;  %v12405_v54 = vpack.c.bf16 %v15828_v30, %v15842_v7  ;;  %v5855_v25 = vsel %vm726_vm0, %v5793_v61, 0.0 }
 0xc1e   : > { %v15870_v13 = vpack.c.bf16 %v5127_v23, %v15846_v28  ;;  %5847 = vadd.xlane.f32.xlu0 %v5846_v5  ;;  %12401 = vmatprep.subr.msk.bf16.mxu1 %vm13618_vm2, %v12399_v8  ;;  %v15876_v16 = vmul.f32 %v15804_v11, %v15706_v55  ;;  %v15884_v9 = vmul.f32 %v15818_v4, %v15716_v37  ;;  %v5965_v5 = vsel %vm726_vm0, %v5915_v42, 0.0 }
 0xc1f   : > { %v15888_v6 = vmul.f32 %v15818_v4, %v15706_v55  ;;  %v5923_v7 = vmul.f32 %v5119_v58, %v5119_v58  ;;  %v15908_v42 = vmul.f32 %v15804_v11, %v15766_v43  ;;  %v15912_v58 = vmul.f32 %v15804_v11, %v15756_v62 }
 0xc20   : > { %v15900_v39 = vpack.c.bf16 %v15876_v16, %v15880_v60  ;;  %v15916_v34 = vmul.f32 %v15818_v4, %v15766_v43  ;;  %v15920_v61 = vmul.f32 %v15818_v4, %v15756_v62  ;;  %v5828_v10 = vsel %vm726_vm0, %v5784_v35, 0.0 }
 0xc21   : > { %5966 = vadd.xlane.f32.xlu1 %v5965_v5  ;;  %v15904_v19 = vpack.c.bf16 %v15888_v6, %v15884_v9  ;;  %18260 = vst [vmem:[#allocation17_spill] sm:$0xff] %v15908_v42  ;;  %v5931_v5 = vmul.f32 %v5127_v23, %v5127_v23  ;;  %v15934_v48 = vpack.c.bf16 %v15912_v58, %v15908_v42 }
 0xc22   : > { %5856 = vadd.xlane.f32.xlu0 %v5855_v25  ;;  %18261 = vst [vmem:[#allocation18_spill] sm:$0xff] %v15916_v34  ;;  %v5989_v25 = vsel %vm726_vm0, %v5923_v7, 0.0  ;;  %v15944_v23 = vmul.f32 %v15804_v11, %v15813_v17  ;;  %v15948_v35 = vmul.f32 %v15804_v11, %v15799_v2  ;;  %v15956_v7 = vmul.f32 %v15818_v4, %v15799_v2 }
 0xc23   : > { %v5909_v30 = vmul.f32 %v15726_v24, %v15726_v24 }
 0xc24   : > { %12380 = vmatpush3.bf16.xpose.msk.msra.mxu0 %vm13618_vm2, %v12375_v57  ;;  %12404 = vmatpush3.bf16.xpose.msk.msra.mxu1 %vm13618_vm2, %v12399_v8  ;;  %v15938_v57 = vpack.c.bf16 %v15920_v61, %v15916_v34  ;;  %18262 = vst [vmem:[#allocation25_spill] sm:$0xff] %v15944_v23  ;;  %18263 = vst [vmem:[#allocation42_spill] sm:$0xff] %v15948_v35  ;;  %v15952_v8 = vmul.f32 %v15818_v4, %v15813_v17 }
 0xc25   : > { %5990 = vadd.xlane.f32.xlu1 %v5989_v25  ;;  %12383 = vmatprep.subr.msk.bf16.mxu0 %vm13618_vm2, %v12381_v53  ;;  %18265 = vst [vmem:[#allocation44_spill] sm:$0xff] %v15956_v7  ;;  %v5852_v25 = vsel %vm726_vm0, %v5792_v1, 0.0  ;;  %v15966_v34 = vpack.c.bf16 %v15948_v35, %v15944_v23  ;;  %v5947_v23 = vsel %vm726_vm0, %v5909_v30, 0.0  ;;  %v5144_v30 = vmul.f32 %v13208_v26, %v15716_v37 }
 0xc26   : > { %5829 = vadd.xlane.f32.xlu0 %v5828_v10  ;;  %12407 = vmatprep.subr.msk.bf16.mxu1 %vm13618_vm2, %v12405_v54  ;;  %18264 = vst [vmem:[#allocation43_spill] sm:$0xff] %v15952_v8  ;;  %v6013_v10 = vsel %vm726_vm0, %v5931_v5, 0.0  ;;  %v15970_v42 = vpack.c.bf16 %v15956_v7, %v15952_v8  ;;  %v13207_v5 = vld [vmem:[%s17982_s12 + $0x4] ss:$0 sm:$0xff]  ;;  %v5143_v8 = vmul.f32 %v13208_v26, %v15670_v36 }
 0xc27   : > { %v5134_v1 = vmul.f32 %v13207_v5, %v15679_v22  ;;  %v5135_v24 = vmul.f32 %v13207_v5, %v15670_v36  ;;  %v5138_v7 = vmul.f32 %v13207_v5, %v15766_v43 }
 0xc29   : > { %6014 = vadd.xlane.f32.xlu1 %v6013_v10  ;;  %v15977_v59 = vpack.c.bf16 %v5135_v24, %v5134_v1  ;;  %v5142_v10 = vmul.f32 %v13208_v26, %v15679_v22  ;;  %v5914_v1 = vmul.f32 %v15699_v18, %v15699_v18  ;;  %v5938_v24 = vsel %vm726_vm0, %v5906_v52, 0.0 }
 0xc2a   : > { %5853 = vadd.xlane.f32.xlu0 %v5852_v25  ;;  %v5917_v25 = vmul.f32 %v15730_v40, %v15730_v40  ;;  %v5145_v40 = vmul.f32 %v13208_v26, %v15706_v55 }
 0xc2b   : > { %v15997_v35 = vpack.c.bf16 %v5143_v8, %v5142_v10  ;;  %v5962_v52 = vsel %vm726_vm0, %v5914_v1, 0.0  ;;  %v5925_v8 = vmul.f32 %v15876_v16, %v15876_v16 }
 0xc2c   : > { %12386 = vmatpush3.bf16.xpose.msk.msra.mxu0 %vm13618_vm2, %v12381_v53  ;;  %12410 = vmatpush3.bf16.xpose.msk.msra.mxu1 %vm13618_vm2, %v12405_v54  ;;  %v5136_v53 = vmul.f32 %v13207_v5, %v15716_v37  ;;  %v5137_v54 = vmul.f32 %v13207_v5, %v15706_v55  ;;  %v16012_v10 = vpack.c.bf16 %v5145_v40, %v5144_v30 }
 0xc2d   : > { %5948 = vadd.xlane.f32.xlu1 %v5947_v23  ;;  %12413 = vmatprep.subr.msk.bf16.mxu0 %vm13618_vm2, %v15860_v33  ;;  %v5971_v23 = vsel %vm726_vm0, %v5917_v25, 0.0  ;;  %v5147_v25 = vmul.f32 %v13208_v26, %v15756_v62 }
 0xc2e   : > { %12437 = vmatprep.subr.msk.bf16.mxu1 %vm13618_vm2, %v15870_v13  ;;  %5939 = vadd.xlane.f32.xlu0 %v5938_v24  ;;  %v16005_v18 = vpack.c.bf16 %v5137_v54, %v5136_v53  ;;  %v5139_v24 = vmul.f32 %v13207_v5, %v15756_v62  ;;  %v5922_v53 = vmul.f32 %v15832_v31, %v15832_v31 }
 0xc2f   : > { %v5146_v54 = vmul.f32 %v13208_v26, %v15766_v43  ;;  %v5141_v31 = vmul.f32 %v13207_v5, %v15799_v2 }
 0xc30   : > { %v16024_v16 = vpack.c.bf16 %v5139_v24, %v5138_v7  ;;  %v5149_v7 = vmul.f32 %v13208_v26, %v15799_v2 }
 0xc31   : > { %5972 = vadd.xlane.f32.xlu1 %v5971_v23  ;;  %v16030_v1 = vpack.c.bf16 %v5147_v25, %v5146_v54 }
 0xc32   : > { %5963 = vadd.xlane.f32.xlu0 %v5962_v52 }
 0xc33   : > { %11536 = vmatmul.mubr.msk.f32.vlgmr.msra.gmra.mrb[80].mxu0 %vm726_vm0, %v15602_v46  ;;  %11564 = vmatmul.mubr.msk.f32.vlgmr.msra.gmra.mrb[72].mxu1 %vm726_vm0, %v15616_v63  ;;  %v5995_v46 = vsel %vm726_vm0, %v5925_v8, 0.0  ;;  %v5933_v63 = vmul.f32 %v15888_v6, %v15888_v6 }
 0xc34   : > { %11538 = vmatprep.mubr.msk.f32.mxu0 %vm726_vm0, %v15637_v27  ;;  %11566 = vmatprep.mubr.msk.f32.mxu1 %vm726_vm0, %v15652_v51  ;;  %v5140_v27 = vmul.f32 %v13207_v5, %v15813_v17  ;;  %v5930_v51 = vmul.f32 %v15846_v28, %v15846_v28  ;;  %v13209_v28 = vld [vmem:[%s17982_s12 + $0x6] ss:$0 sm:$0xff] }
 0xc35   : > { %12416 = vmatpush3.bf16.xpose.msk.msra.mxu0 %vm13618_vm2, %v15860_v33  ;;  %12440 = vmatpush3.bf16.xpose.msk.msra.mxu1 %vm13618_vm2, %v15870_v13  ;;  %v5986_v33 = vsel %vm726_vm0, %v5922_v53, 0.0  ;;  %v5148_v13 = vmul.f32 %v13208_v26, %v15813_v17  ;;  %v5150_v26 = vmul.f32 %v13209_v28, %v15679_v22  ;;  %v6019_v30 = vsel %vm726_vm0, %v5933_v63, 0.0 }
 0xc36   : > { %5996 = vadd.xlane.f32.xlu1 %v5995_v46  ;;  %12419 = vmatprep.subr.msk.bf16.mxu0 %vm13618_vm2, %v15900_v39  ;;  %v16054_v6 = vpack.c.bf16 %v5141_v31, %v5140_v27  ;;  %v6010_v52 = vsel %vm726_vm0, %v5930_v51, 0.0  ;;  %v5156_v46 = vmul.f32 %v13209_v28, %v15813_v17  ;;  %v5918_v51 = vmul.f32 %v15791_v41, %v15791_v41 }
 0xc37   : > { %12443 = vmatprep.subr.msk.bf16.mxu1 %vm13618_vm2, %v15904_v19  ;;  %5987 = vadd.xlane.f32.xlu0 %v5986_v33  ;;  %v16060_v5 = vpack.c.bf16 %v5149_v7, %v5148_v13  ;;  %v18270_v13 = vld [vmem:[#allocation12_spill] sm:$0xff] }
 0xc38   : > { %11539 = vmatmul.mubr.msk.f32.gmra.mrb[82].mxu0 %vm726_vm0, %v15632_v14  ;;  %11567 = vmatmul.mubr.msk.f32.gmra.mrb[74].mxu1 %vm726_vm0, %v15644_v45  ;;  %v5151_v14 = vmul.f32 %v13209_v28, %v15670_v36  ;;  %v13210_v45 = vld [vmem:[%s17982_s12 + $0x7] ss:$0 sm:$0xff]  ;;  %v5974_v7 = vsel %vm726_vm0, %v5918_v51, 0.0  ;;  %v18284_v51 = vld [vmem:[#allocation9_spill] sm:$0xff] }
 0xc39   : > { %11541 = vmatprep.mubr.msk.f32.mxu0 %vm726_vm0, %v15703_v20  ;;  %11569 = vmatprep.mubr.msk.f32.mxu1 %vm726_vm0, %v15734_v50  ;;  %v5158_v40 = vmul.f32 %v13210_v45, %v15679_v22  ;;  %v5159_v23 = vmul.f32 %v13210_v45, %v15670_v36  ;;  %v5916_v20 = vmul.f32 %v15746_v56, %v15746_v56 }
 0xc3a   : > { %6020 = vadd.xlane.f32.xlu1 %v6019_v30  ;;  %v5908_v50 = vmul.f32 %v15742_v15, %v15742_v15  ;;  %v16082_v8 = vpack.c.bf16 %v5151_v14, %v5150_v26  ;;  %v5924_v22 = vmul.f32 %v15880_v60, %v15880_v60  ;;  %v5153_v15 = vmul.f32 %v13209_v28, %v15706_v55  ;;  %v18272_v30 = vld [vmem:[#allocation18_spill] sm:$0xff] }
 0xc3b   : > { %6011 = vadd.xlane.f32.xlu0 %v6010_v52  ;;  %v16084_v24 = vpack.c.bf16 %v5159_v23, %v5158_v40  ;;  %v5968_v36 = vsel %vm726_vm0, %v5916_v20, 0.0  ;;  %v5154_v56 = vmul.f32 %v13209_v28, %v15766_v43  ;;  %v5155_v60 = vmul.f32 %v13209_v28, %v15756_v62  ;;  %v18274_v23 = vld [vmem:[#allocation14_spill] sm:$0xff]  ;;  %v18275_v20 = vld [vmem:[#allocation8_spill] sm:$0xff] }
 0xc3c   : > { %11542 = vmatmul.mubr.msk.f32.gmra.mrb[84].mxu0 %vm726_vm0, %v15684_v12  ;;  %11570 = vmatmul.mubr.msk.f32.gmra.mrb[76].mxu1 %vm726_vm0, %v15676_v32  ;;  %v5992_v32 = vsel %vm726_vm0, %v5924_v22, 0.0  ;;  %v5919_v12 = vmul.f32 %v15778_v21, %v15778_v21  ;;  %v5160_v21 = vmul.f32 %v13210_v45, %v15716_v37  ;;  %v5161_v54 = vmul.f32 %v13210_v45, %v15706_v55  ;;  %v18276_v22 = vld [vmem:[#allocation13_spill] sm:$0xff] }
 0xc3d   : > { %11544 = vmatprep.mubr.msk.f32.mxu0 %vm726_vm0, %v15857_v38  ;;  %11572 = vmatprep.mubr.msk.f32.mxu1 %vm726_vm0, %v15893_v29  ;;  %v5944_v38 = vsel %vm726_vm0, %v5908_v50, 0.0  ;;  %v5932_v29 = vmul.f32 %v15884_v9, %v15884_v9  ;;  %v5935_v9 = vmul.f32 %v15920_v61, %v15920_v61  ;;  %v16144_v25 = vpack.c.bf16 %v5155_v60, %v5154_v56  ;;  %v18280_v60 = vld [vmem:[#allocation42_spill] sm:$0xff] }
 0xc3e   : > { %12422 = vmatpush3.bf16.xpose.msk.msra.mxu0 %vm13618_vm2, %v15900_v39  ;;  %12446 = vmatpush3.bf16.xpose.msk.msra.mxu1 %vm13618_vm2, %v15904_v19  ;;  %v16114_v19 = vmul.f32 %v15804_v11, %v15592_v49  ;;  %v16118_v39 = vmul.f32 %v15818_v4, %v15592_v49  ;;  %v5152_v49 = vmul.f32 %v13209_v28, %v15716_v37  ;;  %v5977_v37 = vsel %vm726_vm0, %v5919_v12, 0.0  ;;  %v18277_v12 = vld [vmem:[#allocation5_spill] sm:$0xff] }
 0xc3f   : > { %5969 = vadd.xlane.f32.xlu1 %v5968_v36  ;;  %12425 = vmatprep.subr.msk.bf16.mxu0 %vm13618_vm2, %v15934_v48  ;;  %v5162_v63 = vmul.f32 %v13210_v45, %v15766_v43  ;;  %v16156_v61 = vpack.c.bf16 %v5161_v54, %v5160_v21  ;;  %v5163_v55 = vmul.f32 %v13210_v45, %v15756_v62  ;;  %v6025_v33 = vsel %vm726_vm0, %v5935_v9, 0.0 }
 0xc40   : > { %12449 = vmatprep.subr.msk.bf16.mxu1 %vm13618_vm2, %v15938_v57  ;;  %5945 = vadd.xlane.f32.xlu0 %v5944_v38  ;;  %v16140_v53 = vpack.c.bf16 %v5153_v15, %v5152_v49  ;;  %v5164_v27 = vmul.f32 %v13210_v45, %v15813_v17  ;;  %v5934_v14 = vmul.f32 %v18272_v30, %v18272_v30 }
 0xc41   : > { %11545 = vmatmul.mubr.msk.f32.gmra.mrb[86].mxu0 %vm726_vm0, %v15713_v0  ;;  %11573 = vmatmul.mubr.msk.f32.gmra.mrb[78].mxu1 %vm726_vm0, %v15795_v44  ;;  %v6016_v0 = vsel %vm726_vm0, %v5932_v29, 0.0  ;;  %v5911_v44 = vmul.f32 %v15774_v3, %v15774_v3  ;;  %v5157_v3 = vmul.f32 %v13209_v28, %v15799_v2  ;;  %18266 = vst [vmem:[#allocation45_spill] sm:$0xff] %v16156_v61  ;;  %v18271_v28 = vld [vmem:[#allocation17_spill] sm:$0xff] }
 0xc42   : > { %11591 = vmatprep.mubr.msk.f32.mxu0 %vm726_vm0, %v16114_v19  ;;  %11619 = vmatprep.mubr.msk.f32.mxu1 %vm726_vm0, %v16118_v39  ;;  %v16172_v62 = vpack.c.bf16 %v5163_v55, %v5162_v63  ;;  %v5926_v41 = vmul.f32 %v18271_v28, %v18271_v28  ;;  %v6022_v40 = vsel %vm726_vm0, %v5934_v14, 0.0  ;;  %v5921_v52 = vmul.f32 %v18274_v23, %v18274_v23  ;;  %v18287_v14 = vld [vmem:[#allocation43_spill] sm:$0xff] }
 0xc43   : > { %5993 = vadd.xlane.f32.xlu1 %v5992_v32  ;;  %v5953_v43 = vsel %vm726_vm0, %v5911_v44, 0.0  ;;  %v16166_v31 = vpack.c.bf16 %v5157_v3, %v5156_v46  ;;  %v16206_v50 = vmul.f32 %v15804_v11, %v18275_v20  ;;  %v16210_v36 = vmul.f32 %v15818_v4, %v18275_v20  ;;  %v18281_v46 = vld [vmem:[#allocation7_spill] sm:$0xff] }
 0xc44   : > { %6017 = vadd.xlane.f32.xlu0 %v6016_v0  ;;  %18268 = vst [vmem:[#allocation47_spill] sm:$0xff] %v16172_v62  ;;  %v5913_v38 = vmul.f32 %v18276_v22, %v18276_v22  ;;  %v5983_v29 = vsel %vm726_vm0, %v5921_v52, 0.0  ;;  %v5089_v49 = vmul.f32 %v15804_v11, %v18277_v12  ;;  %v16229_v15 = vmul.f32 %v15818_v4, %v18277_v12  ;;  %v18278_v0 = vld [vmem:[#allocation44_spill] sm:$0xff] }
 0xc45   : > { %18267 = vst [vmem:[#allocation46_spill] sm:$0xff] %v16166_v31  ;;  %v5937_v44 = vmul.f32 %v18278_v0, %v18278_v0  ;;  %v5929_v9 = vmul.f32 %v18280_v60, %v18280_v60  ;;  %v5091_v3 = vmul.f32 %v15804_v11, %v18281_v46  ;;  %v5099_v63 = vmul.f32 %v15818_v4, %v18281_v46 }
 0xc46   : > { %12428 = vmatpush3.bf16.xpose.msk.msra.mxu0 %vm13618_vm2, %v15934_v48  ;;  %12452 = vmatpush3.bf16.xpose.msk.msra.mxu1 %vm13618_vm2, %v15938_v57  ;;  %v5927_v48 = vmul.f32 %v15912_v58, %v15912_v58  ;;  %v5165_v57 = vmul.f32 %v13210_v45, %v15799_v2  ;;  %v5910_v2 = vmul.f32 %v18270_v13, %v18270_v13  ;;  %v5959_v32 = vsel %vm726_vm0, %v5913_v38, 0.0 }
 0xc47   : > { %5978 = vadd.xlane.f32.xlu1 %v5977_v37  ;;  %12431 = vmatprep.subr.msk.bf16.mxu0 %vm13618_vm2, %v15966_v34  ;;  %v5095_v45 = vmul.f32 %v15818_v4, %v18273_v47  ;;  %v6031_v21 = vsel %vm726_vm0, %v5937_v44, 0.0  ;;  %v6007_v54 = vsel %vm726_vm0, %v5929_v9, 0.0  ;;  %v5101_v13 = vmul.f32 %v15818_v4, %v18284_v51 }
 0xc48   : > { %12455 = vmatprep.subr.msk.bf16.mxu1 %vm13618_vm2, %v15970_v42  ;;  %5954 = vadd.xlane.f32.xlu0 %v5953_v43  ;;  %v16174_v17 = vpack.c.bf16 %v5165_v57, %v5164_v27  ;;  %v6001_v58 = vsel %vm726_vm0, %v5927_v48, 0.0  ;;  %v5950_v26 = vsel %vm726_vm0, %v5910_v2, 0.0  ;;  %v18283_v27 = vld [vmem:[#allocation15_spill] sm:$0xff]  ;;  %v18285_v2 = vld [vmem:[#allocation16_spill] sm:$0xff]  ;;  %v5799_v52 = vmul.f32 %v5091_v3, %v5091_v3 }
 0xc49   : > { %v5912_v43 = vmul.f32 %v18283_v27, %v18283_v27  ;;  %v5803_v57 = vmul.f32 %v5095_v45, %v5095_v45  ;;  %v5807_v38 = vmul.f32 %v5099_v63, %v5099_v63  ;;  %v5809_v44 = vmul.f32 %v5101_v13, %v5101_v13 }
 0xc4a   : > { %18269 = vst [vmem:[#allocation48_spill] sm:$0xff] %v16174_v17  ;;  %v5873_v22 = vsel %vm726_vm0, %v5799_v52, 0.0  ;;  %v18292_v17 = vld [vmem:[#allocation30_spill] sm:$0xff] }
 0xc4b   : > { %6026 = vadd.xlane.f32.xlu1 %v6025_v33  ;;  %v5956_v33 = vsel %vm726_vm0, %v5912_v43, 0.0 }
 0xc4c   : > { %6002 = vadd.xlane.f32.xlu0 %v6001_v58  ;;  %v5093_v58 = vmul.f32 %v15804_v11, %v18284_v51 }
 0xc4e   : > { %12434 = vmatpush3.bf16.xpose.msk.msra.mxu0 %vm13618_vm2, %v15966_v34  ;;  %12458 = vmatpush3.bf16.xpose.msk.msra.mxu1 %vm13618_vm2, %v15970_v42  ;;  %v5998_v34 = vsel %vm726_vm0, %v5926_v41, 0.0  ;;  %v5087_v42 = vmul.f32 %v15804_v11, %v18273_v47  ;;  %v18286_v41 = vld [vmem:[#allocation25_spill] sm:$0xff]  ;;  %v5796_v47 = vmul.f32 %v16206_v50, %v16206_v50  ;;  %v5801_v12 = vmul.f32 %v5093_v58, %v5093_v58 }
 0xc4f   : > { %5975 = vadd.xlane.f32.xlu1 %v5974_v7  ;;  %12460 = vmatprep.subr.bf16.mxu0 %v15977_v59  ;;  %v5920_v7 = vmul.f32 %v18285_v2, %v18285_v2 }
 0xc50   : > { %12476 = vmatprep.subr.bf16.mxu1 %v15997_v35  ;;  %5951 = vadd.xlane.f32.xlu0 %v5950_v26  ;;  %v5795_v37 = vmul.f32 %v5087_v42, %v5087_v42  ;;  %v5802_v26 = vmul.f32 %v16118_v39, %v16118_v39  ;;  %v5864_v39 = vsel %vm726_vm0, %v5796_v47, 0.0  ;;  %v5879_v0 = vsel %vm726_vm0, %v5801_v12, 0.0 }
 0xc52   : > { %v5861_v48 = vsel %vm726_vm0, %v5795_v37, 0.0 }
 0xc53   : > { %5999 = vadd.xlane.f32.xlu1 %v5998_v34  ;;  %v5882_v34 = vsel %vm726_vm0, %v5802_v26, 0.0 }
 0xc54   : > { %6023 = vadd.xlane.f32.xlu0 %v6022_v40  ;;  %v5804_v40 = vmul.f32 %v16210_v36, %v16210_v36 }
 0xc55   : > { %11592 = vmatmul.mubr.msk.f32.vlgmr.msra.gmra.mrb[88].mxu0 %vm726_vm0, %v5087_v42  ;;  %11620 = vmatmul.mubr.msk.f32.vlgmr.msra.gmra.mrb[80].mxu1 %vm726_vm0, %v5095_v45  ;;  %v5805_v45 = vmul.f32 %v16229_v15, %v16229_v15 }
 0xc56   : > { %11594 = vmatprep.mubr.msk.f32.mxu0 %vm726_vm0, %v16206_v50  ;;  %11622 = vmatprep.mubr.msk.f32.mxu1 %vm726_vm0, %v16210_v36  ;;  %v5888_v20 = vsel %vm726_vm0, %v5804_v40, 0.0 }
 0xc57   : > { %12462 = vmatpush3.bf16.msra.mxu0 %v15977_v59  ;;  %12478 = vmatpush3.bf16.msra.mxu1 %v15997_v35  ;;  %v18279_v59 = vld [vmem:[#allocation10_spill] sm:$0xff]  ;;  %v5891_v23 = vsel %vm726_vm0, %v5805_v45, 0.0 }
 0xc58   : > { %5984 = vadd.xlane.f32.xlu1 %v5983_v29  ;;  %12464 = vmatprep.subr.bf16.mxu0 %v16005_v18  ;;  %v16236_v35 = vmul.f32 %v15804_v11, %v18279_v59  ;;  %v16240_v56 = vmul.f32 %v15818_v4, %v18279_v59 }
 0xc59   : > { %12480 = vmatprep.subr.bf16.mxu1 %v16012_v10  ;;  %5960 = vadd.xlane.f32.xlu0 %v5959_v32  ;;  %v5897_v32 = vsel %vm726_vm0, %v5807_v38, 0.0 }
 0xc5a   : > { %11595 = vmatmul.mubr.msk.f32.gmra.mrb[90].mxu0 %vm726_vm0, %v5089_v49  ;;  %11623 = vmatmul.mubr.msk.f32.gmra.mrb[82].mxu1 %vm726_vm0, %v16229_v15  ;;  %v5798_v50 = vmul.f32 %v16236_v35, %v16236_v35  ;;  %v5806_v36 = vmul.f32 %v16240_v56, %v16240_v56 }
 0xc5b   : > { %11597 = vmatprep.mubr.msk.f32.mxu0 %vm726_vm0, %v16236_v35  ;;  %11625 = vmatprep.mubr.msk.f32.mxu1 %vm726_vm0, %v16240_v56  ;;  %v5903_v56 = vsel %vm726_vm0, %v5809_v44, 0.0 }
 0xc5c   : > { %12466 = vmatpush3.bf16.msra.mxu0 %v16005_v18  ;;  %12482 = vmatpush3.bf16.msra.mxu1 %v16012_v10  ;;  %v18282_v18 = vld [vmem:[#allocation11_spill] sm:$0xff]  ;;  %v5870_v29 = vsel %vm726_vm0, %v5798_v50, 0.0 }
 0xc5d   : > { %6032 = vadd.xlane.f32.xlu1 %v6031_v21  ;;  %12468 = vmatprep.subr.bf16.mxu0 %v16024_v16  ;;  %v16263_v10 = vmul.f32 %v15804_v11, %v18282_v18  ;;  %v16267_v55 = vmul.f32 %v15818_v4, %v18282_v18  ;;  %v5797_v11 = vmul.f32 %v5089_v49, %v5089_v49  ;;  %v5980_v4 = vsel %vm726_vm0, %v5920_v7, 0.0  ;;  %v18288_v50 = vld [vmem:[#allocation27_spill] sm:$0xff] }
 0xc5e   : > { %12484 = vmatprep.subr.bf16.mxu1 %v16030_v1  ;;  %6008 = vadd.xlane.f32.xlu0 %v6007_v54  ;;  %v5894_v49 = vsel %vm726_vm0, %v5806_v36, 0.0 }
 0xc5f   : > { %11598 = vmatmul.mubr.msk.f32.gmra.mrb[92].mxu0 %vm726_vm0, %v5091_v3  ;;  %11626 = vmatmul.mubr.msk.f32.gmra.mrb[84].mxu1 %vm726_vm0, %v5099_v63  ;;  %v5867_v28 = vsel %vm726_vm0, %v5797_v11, 0.0  ;;  %v5800_v15 = vmul.f32 %v16263_v10, %v16263_v10  ;;  %v5808_v35 = vmul.f32 %v16267_v55, %v16267_v55 }
 0xc60   : > { %11600 = vmatprep.mubr.msk.f32.mxu0 %vm726_vm0, %v16263_v10  ;;  %11628 = vmatprep.mubr.msk.f32.mxu1 %vm726_vm0, %v16267_v55 }
 0xc61   : > { %12470 = vmatpush3.bf16.msra.mxu0 %v16024_v16  ;;  %12486 = vmatpush3.bf16.msra.mxu1 %v16030_v1  ;;  %v5885_v16 = vsel %vm726_vm0, %v5803_v57, 0.0  ;;  %v5794_v1 = vmul.f32 %v16114_v19, %v16114_v19  ;;  %v5936_v19 = vmul.f32 %v18287_v14, %v18287_v14  ;;  %v5876_v59 = vsel %vm726_vm0, %v5800_v15, 0.0 }
 0xc62   : > { %5862 = vadd.xlane.f32.xlu1 %v5861_v48  ;;  %12472 = vmatprep.subr.bf16.mxu0 %v16054_v6  ;;  %v5900_v60 = vsel %vm726_vm0, %v5808_v35, 0.0  ;;  %v18291_v35 = vld [vmem:[#allocation19_spill] sm:$0xff] }
 0xc63   : > { %12488 = vmatprep.subr.bf16.mxu1 %v16060_v5  ;;  %5957 = vadd.xlane.f32.xlu0 %v5956_v33  ;;  %v6028_v42 = vsel %vm726_vm0, %v5936_v19, 0.0 }
 0xc64   : > { %11601 = vmatmul.mubr.msk.f32.gmra.mrb[94].mxu0 %vm726_vm0, %v5093_v58  ;;  %11629 = vmatmul.mubr.msk.f32.gmra.mrb[86].mxu1 %vm726_vm0, %v5101_v13 }
 0xc65   : > { %12474 = vmatpush3.bf16.msra.mxu0 %v16054_v6  ;;  %12490 = vmatpush3.bf16.msra.mxu1 %v16060_v5  ;;  %v5928_v6 = vmul.f32 %v18286_v41, %v18286_v41  ;;  %v5858_v5 = vsel %vm726_vm0, %v5794_v1, 0.0 }
 0xc66   : > { %5886 = vadd.xlane.f32.xlu1 %v5885_v16  ;;  %12492 = vmatprep.subr.bf16.mxu0 %v16082_v8 }
 0xc67   : > { %12508 = vmatprep.subr.bf16.mxu1 %v16084_v24  ;;  %5981 = vadd.xlane.f32.xlu0 %v5980_v4  ;;  %v6004_v30 = vsel %vm726_vm0, %v5928_v6, 0.0 }
 0xc6a   : > { %5868 = vadd.xlane.f32.xlu1 %v5867_v28 }
 0xc6b   : > { %5859 = vadd.xlane.f32.xlu0 %v5858_v5 }
 0xc6e   : > { %6005 = vadd.xlane.f32.xlu1 %v6004_v30 }
 0xc6f   : > { %5883 = vadd.xlane.f32.xlu0 %v5882_v34 }
 0xc72   : > { %6029 = vadd.xlane.f32.xlu1 %v6028_v42 }
 0xc73   : > { %5865 = vadd.xlane.f32.xlu0 %v5864_v39 }
 0xc76   : > { %5892 = vadd.xlane.f32.xlu1 %v5891_v23 }
 0xc77   : > { %5889 = vadd.xlane.f32.xlu0 %v5888_v20 }
 0xc7a   : > { %5874 = vadd.xlane.f32.xlu1 %v5873_v22 }
 0xc7b   : > { %5871 = vadd.xlane.f32.xlu0 %v5870_v29  ;;  %v18289_v29 = vld [vmem:[#allocation33_spill] sm:$0xff] }
 0xc7e   : > { %5898 = vadd.xlane.f32.xlu1 %v5897_v32  ;;  %v18290_v32 = vld [vmem:[#allocation35_spill] sm:$0xff] }
 0xc7f   : > { %5895 = vadd.xlane.f32.xlu0 %v5894_v49 }
 0xc82   : > { %5880 = vadd.xlane.f32.xlu1 %v5879_v0 }
 0xc83   : > { %5877 = vadd.xlane.f32.xlu0 %v5876_v59 }
 0xc86   : > { %5904 = vadd.xlane.f32.xlu1 %v5903_v56 }
 0xc87   : > { %5901 = vadd.xlane.f32.xlu0 %v5900_v60 }
 0xc92   : > { %v16335_v9 = vpop.xlane.xlu1 %5814 }
 0xc93   : > { %v16337_v21 = vpop.xlane.xlu0 %5811 }
 0xc96   : > { %v16339_v54 = vpop.xlane.xlu1 %5838 }
 0xc97   : > { %v16341_v46 = vpop.xlane.xlu0 %5835 }
 0xc9a   : > { %v16343_v3 = vpop.xlane.xlu1 %5820 }
 0xc9b   : > { %v16345_v63 = vpop.xlane.xlu0 %5817 }
 0xc9e   : > { %v16347_v37 = vpop.xlane.xlu1 %5844 }
 0xc9f   : > { %v16349_v18 = vpop.xlane.xlu0 %5841 }
 0xca2   : > { %v16351_v10 = vpop.xlane.xlu1 %5850 }
 0xca3   : > { %v16353_v55 = vpop.xlane.xlu0 %5826 }
 0xca6   : > { %v16355_v27 = vpop.xlane.xlu1 %5832 }
 0xca7   : > { %v16357_v43 = vpop.xlane.xlu0 %5823 }
 0xcaa   : > { %v5943_v48 = vpop.xlane.xlu1 %5942 }
 0xcab   : > { %v16359_v57 = vpop.xlane.xlu0 %5847  ;;  %v6073_v12 = vrot.slane %v5943_v48, %v18290_v32 }
 0xcae   : > { %v5967_v33 = vpop.xlane.xlu1 %5966 }
 0xcaf   : > { %v16361_v51 = vpop.xlane.xlu0 %5856 }
 0xcb2   : > { %v16363_v58 = vpop.xlane.xlu1 %5990 }
 0xcb3   : > { %v16365_v13 = vpop.xlane.xlu0 %5829 }
 0xcb6   : > { %v16367_v2 = vpop.xlane.xlu1 %6014 }
 0xcb7   : > { %v16369_v7 = vpop.xlane.xlu0 %5853 }
 0xcba   : > { %v5949_v16 = vpop.xlane.xlu1 %5948 }
 0xcbb   : > { %v5940_v11 = vpop.xlane.xlu0 %5939 }
 0xcbc   : > { %v6069_v22 = vrot.slane %v5940_v11, %v18288_v50  ;;  %v6112_v11 = vrot.slane %v5967_v33, %v18290_v32  ;;  %v18294_v33 = vld [vmem:[#allocation29_spill] sm:$0xff] }
 0xcbe   : > { %v5973_v4 = vpop.xlane.xlu1 %5972  ;;  %v6074_v49 = vsel %vm2309_vm3, %v6073_v12, %v6069_v22 }
 0xcbf   : > { %v5964_v1 = vpop.xlane.xlu0 %5963 }
 0xcc0   : > { %v6108_v15 = vrot.slane %v5964_v1, %v18288_v50 }
 0xcc2   : > { %v6113_v48 = vsel %vm2309_vm3, %v6112_v11, %v6108_v15  ;;  %v18295_v15 = vld [vmem:[#allocation20_spill] sm:$0xff] }
 0xcc3   : > { %v16371_v28 = vpop.xlane.xlu1 %5996 }
 0xcc4   : > { %v16373_v41 = vpop.xlane.xlu0 %5987 }
 0xcc7   : > { %v16375_v6 = vpop.xlane.xlu1 %6020 }
 0xcc8   : > { %v16377_v5 = vpop.xlane.xlu0 %6011 }
 0xccc   : > { %v5970_v26 = vpop.xlane.xlu1 %5969 }
 0xccd   : > { %v5946_v30 = vpop.xlane.xlu0 %5945  ;;  %v6117_v44 = vrot.slane %v5970_v26, %v18289_v29 }
 0xcce   : > { %v6078_v36 = vrot.slane %v5946_v30, %v18289_v29  ;;  %v6083_v30 = vrot.slane %v5949_v16, %v18292_v17 }
 0xccf   : > { %v6118_v1 = vsel %vm2316_vm4, %v6117_v44, %v6113_v48 }
 0xcd0   : > { %v16379_v14 = vpop.xlane.xlu1 %5993  ;;  %v6079_v59 = vsel %vm2316_vm4, %v6078_v36, %v6074_v49  ;;  %v18293_v36 = vld [vmem:[#allocation21_spill] sm:$0xff] }
 0xcd1   : > { %v16381_v19 = vpop.xlane.xlu0 %6017  ;;  %v6084_v22 = vsel %vm2323_vm5, %v6083_v30, %v6079_v59 }
 0xcd4   : > { %v5979_v34 = vpop.xlane.xlu1 %5978 }
 0xcd5   : > { %v5955_v47 = vpop.xlane.xlu0 %5954 }
 0xcd6   : > { %v6093_v49 = vrot.slane %v5955_v47, %v18293_v36 }
 0xcd8   : > { %v16383_v42 = vpop.xlane.xlu1 %6026 }
 0xcd9   : > { %v16385_v45 = vpop.xlane.xlu0 %6002 }
 0xcdc   : > { %v5976_v39 = vpop.xlane.xlu1 %5975 }
 0xcdd   : > { %v5952_v40 = vpop.xlane.xlu0 %5951  ;;  %v6127_v12 = vrot.slane %v5976_v39, %v18291_v35 }
 0xcde   : > { %v6088_v56 = vrot.slane %v5952_v40, %v18291_v35  ;;  %v6122_v40 = vrot.slane %v5973_v4, %v18292_v17 }
 0xce0   : > { %v16387_v23 = vpop.xlane.xlu1 %5999  ;;  %v6089_v26 = vsel %vm2330_vm6, %v6088_v56, %v6084_v22  ;;  %v6123_v16 = vsel %vm2323_vm5, %v6122_v40, %v6118_v1  ;;  %v6132_v56 = vrot.slane %v5979_v34, %v18293_v36 }
 0xce1   : > { %v16389_v52 = vpop.xlane.xlu0 %6023  ;;  %v6094_v59 = vsel %vm2337_vm7, %v6093_v49, %v6089_v26  ;;  %v6128_v44 = vsel %vm2330_vm6, %v6127_v12, %v6123_v16 }
 0xce5   : > { %v5985_v20 = vpop.xlane.xlu1 %5984 }
 0xce6   : > { %v5961_v38 = vpop.xlane.xlu0 %5960  ;;  %v6142_v22 = vrot.slane %v5985_v20, %v18295_v15  ;;  %v6186_v20 = vrot.slane %v16377_v5, %v18288_v50  ;;  %v6190_v5 = vrot.slane %v16367_v2, %v18290_v32  ;;  %v6166_v2 = vrot.slane %v16387_v23, %v18291_v35 }
 0xce7   : > { %v6103_v11 = vrot.slane %v5961_v38, %v18295_v15 }
 0xcea   : > { %v16396_v0 = vpop.xlane.xlu1 %6032 }
 0xceb   : > { %v16401_v60 = vpop.xlane.xlu0 %6008 }
 0xcef   : > { %v16410_v62 = vpop.xlane.xlu1 %5862 }
 0xcf0   : > { %v5958_v31 = vpop.xlane.xlu0 %5957 }
 0xcf1   : > { %v6098_v61 = vrot.slane %v5958_v31, %v18294_v33 }
 0xcf3   : > { %v6099_v39 = vsel %vm2344_vm8, %v6098_v61, %v6094_v59  ;;  %v16424_v47 = vpop.xlane.xlu1 %5886  ;;  %v6133_v61 = vsel %vm2337_vm7, %v6132_v56, %v6128_v44  ;;  %v6156_v59 = vrot.slane %v16379_v14, %v18289_v29  ;;  %v6191_v44 = vsel %vm2309_vm3, %v6190_v5, %v6186_v20 }
 0xcf4   : > { %v16422_v30 = vsel %vm2351_vm9, %v6103_v11, %v6099_v39  ;;  %v5982_v4 = vpop.xlane.xlu0 %5981 }
 0xcf5   : > { %v6137_v31 = vrot.slane %v5982_v4, %v18294_v33  ;;  %v6251_v48 = vmul.f32 %v16422_v30, %v16335_v9  ;;  %v6250_v38 = vmul.f32 %v16422_v30, %v16337_v21  ;;  %v6147_v21 = vrot.slane %v16373_v41, %v18288_v50 }
 0xcf6   : > { %v6253_v11 = vmul.f32 %v16422_v30, %v16343_v3  ;;  %v6151_v41 = vrot.slane %v16363_v58, %v18290_v32  ;;  %v6195_v50 = vrot.slane %v16381_v19, %v18289_v29  ;;  %v6205_v32 = vrot.slane %v16389_v52, %v18291_v35 }
 0xcf7   : > { %v6138_v34 = vsel %vm2344_vm8, %v6137_v31, %v6133_v61  ;;  %v6283_v1 = vmax.f32 %v6251_v48, 1e-12  ;;  %v6282_v26 = vmax.f32 %v6250_v38, 1e-12  ;;  %v16445_v49 = vpop.xlane.xlu1 %5868  ;;  %v6200_v31 = vrot.slane %v16375_v6, %v18292_v17 }
 0xcf8   : > { %v16435_v12 = vsel %vm2351_vm9, %v6142_v22, %v6138_v34  ;;  %v6152_v14 = vsel %vm2309_vm3, %v6151_v41, %v6147_v21  ;;  %v16463_v39 = vpop.xlane.xlu0 %5859  ;;  %v6196_v29 = vsel %vm2316_vm4, %v6195_v50, %v6191_v44  ;;  %v6254_v23 = vmul.f32 %v16422_v30, %v16357_v43  ;;  %v10177_v50 = vld [vmem:[%s17981_s11 + $0x308] sm:$0xff] }
 0xcf9   : > { %v6259_v40 = vmul.f32 %v16435_v12, %v16339_v54  ;;  %v6258_v9 = vmul.f32 %v16435_v12, %v16341_v46  ;;  %12931 = vrsqrt.f32 %v6283_v1  ;;  %v6252_v46 = vmul.f32 %v16422_v30, %v16345_v63 }
 0xcfa   : > { %12933 = vrsqrt.f32 %v6282_v26  ;;  %v6261_v3 = vmul.f32 %v16435_v12, %v16347_v37  ;;  %v6285_v63 = vmax.f32 %v6253_v11, 1e-12  ;;  %v6260_v58 = vmul.f32 %v16435_v12, %v16349_v18 }
 0xcfb   : > { %v6291_v16 = vmax.f32 %v6259_v40, 1e-12  ;;  %v6290_v54 = vmax.f32 %v6258_v9, 1e-12  ;;  %v6157_v56 = vsel %vm2316_vm4, %v6156_v59, %v6152_v14  ;;  %v6284_v19 = vmax.f32 %v6252_v46, 1e-12  ;;  %v16475_v4 = vpop.xlane.xlu1 %6005 }
 0xcfc   : > { %v6161_v37 = vrot.slane %v16371_v28, %v18292_v17  ;;  %v6255_v18 = vmul.f32 %v16422_v30, %v16353_v55  ;;  %v6293_v48 = vmax.f32 %v6261_v3, 1e-12  ;;  %v6292_v28 = vmax.f32 %v6260_v58, 1e-12  ;;  %v16493_v61 = vpop.xlane.xlu0 %5883  ;;  %v10145_v40 = vld [vmem:[%s17981_s11 + $0x108] sm:$0xff]  ;;  %v10144_v59 = vld [vmem:[%s17981_s11 + $0x100] sm:$0xff] }
 0xcfd   : > { %12935 = vrsqrt.f32 %v6291_v16  ;;  %v6263_v22 = vmul.f32 %v16435_v12, %v16351_v10  ;;  %v6201_v35 = vsel %vm2323_vm5, %v6200_v31, %v6196_v29  ;;  %v6262_v55 = vmul.f32 %v16435_v12, %v16359_v57  ;;  %v10153_v46 = vld [vmem:[%s17981_s11 + $0x148] sm:$0xff] }
 0xcfe   : > { %12937 = vrsqrt.f32 %v6290_v54  ;;  %v6162_v38 = vsel %vm2323_vm5, %v6161_v37, %v6157_v56  ;;  %v6171_v6 = vrot.slane %v16385_v45, %v18293_v36  ;;  %v6206_v43 = vsel %vm2330_vm6, %v6205_v32, %v6201_v35 }
 0xcff   : > { %12939 = vrsqrt.f32 %v6285_v63  ;;  %v6167_v52 = vsel %vm2330_vm6, %v6166_v2, %v6162_v38  ;;  %v6287_v34 = vmax.f32 %v6255_v18, 1e-12  ;;  %v6210_v10 = vrot.slane %v16383_v42, %v18293_v36  ;;  %v6030_v20 = vpop.xlane.xlu1 %6029  ;;  %v10176_v63 = vld [vmem:[%s17981_s11 + $0x300] sm:$0xff] }
 0xd00   : > { %12941 = vrsqrt.f32 %v6284_v19  ;;  %v6286_v57 = vmax.f32 %v6254_v23, 1e-12  ;;  %v6172_v45 = vsel %vm2337_vm7, %v6171_v6, %v6167_v52  ;;  %v6295_v42 = vmax.f32 %v6263_v22, 1e-12 }
 0xd01   : > { %12943 = vrsqrt.f32 %v6293_v48  ;;  %v6211_v36 = vsel %vm2337_vm7, %v6210_v10, %v6206_v43  ;;  %v6294_v3 = vmax.f32 %v6262_v55, 1e-12  ;;  %v6176_v14 = vrot.slane %v16475_v4, %v18294_v33  ;;  %v16525_v48 = vpop.xlane.xlu0 %5865 }
 0xd02   : > { %12945 = vrsqrt.f32 %v6292_v28  ;;  %v6257_v58 = vmul.f32 %v16422_v30, %v16355_v27  ;;  %v6215_v2 = vrot.slane %v6030_v20, %v18294_v33  ;;  %v6256_v37 = vmul.f32 %v16422_v30, %v16365_v13  ;;  %v10152_v27 = vld [vmem:[%s17981_s11 + $0x140] sm:$0xff]  ;;  %v10185_v30 = vld [vmem:[%s17981_s11 + $0x348] sm:$0xff] }
 0xd03   : > { %v12932_v17 = vpop.eup %12931  ;;  %12947 = vrsqrt.f32 %v6287_v34  ;;  %v6220_v31 = vrot.slane %v16396_v0, %v18295_v15  ;;  %v6265_v13 = vmul.f32 %v16435_v12, %v16361_v51  ;;  %v6177_v0 = vsel %vm2344_vm8, %v6176_v14, %v6172_v45  ;;  %v16545_v43 = vpop.xlane.xlu1 %5892  ;;  %v10184_v20 = vld [vmem:[%s17981_s11 + $0x340] sm:$0xff] }
 0xd04   : > { %v12934_v1 = vpop.eup %12933  ;;  %12949 = vrsqrt.f32 %v6286_v57  ;;  %v6289_v35 = vmax.f32 %v6257_v58, 1e-12  ;;  %v6264_v55 = vmul.f32 %v16435_v12, %v16369_v7  ;;  %v6181_v51 = vrot.slane %v16401_v60, %v18295_v15  ;;  %v10146_v57 = vld [vmem:[%s17981_s11 + $0x110] sm:$0xff] }
 0xd05   : > { %12951 = vrsqrt.f32 %v6295_v42  ;;  %v6216_v6 = vsel %vm2344_vm8, %v6215_v2, %v6211_v36  ;;  %v6297_v45 = vmax.f32 %v6265_v13, 1e-12  ;;  %v16571_v14 = vpop.xlane.xlu0 %5889  ;;  %v10149_v13 = vld [vmem:[%s17981_s11 + $0x128] sm:$0xff] }
 0xd06   : > { %v11537_v26 = vpop.f32.mrb[80].mxu0  ;;  %v11565_v9 = vpop.f32.mrb[72].mxu1  ;;  %12953 = vrsqrt.f32 %v6294_v3  ;;  %v16555_v15 = vsel %vm2351_vm9, %v6181_v51, %v6177_v0 }
 0xd07   : > { %v12936_v21 = vpop.eup %12935  ;;  %v6347_v16 = vmul.f32 %v12932_v17, %v11537_v26  ;;  %v5280_v11 = vpop.f32.mrb[81].mxu0  ;;  %v10147_v26 = vld [vmem:[%s17981_s11 + $0x118] sm:$0xff]  ;;  %12955 = vrsqrt.f32 %v6289_v35 }
 0xd08   : > { %v6355_v54 = vmul.f32 %v12936_v21, %v11565_v9  ;;  %v6346_v41 = vmul.f32 %v12934_v1, %v5280_v11  ;;  %v5433_v5 = vpop.f32.mrb[73].mxu1  ;;  %v12938_v56 = vpop.eup %12937  ;;  %v6288_v1 = vmax.f32 %v6256_v37, 1e-12  ;;  %v16564_v11 = vsel %vm2351_vm9, %v6220_v31, %v6216_v6 }
 0xd09   : > { %v6412_v44 = vmul.f32 %v10145_v40, %v6347_v16  ;;  %v6354_v32 = vmul.f32 %v12938_v56, %v5433_v5  ;;  %v12940_v38 = vpop.eup %12939  ;;  %v10179_v56 = vld [vmem:[%s17981_s11 + $0x318] sm:$0xff]  ;;  %v6275_v31 = vmul.f32 %v16564_v11, %v16424_v47 }
 0xd0a   : > { %v6411_v19 = vmul.f32 %v10144_v59, %v6346_v41  ;;  %v6420_v29 = vmul.f32 %v10153_v46, %v6355_v54  ;;  %v12942_v17 = vpop.eup %12941  ;;  %v6296_v54 = vmax.f32 %v6264_v55, 1e-12  ;;  %v10155_v41 = vld [vmem:[%s17981_s11 + $0x158] sm:$0xff]  ;;  %12957 = vrsqrt.f32 %v6288_v1  ;;  %v10186_v1 = vld [vmem:[%s17981_s11 + $0x350] sm:$0xff] }
 0xd0b   : > { %v11540_v4 = vpop.f32.mrb[82].mxu0  ;;  %v16521_v18 = vadd.f32 %v10177_v50, %v6412_v44  ;;  %v11568_v33 = vpop.f32.mrb[74].mxu1  ;;  %v6419_v10 = vmul.f32 %v10152_v27, %v6354_v32  ;;  %v10178_v32 = vld [vmem:[%s17981_s11 + $0x310] sm:$0xff]  ;;  %12959 = vrsqrt.f32 %v6297_v45  ;;  %v10187_v55 = vld [vmem:[%s17981_s11 + $0x358] sm:$0xff]  ;;  %v10181_v45 = vld [vmem:[%s17981_s11 + $0x328] sm:$0xff] }
 0xd0c   : > { %v16530_v23 = vadd.f32 %v10176_v63, %v6411_v19  ;;  %v5290_v28 = vpop.f32.mrb[83].mxu0  ;;  %v5443_v22 = vpop.f32.mrb[75].mxu1  ;;  %v6349_v34 = vmul.f32 %v12940_v38, %v11540_v4  ;;  %v16552_v12 = vadd.f32 %v10185_v30, %v6420_v29  ;;  %v10154_v63 = vld [vmem:[%s17981_s11 + $0x150] sm:$0xff]  ;;  %v6267_v4 = vmul.f32 %v16555_v15, %v16410_v62  ;;  %v10148_v62 = vld [vmem:[%s17981_s11 + $0x120] sm:$0xff] }
 0xd0d   : > { %v6511_v52 = vsel %vm726_vm0, %v16521_v18, -inf  ;;  %v6348_v40 = vmul.f32 %v12942_v17, %v5290_v28  ;;  %v12944_v60 = vpop.eup %12943  ;;  %v16576_v58 = vadd.f32 %v10184_v20, %v6419_v10  ;;  %v16581_v19 = vpop.xlane.xlu1 %5874  ;;  %12961 = vrsqrt.f32 %v6296_v54 }
 0xd0e   : > { %6512 = vmax.xlane.f32.xlu1 %v6511_v52  ;;  %v6508_v7 = vsel %vm726_vm0, %v16530_v23, -inf  ;;  %v12946_v16 = vpop.eup %12945  ;;  %v6357_v59 = vmul.f32 %v12944_v60, %v11568_v33  ;;  %v6414_v46 = vmul.f32 %v10147_v26, %v6349_v34  ;;  %v6535_v50 = vsel %vm726_vm0, %v16552_v12, -inf  ;;  %v5872_v60 = vpop.xlane.xlu0 %5871 }
 0xd0f   : > { %v11543_v9 = vpop.f32.mrb[84].mxu0  ;;  %v11571_v21 = vpop.f32.mrb[76].mxu1  ;;  %6509 = vmax.xlane.f32.xlu0 %v6508_v7  ;;  %v6356_v5 = vmul.f32 %v12946_v16, %v5443_v22  ;;  %v6413_v44 = vmul.f32 %v10146_v57, %v6348_v40  ;;  %v6532_v28 = vsel %vm726_vm0, %v16576_v58, -inf  ;;  %v6266_v17 = vmul.f32 %v16555_v15, %v16463_v39  ;;  %v10157_v40 = vld [vmem:[%s17981_s11 + $0x168] sm:$0xff]  ;;  %v10156_v39 = vld [vmem:[%s17981_s11 + $0x160] sm:$0xff] }
 0xd10   : > { %v5300_v42 = vpop.f32.mrb[85].mxu0  ;;  %v5453_v36 = vpop.f32.mrb[77].mxu1  ;;  %v6422_v33 = vmul.f32 %v10155_v41, %v6357_v59  ;;  %v16602_v35 = vadd.f32 %v10179_v56, %v6414_v46  ;;  %v6274_v10 = vmul.f32 %v16564_v11, %v16493_v61  ;;  %v6299_v7 = vmax.f32 %v6267_v4, 1e-12 }
 0xd11   : > { %v12948_v3 = vpop.eup %12947  ;;  %v6421_v52 = vmul.f32 %v10154_v63, %v6356_v5  ;;  %v16609_v34 = vadd.f32 %v10178_v32, %v6413_v44  ;;  %v6307_v20 = vmax.f32 %v6275_v31, 1e-12  ;;  %v6268_v16 = vmul.f32 %v16555_v15, %v16525_v48  ;;  %v5899_v5 = vpop.xlane.xlu1 %5898 }
 0xd12   : > { %6536 = vmax.xlane.f32.xlu1 %v6535_v50  ;;  %v12950_v2 = vpop.eup %12949  ;;  %v6351_v37 = vmul.f32 %v12948_v3, %v11543_v9  ;;  %v6517_v9 = vsel %vm726_vm0, %v16602_v35, -inf  ;;  %v16626_v61 = vadd.f32 %v10187_v55, %v6422_v33  ;;  %v6269_v54 = vmul.f32 %v16555_v15, %v16445_v49  ;;  %v10151_v49 = vld [vmem:[%s17981_s11 + $0x138] sm:$0xff]  ;;  %v10188_v33 = vld [vmem:[%s17981_s11 + $0x360] sm:$0xff] }
 0xd13   : > { %v12952_v27 = vpop.eup %12951  ;;  %v6350_v30 = vmul.f32 %v12950_v2, %v5300_v42  ;;  %6533 = vmax.xlane.f32.xlu0 %v6532_v28  ;;  %v16633_v59 = vadd.f32 %v10186_v1, %v6421_v52  ;;  %v10180_v42 = vld [vmem:[%s17981_s11 + $0x320] sm:$0xff]  ;;  %v6277_v41 = vmul.f32 %v16564_v11, %v16545_v43  ;;  %v6306_v44 = vmax.f32 %v6274_v10, 1e-12  ;;  %v5896_v28 = vpop.xlane.xlu0 %5895 }
 0xd14   : > { %v11546_v29 = vpop.f32.mrb[86].mxu0  ;;  %v16593_v38 = vpop.f32.mrb[78].mxu1  ;;  %v6359_v51 = vmul.f32 %v12952_v27, %v11571_v21  ;;  %v6416_v26 = vmul.f32 %v10149_v13, %v6351_v37  ;;  %v6514_v21 = vsel %vm726_vm0, %v16609_v34, -inf  ;;  %v6541_v56 = vsel %vm726_vm0, %v16626_v61, -inf  ;;  %v10150_v27 = vld [vmem:[%s17981_s11 + $0x130] sm:$0xff] }
 0xd15   : > { %v5310_v0 = vpop.f32.mrb[87].mxu0  ;;  %v12954_v22 = vpop.eup %12953  ;;  %v6415_v57 = vmul.f32 %v10148_v62, %v6350_v30  ;;  %12963 = vrsqrt.f32 %v6299_v7  ;;  %v6538_v43 = vsel %vm726_vm0, %v16633_v59, -inf  ;;  %v6300_v4 = vmax.f32 %v6268_v16, 1e-12 }
 0xd16   : > { %v16600_v47 = vpop.f32.mrb[79].mxu1  ;;  %v6358_v6 = vmul.f32 %v12954_v22, %v5453_v36  ;;  %6518 = vmax.xlane.f32.xlu1 %v6517_v9  ;;  %v6298_v36 = vmax.f32 %v6266_v17, 1e-12  ;;  %v12956_v46 = vpop.eup %12955  ;;  %v6424_v50 = vmul.f32 %v10157_v40, %v6359_v51  ;;  %v16644_v2 = vadd.f32 %v10181_v45, %v6416_v26  ;;  %v10158_v9 = vld [vmem:[%s17981_s11 + $0x170] sm:$0xff] }
 0xd17   : > { %6515 = vmax.xlane.f32.xlu0 %v6514_v21  ;;  %v12958_v48 = vpop.eup %12957  ;;  %v6353_v63 = vmul.f32 %v12956_v46, %v11546_v29  ;;  %v16651_v32 = vadd.f32 %v10180_v42, %v6415_v57  ;;  %v10189_v29 = vld [vmem:[%s17981_s11 + $0x368] sm:$0xff]  ;;  %12965 = vrsqrt.f32 %v6307_v20  ;;  %v6276_v31 = vmul.f32 %v16564_v11, %v16571_v14  ;;  %v5881_v51 = vpop.xlane.xlu1 %5880  ;;  %v10191_v46 = vld [vmem:[%s17981_s11 + $0x378] sm:$0xff] }
 0xd18   : > { %v6423_v3 = vmul.f32 %v10156_v39, %v6358_v6  ;;  %v6352_v37 = vmul.f32 %v12958_v48, %v5310_v0  ;;  %12967 = vrsqrt.f32 %v6298_v36  ;;  %v12960_v13 = vpop.eup %12959  ;;  %v6309_v30 = vmax.f32 %v6277_v41, 1e-12  ;;  %v10159_v6 = vld [vmem:[%s17981_s11 + $0x178] sm:$0xff]  ;;  %v5878_v16 = vpop.xlane.xlu0 %5877 }
 0xd19   : > { %v6271_v0 = vmul.f32 %v16555_v15, %v16581_v19  ;;  %12969 = vrsqrt.f32 %v6306_v44  ;;  %v6301_v22 = vmax.f32 %v6269_v54, 1e-12  ;;  %v12962_v52 = vpop.eup %12961  ;;  %v6418_v14 = vmul.f32 %v10151_v49, %v6353_v63 }
 0xd1a   : > { %6542 = vmax.xlane.f32.xlu1 %v6541_v56  ;;  %v6361_v62 = vmul.f32 %v12960_v13, %v16593_v38  ;;  %v6523_v55 = vsel %vm726_vm0, %v16644_v2, -inf  ;;  %v16669_v17 = vadd.f32 %v10189_v29, %v6424_v50  ;;  %v6417_v1 = vmul.f32 %v10150_v27, %v6352_v37  ;;  %v10183_v38 = vld [vmem:[%s17981_s11 + $0x338] sm:$0xff]  ;;  %v10190_v50 = vld [vmem:[%s17981_s11 + $0x370] sm:$0xff] }
 0xd1b   : > { %6539 = vmax.xlane.f32.xlu0 %v6538_v43  ;;  %v6360_v19 = vmul.f32 %v12962_v52, %v16600_v47  ;;  %v6520_v10 = vsel %vm726_vm0, %v16651_v32, -inf  ;;  %v16677_v26 = vadd.f32 %v10188_v33, %v6423_v3  ;;  %12971 = vrsqrt.f32 %v6300_v4  ;;  %v10182_v47 = vld [vmem:[%s17981_s11 + $0x330] sm:$0xff]  ;;  %v5905_v48 = vpop.xlane.xlu1 %5904  ;;  %v10161_v43 = vld [vmem:[%s17981_s11 + $0x188] sm:$0xff] }
 0xd1c   : > { %v6308_v40 = vmax.f32 %v6276_v31, 1e-12  ;;  %v6270_v39 = vmul.f32 %v16555_v15, %v5872_v60  ;;  %v6303_v7 = vmax.f32 %v6271_v0, 1e-12  ;;  %v6279_v57 = vmul.f32 %v16564_v11, %v5899_v5 }
 0xd1d   : > { %12973 = vrsqrt.f32 %v6301_v22  ;;  %v6278_v21 = vmul.f32 %v16564_v11, %v5896_v28  ;;  %v6426_v45 = vmul.f32 %v10159_v6, %v6361_v62  ;;  %v6547_v20 = vsel %vm726_vm0, %v16669_v17, -inf  ;;  %v10160_v28 = vld [vmem:[%s17981_s11 + $0x180] sm:$0xff] }
 0xd1e   : > { %6524 = vmax.xlane.f32.xlu1 %v6523_v55  ;;  %v16693_v60 = vadd.f32 %v10183_v38, %v6418_v14  ;;  %12975 = vrsqrt.f32 %v6309_v30  ;;  %v6425_v42 = vmul.f32 %v10158_v9, %v6360_v19  ;;  %v6544_v36 = vsel %vm726_vm0, %v16677_v26, -inf  ;;  %v10169_v30 = vld [vmem:[%s17981_s11 + $0x1c8] sm:$0xff]  ;;  %v10168_v6 = vld [vmem:[%s17981_s11 + $0x1c0] sm:$0xff] }
 0xd1f   : > { %6521 = vmax.xlane.f32.xlu0 %v6520_v10  ;;  %v16697_v54 = vadd.f32 %v10182_v47, %v6417_v1  ;;  %v12964_v41 = vpop.eup %12963  ;;  %12977 = vrsqrt.f32 %v6308_v40  ;;  %v6302_v5 = vmax.f32 %v6270_v39, 1e-12  ;;  %v6311_v44 = vmax.f32 %v6279_v57, 1e-12  ;;  %v10193_v1 = vld [vmem:[%s17981_s11 + $0x388] sm:$0xff]  ;;  %v5902_v10 = vpop.xlane.xlu0 %5901  ;;  %v10163_v47 = vld [vmem:[%s17981_s11 + $0x198] sm:$0xff] }
 0xd20   : > { %12979 = vrsqrt.f32 %v6303_v7  ;;  %v6310_v56 = vmax.f32 %v6278_v21, 1e-12  ;;  %v6273_v49 = vmul.f32 %v16555_v15, %v5881_v51  ;;  %v6529_v4 = vsel %vm726_vm0, %v16693_v60, -inf }
 0xd21   : > { %v12966_v3 = vpop.eup %12965  ;;  %v16711_v31 = vadd.f32 %v10191_v46, %v6426_v45  ;;  %v6526_v52 = vsel %vm726_vm0, %v16697_v54, -inf  ;;  %v16721_v14 = vadd.f32 %v10190_v50, %v6425_v42  ;;  %12981 = vrsqrt.f32 %v6302_v5  ;;  %v10201_v46 = vld [vmem:[%s17981_s11 + $0x3c8] sm:$0xff] }
 0xd22   : > { %6548 = vmax.xlane.f32.xlu1 %v6547_v20  ;;  %v12968_v63 = vpop.eup %12967  ;;  %v6272_v62 = vmul.f32 %v16555_v15, %v5878_v16  ;;  %12983 = vrsqrt.f32 %v6311_v44  ;;  %v6281_v19 = vmul.f32 %v16564_v11, %v5905_v48  ;;  %v10192_v15 = vld [vmem:[%s17981_s11 + $0x380] sm:$0xff]  ;;  %v6305_v21 = vmax.f32 %v6273_v49, 1e-12  ;;  %v10162_v44 = vld [vmem:[%s17981_s11 + $0x190] sm:$0xff] }
 0xd23   : > { %6545 = vmax.xlane.f32.xlu0 %v6544_v36  ;;  %v12970_v27 = vpop.eup %12969  ;;  %12985 = vrsqrt.f32 %v6310_v56  ;;  %v6553_v7 = vsel %vm726_vm0, %v16711_v31, -inf  ;;  %v6550_v42 = vsel %vm726_vm0, %v16721_v14, -inf  ;;  %v6280_v5 = vmul.f32 %v16564_v11, %v5902_v10  ;;  %v10200_v56 = vld [vmem:[%s17981_s11 + $0x3c0] sm:$0xff] }
 0xd24   : > { %12987 = vrsqrt.f32 %v6305_v21  ;;  %v10165_v21 = vld [vmem:[%s17981_s11 + $0x1a8] sm:$0xff] }
 0xd25   : > { %v12972_v40 = vpop.eup %12971 }
 0xd26   : > { %6530 = vmax.xlane.f32.xlu1 %v6529_v4 }
 0xd27   : > { %6527 = vmax.xlane.f32.xlu0 %v6526_v52  ;;  %v12974_v57 = vpop.eup %12973 }
 0xd28   : > { %v11593_v37 = vpop.f32.mrb[88].mxu0  ;;  %v11621_v29 = vpop.f32.mrb[80].mxu1 }
 0xd29   : > { %v6363_v33 = vmul.f32 %v12964_v41, %v11593_v37  ;;  %v6371_v13 = vmul.f32 %v12966_v3, %v11621_v29  ;;  %v5586_v0 = vpop.f32.mrb[89].mxu0  ;;  %v5739_v22 = vpop.f32.mrb[81].mxu1  ;;  %v6304_v41 = vmax.f32 %v6272_v62, 1e-12  ;;  %v6313_v37 = vmax.f32 %v6281_v19, 1e-12 }
 0xd2a   : > { %v6362_v55 = vmul.f32 %v12968_v63, %v5586_v0  ;;  %v6370_v51 = vmul.f32 %v12970_v27, %v5739_v22  ;;  %6554 = vmax.xlane.f32.xlu1 %v6553_v7  ;;  %v12976_v49 = vpop.eup %12975  ;;  %v10171_v0 = vld [vmem:[%s17981_s11 + $0x1d8] sm:$0xff]  ;;  %v10194_v19 = vld [vmem:[%s17981_s11 + $0x390] sm:$0xff] }
 0xd2b   : > { %v6428_v38 = vmul.f32 %v10161_v43, %v6363_v33  ;;  %v6436_v39 = vmul.f32 %v10169_v30, %v6371_v13  ;;  %6551 = vmax.xlane.f32.xlu0 %v6550_v42  ;;  %v12978_v29 = vpop.eup %12977  ;;  %v10195_v62 = vld [vmem:[%s17981_s11 + $0x398] sm:$0xff]  ;;  %12989 = vrsqrt.f32 %v6304_v41  ;;  %v10164_v41 = vld [vmem:[%s17981_s11 + $0x1a0] sm:$0xff] }
 0xd2c   : > { %v6427_v9 = vmul.f32 %v10160_v28, %v6362_v55  ;;  %v6435_v45 = vmul.f32 %v10168_v6, %v6370_v51  ;;  %v12980_v30 = vpop.eup %12979  ;;  %v6312_v55 = vmax.f32 %v6280_v5, 1e-12  ;;  %v10170_v51 = vld [vmem:[%s17981_s11 + $0x1d0] sm:$0xff]  ;;  %12991 = vrsqrt.f32 %v6313_v37  ;;  %v10203_v42 = vld [vmem:[%s17981_s11 + $0x3d8] sm:$0xff] }
 0xd2d   : > { %v11596_v20 = vpop.f32.mrb[90].mxu0  ;;  %v11624_v16 = vpop.f32.mrb[82].mxu1  ;;  %v16741_v36 = vadd.f32 %v10193_v1, %v6428_v38  ;;  %v16759_v13 = vadd.f32 %v10201_v46, %v6436_v39  ;;  %v10202_v5 = vld [vmem:[%s17981_s11 + $0x3d0] sm:$0xff] }
 0xd2e   : > { %v6365_v50 = vmul.f32 %v12974_v57, %v11596_v20  ;;  %v5596_v3 = vpop.f32.mrb[91].mxu0  ;;  %v5749_v48 = vpop.f32.mrb[83].mxu1  ;;  %v16750_v63 = vadd.f32 %v10192_v15, %v6427_v9  ;;  %v6373_v27 = vmul.f32 %v12976_v49, %v11624_v16  ;;  %v16764_v52 = vadd.f32 %v10200_v56, %v6435_v45 }
 0xd2f   : > { %v6364_v43 = vmul.f32 %v12972_v40, %v5596_v3  ;;  %v6559_v11 = vsel %vm726_vm0, %v16741_v36, -inf  ;;  %v6372_v22 = vmul.f32 %v12978_v29, %v5749_v48  ;;  %v12982_v15 = vpop.eup %12981  ;;  %v6583_v9 = vsel %vm726_vm0, %v16759_v13, -inf }
 0xd30   : > { %v6430_v4 = vmul.f32 %v10163_v47, %v6365_v50  ;;  %v6556_v33 = vsel %vm726_vm0, %v16750_v63, -inf  ;;  %6560 = vmax.xlane.f32.xlu1 %v6559_v11  ;;  %v6438_v40 = vmul.f32 %v10171_v0, %v6373_v27  ;;  %v12984_v7 = vpop.eup %12983  ;;  %v6580_v20 = vsel %vm726_vm0, %v16764_v52, -inf  ;;  %v10173_v11 = vld [vmem:[%s17981_s11 + $0x1e8] sm:$0xff]  ;;  %v10172_v0 = vld [vmem:[%s17981_s11 + $0x1e0] sm:$0xff] }
 0xd31   : > { %v6429_v28 = vmul.f32 %v10162_v44, %v6364_v43  ;;  %6557 = vmax.xlane.f32.xlu0 %v6556_v33  ;;  %v6437_v57 = vmul.f32 %v10170_v51, %v6372_v22  ;;  %v12986_v46 = vpop.eup %12985  ;;  %12993 = vrsqrt.f32 %v6312_v55 }
 0xd32   : > { %v11599_v6 = vpop.f32.mrb[92].mxu0  ;;  %v11627_v1 = vpop.f32.mrb[84].mxu1  ;;  %v16777_v47 = vadd.f32 %v10195_v62, %v6430_v4  ;;  %v16797_v43 = vadd.f32 %v10203_v42, %v6438_v40 }
 0xd33   : > { %v5606_v10 = vpop.f32.mrb[93].mxu0  ;;  %v5759_v38 = vpop.f32.mrb[85].mxu1  ;;  %v6367_v39 = vmul.f32 %v12980_v30, %v11599_v6  ;;  %v16784_v16 = vadd.f32 %v10194_v19, %v6429_v28  ;;  %v6375_v48 = vmul.f32 %v12984_v7, %v11627_v1  ;;  %v16804_v33 = vadd.f32 %v10202_v5, %v6437_v57  ;;  %v10197_v30 = vld [vmem:[%s17981_s11 + $0x3a8] sm:$0xff]  ;;  %v10196_v28 = vld [vmem:[%s17981_s11 + $0x3a0] sm:$0xff]  ;;  %v10166_v7 = vld [vmem:[%s17981_s11 + $0x1b0] sm:$0xff] }
 0xd34   : > { %v6366_v45 = vmul.f32 %v12982_v15, %v5606_v10  ;;  %6584 = vmax.xlane.f32.xlu1 %v6583_v9  ;;  %v6565_v37 = vsel %vm726_vm0, %v16777_v47, -inf  ;;  %v6374_v4 = vmul.f32 %v12986_v46, %v5759_v38  ;;  %v12988_v22 = vpop.eup %12987  ;;  %v6589_v6 = vsel %vm726_vm0, %v16797_v43, -inf  ;;  %v10167_v38 = vld [vmem:[%s17981_s11 + $0x1b8] sm:$0xff]  ;;  %v10205_v9 = vld [vmem:[%s17981_s11 + $0x3e8] sm:$0xff]  ;;  %v10204_v57 = vld [vmem:[%s17981_s11 + $0x3e0] sm:$0xff] }
 0xd35   : > { %6581 = vmax.xlane.f32.xlu0 %v6580_v20  ;;  %v6432_v44 = vmul.f32 %v10165_v21, %v6367_v39  ;;  %v6562_v27 = vsel %vm726_vm0, %v16784_v16, -inf  ;;  %v12990_v62 = vpop.eup %12989  ;;  %v6440_v55 = vmul.f32 %v10173_v11, %v6375_v48  ;;  %v6586_v40 = vsel %vm726_vm0, %v16804_v33, -inf }
 0xd36   : > { %v6431_v29 = vmul.f32 %v10164_v41, %v6366_v45  ;;  %v12992_v19 = vpop.eup %12991  ;;  %v6439_v10 = vmul.f32 %v10172_v0, %v6374_v4  ;;  %v10175_v41 = vld [vmem:[%s17981_s11 + $0x1f8] sm:$0xff] }
 0xd37   : > { %v11602_v50 = vpop.f32.mrb[94].mxu0  ;;  %v11630_v3 = vpop.f32.mrb[86].mxu1  ;;  %v16817_v1 = vadd.f32 %v10197_v30, %v6432_v44  ;;  %v16837_v46 = vadd.f32 %v10205_v9, %v6440_v55  ;;  %v10207_v0 = vld [vmem:[%s17981_s11 + $0x3f8] sm:$0xff] }
 0xd38   : > { %v5616_v56 = vpop.f32.mrb[95].mxu0  ;;  %v5769_v49 = vpop.f32.mrb[87].mxu1  ;;  %6566 = vmax.xlane.f32.xlu1 %v6565_v37  ;;  %v6369_v51 = vmul.f32 %v12988_v22, %v11602_v50  ;;  %v16824_v39 = vadd.f32 %v10196_v28, %v6431_v29  ;;  %v6377_v20 = vmul.f32 %v12992_v19, %v11630_v3  ;;  %v16844_v48 = vadd.f32 %v10204_v57, %v6439_v10  ;;  %v10199_v3 = vld [vmem:[%s17981_s11 + $0x3b8] sm:$0xff]  ;;  %v10198_v37 = vld [vmem:[%s17981_s11 + $0x3b0] sm:$0xff] }
 0xd39   : > { %6563 = vmax.xlane.f32.xlu0 %v6562_v27  ;;  %v6368_v15 = vmul.f32 %v12990_v62, %v5616_v56  ;;  %v6571_v42 = vsel %vm726_vm0, %v16817_v1, -inf  ;;  %v10174_v56 = vld [vmem:[%s17981_s11 + $0x1f0] sm:$0xff]  ;;  %v6595_v11 = vsel %vm726_vm0, %v16837_v46, -inf }
 0xd3a   : > { %v6434_v45 = vmul.f32 %v10167_v38, %v6369_v51  ;;  %v6568_v44 = vsel %vm726_vm0, %v16824_v39, -inf  ;;  %v6592_v27 = vsel %vm726_vm0, %v16844_v48, -inf  ;;  %v10206_v28 = vld [vmem:[%s17981_s11 + $0x3f0] sm:$0xff] }
 0xd3b   : > { %v12994_v21 = vpop.eup %12993  ;;  %v6433_v5 = vmul.f32 %v10166_v7, %v6368_v15 }
 0xd3c   : > { %6590 = vmax.xlane.f32.xlu1 %v6589_v6  ;;  %v6376_v50 = vmul.f32 %v12994_v21, %v5769_v49  ;;  %v6442_v49 = vmul.f32 %v10175_v41, %v6377_v20  ;;  %v16857_v29 = vadd.f32 %v10199_v3, %v6434_v45 }
 0xd3d   : > { %6587 = vmax.xlane.f32.xlu0 %v6586_v40  ;;  %v16861_v30 = vadd.f32 %v10198_v37, %v6433_v5 }
 0xd3e   : > { %v6441_v4 = vmul.f32 %v10174_v56, %v6376_v50  ;;  %v6577_v22 = vsel %vm726_vm0, %v16857_v29, -inf  ;;  %v16871_v62 = vadd.f32 %v10207_v0, %v6442_v49 }
 0xd3f   : > { %v6574_v55 = vsel %vm726_vm0, %v16861_v30, -inf }
 0xd40   : > { %6572 = vmax.xlane.f32.xlu1 %v6571_v42  ;;  %v16875_v51 = vadd.f32 %v10206_v28, %v6441_v4  ;;  %v6601_v6 = vsel %vm726_vm0, %v16871_v62, -inf }
 0xd41   : > { %6569 = vmax.xlane.f32.xlu0 %v6568_v44 }
 0xd42   : > { %v6598_v19 = vsel %vm726_vm0, %v16875_v51, -inf }
 0xd44   : > { %6596 = vmax.xlane.f32.xlu1 %v6595_v11 }
 0xd45   : > { %6593 = vmax.xlane.f32.xlu0 %v6592_v27 }
 0xd48   : > { %6578 = vmax.xlane.f32.xlu1 %v6577_v22 }
 0xd49   : > { %6575 = vmax.xlane.f32.xlu0 %v6574_v55 }
 0xd4c   : > { %6602 = vmax.xlane.f32.xlu1 %v6601_v6 }
 0xd4d   : > { %6599 = vmax.xlane.f32.xlu0 %v6598_v19 }
 0xd9b   : > { %v6513_v10 = vpop.xlane.xlu1 %6512 }
 0xd9c   : > { %v6605_v38 = vsub.f32 %v16521_v18, %v6513_v10  ;;  %v6510_v15 = vpop.xlane.xlu0 %6509 }
 0xd9d   : > { %v6604_v9 = vsub.f32 %v16530_v23, %v6510_v15 }
 0xd9e   : > { %v6638_v40 = vmul.f32 1.442695, %v6605_v38 }
 0xd9f   : > { %v6636_v7 = vmul.f32 1.442695, %v6604_v9  ;;  %v6537_v57 = vpop.xlane.xlu1 %6536 }
 0xda0   : > { %12995 = vpow2.f32 %v6638_v40  ;;  %v6613_v21 = vsub.f32 %v16552_v12, %v6537_v57  ;;  %v6534_v20 = vpop.xlane.xlu0 %6533 }
 0xda1   : > { %12997 = vpow2.f32 %v6636_v7  ;;  %v6612_v42 = vsub.f32 %v16576_v58, %v6534_v20 }
 0xda2   : > { %v6654_v45 = vmul.f32 1.442695, %v6613_v21 }
 0xda3   : > { %v6652_v41 = vmul.f32 1.442695, %v6612_v42  ;;  %v6519_v5 = vpop.xlane.xlu1 %6518 }
 0xda4   : > { %12999 = vpow2.f32 %v6654_v45  ;;  %v6607_v50 = vsub.f32 %v16602_v35, %v6519_v5  ;;  %v6516_v18 = vpop.xlane.xlu0 %6515 }
 0xda5   : > { %13001 = vpow2.f32 %v6652_v41  ;;  %v6606_v44 = vsub.f32 %v16609_v34, %v6516_v18 }
 0xda6   : > { %v6642_v23 = vmul.f32 1.442695, %v6607_v50 }
 0xda7   : > { %v6640_v56 = vmul.f32 1.442695, %v6606_v44  ;;  %v6543_v37 = vpop.xlane.xlu1 %6542 }
 0xda8   : > { %13003 = vpow2.f32 %v6642_v23  ;;  %v6615_v12 = vsub.f32 %v16626_v61, %v6543_v37  ;;  %v6540_v49 = vpop.xlane.xlu0 %6539 }
 0xda9   : > { %13005 = vpow2.f32 %v6640_v56  ;;  %v6614_v35 = vsub.f32 %v16633_v59, %v6540_v49 }
 0xdaa   : > { %v16887_v3 = vpop.eup %12995  ;;  %v6658_v4 = vmul.f32 1.442695, %v6615_v12 }
 0xdab   : > { %v6703_v58 = vsel %vm726_vm0, %v16887_v3, 0.0  ;;  %v16892_v11 = vpop.eup %12997  ;;  %v6656_v27 = vmul.f32 1.442695, %v6614_v35  ;;  %v6525_v0 = vpop.xlane.xlu1 %6524 }
 0xdac   : > { %6704 = vadd.xlane.f32.xlu1 %v6703_v58  ;;  %v6700_v34 = vsel %vm726_vm0, %v16892_v11, 0.0  ;;  %13007 = vpow2.f32 %v6658_v4  ;;  %v6609_v61 = vsub.f32 %v16644_v2, %v6525_v0  ;;  %v6522_v22 = vpop.xlane.xlu0 %6521 }
 0xdad   : > { %6701 = vadd.xlane.f32.xlu0 %v6700_v34  ;;  %13009 = vpow2.f32 %v6656_v27  ;;  %v6608_v55 = vsub.f32 %v16651_v32, %v6522_v22 }
 0xdae   : > { %v16897_v28 = vpop.eup %12999  ;;  %v6646_v6 = vmul.f32 1.442695, %v6609_v61 }
 0xdaf   : > { %v6727_v59 = vsel %vm726_vm0, %v16897_v28, 0.0  ;;  %v16903_v19 = vpop.eup %13001  ;;  %v6644_v10 = vmul.f32 1.442695, %v6608_v55  ;;  %v6549_v38 = vpop.xlane.xlu1 %6548 }
 0xdb0   : > { %6728 = vadd.xlane.f32.xlu1 %v6727_v59  ;;  %13011 = vpow2.f32 %v6646_v6  ;;  %v6617_v15 = vsub.f32 %v16669_v17, %v6549_v38  ;;  %v6546_v40 = vpop.xlane.xlu0 %6545  ;;  %v6724_v2 = vsel %vm726_vm0, %v16903_v19, 0.0 }
 0xdb1   : > { %13013 = vpow2.f32 %v6644_v10  ;;  %v6616_v9 = vsub.f32 %v16677_v26, %v6546_v40  ;;  %6725 = vadd.xlane.f32.xlu0 %v6724_v2 }
 0xdb2   : > { %v16909_v32 = vpop.eup %13003  ;;  %v6662_v7 = vmul.f32 1.442695, %v6617_v15 }
 0xdb3   : > { %v16911_v57 = vpop.eup %13005  ;;  %v6660_v21 = vmul.f32 1.442695, %v6616_v9  ;;  %v6531_v45 = vpop.xlane.xlu1 %6530  ;;  %v6709_v20 = vsel %vm726_vm0, %v16909_v32, 0.0 }
 0xdb4   : > { %13015 = vpow2.f32 %v6662_v7  ;;  %v6611_v17 = vsub.f32 %v16693_v60, %v6531_v45  ;;  %6710 = vadd.xlane.f32.xlu1 %v6709_v20  ;;  %v6528_v42 = vpop.xlane.xlu0 %6527  ;;  %v6706_v41 = vsel %vm726_vm0, %v16911_v57, 0.0 }
 0xdb5   : > { %13017 = vpow2.f32 %v6660_v21  ;;  %v6610_v26 = vsub.f32 %v16697_v54, %v6528_v42  ;;  %6707 = vadd.xlane.f32.xlu0 %v6706_v41 }
 0xdb6   : > { %v16919_v5 = vpop.eup %13007  ;;  %v6650_v50 = vmul.f32 1.442695, %v6611_v17 }
 0xdb7   : > { %v16921_v18 = vpop.eup %13009  ;;  %v6648_v44 = vmul.f32 1.442695, %v6610_v26  ;;  %v6555_v23 = vpop.xlane.xlu1 %6554  ;;  %v6733_v56 = vsel %vm726_vm0, %v16919_v5, 0.0 }
 0xdb8   : > { %13019 = vpow2.f32 %v6650_v50  ;;  %v6619_v60 = vsub.f32 %v16711_v31, %v6555_v23  ;;  %6734 = vadd.xlane.f32.xlu1 %v6733_v56  ;;  %v6552_v37 = vpop.xlane.xlu0 %6551  ;;  %v6730_v12 = vsel %vm726_vm0, %v16921_v18, 0.0 }
 0xdb9   : > { %13021 = vpow2.f32 %v6648_v44  ;;  %v6618_v54 = vsub.f32 %v16721_v14, %v6552_v37  ;;  %6731 = vadd.xlane.f32.xlu0 %v6730_v12 }
 0xdba   : > { %v16929_v49 = vpop.eup %13011  ;;  %v6666_v58 = vmul.f32 1.442695, %v6619_v60 }
 0xdbb   : > { %v16931_v35 = vpop.eup %13013  ;;  %v6664_v4 = vmul.f32 1.442695, %v6618_v54  ;;  %v6715_v27 = vsel %vm726_vm0, %v16929_v49, 0.0 }
 0xdbc   : > { %13023 = vpow2.f32 %v6666_v58  ;;  %6716 = vadd.xlane.f32.xlu1 %v6715_v27  ;;  %v6712_v61 = vsel %vm726_vm0, %v16931_v35, 0.0 }
 0xdbd   : > { %v6561_v34 = vpop.xlane.xlu1 %6560  ;;  %13025 = vpow2.f32 %v6664_v4  ;;  %6713 = vadd.xlane.f32.xlu0 %v6712_v61 }
 0xdbe   : > { %v6621_v31 = vsub.f32 %v16741_v36, %v6561_v34  ;;  %v6558_v0 = vpop.xlane.xlu0 %6557  ;;  %v16939_v22 = vpop.eup %13015 }
 0xdbf   : > { %v6620_v14 = vsub.f32 %v16750_v63, %v6558_v0  ;;  %v16941_v59 = vpop.eup %13017  ;;  %v6739_v38 = vsel %vm726_vm0, %v16939_v22, 0.0 }
 0xdc0   : > { %v6670_v55 = vmul.f32 1.442695, %v6621_v31  ;;  %6740 = vadd.xlane.f32.xlu1 %v6739_v38  ;;  %v6736_v40 = vsel %vm726_vm0, %v16941_v59, 0.0 }
 0xdc1   : > { %v6668_v6 = vmul.f32 1.442695, %v6620_v14  ;;  %v6585_v10 = vpop.xlane.xlu1 %6584  ;;  %6737 = vadd.xlane.f32.xlu0 %v6736_v40 }
 0xdc2   : > { %13027 = vpow2.f32 %v6670_v55  ;;  %v6629_v36 = vsub.f32 %v16759_v13, %v6585_v10  ;;  %v6582_v15 = vpop.xlane.xlu0 %6581  ;;  %v16949_v2 = vpop.eup %13019 }
 0xdc3   : > { %13029 = vpow2.f32 %v6668_v6  ;;  %v6628_v63 = vsub.f32 %v16764_v52, %v6582_v15  ;;  %v16951_v7 = vpop.eup %13021  ;;  %v6721_v20 = vsel %vm726_vm0, %v16949_v2, 0.0 }
 0xdc4   : > { %v6686_v9 = vmul.f32 1.442695, %v6629_v36  ;;  %6722 = vadd.xlane.f32.xlu1 %v6721_v20  ;;  %v6718_v42 = vsel %vm726_vm0, %v16951_v7, 0.0 }
 0xdc5   : > { %v6684_v21 = vmul.f32 1.442695, %v6628_v63  ;;  %v6567_v45 = vpop.xlane.xlu1 %6566  ;;  %6719 = vadd.xlane.f32.xlu0 %v6718_v42 }
 0xdc6   : > { %13031 = vpow2.f32 %v6686_v9  ;;  %v6623_v13 = vsub.f32 %v16777_v47, %v6567_v45  ;;  %v6564_v17 = vpop.xlane.xlu0 %6563  ;;  %v16959_v41 = vpop.eup %13023 }
 0xdc7   : > { %13033 = vpow2.f32 %v6684_v21  ;;  %v6622_v52 = vsub.f32 %v16784_v16, %v6564_v17  ;;  %v16961_v50 = vpop.eup %13025  ;;  %v6745_v56 = vsel %vm726_vm0, %v16959_v41, 0.0 }
 0xdc8   : > { %v6674_v26 = vmul.f32 1.442695, %v6623_v13  ;;  %6746 = vadd.xlane.f32.xlu1 %v6745_v56  ;;  %v6742_v37 = vsel %vm726_vm0, %v16961_v50, 0.0 }
 0xdc9   : > { %v6672_v44 = vmul.f32 1.442695, %v6622_v52  ;;  %v6591_v23 = vpop.xlane.xlu1 %6590  ;;  %6743 = vadd.xlane.f32.xlu0 %v6742_v37 }
 0xdca   : > { %13035 = vpow2.f32 %v6674_v26  ;;  %v6631_v47 = vsub.f32 %v16797_v43, %v6591_v23  ;;  %v6588_v60 = vpop.xlane.xlu0 %6587 }
 0xdcb   : > { %13037 = vpow2.f32 %v6672_v44  ;;  %v6630_v16 = vsub.f32 %v16804_v33, %v6588_v60 }
 0xdcc   : > { %v16969_v12 = vpop.eup %13027  ;;  %v6690_v54 = vmul.f32 1.442695, %v6631_v47 }
 0xdcd   : > { %v16971_v58 = vpop.eup %13029  ;;  %v6688_v4 = vmul.f32 1.442695, %v6630_v16  ;;  %v6573_v34 = vpop.xlane.xlu1 %6572  ;;  %v6751_v27 = vsel %vm726_vm0, %v16969_v12, 0.0 }
 0xdce   : > { %13039 = vpow2.f32 %v6690_v54  ;;  %v6625_v43 = vsub.f32 %v16817_v1, %v6573_v34  ;;  %6752 = vadd.xlane.f32.xlu1 %v6751_v27  ;;  %v6570_v31 = vpop.xlane.xlu0 %6569  ;;  %v6748_v0 = vsel %vm726_vm0, %v16971_v58, 0.0 }
 0xdcf   : > { %13041 = vpow2.f32 %v6688_v4  ;;  %v6624_v33 = vsub.f32 %v16824_v39, %v6570_v31  ;;  %6749 = vadd.xlane.f32.xlu0 %v6748_v0 }
 0xdd0   : > { %v16979_v61 = vpop.eup %13031  ;;  %v6678_v14 = vmul.f32 1.442695, %v6625_v43 }
 0xdd1   : > { %v16981_v55 = vpop.eup %13033  ;;  %v6676_v6 = vmul.f32 1.442695, %v6624_v33  ;;  %v6597_v10 = vpop.xlane.xlu1 %6596  ;;  %v6775_v38 = vsel %vm726_vm0, %v16979_v61, 0.0 }
 0xdd2   : > { %13043 = vpow2.f32 %v6678_v14  ;;  %v6633_v1 = vsub.f32 %v16837_v46, %v6597_v10  ;;  %6776 = vadd.xlane.f32.xlu1 %v6775_v38  ;;  %v6594_v36 = vpop.xlane.xlu0 %6593  ;;  %v6772_v15 = vsel %vm726_vm0, %v16981_v55, 0.0 }
 0xdd3   : > { %13045 = vpow2.f32 %v6676_v6  ;;  %v6632_v39 = vsub.f32 %v16844_v48, %v6594_v36  ;;  %6773 = vadd.xlane.f32.xlu0 %v6772_v15 }
 0xdd4   : > { %v16989_v40 = vpop.eup %13035  ;;  %v6694_v63 = vmul.f32 1.442695, %v6633_v1 }
 0xdd5   : > { %v16991_v9 = vpop.eup %13037  ;;  %v6692_v21 = vmul.f32 1.442695, %v6632_v39  ;;  %v6579_v45 = vpop.xlane.xlu1 %6578  ;;  %v6757_v20 = vsel %vm726_vm0, %v16989_v40, 0.0 }
 0xdd6   : > { %13047 = vpow2.f32 %v6694_v63  ;;  %v6627_v46 = vsub.f32 %v16857_v29, %v6579_v45  ;;  %6758 = vadd.xlane.f32.xlu1 %v6757_v20  ;;  %v6576_v13 = vpop.xlane.xlu0 %6575  ;;  %v6754_v17 = vsel %vm726_vm0, %v16991_v9, 0.0 }
 0xdd7   : > { %13049 = vpow2.f32 %v6692_v21  ;;  %v6626_v48 = vsub.f32 %v16861_v30, %v6576_v13  ;;  %6755 = vadd.xlane.f32.xlu0 %v6754_v17 }
 0xdd8   : > { %v16999_v42 = vpop.eup %13039  ;;  %v6682_v52 = vmul.f32 1.442695, %v6627_v46 }
 0xdd9   : > { %v17001_v26 = vpop.eup %13041  ;;  %v6680_v44 = vmul.f32 1.442695, %v6626_v48  ;;  %v6603_v23 = vpop.xlane.xlu1 %6602  ;;  %v6781_v56 = vsel %vm726_vm0, %v16999_v42, 0.0 }
 0xdda   : > { %13051 = vpow2.f32 %v6682_v52  ;;  %v6635_v29 = vsub.f32 %v16871_v62, %v6603_v23  ;;  %6782 = vadd.xlane.f32.xlu1 %v6781_v56  ;;  %v6600_v47 = vpop.xlane.xlu0 %6599  ;;  %v6778_v60 = vsel %vm726_vm0, %v17001_v26, 0.0 }
 0xddb   : > { %13053 = vpow2.f32 %v6680_v44  ;;  %v6634_v30 = vsub.f32 %v16875_v51, %v6600_v47  ;;  %6779 = vadd.xlane.f32.xlu0 %v6778_v60 }
 0xddc   : > { %v17009_v37 = vpop.eup %13043  ;;  %v6698_v16 = vmul.f32 1.442695, %v6635_v29 }
 0xddd   : > { %v17011_v54 = vpop.eup %13045  ;;  %v6696_v4 = vmul.f32 1.442695, %v6634_v30  ;;  %v6763_v34 = vsel %vm726_vm0, %v17009_v37, 0.0 }
 0xdde   : > { %13055 = vpow2.f32 %v6698_v16  ;;  %6764 = vadd.xlane.f32.xlu1 %v6763_v34  ;;  %v6760_v62 = vsel %vm726_vm0, %v17011_v54, 0.0 }
 0xddf   : > { %13057 = vpow2.f32 %v6696_v4  ;;  %6761 = vadd.xlane.f32.xlu0 %v6760_v62  ;;  %v18296_v4 = vld [vmem:[#allocation45_spill] sm:$0xff] }
 0xde0   : > { %v17017_v27 = vpop.eup %13047 }
 0xde1   : > { %v17019_v51 = vpop.eup %13049  ;;  %v6787_v43 = vsel %vm726_vm0, %v17017_v27, 0.0 }
 0xde2   : > { %6788 = vadd.xlane.f32.xlu1 %v6787_v43  ;;  %v6784_v31 = vsel %vm726_vm0, %v17019_v51, 0.0  ;;  %v18297_v43 = vld [vmem:[#allocation46_spill] sm:$0xff] }
 0xde3   : > { %6785 = vadd.xlane.f32.xlu0 %v6784_v31  ;;  %v18298_v31 = vld [vmem:[#allocation47_spill] sm:$0xff] }
 0xde4   : > { %v17025_v0 = vpop.eup %13051 }
 0xde5   : > { %v17027_v33 = vpop.eup %13053  ;;  %v6769_v14 = vsel %vm726_vm0, %v17025_v0, 0.0 }
 0xde6   : > { %6770 = vadd.xlane.f32.xlu1 %v6769_v14  ;;  %v6766_v6 = vsel %vm726_vm0, %v17027_v33, 0.0 }
 0xde7   : > { %6767 = vadd.xlane.f32.xlu0 %v6766_v6 }
 0xde8   : > { %v17033_v10 = vpop.eup %13055 }
 0xde9   : > { %v17035_v38 = vpop.eup %13057  ;;  %v6793_v1 = vsel %vm726_vm0, %v17033_v10, 0.0 }
 0xdea   : > { %6794 = vadd.xlane.f32.xlu1 %v6793_v1  ;;  %v6790_v36 = vsel %vm726_vm0, %v17035_v38, 0.0 }
 0xdeb   : > { %6791 = vadd.xlane.f32.xlu0 %v6790_v36  ;;  %v18299_v36 = vld [vmem:[#allocation48_spill] sm:$0xff] }
 0xe39   : > { %v6705_v15 = vpop.xlane.xlu1 %6704 }
 0xe3a   : > { %13059 = vrcp.f32 %v6705_v15  ;;  %v6702_v39 = vpop.xlane.xlu0 %6701 }
 0xe3b   : > { %13061 = vrcp.f32 %v6702_v39 }
 0xe3d   : > { %v6729_v63 = vpop.xlane.xlu1 %6728 }
 0xe3e   : > { %13063 = vrcp.f32 %v6729_v63  ;;  %v6726_v21 = vpop.xlane.xlu0 %6725 }
 0xe3f   : > { %13065 = vrcp.f32 %v6726_v21 }
 0xe41   : > { %v6711_v45 = vpop.xlane.xlu1 %6710 }
 0xe42   : > { %13067 = vrcp.f32 %v6711_v45  ;;  %v6708_v46 = vpop.xlane.xlu0 %6707 }
 0xe43   : > { %13069 = vrcp.f32 %v6708_v46 }
 0xe44   : > { %v13060_v20 = vpop.eup %13059 }
 0xe45   : > { %v13062_v13 = vpop.eup %13061  ;;  %v6829_v48 = vmul.f32 %v13060_v20, %v16887_v3  ;;  %v6735_v52 = vpop.xlane.xlu1 %6734 }
 0xe46   : > { %v6828_v17 = vmul.f32 %v13062_v13, %v16892_v11  ;;  %13071 = vrcp.f32 %v6735_v52  ;;  %v6732_v44 = vpop.xlane.xlu0 %6731 }
 0xe47   : > { %13073 = vrcp.f32 %v6732_v44 }
 0xe48   : > { %11647 = vmatprep.mubr.msk.f32.mxu0 %vm726_vm0, %v6828_v17  ;;  %v13064_v23 = vpop.eup %13063 }
 0xe49   : > { %11648 = vmatmul.mubr.msk.f32.vlgmr.msra.gmra.mrb[96].mxu0 %vm726_vm0, %v6829_v48  ;;  %v13066_v56 = vpop.eup %13065  ;;  %v6717_v29 = vpop.xlane.xlu1 %6716  ;;  %v6837_v3 = vmul.f32 %v13064_v23, %v16897_v28 }
 0xe4a   : > { %12494 = vmatpush3.bf16.msra.mxu0 %v16082_v8  ;;  %13075 = vrcp.f32 %v6717_v29  ;;  %v6714_v47 = vpop.xlane.xlu0 %6713  ;;  %v6836_v11 = vmul.f32 %v13066_v56, %v16903_v19 }
 0xe4b   : > { %12496 = vmatprep.subr.bf16.mxu0 %v16140_v53  ;;  %13077 = vrcp.f32 %v6714_v47 }
 0xe4c   : > { %v13068_v60 = vpop.eup %13067  ;;  %11675 = vmatprep.mubr.msk.f32.mxu1 %vm726_vm0, %v6836_v11 }
 0xe4d   : > { %v13070_v30 = vpop.eup %13069  ;;  %v6741_v16 = vpop.xlane.xlu1 %6740  ;;  %11676 = vmatmul.mubr.msk.f32.vlgmr.msra.gmra.mrb[88].mxu1 %vm726_vm0, %v6837_v3  ;;  %v6831_v28 = vmul.f32 %v13068_v60, %v16909_v32 }
 0xe4e   : > { %12498 = vmatpush3.bf16.msra.mxu0 %v16140_v53  ;;  %13079 = vrcp.f32 %v6741_v16  ;;  %12510 = vmatpush3.bf16.msra.mxu1 %v16084_v24  ;;  %v6738_v8 = vpop.xlane.xlu0 %6737  ;;  %v6830_v19 = vmul.f32 %v13070_v30, %v16911_v57 }
 0xe4f   : > { %12500 = vmatprep.subr.bf16.mxu0 %v16144_v25  ;;  %12512 = vmatprep.subr.bf16.mxu1 %v18296_v4  ;;  %13081 = vrcp.f32 %v6738_v8 }
 0xe50   : > { %v13072_v34 = vpop.eup %13071  ;;  %11650 = vmatprep.mubr.msk.f32.mxu0 %vm726_vm0, %v6830_v19 }
 0xe51   : > { %v13074_v53 = vpop.eup %13073  ;;  %v6723_v62 = vpop.xlane.xlu1 %6722  ;;  %11651 = vmatmul.mubr.msk.f32.gmra.mrb[98].mxu0 %vm726_vm0, %v6831_v28  ;;  %v6839_v32 = vmul.f32 %v13072_v34, %v16919_v5 }
 0xe52   : > { %12502 = vmatpush3.bf16.msra.mxu0 %v16144_v25  ;;  %13083 = vrcp.f32 %v6723_v62  ;;  %12514 = vmatpush3.bf16.msra.mxu1 %v18296_v4  ;;  %v6720_v24 = vpop.xlane.xlu0 %6719  ;;  %v6838_v57 = vmul.f32 %v13074_v53, %v16921_v18 }
 0xe53   : > { %12504 = vmatprep.subr.bf16.mxu0 %v18297_v43  ;;  %12516 = vmatprep.subr.bf16.mxu1 %v18298_v31  ;;  %13085 = vrcp.f32 %v6720_v24 }
 0xe54   : > { %v13076_v14 = vpop.eup %13075  ;;  %11678 = vmatprep.mubr.msk.f32.mxu1 %vm726_vm0, %v6838_v57 }
 0xe55   : > { %v13078_v25 = vpop.eup %13077  ;;  %v6747_v6 = vpop.xlane.xlu1 %6746  ;;  %11679 = vmatmul.mubr.msk.f32.gmra.mrb[90].mxu1 %vm726_vm0, %v6839_v32  ;;  %v6833_v5 = vmul.f32 %v13076_v14, %v16929_v49 }
 0xe56   : > { %12506 = vmatpush3.bf16.msra.mxu0 %v18297_v43  ;;  %13087 = vrcp.f32 %v6747_v6  ;;  %12518 = vmatpush3.bf16.msra.mxu1 %v18298_v31  ;;  %v6744_v1 = vpop.xlane.xlu0 %6743  ;;  %v6832_v18 = vmul.f32 %v13078_v25, %v16931_v35 }
 0xe57   : > { %12520 = vmatprep.subr.bf16.mxu1 %v18299_v36  ;;  %13089 = vrcp.f32 %v6744_v1 }
 0xe58   : > { %v13080_v15 = vpop.eup %13079  ;;  %11653 = vmatprep.mubr.msk.f32.mxu0 %vm726_vm0, %v6832_v18 }
 0xe59   : > { %v13082_v39 = vpop.eup %13081  ;;  %11654 = vmatmul.mubr.msk.f32.gmra.mrb[100].mxu0 %vm726_vm0, %v6833_v5  ;;  %v6841_v35 = vmul.f32 %v13080_v15, %v16939_v22 }
 0xe5a   : > { %12522 = vmatpush3.bf16.msra.mxu1 %v18299_v36  ;;  %v6840_v45 = vmul.f32 %v13082_v39, %v16941_v59 }
 0xe5b   : > { %v6753_v63 = vpop.xlane.xlu1 %6752 }
 0xe5c   : > { %13091 = vrcp.f32 %v6753_v63  ;;  %v6750_v21 = vpop.xlane.xlu0 %6749  ;;  %v13084_v20 = vpop.eup %13083  ;;  %11681 = vmatprep.mubr.msk.f32.mxu1 %vm726_vm0, %v6840_v45  ;;  %v10244_v63 = vld [vmem:[%s18214_s22 + $0x60] sm:$0xff] }
 0xe5d   : > { %13093 = vrcp.f32 %v6750_v21  ;;  %v13086_v49 = vpop.eup %13085  ;;  %11682 = vmatmul.mubr.msk.f32.gmra.mrb[92].mxu1 %vm726_vm0, %v6841_v35  ;;  %v6835_v48 = vmul.f32 %v13084_v20, %v16949_v2  ;;  %v10245_v21 = vld [vmem:[%s18214_s22 + $0x68] sm:$0xff]  ;;  %v10246_v35 = vld [vmem:[%s18214_s22 + $0x70] sm:$0xff]  ;;  %v10247_v20 = vld [vmem:[%s18214_s22 + $0x78] sm:$0xff] }
 0xe5e   : > { %v6834_v17 = vmul.f32 %v13086_v49, %v16951_v7  ;;  %v12531_v45 = vpack.c.bf16 %v10245_v21, %v10244_v63  ;;  %v12535_v49 = vpack.c.bf16 %v10247_v20, %v10246_v35 }
 0xe5f   : > { %v6777_v46 = vpop.xlane.xlu1 %6776 }
 0xe60   : > { %13095 = vrcp.f32 %v6777_v46  ;;  %v6774_v13 = vpop.xlane.xlu0 %6773  ;;  %v13088_v52 = vpop.eup %13087  ;;  %11656 = vmatprep.mubr.msk.f32.mxu0 %vm726_vm0, %v6834_v17 }
 0xe61   : > { %13097 = vrcp.f32 %v6774_v13  ;;  %v13090_v59 = vpop.eup %13089  ;;  %11657 = vmatmul.mubr.msk.f32.gmra.mrb[102].mxu0 %vm726_vm0, %v6835_v48  ;;  %v6843_v56 = vmul.f32 %v13088_v52, %v16959_v41 }
 0xe62   : > { %v6842_v23 = vmul.f32 %v13090_v59, %v16961_v50 }
 0xe63   : > { %v6759_v44 = vpop.xlane.xlu1 %6758 }
 0xe64   : > { %13099 = vrcp.f32 %v6759_v44  ;;  %v6756_v22 = vpop.xlane.xlu0 %6755  ;;  %11684 = vmatprep.mubr.msk.f32.mxu1 %vm726_vm0, %v6842_v23 }
 0xe65   : > { %13101 = vrcp.f32 %v6756_v22  ;;  %11685 = vmatmul.mubr.msk.f32.gmra.mrb[94].mxu1 %vm726_vm0, %v6843_v56 }
 0xe66   : > { %v13092_v29 = vpop.eup %13091 }
 0xe67   : > { %v13094_v7 = vpop.eup %13093  ;;  %v6783_v47 = vpop.xlane.xlu1 %6782  ;;  %v6845_v3 = vmul.f32 %v13092_v29, %v16969_v12 }
 0xe68   : > { %13103 = vrcp.f32 %v6783_v47  ;;  %v6780_v2 = vpop.xlane.xlu0 %6779  ;;  %v6844_v11 = vmul.f32 %v13094_v7, %v16971_v58 }
 0xe69   : > { %13105 = vrcp.f32 %v6780_v2 }
 0xe6a   : > { %v13096_v60 = vpop.eup %13095  ;;  %11703 = vmatprep.mubr.msk.f32.mxu0 %vm726_vm0, %v6844_v11 }
 0xe6b   : > { %v13098_v50 = vpop.eup %13097  ;;  %v6765_v30 = vpop.xlane.xlu1 %6764  ;;  %11704 = vmatmul.mubr.msk.f32.vlgmr.msra.gmra.mrb[104].mxu0 %vm726_vm0, %v6845_v3  ;;  %v6853_v8 = vmul.f32 %v13096_v60, %v16979_v61 }
 0xe6c   : > { %13107 = vrcp.f32 %v6765_v30  ;;  %v6762_v41 = vpop.xlane.xlu0 %6761  ;;  %v6852_v16 = vmul.f32 %v13098_v50, %v16981_v55 }
 0xe6d   : > { %13109 = vrcp.f32 %v6762_v41 }
 0xe6e   : > { %v13100_v19 = vpop.eup %13099  ;;  %11731 = vmatprep.mubr.msk.f32.mxu1 %vm726_vm0, %v6852_v16 }
 0xe6f   : > { %v13102_v58 = vpop.eup %13101  ;;  %v6789_v12 = vpop.xlane.xlu1 %6788  ;;  %11732 = vmatmul.mubr.msk.f32.vlgmr.msra.gmra.mrb[96].mxu1 %vm726_vm0, %v6853_v8  ;;  %v6847_v34 = vmul.f32 %v13100_v19, %v16989_v40 }
 0xe70   : > { %13111 = vrcp.f32 %v6789_v12  ;;  %v6786_v4 = vpop.xlane.xlu0 %6785  ;;  %v6846_v28 = vmul.f32 %v13102_v58, %v16991_v9 }
 0xe71   : > { %13113 = vrcp.f32 %v6786_v4 }
 0xe72   : > { %v13104_v53 = vpop.eup %13103  ;;  %11706 = vmatprep.mubr.msk.f32.mxu0 %vm726_vm0, %v6846_v28 }
 0xe73   : > { %v13106_v55 = vpop.eup %13105  ;;  %v6771_v61 = vpop.xlane.xlu1 %6770  ;;  %11707 = vmatmul.mubr.msk.f32.gmra.mrb[106].mxu0 %vm726_vm0, %v6847_v34  ;;  %v6855_v24 = vmul.f32 %v13104_v53, %v16999_v42 }
 0xe74   : > { %13115 = vrcp.f32 %v6771_v61  ;;  %v6768_v62 = vpop.xlane.xlu0 %6767  ;;  %v6854_v43 = vmul.f32 %v13106_v55, %v17001_v26 }
 0xe75   : > { %13117 = vrcp.f32 %v6768_v62 }
 0xe76   : > { %v13108_v57 = vpop.eup %13107  ;;  %11734 = vmatprep.mubr.msk.f32.mxu1 %vm726_vm0, %v6854_v43 }
 0xe77   : > { %v13110_v9 = vpop.eup %13109  ;;  %v6795_v31 = vpop.xlane.xlu1 %6794  ;;  %11735 = vmatmul.mubr.msk.f32.gmra.mrb[98].mxu1 %vm726_vm0, %v6855_v24  ;;  %v6849_v14 = vmul.f32 %v13108_v57, %v17009_v37 }
 0xe78   : > { %13119 = vrcp.f32 %v6795_v31  ;;  %v6792_v40 = vpop.xlane.xlu0 %6791  ;;  %v6848_v32 = vmul.f32 %v13110_v9, %v17011_v54 }
 0xe79   : > { %13121 = vrcp.f32 %v6792_v40 }
 0xe7a   : > { %v13112_v25 = vpop.eup %13111  ;;  %11709 = vmatprep.mubr.msk.f32.mxu0 %vm726_vm0, %v6848_v32 }
 0xe7b   : > { %v13114_v26 = vpop.eup %13113  ;;  %11710 = vmatmul.mubr.msk.f32.gmra.mrb[108].mxu0 %vm726_vm0, %v6849_v14  ;;  %v6857_v6 = vmul.f32 %v13112_v25, %v17017_v27 }
 0xe7c   : > { %v6856_v42 = vmul.f32 %v13114_v26, %v17019_v51 }
 0xe7e   : > { %v13116_v1 = vpop.eup %13115  ;;  %11737 = vmatprep.mubr.msk.f32.mxu1 %vm726_vm0, %v6856_v42 }
 0xe7f   : > { %v13118_v18 = vpop.eup %13117  ;;  %11738 = vmatmul.mubr.msk.f32.gmra.mrb[100].mxu1 %vm726_vm0, %v6857_v6  ;;  %v6851_v37 = vmul.f32 %v13116_v1, %v17025_v0  ;;  %v10241_v0 = vld [vmem:[%s18214_s22 + $0x48] sm:$0xff] }
 0xe80   : > { %v6850_v54 = vmul.f32 %v13118_v18, %v17027_v33  ;;  %v10240_v33 = vld [vmem:[%s18214_s22 + $0x40] sm:$0xff] }
 0xe81   : > { %v12523_v15 = vpack.c.bf16 %v10241_v0, %v10240_v33 }
 0xe82   : > { %v13120_v36 = vpop.eup %13119  ;;  %11712 = vmatprep.mubr.msk.f32.mxu0 %vm726_vm0, %v6850_v54 }
 0xe83   : > { %v13122_v5 = vpop.eup %13121  ;;  %11713 = vmatmul.mubr.msk.f32.gmra.mrb[110].mxu0 %vm726_vm0, %v6851_v37  ;;  %v6859_v27 = vmul.f32 %v13120_v36, %v17033_v10  ;;  %12524 = vmatprep.subr.bf16.mxu0 %v12523_v15  ;;  %v10243_v10 = vld [vmem:[%s18214_s22 + $0x58] sm:$0xff] }
 0xe84   : > { %v6858_v51 = vmul.f32 %v13122_v5, %v17035_v38  ;;  %12526 = vmatpush3.bf16.msra.mxu0 %v12523_v15  ;;  %v10242_v38 = vld [vmem:[%s18214_s22 + $0x50] sm:$0xff] }
 0xe85   : > { %v12527_v39 = vpack.c.bf16 %v10243_v10, %v10242_v38 }
 0xe86   : > { %11740 = vmatprep.mubr.msk.f32.mxu1 %vm726_vm0, %v6858_v51 }
 0xe87   : > { %11741 = vmatmul.mubr.msk.f32.gmra.mrb[102].mxu1 %vm726_vm0, %v6859_v27  ;;  %12528 = vmatprep.subr.bf16.mxu0 %v12527_v39 }
 0xe88   : > { %12530 = vmatpush3.bf16.msra.mxu0 %v12527_v39 }
 0xe89   : > { %12532 = vmatprep.subr.bf16.mxu0 %v12531_v45 }
 0xe8c   : > { %12534 = vmatpush3.bf16.msra.mxu0 %v12531_v45 }
 0xe8d   : > { %12536 = vmatprep.subr.bf16.mxu0 %v12535_v49 }
 0xe90   : > { %12538 = vmatpush3.bf16.msra.mxu0 %v12535_v49 }
 0xf1c   : > { %v11649_v46 = vpop.f32.mrb[96].mxu0 }
 0xf1d   : > { %v6950_v13 = vpop.f32.mrb[97].mxu0  ;;  %v7383_v48 = vsel %vm726_vm0, %v11649_v46, 0.0 }
 0xf1e   : > { %v7376_v44 = vsel %vm726_vm0, %v6950_v13, 0.0 }
 0xf20   : > { %v11677_v17 = vpop.f32.mrb[88].mxu1 }
 0xf21   : > { %v7384_v52 = vsel %vm726_vm0, %v11677_v17, 0.0  ;;  %v7079_v59 = vpop.f32.mrb[89].mxu1 }
 0xf22   : > { %v7385_v22 = vadd.f32 %v7384_v52, %v7383_v48  ;;  %v7377_v23 = vsel %vm726_vm0, %v7079_v59, 0.0 }
 0xf23   : > { %v7378_v56 = vadd.f32 %v7377_v23, %v7376_v44 }
 0xf24   : > { %v11652_v29 = vpop.f32.mrb[98].mxu0 }
 0xf25   : > { %v6960_v7 = vpop.f32.mrb[99].mxu0  ;;  %v7397_v2 = vsel %vm726_vm0, %v11652_v29, 0.0 }
 0xf26   : > { %v7390_v60 = vsel %vm726_vm0, %v6960_v7, 0.0 }
 0xf28   : > { %v11680_v47 = vpop.f32.mrb[90].mxu1 }
 0xf29   : > { %v7398_v11 = vsel %vm726_vm0, %v11680_v47, 0.0  ;;  %v7089_v3 = vpop.f32.mrb[91].mxu1 }
 0xf2a   : > { %v7399_v50 = vadd.f32 %v7398_v11, %v7397_v2  ;;  %v7391_v30 = vsel %vm726_vm0, %v7089_v3, 0.0 }
 0xf2b   : > { %v7392_v41 = vadd.f32 %v7391_v30, %v7390_v60 }
 0xf2c   : > { %v11655_v16 = vpop.f32.mrb[100].mxu0 }
 0xf2d   : > { %v6970_v8 = vpop.f32.mrb[101].mxu0  ;;  %v7411_v58 = vsel %vm726_vm0, %v11655_v16, 0.0 }
 0xf2e   : > { %v7404_v28 = vsel %vm726_vm0, %v6970_v8, 0.0 }
 0xf30   : > { %v11683_v19 = vpop.f32.mrb[92].mxu1 }
 0xf31   : > { %v7412_v12 = vsel %vm726_vm0, %v11683_v19, 0.0  ;;  %v7099_v4 = vpop.f32.mrb[93].mxu1 }
 0xf32   : > { %v7413_v34 = vadd.f32 %v7412_v12, %v7411_v58  ;;  %v7405_v53 = vsel %vm726_vm0, %v7099_v4, 0.0  ;;  %v10249_v12 = vld [vmem:[%s17979_s9 + $0x8] ss:$0 sm:$0xff] }
 0xf33   : > { %v7406_v55 = vadd.f32 %v7405_v53, %v7404_v28 }
 0xf34   : > { %v11658_v61 = vpop.f32.mrb[102].mxu0 }
 0xf35   : > { %v6980_v62 = vpop.f32.mrb[103].mxu0  ;;  %v7425_v24 = vsel %vm726_vm0, %v11658_v61, 0.0 }
 0xf36   : > { %v7418_v31 = vsel %vm726_vm0, %v6980_v62, 0.0 }
 0xf38   : > { %v11686_v43 = vpop.f32.mrb[94].mxu1 }
 0xf39   : > { %v7426_v57 = vsel %vm726_vm0, %v11686_v43, 0.0  ;;  %v7109_v9 = vpop.f32.mrb[95].mxu1 }
 0xf3a   : > { %v7427_v40 = vadd.f32 %v7426_v57, %v7425_v24  ;;  %v7419_v32 = vsel %vm726_vm0, %v7109_v9, 0.0 }
 0xf3b   : > { %v7420_v14 = vadd.f32 %v7419_v32, %v7418_v31 }
 0xf3e   : > { %v11705_v25 = vpop.f32.mrb[104].mxu0 }
 0xf3f   : > { %v7386_v26 = vsel %vm726_vm0, %v11705_v25, 0.0  ;;  %v7208_v42 = vpop.f32.mrb[105].mxu0 }
 0xf40   : > { %v7387_v6 = vadd.f32 %v7386_v26, %v7385_v22  ;;  %v7379_v1 = vsel %vm726_vm0, %v7208_v42, 0.0 }
 0xf41   : > { %v7380_v18 = vadd.f32 %v7379_v1, %v7378_v56 }
 0xf42   : > { %v11733_v54 = vpop.f32.mrb[96].mxu1 }
 0xf43   : > { %v7388_v37 = vsel %vm726_vm0, %v11733_v54, 0.0  ;;  %v7337_v36 = vpop.f32.mrb[97].mxu1 }
 0xf44   : > { %v7389_v5 = vadd.f32 %v7388_v37, %v7387_v6  ;;  %v7381_v51 = vsel %vm726_vm0, %v7337_v36, 0.0 }
 0xf45   : > { %v7382_v27 = vadd.f32 %v7381_v51, %v7380_v18 }
 0xf46   : > { %v11708_v33 = vpop.f32.mrb[106].mxu0 }
 0xf47   : > { %v7400_v0 = vsel %vm726_vm0, %v11708_v33, 0.0  ;;  %v7218_v15 = vpop.f32.mrb[107].mxu0  ;;  %11759 = vmatprep.mubr.msk.f32.mxu0 %vm726_vm0, %v7382_v27 }
 0xf48   : > { %v7401_v38 = vadd.f32 %v7400_v0, %v7399_v50  ;;  %v7393_v10 = vsel %vm726_vm0, %v7218_v15, 0.0  ;;  %11760 = vmatmul.mubr.msk.f32.vlgmr.msra.gmra.mrb[112].mxu0 %vm726_vm0, %v7389_v5 }
 0xf49   : > { %v7394_v39 = vadd.f32 %v7393_v10, %v7392_v41 }
 0xf4a   : > { %v11736_v63 = vpop.f32.mrb[98].mxu1 }
 0xf4b   : > { %v7402_v21 = vsel %vm726_vm0, %v11736_v63, 0.0  ;;  %v7347_v45 = vpop.f32.mrb[99].mxu1 }
 0xf4c   : > { %v7403_v35 = vadd.f32 %v7402_v21, %v7401_v38  ;;  %v7395_v20 = vsel %vm726_vm0, %v7347_v45, 0.0 }
 0xf4d   : > { %v7396_v49 = vadd.f32 %v7395_v20, %v7394_v39 }
 0xf4e   : > { %v11711_v46 = vpop.f32.mrb[108].mxu0 }
 0xf4f   : > { %v7414_v13 = vsel %vm726_vm0, %v11711_v46, 0.0  ;;  %v7228_v17 = vpop.f32.mrb[109].mxu0  ;;  %11762 = vmatprep.mubr.msk.f32.mxu0 %vm726_vm0, %v7396_v49 }
 0xf50   : > { %v7415_v48 = vadd.f32 %v7414_v13, %v7413_v34  ;;  %v7407_v52 = vsel %vm726_vm0, %v7228_v17, 0.0  ;;  %11763 = vmatmul.mubr.msk.f32.gmra.mrb[114].mxu0 %vm726_vm0, %v7403_v35 }
 0xf51   : > { %v7408_v59 = vadd.f32 %v7407_v52, %v7406_v55 }
 0xf52   : > { %v11739_v44 = vpop.f32.mrb[100].mxu1 }
 0xf53   : > { %v7416_v22 = vsel %vm726_vm0, %v11739_v44, 0.0  ;;  %v7357_v23 = vpop.f32.mrb[101].mxu1 }
 0xf54   : > { %v7417_v56 = vadd.f32 %v7416_v22, %v7415_v48  ;;  %v7409_v29 = vsel %vm726_vm0, %v7357_v23, 0.0 }
 0xf55   : > { %v7410_v7 = vadd.f32 %v7409_v29, %v7408_v59 }
 0xf56   : > { %v11714_v47 = vpop.f32.mrb[110].mxu0 }
 0xf57   : > { %v7428_v2 = vsel %vm726_vm0, %v11714_v47, 0.0  ;;  %v7238_v11 = vpop.f32.mrb[111].mxu0  ;;  %11765 = vmatprep.mubr.msk.f32.mxu0 %vm726_vm0, %v7410_v7 }
 0xf58   : > { %v7429_v3 = vadd.f32 %v7428_v2, %v7427_v40  ;;  %v7421_v60 = vsel %vm726_vm0, %v7238_v11, 0.0  ;;  %11766 = vmatmul.mubr.msk.f32.gmra.mrb[116].mxu0 %vm726_vm0, %v7417_v56 }
 0xf59   : > { %v7422_v50 = vadd.f32 %v7421_v60, %v7420_v14 }
 0xf5a   : > { %v11742_v30 = vpop.f32.mrb[102].mxu1 }
 0xf5b   : > { %v7430_v41 = vsel %vm726_vm0, %v11742_v30, 0.0  ;;  %v7367_v16 = vpop.f32.mrb[103].mxu1 }
 0xf5c   : > { %v7431_v8 = vadd.f32 %v7430_v41, %v7429_v3  ;;  %v7423_v19 = vsel %vm726_vm0, %v7367_v16, 0.0 }
 0xf5d   : > { %v7424_v58 = vadd.f32 %v7423_v19, %v7422_v50 }
 0xf5f   : > { %11768 = vmatprep.mubr.msk.f32.mxu0 %vm726_vm0, %v7424_v58 }
 0xf60   : > { %11769 = vmatmul.mubr.msk.f32.gmra.mrb[118].mxu0 %vm726_vm0, %v7431_v8 }
0x101b   : > { %v11761_v4 = vpop.f32.mrb[112].mxu0 }
0x101c   : > { %v7543_v28 = vadd.f32 %v11761_v4, %v10249_v12  ;;  %v7537_v34 = vpop.f32.mrb[113].mxu0  ;;  %v10262_v4 = vld [vmem:[%s17976_s6 + $0x20] sm:$0xff] }
0x101d   : > { %v7538_v53 = vadd.f32 %v10249_v12, %v7537_v34  ;;  %v10264_v34 = vld [vmem:[%s17976_s6 + $0x30] sm:$0xff] }
0x101e   : > { %v7581_v55 = vsel %vm978_vm1, %v7543_v28, 0.0 }
0x101f   : > { %7582 = vadd.xlane.f32.xlu1 %v7581_v55  ;;  %v7578_v61 = vsel %vm978_vm1, %v7538_v53, 0.0  ;;  %v10265_v55 = vld [vmem:[%s17976_s6 + $0x38] sm:$0xff] }
0x1020   : > { %7579 = vadd.xlane.f32.xlu0 %v7578_v61  ;;  %v12543_v61 = vpack.c.bf16 %v10265_v55, %v10264_v34 }
0x1023   : > { %v11764_v62 = vpop.f32.mrb[114].mxu0 }
0x1024   : > { %v7553_v43 = vadd.f32 %v11764_v62, %v10249_v12  ;;  %v7547_v24 = vpop.f32.mrb[115].mxu0  ;;  %v10276_v62 = vld [vmem:[%s17977_s7 + $0x80] sm:$0xff] }
0x1025   : > { %v7548_v57 = vadd.f32 %v10249_v12, %v7547_v24  ;;  %v10278_v24 = vld [vmem:[%s17977_s7 + $0x90] sm:$0xff] }
0x1026   : > { %v7587_v9 = vsel %vm978_vm1, %v7553_v43, 0.0 }
0x1027   : > { %7588 = vadd.xlane.f32.xlu1 %v7587_v9  ;;  %v7584_v31 = vsel %vm978_vm1, %v7548_v57, 0.0  ;;  %v10279_v9 = vld [vmem:[%s17977_s7 + $0x98] sm:$0xff] }
0x1028   : > { %7585 = vadd.xlane.f32.xlu0 %v7584_v31  ;;  %v12551_v31 = vpack.c.bf16 %v10279_v9, %v10278_v24 }
0x102b   : > { %v11767_v40 = vpop.f32.mrb[116].mxu0 }
0x102c   : > { %v7563_v32 = vadd.f32 %v11767_v40, %v10249_v12  ;;  %v7557_v14 = vpop.f32.mrb[117].mxu0  ;;  %v10280_v40 = vld [vmem:[%s17977_s7 + $0xa0] sm:$0xff] }
0x102d   : > { %v7558_v25 = vadd.f32 %v10249_v12, %v7557_v14 }
0x102e   : > { %v7593_v26 = vsel %vm978_vm1, %v7563_v32, 0.0 }
0x102f   : > { %7594 = vadd.xlane.f32.xlu1 %v7593_v26  ;;  %v7590_v42 = vsel %vm978_vm1, %v7558_v25, 0.0 }
0x1030   : > { %7591 = vadd.xlane.f32.xlu0 %v7590_v42 }
0x1033   : > { %v11770_v6 = vpop.f32.mrb[118].mxu0 }
0x1034   : > { %v7573_v1 = vadd.f32 %v11770_v6, %v10249_v12  ;;  %v7567_v18 = vpop.f32.mrb[119].mxu0 }
0x1035   : > { %v7568_v54 = vadd.f32 %v10249_v12, %v7567_v18 }
0x1036   : > { %v7599_v37 = vsel %vm978_vm1, %v7573_v1, 0.0 }
0x1037   : > { %7600 = vadd.xlane.f32.xlu1 %v7599_v37  ;;  %v7596_v36 = vsel %vm978_vm1, %v7568_v54, 0.0 }
0x1038   : > { %7597 = vadd.xlane.f32.xlu0 %v7596_v36 }
0x10ac   : > { %v7583_v5 = vpop.xlane.xlu1 %7582 }
0x10ad   : > { %v7603_v51 = vmul.f32 0.03125, %v7583_v5  ;;  %v7580_v27 = vpop.xlane.xlu0 %7579 }
0x10ae   : > { %v7602_v33 = vmul.f32 0.03125, %v7580_v27 }
0x10af   : > { %v17194_v0 = vsub.f32 %v7543_v28, %v7603_v51  ;;  %v10263_v28 = vld [vmem:[%s17976_s6 + $0x28] sm:$0xff] }
0x10b0   : > { %v17196_v15 = vsub.f32 %v7538_v53, %v7602_v33  ;;  %v12539_v53 = vpack.c.bf16 %v10263_v28, %v10262_v4 }
0x10b1   : > { %v7619_v38 = vmul.f32 %v17194_v0, %v17194_v0 }
0x10b2   : > { %v7618_v10 = vmul.f32 %v17196_v15, %v17196_v15  ;;  %12540 = vmatprep.subr.bf16.mxu1 %v12539_v53 }
0x10b3   : > { %v7629_v39 = vsel %vm978_vm1, %v7619_v38, 0.0  ;;  %12542 = vmatpush3.bf16.msra.mxu1 %v12539_v53  ;;  %v10260_v38 = vld [vmem:[%s17979_s9 + $0x9] ss:$0 sm:$0xff]  ;;  %v18302_v53 = vld [vmem:[#allocation26_spill] sm:$0xff] }
0x10b4   : > { %v7589_v63 = vpop.xlane.xlu1 %7588  ;;  %7630 = vadd.xlane.f32.xlu1 %v7629_v39  ;;  %v7626_v21 = vsel %vm978_vm1, %v7618_v10, 0.0  ;;  %12544 = vmatprep.subr.bf16.mxu1 %v12543_v61 }
0x10b5   : > { %v7605_v45 = vmul.f32 0.03125, %v7589_v63  ;;  %7627 = vadd.xlane.f32.xlu0 %v7626_v21  ;;  %v7586_v35 = vpop.xlane.xlu0 %7585  ;;  %v10261_v21 = vld [vmem:[%s17979_s9 + $0xa] ss:$0 sm:$0xff] }
0x10b6   : > { %v7604_v20 = vmul.f32 0.03125, %v7586_v35 }
0x10b7   : > { %v17204_v49 = vsub.f32 %v7553_v43, %v7605_v45  ;;  %12546 = vmatpush3.bf16.msra.mxu1 %v12543_v61  ;;  %v10277_v43 = vld [vmem:[%s17977_s7 + $0x88] sm:$0xff] }
0x10b8   : > { %v17206_v46 = vsub.f32 %v7548_v57, %v7604_v20  ;;  %v12547_v57 = vpack.c.bf16 %v10277_v43, %v10276_v62  ;;  %v18303_v62 = vld [vmem:[#allocation22_spill] sm:$0xff] }
0x10b9   : > { %v7621_v13 = vmul.f32 %v17204_v49, %v17204_v49 }
0x10ba   : > { %v7620_v17 = vmul.f32 %v17206_v46, %v17206_v46  ;;  %12548 = vmatprep.subr.bf16.mxu0 %v12547_v57 }
0x10bb   : > { %v7635_v48 = vsel %vm978_vm1, %v7621_v13, 0.0  ;;  %12550 = vmatpush3.bf16.msra.mxu0 %v12547_v57 }
0x10bc   : > { %v7595_v52 = vpop.xlane.xlu1 %7594  ;;  %7636 = vadd.xlane.f32.xlu1 %v7635_v48  ;;  %v7632_v59 = vsel %vm978_vm1, %v7620_v17, 0.0  ;;  %12552 = vmatprep.subr.bf16.mxu0 %v12551_v31 }
0x10bd   : > { %v7607_v44 = vmul.f32 0.03125, %v7595_v52  ;;  %7633 = vadd.xlane.f32.xlu0 %v7632_v59  ;;  %v7592_v22 = vpop.xlane.xlu0 %7591 }
0x10be   : > { %v7606_v23 = vmul.f32 0.03125, %v7592_v22 }
0x10bf   : > { %v17214_v56 = vsub.f32 %v7563_v32, %v7607_v44  ;;  %v10281_v32 = vld [vmem:[%s17977_s7 + $0xa8] sm:$0xff]  ;;  %12554 = vmatpush3.bf16.msra.mxu0 %v12551_v31 }
0x10c0   : > { %v17216_v29 = vsub.f32 %v7558_v25, %v7606_v23  ;;  %v12555_v14 = vpack.c.bf16 %v10281_v32, %v10280_v40 }
0x10c1   : > { %v7623_v7 = vmul.f32 %v17214_v56, %v17214_v56 }
0x10c2   : > { %v7622_v47 = vmul.f32 %v17216_v29, %v17216_v29  ;;  %12556 = vmatprep.subr.bf16.mxu0 %v12555_v14 }
0x10c3   : > { %v7641_v2 = vsel %vm978_vm1, %v7623_v7, 0.0  ;;  %12558 = vmatpush3.bf16.msra.mxu0 %v12555_v14  ;;  %v18304_v14 = vld [vmem:[#allocation24_spill] sm:$0xff] }
0x10c4   : > { %7642 = vadd.xlane.f32.xlu1 %v7641_v2  ;;  %v7601_v11 = vpop.xlane.xlu1 %7600  ;;  %v7638_v3 = vsel %vm978_vm1, %v7622_v47, 0.0 }
0x10c5   : > { %v7609_v60 = vmul.f32 0.03125, %v7601_v11  ;;  %7639 = vadd.xlane.f32.xlu0 %v7638_v3  ;;  %v7598_v50 = vpop.xlane.xlu0 %7597 }
0x10c6   : > { %v7608_v30 = vmul.f32 0.03125, %v7598_v50 }
0x10c7   : > { %v17224_v41 = vsub.f32 %v7573_v1, %v7609_v60 }
0x10c8   : > { %v17226_v16 = vsub.f32 %v7568_v54, %v7608_v30 }
0x10c9   : > { %v7625_v8 = vmul.f32 %v17224_v41, %v17224_v41 }
0x10ca   : > { %v7624_v19 = vmul.f32 %v17226_v16, %v17226_v16 }
0x10cb   : > { %v7647_v58 = vsel %vm978_vm1, %v7625_v8, 0.0 }
0x10cc   : > { %7648 = vadd.xlane.f32.xlu1 %v7647_v58  ;;  %v7644_v12 = vsel %vm978_vm1, %v7624_v19, 0.0 }
0x10cd   : > { %7645 = vadd.xlane.f32.xlu0 %v7644_v12 }
0x1141   : > { %v7631_v25 = vpop.xlane.xlu1 %7630 }
0x1142   : > { %v7651_v26 = vmul.f32 0.03125, %v7631_v25  ;;  %v7628_v42 = vpop.xlane.xlu0 %7627 }
0x1143   : > { %v7650_v6 = vmul.f32 0.03125, %v7628_v42  ;;  %v18305_v42 = vld [vmem:[#allocation31_spill] sm:$0xff] }
0x1144   : > { %v7659_v1 = vadd.f32 1e-05, %v7651_v26 }
0x1145   : > { %v7658_v18 = vadd.f32 1e-05, %v7650_v6 }
0x1146   : > { %13123 = vrsqrt.f32 %v7659_v1 }
0x1147   : > { %13125 = vrsqrt.f32 %v7658_v18 }
0x1149   : > { %v7637_v54 = vpop.xlane.xlu1 %7636 }
0x114a   : > { %v7653_v37 = vmul.f32 0.03125, %v7637_v54  ;;  %v7634_v36 = vpop.xlane.xlu0 %7633 }
0x114b   : > { %v7652_v5 = vmul.f32 0.03125, %v7634_v36  ;;  %v18306_v36 = vld [vmem:[#allocation36_spill] sm:$0xff] }
0x114c   : > { %v7661_v51 = vadd.f32 1e-05, %v7653_v37 }
0x114d   : > { %v7660_v27 = vadd.f32 1e-05, %v7652_v5 }
0x114e   : > { %13127 = vrsqrt.f32 %v7661_v51  ;;  %v18307_v51 = vld [vmem:[#allocation32_spill] sm:$0xff] }
0x114f   : > { %13129 = vrsqrt.f32 %v7660_v27  ;;  %v10283_v27 = vld [vmem:[%s17977_s7 + $0xb8] sm:$0xff] }
0x1150   : > { %v13124_v33 = vpop.eup %13123 }
0x1151   : > { %v13126_v10 = vpop.eup %13125  ;;  %v7675_v39 = vmul.f32 %v13124_v33, %v17194_v0  ;;  %v7643_v63 = vpop.xlane.xlu1 %7642  ;;  %v18300_v0 = vld [vmem:[#allocation37_spill] sm:$0xff]  ;;  %v10284_v33 = vld [vmem:[%s17977_s7 + $0xc0] sm:$0xff] }
0x1152   : > { %v7674_v45 = vmul.f32 %v13126_v10, %v17196_v15  ;;  %v7655_v35 = vmul.f32 0.03125, %v7643_v63  ;;  %v7640_v20 = vpop.xlane.xlu0 %7639  ;;  %v18301_v15 = vld [vmem:[#allocation23_spill] sm:$0xff]  ;;  %v10285_v10 = vld [vmem:[%s17977_s7 + $0xc8] sm:$0xff]  ;;  %v10286_v63 = vld [vmem:[%s17977_s7 + $0xd0] sm:$0xff] }
0x1153   : > { %v7687_v13 = vmul.f32 %v10260_v38, %v7675_v39  ;;  %v7654_v17 = vmul.f32 0.03125, %v7640_v20  ;;  %v12563_v39 = vpack.c.bf16 %v10285_v10, %v10284_v33  ;;  %v10289_v20 = vld [vmem:[%s17977_s7 + $0xe8] sm:$0xff] }
0x1154   : > { %v7663_v48 = vadd.f32 1e-05, %v7655_v35  ;;  %v7686_v52 = vmul.f32 %v10260_v38, %v7674_v45  ;;  %v10288_v45 = vld [vmem:[%s17977_s7 + $0xe0] sm:$0xff] }
0x1155   : > { %v7699_v59 = vadd.f32 %v10261_v21, %v7687_v13  ;;  %v7662_v44 = vadd.f32 1e-05, %v7654_v17  ;;  %v12571_v13 = vpack.c.bf16 %v10289_v20, %v10288_v45  ;;  %v10290_v17 = vld [vmem:[%s17977_s7 + $0xf0] sm:$0xff] }
0x1156   : > { %13131 = vrsqrt.f32 %v7663_v48  ;;  %v7698_v22 = vadd.f32 %v10261_v21, %v7686_v52  ;;  %v10291_v48 = vld [vmem:[%s17977_s7 + $0xf8] sm:$0xff] }
0x1157   : > { %13133 = vrsqrt.f32 %v7662_v44  ;;  %v17277_v3 = vadd.f32 %v18301_v15, %v7699_v59  ;;  %v12575_v52 = vpack.c.bf16 %v10291_v48, %v10290_v17  ;;  %v10267_v59 = vld [vmem:[%s17980_s10 + $0x1] ss:$0 sm:$0xff] }
0x1158   : > { %v13128_v23 = vpop.eup %13127  ;;  %v17273_v7 = vadd.f32 %v7698_v22, %v18300_v0 }
0x1159   : > { %v13130_v47 = vpop.eup %13129  ;;  %v7677_v2 = vmul.f32 %v13128_v23, %v17204_v49  ;;  %v7649_v11 = vpop.xlane.xlu1 %7648 }
0x115a   : > { %v7676_v60 = vmul.f32 %v13130_v47, %v17206_v46  ;;  %v7657_v50 = vmul.f32 0.03125, %v7649_v11  ;;  %11779 = vmatprep.mubr.msk.f32.mxu1 %vm978_vm1, %v17273_v7  ;;  %v7646_v30 = vpop.xlane.xlu0 %7645 }
0x115b   : > { %v7656_v8 = vmul.f32 0.03125, %v7646_v30  ;;  %11780 = vmatmul.mubr.msk.f32.vlgmr.msra.gmra.mrb[104].mxu1 %vm978_vm1, %v17277_v3  ;;  %v7689_v19 = vmul.f32 %v10260_v38, %v7677_v2 }
0x115c   : > { %v7665_v58 = vadd.f32 1e-05, %v7657_v50  ;;  %v7688_v12 = vmul.f32 %v10260_v38, %v7676_v60 }
0x115d   : > { %v7664_v4 = vadd.f32 1e-05, %v7656_v8  ;;  %v7701_v49 = vadd.f32 %v10261_v21, %v7689_v19 }
0x115e   : > { %13135 = vrsqrt.f32 %v7665_v58  ;;  %v7700_v28 = vadd.f32 %v10261_v21, %v7688_v12 }
0x115f   : > { %13137 = vrsqrt.f32 %v7664_v4  ;;  %v17289_v43 = vadd.f32 %v18303_v62, %v7701_v49 }
0x1160   : > { %v13132_v34 = vpop.eup %13131  ;;  %v17285_v46 = vadd.f32 %v7700_v28, %v18302_v53 }
0x1161   : > { %v13134_v55 = vpop.eup %13133  ;;  %v7679_v61 = vmul.f32 %v13132_v34, %v17214_v56 }
0x1162   : > { %v7678_v24 = vmul.f32 %v13134_v55, %v17216_v29  ;;  %11782 = vmatprep.mubr.msk.f32.mxu1 %vm978_vm1, %v17285_v46 }
0x1163   : > { %11783 = vmatmul.mubr.msk.f32.gmra.mrb[106].mxu1 %vm978_vm1, %v17289_v43  ;;  %v7691_v57 = vmul.f32 %v10260_v38, %v7679_v61 }
0x1164   : > { %v7690_v9 = vmul.f32 %v10260_v38, %v7678_v24 }
0x1165   : > { %v7703_v31 = vadd.f32 %v10261_v21, %v7691_v57 }
0x1166   : > { %v7702_v40 = vadd.f32 %v10261_v21, %v7690_v9 }
0x1167   : > { %v17301_v6 = vadd.f32 %v18305_v42, %v7703_v31 }
0x1168   : > { %v13136_v32 = vpop.eup %13135  ;;  %v17297_v25 = vadd.f32 %v7702_v40, %v18304_v14 }
0x1169   : > { %v13138_v56 = vpop.eup %13137  ;;  %v7681_v26 = vmul.f32 %v13136_v32, %v17224_v41 }
0x116a   : > { %v7680_v29 = vmul.f32 %v13138_v56, %v17226_v16  ;;  %11785 = vmatprep.mubr.msk.f32.mxu1 %vm978_vm1, %v17297_v25  ;;  %v10282_v16 = vld [vmem:[%s17977_s7 + $0xb0] sm:$0xff] }
0x116b   : > { %11786 = vmatmul.mubr.msk.f32.gmra.mrb[108].mxu1 %vm978_vm1, %v17301_v6  ;;  %v7693_v1 = vmul.f32 %v10260_v38, %v7681_v26 }
0x116c   : > { %v7692_v18 = vmul.f32 %v10260_v38, %v7680_v29  ;;  %v12559_v38 = vpack.c.bf16 %v10283_v27, %v10282_v16 }
0x116d   : > { %v7705_v54 = vadd.f32 %v10261_v21, %v7693_v1 }
0x116e   : > { %v7704_v37 = vadd.f32 %v10261_v21, %v7692_v18  ;;  %12560 = vmatprep.subr.bf16.mxu0 %v12559_v38  ;;  %v10287_v21 = vld [vmem:[%s17977_s7 + $0xd8] sm:$0xff] }
0x116f   : > { %v17312_v41 = vadd.f32 %v18307_v51, %v7705_v54  ;;  %12562 = vmatpush3.bf16.msra.mxu0 %v12559_v38  ;;  %v12567_v35 = vpack.c.bf16 %v10287_v21, %v10286_v63 }
0x1170   : > { %v17309_v5 = vadd.f32 %v7704_v37, %v18306_v36  ;;  %12564 = vmatprep.subr.bf16.mxu0 %v12563_v39 }
0x1172   : > { %11788 = vmatprep.mubr.msk.f32.mxu1 %vm978_vm1, %v17309_v5 }
0x1173   : > { %11789 = vmatmul.mubr.msk.f32.gmra.mrb[110].mxu1 %vm978_vm1, %v17312_v41  ;;  %12566 = vmatpush3.bf16.msra.mxu0 %v12563_v39 }
0x1174   : > { %12568 = vmatprep.subr.bf16.mxu0 %v12567_v35 }
0x1177   : > { %12570 = vmatpush3.bf16.msra.mxu0 %v12567_v35 }
0x1178   : > { %12572 = vmatprep.subr.bf16.mxu0 %v12571_v13 }
0x117b   : > { %12574 = vmatpush3.bf16.msra.mxu0 %v12571_v13 }
0x117c   : > { %12576 = vmatprep.subr.bf16.mxu0 %v12575_v52 }
0x117f   : > { %12578 = vmatpush3.bf16.msra.mxu0 %v12575_v52 }
0x122e   : > { %v11781_v44 = vpop.f32.mrb[104].mxu1 }
0x122f   : > { %v7823_v22 = vadd.f32 %v11781_v44, %v10267_v59  ;;  %v7817_v23 = vpop.f32.mrb[105].mxu1  ;;  %v10293_v44 = vld [vmem:[%s17979_s9 + $0xf] ss:$0 sm:$0xff] }
0x1230   : > { %v7818_v0 = vadd.f32 %v10267_v59, %v7817_v23 }
0x1231   : > { %v7865_v47 = vmul.f32 0.70710677, %v7823_v22  ;;  %v7857_v55 = vmul.f32 0.5, %v7823_v22 }
0x1232   : > { %v7864_v2 = vmul.f32 0.70710677, %v7818_v0  ;;  %v7856_v49 = vmul.f32 0.5, %v7818_v0 }
0x1233   : > { %13139 = verf.f32 %v7865_v47 }
0x1234   : > { %13141 = verf.f32 %v7864_v2 }
0x1236   : > { %v11784_v11 = vpop.f32.mrb[106].mxu1 }
0x1237   : > { %v7833_v15 = vadd.f32 %v11784_v11, %v10267_v59  ;;  %v7827_v60 = vpop.f32.mrb[107].mxu1 }
0x1238   : > { %v7828_v50 = vadd.f32 %v10267_v59, %v7827_v60 }
0x1239   : > { %v7867_v30 = vmul.f32 0.70710677, %v7833_v15  ;;  %v7859_v1 = vmul.f32 0.5, %v7833_v15 }
0x123a   : > { %v7866_v8 = vmul.f32 0.70710677, %v7828_v50  ;;  %v7858_v56 = vmul.f32 0.5, %v7828_v50 }
0x123b   : > { %13143 = verf.f32 %v7867_v30 }
0x123c   : > { %13145 = verf.f32 %v7866_v8 }
0x123d   : > { %v13140_v19 = vpop.eup %13139 }
0x123e   : > { %v13142_v58 = vpop.eup %13141  ;;  %v7881_v12 = vadd.f32 1.0, %v13140_v19  ;;  %v11787_v4 = vpop.f32.mrb[108].mxu1 }
0x123f   : > { %v7880_v28 = vadd.f32 1.0, %v13142_v58  ;;  %v7843_v34 = vadd.f32 %v11787_v4, %v10267_v59  ;;  %v7837_v53 = vpop.f32.mrb[109].mxu1 }
0x1240   : > { %v7838_v61 = vadd.f32 %v10267_v59, %v7837_v53  ;;  %v7889_v57 = vmul.f32 %v7881_v12, %v7857_v55 }
0x1241   : > { %v7869_v62 = vmul.f32 0.70710677, %v7843_v34  ;;  %v7888_v24 = vmul.f32 %v7880_v28, %v7856_v49  ;;  %v7861_v39 = vmul.f32 0.5, %v7843_v34 }
0x1242   : > { %v7868_v9 = vmul.f32 0.70710677, %v7838_v61  ;;  %v7860_v38 = vmul.f32 0.5, %v7838_v61 }
0x1243   : > { %13147 = verf.f32 %v7869_v62  ;;  %11823 = vmatprep.mubr.f32.mxu0 %v7888_v24 }
0x1244   : > { %13149 = verf.f32 %v7868_v9  ;;  %11824 = vmatmul.mubr.f32.vlgmr.msra.gmra.mrb[120].mxu0 %v7889_v57 }
0x1245   : > { %v13144_v31 = vpop.eup %13143 }
0x1246   : > { %v13146_v40 = vpop.eup %13145  ;;  %v7883_v32 = vadd.f32 1.0, %v13144_v31  ;;  %v11790_v14 = vpop.f32.mrb[110].mxu1 }
0x1247   : > { %v7882_v26 = vadd.f32 1.0, %v13146_v40  ;;  %v7853_v42 = vadd.f32 %v11790_v14, %v10267_v59  ;;  %v7847_v29 = vpop.f32.mrb[111].mxu1 }
0x1248   : > { %v7848_v18 = vadd.f32 %v10267_v59, %v7847_v29  ;;  %v7891_v51 = vmul.f32 %v7883_v32, %v7859_v1 }
0x1249   : > { %v7871_v54 = vmul.f32 0.70710677, %v7853_v42  ;;  %v7890_v37 = vmul.f32 %v7882_v26, %v7858_v56  ;;  %v7863_v48 = vmul.f32 0.5, %v7853_v42 }
0x124a   : > { %v7870_v36 = vmul.f32 0.70710677, %v7848_v18  ;;  %v7862_v13 = vmul.f32 0.5, %v7848_v18 }
0x124b   : > { %13151 = verf.f32 %v7871_v54  ;;  %11826 = vmatprep.mubr.f32.mxu0 %v7890_v37 }
0x124c   : > { %13153 = verf.f32 %v7870_v36  ;;  %11827 = vmatmul.mubr.f32.gmra.mrb[122].mxu0 %v7891_v51 }
0x124d   : > { %v13148_v16 = vpop.eup %13147 }
0x124e   : > { %v13150_v27 = vpop.eup %13149  ;;  %v7885_v33 = vadd.f32 1.0, %v13148_v16 }
0x124f   : > { %v7884_v10 = vadd.f32 1.0, %v13150_v27 }
0x1250   : > { %v7893_v21 = vmul.f32 %v7885_v33, %v7861_v39 }
0x1251   : > { %v7892_v63 = vmul.f32 %v7884_v10, %v7860_v38 }
0x1253   : > { %11829 = vmatprep.mubr.f32.mxu0 %v7892_v63 }
0x1254   : > { %11830 = vmatmul.mubr.f32.gmra.mrb[124].mxu0 %v7893_v21 }
0x1255   : > { %v13152_v45 = vpop.eup %13151 }
0x1256   : > { %v13154_v35 = vpop.eup %13153  ;;  %v7887_v20 = vadd.f32 1.0, %v13152_v45 }
0x1257   : > { %v7886_v17 = vadd.f32 1.0, %v13154_v35 }
0x1258   : > { %v7895_v59 = vmul.f32 %v7887_v20, %v7863_v48 }
0x1259   : > { %v7894_v52 = vmul.f32 %v7886_v17, %v7862_v13 }
0x125b   : > { %11832 = vmatprep.mubr.f32.mxu0 %v7894_v52 }
0x125c   : > { %11833 = vmatmul.mubr.f32.gmra.mrb[126].mxu0 %v7895_v59 }
0x1317   : > { %v11825_v22 = vpop.f32.mrb[120].mxu0 }
0x1318   : > { %v7990_v23 = vadd.f32 %v11825_v22, %v10293_v44  ;;  %v7984_v0 = vpop.f32.mrb[121].mxu0 }
0x1319   : > { %v7985_v47 = vadd.f32 %v10293_v44, %v7984_v0 }
0x131a   : > { %v8028_v2 = vsel %vm978_vm1, %v7990_v23, 0.0 }
0x131b   : > { %8029 = vadd.xlane.f32.xlu1 %v8028_v2  ;;  %v8025_v11 = vsel %vm978_vm1, %v7985_v47, 0.0 }
0x131c   : > { %8026 = vadd.xlane.f32.xlu0 %v8025_v11 }
0x131f   : > { %v11828_v15 = vpop.f32.mrb[122].mxu0 }
0x1320   : > { %v8000_v60 = vadd.f32 %v11828_v15, %v10293_v44  ;;  %v7994_v50 = vpop.f32.mrb[123].mxu0 }
0x1321   : > { %v7995_v30 = vadd.f32 %v10293_v44, %v7994_v50  ;;  %v18308_v50 = vld [vmem:[#allocation38_spill] sm:$0xff] }
0x1322   : > { %v8034_v8 = vsel %vm978_vm1, %v8000_v60, 0.0 }
0x1323   : > { %8035 = vadd.xlane.f32.xlu1 %v8034_v8  ;;  %v8031_v19 = vsel %vm978_vm1, %v7995_v30, 0.0  ;;  %v18309_v8 = vld [vmem:[#allocation40_spill] sm:$0xff] }
0x1324   : > { %8032 = vadd.xlane.f32.xlu0 %v8031_v19  ;;  %v8163_v19 = vsel %vm978_vm1, %v18309_v8, 0.0 }
0x1327   : > { %v11831_v58 = vpop.f32.mrb[124].mxu0 }
0x1328   : > { %v8010_v12 = vadd.f32 %v11831_v58, %v10293_v44  ;;  %v8004_v4 = vpop.f32.mrb[125].mxu0  ;;  %v18310_v58 = vld [vmem:[#allocation41_spill] sm:$0xff] }
0x1329   : > { %v8005_v49 = vadd.f32 %v10293_v44, %v8004_v4  ;;  %v18311_v4 = vld [vmem:[#allocation39_spill] sm:$0xff] }
0x132a   : > { %v8040_v28 = vsel %vm978_vm1, %v8010_v12, 0.0 }
0x132b   : > { %8041 = vadd.xlane.f32.xlu1 %v8040_v28  ;;  %v8037_v34 = vsel %vm978_vm1, %v8005_v49, 0.0  ;;  %v18312_v28 = vld [vmem:[#allocation34_spill] sm:$0xff] }
0x132c   : > { %8038 = vadd.xlane.f32.xlu0 %v8037_v34  ;;  %v8178_v34 = vsel %vm978_vm1, %v18312_v28, 0.0 }
0x132f   : > { %v11834_v53 = vpop.f32.mrb[126].mxu0 }
0x1330   : > { %v8020_v55 = vadd.f32 %v11834_v53, %v10293_v44  ;;  %v8014_v61 = vpop.f32.mrb[127].mxu0  ;;  %v18313_v53 = vld [vmem:[#allocation28_spill] sm:$0xff] }
0x1331   : > { %v8015_v62 = vadd.f32 %v10293_v44, %v8014_v61  ;;  %v18314_v61 = vld [vmem:[#allocation4_spill] sm:$0xff] }
0x1332   : > { %v8046_v24 = vsel %vm978_vm1, %v8020_v55, 0.0 }
0x1333   : > { %8047 = vadd.xlane.f32.xlu1 %v8046_v24  ;;  %v8043_v57 = vsel %vm978_vm1, %v8015_v62, 0.0  ;;  %v18315_v24 = vld [vmem:[#allocation3_spill] sm:$0xff] }
0x1334   : > { %8044 = vadd.xlane.f32.xlu0 %v8043_v57  ;;  %v8181_v57 = vsel %vm978_vm1, %v18315_v24, 0.0 }
0x13a8   : > { %v8030_v9 = vpop.xlane.xlu1 %8029 }
0x13a9   : > { %v8050_v31 = vmul.f32 0.03125, %v8030_v9  ;;  %v8027_v40 = vpop.xlane.xlu0 %8026  ;;  %v10302_v9 = vld [vmem:[%s18132_s3 + $0x80] sm:$0xff] }
0x13aa   : > { %v8049_v32 = vmul.f32 0.03125, %v8027_v40  ;;  %11851 = vmatprep.mubr.msk.f32.mxu1 %vm726_vm0, %v10302_v9 }
0x13ab   : > { %v17362_v14 = vsub.f32 %v7990_v23, %v8050_v31 }
0x13ac   : > { %v17364_v56 = vsub.f32 %v7985_v47, %v8049_v32 }
0x13ad   : > { %v8066_v26 = vmul.f32 %v17362_v14, %v17362_v14 }
0x13ae   : > { %v8065_v42 = vmul.f32 %v17364_v56, %v17364_v56 }
0x13af   : > { %v8076_v29 = vsel %vm978_vm1, %v8066_v26, 0.0 }
0x13b0   : > { %v8036_v1 = vpop.xlane.xlu1 %8035  ;;  %8077 = vadd.xlane.f32.xlu1 %v8076_v29  ;;  %v8073_v18 = vsel %vm978_vm1, %v8065_v42, 0.0 }
0x13b1   : > { %v8052_v54 = vmul.f32 0.03125, %v8036_v1  ;;  %8074 = vadd.xlane.f32.xlu0 %v8073_v18  ;;  %v8033_v37 = vpop.xlane.xlu0 %8032 }
0x13b2   : > { %v8051_v36 = vmul.f32 0.03125, %v8033_v37 }
0x13b3   : > { %v17372_v51 = vsub.f32 %v8000_v60, %v8052_v54 }
0x13b4   : > { %v17374_v16 = vsub.f32 %v7995_v30, %v8051_v36  ;;  %v8166_v30 = vsel %vm978_vm1, %v18308_v50, 0.0 }
0x13b5   : > { %v8068_v27 = vmul.f32 %v17372_v51, %v17372_v51 }
0x13b6   : > { %v8067_v33 = vmul.f32 %v17374_v16, %v17374_v16 }
0x13b7   : > { %v8082_v38 = vsel %vm978_vm1, %v8068_v27, 0.0 }
0x13b8   : > { %v8042_v10 = vpop.xlane.xlu1 %8041  ;;  %8083 = vadd.xlane.f32.xlu1 %v8082_v38  ;;  %v8079_v39 = vsel %vm978_vm1, %v8067_v33, 0.0  ;;  %v17425_v38 = vld [vmem:[%s17979_s9 + $0xd] ss:$0 sm:$0xff] }
0x13b9   : > { %v8054_v63 = vmul.f32 0.03125, %v8042_v10  ;;  %8080 = vadd.xlane.f32.xlu0 %v8079_v39  ;;  %v8039_v21 = vpop.xlane.xlu0 %8038 }
0x13ba   : > { %v8053_v45 = vmul.f32 0.03125, %v8039_v21 }
0x13bb   : > { %v17382_v35 = vsub.f32 %v8010_v12, %v8054_v63  ;;  %v8172_v12 = vsel %vm978_vm1, %v18310_v58, 0.0 }
0x13bc   : > { %v17384_v20 = vsub.f32 %v8005_v49, %v8053_v45  ;;  %v8169_v49 = vsel %vm978_vm1, %v18311_v4, 0.0 }
0x13bd   : > { %v8070_v13 = vmul.f32 %v17382_v35, %v17382_v35 }
0x13be   : > { %v8069_v17 = vmul.f32 %v17384_v20, %v17384_v20 }
0x13bf   : > { %v8088_v48 = vsel %vm978_vm1, %v8070_v13, 0.0  ;;  %v17431_v13 = vld [vmem:[%s17979_s9 + $0xe] ss:$0 sm:$0xff] }
0x13c0   : > { %8089 = vadd.xlane.f32.xlu1 %v8088_v48  ;;  %v8048_v52 = vpop.xlane.xlu1 %8047  ;;  %v8085_v59 = vsel %vm978_vm1, %v8069_v17, 0.0 }
0x13c1   : > { %v8056_v44 = vmul.f32 0.03125, %v8048_v52  ;;  %8086 = vadd.xlane.f32.xlu0 %v8085_v59  ;;  %v8045_v22 = vpop.xlane.xlu0 %8044 }
0x13c2   : > { %v8055_v23 = vmul.f32 0.03125, %v8045_v22 }
0x13c3   : > { %v17392_v0 = vsub.f32 %v8020_v55, %v8056_v44  ;;  %v8175_v55 = vsel %vm978_vm1, %v18313_v53, 0.0 }
0x13c4   : > { %v17394_v47 = vsub.f32 %v8015_v62, %v8055_v23  ;;  %v8184_v62 = vsel %vm978_vm1, %v18314_v61, 0.0 }
0x13c5   : > { %v8072_v2 = vmul.f32 %v17392_v0, %v17392_v0 }
0x13c6   : > { %v8071_v11 = vmul.f32 %v17394_v47, %v17394_v47 }
0x13c7   : > { %v8094_v15 = vsel %vm978_vm1, %v8072_v2, 0.0 }
0x13c8   : > { %8095 = vadd.xlane.f32.xlu1 %v8094_v15  ;;  %v8091_v60 = vsel %vm978_vm1, %v8071_v11, 0.0 }
0x13c9   : > { %8092 = vadd.xlane.f32.xlu0 %v8091_v60 }
0x13cc   : > { %8167 = vadd.xlane.f32.xlu1 %v8166_v30 }
0x13cd   : > { %8164 = vadd.xlane.f32.xlu0 %v8163_v19 }
0x13d0   : > { %8173 = vadd.xlane.f32.xlu1 %v8172_v12 }
0x13d1   : > { %8170 = vadd.xlane.f32.xlu0 %v8169_v49 }
0x13d4   : > { %8179 = vadd.xlane.f32.xlu1 %v8178_v34 }
0x13d5   : > { %8176 = vadd.xlane.f32.xlu0 %v8175_v55 }
0x13d8   : > { %8185 = vadd.xlane.f32.xlu1 %v8184_v62 }
0x13d9   : > { %8182 = vadd.xlane.f32.xlu0 %v8181_v57 }
0x143d   : > { %v8078_v31 = vpop.xlane.xlu1 %8077 }
0x143e   : > { %v8098_v40 = vmul.f32 0.03125, %v8078_v31  ;;  %v8075_v32 = vpop.xlane.xlu0 %8074 }
0x143f   : > { %v8097_v26 = vmul.f32 0.03125, %v8075_v32 }
0x1440   : > { %v8106_v42 = vadd.f32 1e-05, %v8098_v40 }
0x1441   : > { %v8105_v29 = vadd.f32 1e-05, %v8097_v26 }
0x1442   : > { %13155 = vrsqrt.f32 %v8106_v42 }
0x1443   : > { %13157 = vrsqrt.f32 %v8105_v29 }
0x1445   : > { %v8084_v1 = vpop.xlane.xlu1 %8083 }
0x1446   : > { %v8100_v18 = vmul.f32 0.03125, %v8084_v1  ;;  %v8081_v54 = vpop.xlane.xlu0 %8080 }
0x1447   : > { %v8099_v37 = vmul.f32 0.03125, %v8081_v54 }
0x1448   : > { %v8108_v36 = vadd.f32 1e-05, %v8100_v18 }
0x1449   : > { %v8107_v27 = vadd.f32 1e-05, %v8099_v37 }
0x144a   : > { %13159 = vrsqrt.f32 %v8108_v36 }
0x144b   : > { %13161 = vrsqrt.f32 %v8107_v27 }
0x144c   : > { %v13156_v33 = vpop.eup %13155 }
0x144d   : > { %v13158_v10 = vpop.eup %13157  ;;  %v8090_v39 = vpop.xlane.xlu1 %8089  ;;  %v8122_v63 = vmul.f32 %v13156_v33, %v17362_v14 }
0x144e   : > { %v8102_v21 = vmul.f32 0.03125, %v8090_v39  ;;  %v8087_v45 = vpop.xlane.xlu0 %8086  ;;  %v8121_v17 = vmul.f32 %v13158_v10, %v17364_v56 }
0x144f   : > { %v8101_v48 = vmul.f32 0.03125, %v8087_v45  ;;  %v8134_v52 = vmul.f32 %v17425_v38, %v8122_v63 }
0x1450   : > { %v8110_v59 = vadd.f32 1e-05, %v8102_v21  ;;  %v8133_v44 = vmul.f32 %v17425_v38, %v8121_v17 }
0x1451   : > { %v8109_v22 = vadd.f32 1e-05, %v8101_v48  ;;  %v8146_v23 = vadd.f32 %v17431_v13, %v8134_v52 }
0x1452   : > { %13163 = vrsqrt.f32 %v8110_v59  ;;  %v8145_v14 = vadd.f32 %v17431_v13, %v8133_v44 }
0x1453   : > { %13165 = vrsqrt.f32 %v8109_v22  ;;  %v8154_v2 = vadd.f32 %v8146_v23, %v17277_v3 }
0x1454   : > { %v13160_v11 = vpop.eup %13159  ;;  %v8153_v15 = vadd.f32 %v8145_v14, %v17273_v7 }
0x1455   : > { %v13162_v60 = vpop.eup %13161  ;;  %v8096_v56 = vpop.xlane.xlu1 %8095  ;;  %v8124_v30 = vmul.f32 %v13160_v11, %v17372_v51 }
0x1456   : > { %v8104_v19 = vmul.f32 0.03125, %v8096_v56  ;;  %v8093_v12 = vpop.xlane.xlu0 %8092  ;;  %v12579_v49 = vpack.c.bf16 %v8154_v2, %v8153_v15  ;;  %v8123_v34 = vmul.f32 %v13162_v60, %v17374_v16 }
0x1457   : > { %v8103_v55 = vmul.f32 0.03125, %v8093_v12  ;;  %v8136_v62 = vmul.f32 %v17425_v38, %v8124_v30 }
0x1458   : > { %v8112_v57 = vadd.f32 1e-05, %v8104_v19  ;;  %12580 = vmatprep.subr.bf16.mxu1 %v12579_v49  ;;  %v8135_v9 = vmul.f32 %v17425_v38, %v8123_v34 }
0x1459   : > { %v8111_v3 = vadd.f32 1e-05, %v8103_v55  ;;  %v8168_v31 = vpop.xlane.xlu1 %8167  ;;  %12582 = vmatpush3.bf16.msra.mxu1 %v12579_v49  ;;  %v8148_v7 = vadd.f32 %v17431_v13, %v8136_v62 }
0x145a   : > { %13167 = vrsqrt.f32 %v8112_v57  ;;  %v8188_v40 = vmul.f32 0.03125, %v8168_v31  ;;  %v8165_v51 = vpop.xlane.xlu0 %8164  ;;  %v8147_v32 = vadd.f32 %v17431_v13, %v8135_v9 }
0x145b   : > { %13169 = vrsqrt.f32 %v8111_v3  ;;  %v8187_v26 = vmul.f32 0.03125, %v8165_v51  ;;  %v8156_v16 = vadd.f32 %v8148_v7, %v17289_v43 }
0x145c   : > { %v13164_v42 = vpop.eup %13163  ;;  %v17448_v29 = vsub.f32 %v18308_v50, %v8188_v40  ;;  %v8155_v1 = vadd.f32 %v8147_v32, %v17285_v46 }
0x145d   : > { %v13166_v18 = vpop.eup %13165  ;;  %v17452_v54 = vsub.f32 %v18309_v8, %v8187_v26  ;;  %v8174_v37 = vpop.xlane.xlu1 %8173  ;;  %v8126_v36 = vmul.f32 %v13164_v42, %v17382_v35  ;;  %v10307_v42 = vld [vmem:[%s18132_s3 + $0xa8] sm:$0xff] }
0x145e   : > { %v8190_v27 = vmul.f32 0.03125, %v8174_v37  ;;  %v8171_v33 = vpop.xlane.xlu0 %8170  ;;  %v12583_v10 = vpack.c.bf16 %v8156_v16, %v8155_v1  ;;  %v8204_v39 = vmul.f32 %v17448_v29, %v17448_v29  ;;  %v8125_v43 = vmul.f32 %v13166_v18, %v17384_v20  ;;  %v10304_v16 = vld [vmem:[%s18132_s3 + $0x90] sm:$0xff]  ;;  %v10309_v18 = vld [vmem:[%s18132_s3 + $0xb8] sm:$0xff]  ;;  %v8437_v37 = vld [vmem:[%s17983_s13] sm:$0xff] }
0x145f   : > { %v8189_v63 = vmul.f32 0.03125, %v8171_v33  ;;  %v8203_v50 = vmul.f32 %v17452_v54, %v17452_v54  ;;  %v8138_v46 = vmul.f32 %v17425_v38, %v8126_v36  ;;  %v10308_v1 = vld [vmem:[%s18132_s3 + $0xb0] sm:$0xff]  ;;  %v8438_v36 = vld [vmem:[%s17983_s13 + $0x8] sm:$0xff] }
0x1460   : > { %v17462_v8 = vsub.f32 %v18310_v58, %v8190_v27  ;;  %12584 = vmatprep.subr.bf16.mxu1 %v12583_v10  ;;  %v8214_v35 = vsel %vm978_vm1, %v8204_v39, 0.0  ;;  %v8137_v21 = vmul.f32 %v17425_v38, %v8125_v43  ;;  %v8439_v27 = vld [vmem:[%s17983_s13 + $0x10] sm:$0xff]  ;;  %v12595_v33 = vpack.c.bf16 %v8438_v36, %v8437_v37  ;;  %v8570_v43 = vld [vmem:[%s17985_s15] sm:$0xff] }
0x1461   : > { %v17467_v45 = vsub.f32 %v18311_v4, %v8189_v63  ;;  %8215 = vadd.xlane.f32.xlu1 %v8214_v35  ;;  %v8180_v17 = vpop.xlane.xlu1 %8179  ;;  %12586 = vmatpush3.bf16.msra.mxu1 %v12583_v10  ;;  %v8211_v20 = vsel %vm978_vm1, %v8203_v50, 0.0  ;;  %v8150_v48 = vadd.f32 %v17431_v13, %v8138_v46  ;;  %v8440_v10 = vld [vmem:[%s17983_s13 + $0x18] sm:$0xff]  ;;  %v8571_v63 = vld [vmem:[%s17985_s15 + $0x8] sm:$0xff]  ;;  %v8572_v50 = vld [vmem:[%s17985_s15 + $0x10] sm:$0xff] }
0x1462   : > { %v8192_v52 = vmul.f32 0.03125, %v8180_v17  ;;  %8212 = vadd.xlane.f32.xlu0 %v8211_v20  ;;  %v8177_v59 = vpop.xlane.xlu0 %8176  ;;  %v8206_v58 = vmul.f32 %v17462_v8, %v17462_v8  ;;  %v8149_v44 = vadd.f32 %v17431_v13, %v8137_v21  ;;  %v12599_v39 = vpack.c.bf16 %v8440_v10, %v8439_v27  ;;  %v8573_v35 = vld [vmem:[%s17985_s15 + $0x18] sm:$0xff]  ;;  %v8574_v17 = vld [vmem:[%s17985_s15 + $0x20] sm:$0xff]  ;;  %v8575_v20 = vld [vmem:[%s17985_s15 + $0x28] sm:$0xff] }
0x1463   : > { %v8191_v22 = vmul.f32 0.03125, %v8177_v59  ;;  %v8205_v4 = vmul.f32 %v17467_v45, %v17467_v45  ;;  %v8158_v23 = vadd.f32 %v8150_v48, %v17301_v6  ;;  %v12603_v46 = vpack.c.bf16 %v8571_v63, %v8570_v43  ;;  %v8577_v59 = vld [vmem:[%s17985_s15 + $0x38] sm:$0xff] }
0x1464   : > { %v13168_v14 = vpop.eup %13167  ;;  %v17478_v2 = vsub.f32 %v18312_v28, %v8192_v52  ;;  %v8220_v11 = vsel %vm978_vm1, %v8206_v58, 0.0  ;;  %v8157_v15 = vadd.f32 %v8149_v44, %v17297_v25  ;;  %v12607_v21 = vpack.c.bf16 %v8573_v35, %v8572_v50  ;;  %v8576_v52 = vld [vmem:[%s17985_s15 + $0x30] sm:$0xff] }
0x1465   : > { %v13170_v60 = vpop.eup %13169  ;;  %v17483_v56 = vsub.f32 %v18313_v53, %v8191_v22  ;;  %8221 = vadd.xlane.f32.xlu1 %v8220_v11  ;;  %v8186_v30 = vpop.xlane.xlu1 %8185  ;;  %v8217_v19 = vsel %vm978_vm1, %v8205_v4, 0.0  ;;  %v8128_v12 = vmul.f32 %v13168_v14, %v17392_v0  ;;  %12604 = vmatprep.subr.bf16.mxu0 %v12603_v46  ;;  %v12611_v48 = vpack.c.bf16 %v8575_v20, %v8574_v17 }
0x1466   : > { %v8194_v49 = vmul.f32 0.03125, %v8186_v30  ;;  %8218 = vadd.xlane.f32.xlu0 %v8217_v19  ;;  %v8183_v6 = vpop.xlane.xlu0 %8182  ;;  %v12587_v34 = vpack.c.bf16 %v8158_v23, %v8157_v15  ;;  %v8208_v28 = vmul.f32 %v17478_v2, %v17478_v2  ;;  %v8127_v55 = vmul.f32 %v13170_v60, %v17394_v47  ;;  %12606 = vmatpush3.bf16.msra.mxu0 %v12603_v46  ;;  %v8707_v30 = vld [vmem:[%s17986_s16] sm:$0xf] }
0x1467   : > { %v8193_v25 = vmul.f32 0.03125, %v8183_v6  ;;  %v8207_v53 = vmul.f32 %v17483_v56, %v17483_v56  ;;  %v8140_v62 = vmul.f32 %v17425_v38, %v8128_v12  ;;  %12608 = vmatprep.subr.bf16.mxu0 %v12607_v21  ;;  %v12615_v58 = vpack.c.bf16 %v8577_v59, %v8576_v52  ;;  %v9169_v52 = vld [vmem:[%s17987_s17 + $0x18] sm:$0xff] }
0x1468   : > { %v17494_v57 = vsub.f32 %v18314_v61, %v8194_v49  ;;  %12588 = vmatprep.subr.bf16.mxu1 %v12587_v34  ;;  %v8226_v0 = vsel %vm978_vm1, %v8208_v28, 0.0  ;;  %v8139_v9 = vmul.f32 %v17425_v38, %v8127_v55 }
0x1469   : > { %v17499_v3 = vsub.f32 %v18315_v24, %v8193_v25  ;;  %8227 = vadd.xlane.f32.xlu1 %v8226_v0  ;;  %12590 = vmatpush3.bf16.msra.mxu1 %v12587_v34  ;;  %v8223_v47 = vsel %vm978_vm1, %v8207_v53, 0.0  ;;  %v8152_v31 = vadd.f32 %v17431_v13, %v8140_v62 }
0x146a   : > { %8224 = vadd.xlane.f32.xlu0 %v8223_v47  ;;  %v8210_v7 = vmul.f32 %v17494_v57, %v17494_v57  ;;  %v8151_v61 = vadd.f32 %v17431_v13, %v8139_v9  ;;  %v10303_v13 = vld [vmem:[%s18132_s3 + $0x88] sm:$0xff]  ;;  %12610 = vmatpush3.bf16.msra.mxu0 %v12607_v21 }
0x146b   : > { %v8209_v40 = vmul.f32 %v17499_v3, %v17499_v3  ;;  %v8160_v38 = vadd.f32 %v8152_v31, %v17312_v41  ;;  %v10306_v41 = vld [vmem:[%s18132_s3 + $0xa0] sm:$0xff]  ;;  %12612 = vmatprep.subr.bf16.mxu0 %v12611_v48 }
0x146c   : > { %v8232_v24 = vsel %vm978_vm1, %v8210_v7, 0.0  ;;  %v8159_v51 = vadd.f32 %v8151_v61, %v17309_v5  ;;  %v10305_v5 = vld [vmem:[%s18132_s3 + $0x98] sm:$0xff] }
0x146d   : > { %8233 = vadd.xlane.f32.xlu1 %v8232_v24  ;;  %v8229_v32 = vsel %vm978_vm1, %v8209_v40, 0.0  ;;  %v9166_v40 = vld [vmem:[%s17987_s17] sm:$0xff] }
0x146e   : > { %8230 = vadd.xlane.f32.xlu0 %v8229_v32  ;;  %v12591_v26 = vpack.c.bf16 %v8160_v38, %v8159_v51  ;;  %12614 = vmatpush3.bf16.msra.mxu0 %v12611_v48  ;;  %v9167_v38 = vld [vmem:[%s17987_s17 + $0x8] sm:$0xff] }
0x146f   : > { %12616 = vmatprep.subr.bf16.mxu0 %v12615_v58  ;;  %v12635_v24 = vpack.c.bf16 %v9167_v38, %v9166_v40 }
0x1470   : > { %12592 = vmatprep.subr.bf16.mxu1 %v12591_v26 }
0x1471   : > { %12594 = vmatpush3.bf16.msra.mxu1 %v12591_v26 }
0x1472   : > { %12596 = vmatprep.subr.bf16.mxu1 %v12595_v33  ;;  %12618 = vmatpush3.bf16.msra.mxu0 %v12615_v58 }
0x1473   : > { %12620 = vmatprep.subr.bf16.mxu0 %v12603_v46 }
0x1474   : > { %11852 = vmatmul.mubr.msk.f32.vlgmr.msra.gmra.mrb[112].mxu1 %vm726_vm0, %v10303_v13 }
0x1475   : > { %11854 = vmatprep.mubr.msk.f32.mxu1 %vm726_vm0, %v10304_v16  ;;  %12598 = vmatpush3.bf16.msra.mxu1 %v12595_v33 }
0x1476   : > { %12600 = vmatprep.subr.bf16.mxu1 %v12599_v39 }
0x1478   : > { %11855 = vmatmul.mubr.msk.f32.gmra.mrb[114].mxu1 %vm726_vm0, %v10305_v5 }
0x1479   : > { %11857 = vmatprep.mubr.msk.f32.mxu1 %vm726_vm0, %v10306_v41  ;;  %12602 = vmatpush3.bf16.msra.mxu1 %v12599_v39 }
0x147a   : > { %11911 = vmatprep.subr.msk.mxu1 %vm8733_vm10, %v8707_v30 }
0x147c   : > { %11858 = vmatmul.mubr.msk.f32.gmra.mrb[116].mxu1 %vm726_vm0, %v10307_v42 }
0x147d   : > { %11860 = vmatprep.mubr.msk.f32.mxu1 %vm726_vm0, %v10308_v1 }
0x1480   : > { %11861 = vmatmul.mubr.msk.f32.gmra.mrb[118].mxu1 %vm726_vm0, %v10309_v18 }
0x14ee   : > { %v8216_v32 = vpop.xlane.xlu1 %8215 }
0x14ef   : > { %v8213_v51 = vpop.xlane.xlu0 %8212  ;;  %v8236_v5 = vmul.f32 0.03125, %v8216_v32 }
0x14f0   : > { %v8235_v13 = vmul.f32 0.03125, %v8213_v51 }
0x14f1   : > { %v8244_v36 = vadd.f32 1e-05, %v8236_v5 }
0x14f2   : > { %v8222_v16 = vpop.xlane.xlu1 %8221  ;;  %v8243_v42 = vadd.f32 1e-05, %v8235_v13 }
0x14f3   : > { %v8219_v26 = vpop.xlane.xlu0 %8218  ;;  %v8238_v18 = vmul.f32 0.03125, %v8222_v16 }
0x14f4   : > { %v8237_v1 = vmul.f32 0.03125, %v8219_v26  ;;  %13171 = vrsqrt.f32 %v8243_v42 }
0x14f5   : > { %v8246_v39 = vadd.f32 1e-05, %v8238_v18  ;;  %13173 = vrsqrt.f32 %v8244_v36 }
0x14f6   : > { %v8228_v37 = vpop.xlane.xlu1 %8227  ;;  %v8245_v33 = vadd.f32 1e-05, %v8237_v1 }
0x14f7   : > { %v8225_v41 = vpop.xlane.xlu0 %8224  ;;  %v8240_v43 = vmul.f32 0.03125, %v8228_v37 }
0x14f8   : > { %v8239_v27 = vmul.f32 0.03125, %v8225_v41  ;;  %13175 = vrsqrt.f32 %v8245_v33 }
0x14f9   : > { %13177 = vrsqrt.f32 %v8246_v39  ;;  %v8248_v59 = vadd.f32 1e-05, %v8240_v43 }
0x14fa   : > { %v8247_v63 = vadd.f32 1e-05, %v8239_v27 }
0x14fb   : > { %v8231_v10 = vpop.xlane.xlu0 %8230 }
0x14fc   : > { %v8241_v35 = vmul.f32 0.03125, %v8231_v10  ;;  %13179 = vrsqrt.f32 %v8247_v63 }
0x14fd   : > { %13181 = vrsqrt.f32 %v8248_v59 }
0x1547   : > { %v11853_v44 = vpop.f32.mrb[112].mxu1 }
0x1548   : > { %8430 = vst.msk [vmem:[%s691_s23 + $0x8] sm:$0xff] %vm978_vm1, %v11853_v44  ;;  %v8390_v22 = vpop.f32.mrb[113].mxu1 }
0x1549   : > { %8429 = vst.msk [vmem:[%s691_s23] sm:$0xff] %vm978_vm1, %v8390_v22  ;;  %11871 = vmatprep.mubr.msk.f32.mxu1 %vm978_vm1, %v8390_v22 }
0x154a   : > { %11872 = vmatmul.mubr.msk.f32.vlgmr.msra.gmra.mrb[120].mxu1 %vm978_vm1, %v11853_v44 }
0x154b   : > { %v11856_v4 = vpop.f32.mrb[114].mxu1  ;;  %11912 = vmatpush3.msk.msra.mxu1 %vm8733_vm10, %v8707_v30 }
0x154c   : > { %8432 = vst.msk [vmem:[%s691_s23 + $0x18] sm:$0xff] %vm978_vm1, %v11856_v4  ;;  %v8400_v23 = vpop.f32.mrb[115].mxu1  ;;  %11953 = vmatprep.subr.msk.mxu1 %vm8733_vm10, %v8707_v30 }
0x154d   : > { %8431 = vst.msk [vmem:[%s691_s23 + $0x10] sm:$0xff] %vm978_vm1, %v8400_v23  ;;  %11874 = vmatprep.mubr.msk.f32.mxu1 %vm978_vm1, %v8400_v23 }
0x154e   : > { %11875 = vmatmul.mubr.msk.f32.gmra.mrb[122].mxu1 %vm978_vm1, %v11856_v4  ;;  %v8249_v4 = vadd.f32 1e-05, %v8241_v35 }
0x154f   : > { %v11859_v14 = vpop.f32.mrb[116].mxu1 }
0x1550   : > { %8434 = vst.msk [vmem:[%s691_s23 + $0x28] sm:$0xff] %vm978_vm1, %v11859_v14  ;;  %v8410_v11 = vpop.f32.mrb[117].mxu1  ;;  %13183 = vrsqrt.f32 %v8249_v4 }
0x1551   : > { %8433 = vst.msk [vmem:[%s691_s23 + $0x20] sm:$0xff] %vm978_vm1, %v8410_v11  ;;  %11877 = vmatprep.mubr.msk.f32.mxu1 %vm978_vm1, %v8410_v11 }
0x1552   : > { %11878 = vmatmul.mubr.msk.f32.gmra.mrb[124].mxu1 %vm978_vm1, %v11859_v14 }
0x1553   : > { %v11862_v15 = vpop.f32.mrb[118].mxu1 }
0x1554   : > { %8436 = vst.msk [vmem:[%s691_s23 + $0x38] sm:$0xff] %vm978_vm1, %v11862_v15  ;;  %v8420_v60 = vpop.f32.mrb[119].mxu1 }
0x1555   : > { %8435 = vst.msk [vmem:[%s691_s23 + $0x30] sm:$0xff] %vm978_vm1, %v8420_v60  ;;  %11880 = vmatprep.mubr.msk.f32.mxu1 %vm978_vm1, %v8420_v60 }
0x1556   : > { %11881 = vmatmul.mubr.msk.f32.gmra.mrb[126].mxu1 %vm978_vm1, %v11862_v15 }
0x161d   : > { %v17602_v19 = vpop.f32.mrb[120].mxu1 }
0x161e   : > { %v17604_v12 = vpop.f32.mrb[121].mxu1 }
0x161f   : > { %11899 = vmatprep.mubr.msk.f32.mxu0 %vm726_vm0, %v17604_v12 }
0x1620   : > { %11900 = vmatmul.mubr.msk.f32.vlgmr.msra.gmra.mrb[128].mxu0 %vm726_vm0, %v17602_v19 }
0x1621   : > { %v17610_v49 = vpop.f32.mrb[122].mxu1  ;;  %12622 = vmatpush3.bf16.msra.mxu0 %v12603_v46  ;;  %v8234_v46 = vpop.xlane.xlu1 %8233 }
0x1622   : > { %v17612_v6 = vpop.f32.mrb[123].mxu1  ;;  %12624 = vmatprep.subr.bf16.mxu0 %v12607_v21 }
0x1623   : > { %11902 = vmatprep.mubr.msk.f32.mxu0 %vm726_vm0, %v17612_v6 }
0x1624   : > { %11903 = vmatmul.mubr.msk.f32.gmra.mrb[130].mxu0 %vm726_vm0, %v17610_v49 }
0x1625   : > { %v17618_v34 = vpop.f32.mrb[124].mxu1  ;;  %12626 = vmatpush3.bf16.msra.mxu0 %v12607_v21 }
0x1626   : > { %v17620_v28 = vpop.f32.mrb[125].mxu1  ;;  %12628 = vmatprep.subr.bf16.mxu0 %v12611_v48 }
0x1627   : > { %11905 = vmatprep.mubr.msk.f32.mxu0 %vm726_vm0, %v17620_v28 }
0x1628   : > { %11906 = vmatmul.mubr.msk.f32.gmra.mrb[132].mxu0 %vm726_vm0, %v17618_v34 }
0x1629   : > { %v17626_v55 = vpop.f32.mrb[126].mxu1  ;;  %12630 = vmatpush3.bf16.msra.mxu0 %v12611_v48  ;;  %v9168_v48 = vld [vmem:[%s17987_s17 + $0x10] sm:$0xff] }
0x162a   : > { %v17628_v25 = vpop.f32.mrb[127].mxu1  ;;  %12632 = vmatprep.subr.bf16.mxu0 %v12615_v58  ;;  %v12639_v15 = vpack.c.bf16 %v9169_v52, %v9168_v48 }
0x162b   : > { %11908 = vmatprep.mubr.msk.f32.mxu0 %vm726_vm0, %v17628_v25 }
0x162c   : > { %11909 = vmatmul.mubr.msk.f32.gmra.mrb[134].mxu0 %vm726_vm0, %v17626_v55 }
0x162d   : > { %12634 = vmatpush3.bf16.msra.mxu0 %v12615_v58  ;;  %v8242_v58 = vmul.f32 0.03125, %v8234_v46 }
0x162e   : > { %12636 = vmatprep.subr.bf16.mxu0 %v12635_v24 }
0x16f3   : > { %v11901_v53 = vpop.f32.mrb[128].mxu0 }
0x16f4   : > { %v8668_v62 = vpop.f32.mrb[129].mxu0 }
0x16f5   : > { %11913 = vmatprep.mubr.msk.f32.mxu1 %vm8708_vm11, %v8668_v62 }
0x16f6   : > { %11914 = vmatmul.mubr.msk.f32.vlgmr.msra.gmra.mrb[128].mxu1 %vm8708_vm11, %v11901_v53 }
0x16f7   : > { %v11904_v0 = vpop.f32.mrb[130].mxu0  ;;  %11954 = vmatpush3.msk.msra.mxu1 %vm8733_vm10, %v8707_v30  ;;  %v13172_v30 = vpop.eup %13171 }
0x16f8   : > { %v8678_v9 = vpop.f32.mrb[131].mxu0 }
0x16f9   : > { %11916 = vmatprep.mubr.msk.f32.mxu1 %vm8708_vm11, %v8678_v9 }
0x16fa   : > { %11917 = vmatmul.mubr.msk.f32.gmra.mrb[130].mxu1 %vm8708_vm11, %v11904_v0  ;;  %v13174_v0 = vpop.eup %13173 }
0x16fb   : > { %v11907_v47 = vpop.f32.mrb[132].mxu0 }
0x16fc   : > { %v8688_v31 = vpop.f32.mrb[133].mxu0 }
0x16fd   : > { %11919 = vmatprep.mubr.msk.f32.mxu1 %vm8708_vm11, %v8688_v31  ;;  %v13176_v31 = vpop.eup %13175 }
0x16fe   : > { %11920 = vmatmul.mubr.msk.f32.gmra.mrb[132].mxu1 %vm8708_vm11, %v11907_v47  ;;  %v8259_v47 = vmul.f32 %v13172_v30, %v17452_v54  ;;  %v13178_v40 = vpop.eup %13177  ;;  %v8261_v13 = vmul.f32 %v13176_v31, %v17467_v45 }
0x16ff   : > { %v11910_v7 = vpop.f32.mrb[134].mxu0  ;;  %v13180_v51 = vpop.eup %13179 }
0x1700   : > { %v8698_v61 = vpop.f32.mrb[135].mxu0  ;;  %v13182_v41 = vpop.eup %13181  ;;  %v8263_v1 = vmul.f32 %v13180_v51, %v17483_v56  ;;  %v9306_v51 = vld [vmem:[%s17988_s18 + $0x38] sm:$0xff] }
0x1701   : > { %11922 = vmatprep.mubr.msk.f32.mxu1 %vm8708_vm11, %v8698_v61  ;;  %v13184_v18 = vpop.eup %13183  ;;  %v8264_v27 = vmul.f32 %v13182_v41, %v17478_v2  ;;  %v9314_v41 = vld [vmem:[%s17988_s18 + $0x78] sm:$0xff] }
0x1702   : > { %11923 = vmatmul.mubr.msk.f32.gmra.mrb[134].mxu1 %vm8708_vm11, %v11910_v7  ;;  %v10300_v7 = vld [vmem:[%s17979_s9 + $0xb] ss:$0 sm:$0xff] }
0x1703   : > { %v8271_v26 = vmul.f32 %v10300_v7, %v8259_v47  ;;  %v8273_v45 = vmul.f32 %v10300_v7, %v8261_v13  ;;  %v8275_v39 = vmul.f32 %v10300_v7, %v8263_v1  ;;  %v8276_v56 = vmul.f32 %v10300_v7, %v8264_v27  ;;  %v9308_v13 = vld [vmem:[%s17988_s18 + $0x48] sm:$0xff]  ;;  %v9317_v1 = vld [vmem:[%s17988_s18 + $0x90] sm:$0xff] }
0x1704   : > { %v9321_v27 = vld [vmem:[%s17988_s18 + $0xb0] sm:$0xff] }
0x17c9   : > { %v11915_v50 = vpop.f32.mrb[128].mxu1 }
0x17ca   : > { %v17650_v21 = vsub.f32 %v17602_v19, %v11915_v50  ;;  %v8803_v17 = vpop.f32.mrb[129].mxu1  ;;  %v8250_v19 = vadd.f32 1e-05, %v8242_v58 }
0x17cb   : > { %v17653_v20 = vsub.f32 %v17604_v12, %v8803_v17 }
0x17cc   : > { %v8851_v23 = vmul.f32 %v17650_v21, %v17650_v21  ;;  %13185 = vrsqrt.f32 %v8250_v19 }
0x17cd   : > { %v8850_v44 = vmul.f32 %v17653_v20, %v17653_v20  ;;  %v11918_v22 = vpop.f32.mrb[130].mxu1 }
0x17ce   : > { %v17666_v14 = vsub.f32 %v17610_v49, %v11918_v22  ;;  %v8813_v11 = vpop.f32.mrb[131].mxu1 }
0x17cf   : > { %v17669_v60 = vsub.f32 %v17612_v6, %v8813_v11  ;;  %11941 = vmatprep.mubr.msk.f32.mxu0 %vm726_vm0, %v8850_v44  ;;  %v9301_v11 = vld [vmem:[%s17988_s18 + $0x10] sm:$0xff] }
0x17d0   : > { %11942 = vmatmul.mubr.msk.f32.vlgmr.msra.gmra.mrb[136].mxu0 %vm726_vm0, %v8851_v23  ;;  %v8853_v49 = vmul.f32 %v17666_v14, %v17666_v14 }
0x17d1   : > { %v8852_v12 = vmul.f32 %v17669_v60, %v17669_v60  ;;  %v11921_v53 = vpop.f32.mrb[132].mxu1  ;;  %12638 = vmatpush3.bf16.msra.mxu0 %v12635_v24 }
0x17d2   : > { %v17678_v62 = vsub.f32 %v17618_v34, %v11921_v53  ;;  %v8823_v6 = vpop.f32.mrb[133].mxu1  ;;  %12640 = vmatprep.subr.bf16.mxu0 %v12639_v15 }
0x17d3   : > { %v17681_v9 = vsub.f32 %v17620_v28, %v8823_v6  ;;  %11944 = vmatprep.mubr.msk.f32.mxu0 %vm726_vm0, %v8852_v12  ;;  %v8260_v28 = vmul.f32 %v13174_v0, %v17448_v29  ;;  %v10301_v29 = vld [vmem:[%s17979_s9 + $0xc] ss:$0 sm:$0xff] }
0x17d4   : > { %11945 = vmatmul.mubr.msk.f32.gmra.mrb[138].mxu0 %vm726_vm0, %v8853_v49  ;;  %v8855_v38 = vmul.f32 %v17678_v62, %v17678_v62  ;;  %v8283_v42 = vadd.f32 %v10301_v29, %v8271_v26  ;;  %v8285_v10 = vadd.f32 %v10301_v29, %v8273_v45  ;;  %v8287_v50 = vadd.f32 %v10301_v29, %v8275_v39  ;;  %v9307_v26 = vld [vmem:[%s17988_s18 + $0x40] sm:$0xff]  ;;  %v9316_v45 = vld [vmem:[%s17988_s18 + $0x88] sm:$0xff] }
0x17d5   : > { %v8854_v34 = vmul.f32 %v17681_v9, %v17681_v9  ;;  %v11924_v61 = vpop.f32.mrb[134].mxu1  ;;  %12642 = vmatpush3.bf16.msra.mxu0 %v12639_v15  ;;  %v8272_v16 = vmul.f32 %v10300_v7, %v8260_v28  ;;  %v8288_v2 = vadd.f32 %v10301_v29, %v8276_v56  ;;  %v9303_v28 = vld [vmem:[%s17988_s18 + $0x20] sm:$0xff]  ;;  %v9324_v39 = vld [vmem:[%s17988_s18 + $0xc8] sm:$0xff] }
0x17d6   : > { %v17695_v54 = vsub.f32 %v17626_v55, %v11924_v61  ;;  %v8833_v24 = vpop.f32.mrb[135].mxu1  ;;  %v13186_v33 = vpop.eup %13185  ;;  %v9302_v61 = vld [vmem:[%s17988_s18 + $0x18] sm:$0xff]  ;;  %v9327_v56 = vld [vmem:[%s17988_s18 + $0xe0] sm:$0xff] }
0x17d7   : > { %v17698_v32 = vsub.f32 %v17628_v25, %v8833_v24  ;;  %11947 = vmatprep.mubr.msk.f32.mxu0 %vm726_vm0, %v8854_v34  ;;  %v8262_v25 = vmul.f32 %v13178_v40, %v17462_v8  ;;  %v8284_v37 = vadd.f32 %v10301_v29, %v8272_v16  ;;  %v8265_v8 = vmul.f32 %v13184_v18, %v17499_v3  ;;  %v9300_v40 = vld [vmem:[%s17988_s18 + $0x8] sm:$0xff]  ;;  %v9305_v24 = vld [vmem:[%s17988_s18 + $0x30] sm:$0xff]  ;;  %v9311_v16 = vld [vmem:[%s17988_s18 + $0x60] sm:$0xff] }
0x17d8   : > { %11948 = vmatmul.mubr.msk.f32.gmra.mrb[140].mxu0 %vm726_vm0, %v8855_v38  ;;  %v8857_v5 = vmul.f32 %v17695_v54, %v17695_v54  ;;  %v8266_v63 = vmul.f32 %v13186_v33, %v17494_v57  ;;  %v9299_v57 = vld [vmem:[%s17988_s18] sm:$0xff]  ;;  %v9304_v38 = vld [vmem:[%s17988_s18 + $0x28] sm:$0xff]  ;;  %v9318_v18 = vld [vmem:[%s17988_s18 + $0x98] sm:$0xff] }
0x17d9   : > { %v8856_v55 = vmul.f32 %v17698_v32, %v17698_v32  ;;  %v8274_v36 = vmul.f32 %v10300_v7, %v8262_v25  ;;  %v8277_v46 = vmul.f32 %v10300_v7, %v8265_v8  ;;  %v9313_v25 = vld [vmem:[%s17988_s18 + $0x70] sm:$0xff]  ;;  %v9322_v33 = vld [vmem:[%s17988_s18 + $0xb8] sm:$0xff] }
0x17da   : > { %v8278_v35 = vmul.f32 %v10300_v7, %v8266_v63  ;;  %v9325_v8 = vld [vmem:[%s17988_s18 + $0xd0] sm:$0xff]  ;;  %v9328_v63 = vld [vmem:[%s17988_s18 + $0xe8] sm:$0xff] }
0x17db   : > { %11950 = vmatprep.mubr.msk.f32.mxu0 %vm726_vm0, %v8856_v55  ;;  %v8286_v43 = vadd.f32 %v10301_v29, %v8274_v36  ;;  %v8289_v17 = vadd.f32 %v10301_v29, %v8277_v46  ;;  %v9310_v55 = vld [vmem:[%s17988_s18 + $0x58] sm:$0xff]  ;;  %v9320_v36 = vld [vmem:[%s17988_s18 + $0xa8] sm:$0xff] }
0x17dc   : > { %11951 = vmatmul.mubr.msk.f32.gmra.mrb[142].mxu0 %vm726_vm0, %v8857_v5  ;;  %v8290_v3 = vadd.f32 %v10301_v29, %v8278_v35  ;;  %v9309_v29 = vld [vmem:[%s17988_s18 + $0x50] sm:$0xff]  ;;  %v9312_v5 = vld [vmem:[%s17988_s18 + $0x68] sm:$0xff]  ;;  %v9330_v46 = vld [vmem:[%s17988_s18 + $0xf8] sm:$0xff] }
0x17dd   : > { %11975 = vmatprep.mubr.msk.f32.mxu0 %vm978_vm1, %v8283_v42  ;;  %v9315_v42 = vld [vmem:[%s17988_s18 + $0x80] sm:$0xff] }
0x17e0   : > { %11976 = vmatmul.mubr.msk.f32.vlgmr.msra.gmra.mrb[144].mxu0 %vm978_vm1, %v8284_v37  ;;  %v9319_v37 = vld [vmem:[%s17988_s18 + $0xa0] sm:$0xff] }
0x17e1   : > { %11978 = vmatprep.mubr.msk.f32.mxu0 %vm978_vm1, %v8285_v10  ;;  %v9323_v10 = vld [vmem:[%s17988_s18 + $0xc0] sm:$0xff] }
0x17e4   : > { %11979 = vmatmul.mubr.msk.f32.gmra.mrb[146].mxu0 %vm978_vm1, %v8286_v43  ;;  %v9326_v43 = vld [vmem:[%s17988_s18 + $0xd8] sm:$0xff] }
0x17e5   : > { %11981 = vmatprep.mubr.msk.f32.mxu0 %vm978_vm1, %v8287_v50  ;;  %v9329_v50 = vld [vmem:[%s17988_s18 + $0xf0] sm:$0xff] }
0x17e8   : > { %11982 = vmatmul.mubr.msk.f32.gmra.mrb[148].mxu0 %vm978_vm1, %v8288_v2 }
0x17e9   : > { %11984 = vmatprep.mubr.msk.f32.mxu0 %vm978_vm1, %v8289_v17 }
0x17ec   : > { %11985 = vmatmul.mubr.msk.f32.gmra.mrb[150].mxu0 %vm978_vm1, %v8290_v3 }
0x17ed   : > { %12003 = vmatprep.mubr.msk.f32.mxu0 %vm726_vm0, %v9299_v57 }
0x18a3   : > { %v11943_v48 = vpop.f32.mrb[136].mxu0 }
0x18a4   : > { %v8948_v52 = vpop.f32.mrb[137].mxu0 }
0x18a5   : > { %11955 = vmatprep.mubr.msk.f32.mxu1 %vm8708_vm11, %v8948_v52 }
0x18a6   : > { %11956 = vmatmul.mubr.msk.f32.vlgmr.msra.gmra.mrb[136].mxu1 %vm8708_vm11, %v11943_v48 }
0x18a7   : > { %v11946_v59 = vpop.f32.mrb[138].mxu0 }
0x18a8   : > { %v8958_v58 = vpop.f32.mrb[139].mxu0 }
0x18a9   : > { %11958 = vmatprep.mubr.msk.f32.mxu1 %vm8708_vm11, %v8958_v58 }
0x18aa   : > { %11959 = vmatmul.mubr.msk.f32.gmra.mrb[138].mxu1 %vm8708_vm11, %v11946_v59 }
0x18ab   : > { %v11949_v44 = vpop.f32.mrb[140].mxu0 }
0x18ac   : > { %v8968_v22 = vpop.f32.mrb[141].mxu0 }
0x18ad   : > { %11961 = vmatprep.mubr.msk.f32.mxu1 %vm8708_vm11, %v8968_v22 }
0x18ae   : > { %11962 = vmatmul.mubr.msk.f32.gmra.mrb[140].mxu1 %vm8708_vm11, %v11949_v44 }
0x18af   : > { %v11952_v4 = vpop.f32.mrb[142].mxu0 }
0x18b0   : > { %v8978_v23 = vpop.f32.mrb[143].mxu0 }
0x18b1   : > { %11964 = vmatprep.mubr.msk.f32.mxu1 %vm8708_vm11, %v8978_v23 }
0x18b2   : > { %11965 = vmatmul.mubr.msk.f32.gmra.mrb[142].mxu1 %vm8708_vm11, %v11952_v4 }
0x18b3   : > { %v11977_v15 = vpop.f32.mrb[144].mxu0  ;;  %12006 = vmatprep.mubr.msk.f32.mxu1 %vm726_vm0, %v9301_v11 }
0x18b4   : > { %v9260_v30 = vpop.f32.mrb[145].mxu0 }
0x18b5   : > { %v12643_v19 = vpack.c.bf16 %v11977_v15, %v9260_v30  ;;  %v10360_v15 = vld [vmem:[%s17984_s14] ss:$0 sm:$0xff] }
0x18b7   : > { %v11980_v12 = vpop.f32.mrb[146].mxu0  ;;  %12644 = vmatprep.subr.bf16.mxu0 %v12643_v19  ;;  %12659 = vmatprep.subr.bf16.mxu1 %v12643_v19 }
0x18b8   : > { %v9270_v53 = vpop.f32.mrb[147].mxu0  ;;  %12646 = vmatpush3.bf16.msra.mxu0 %v12643_v19  ;;  %12663 = vmatpush3.bf16.msra.mxu1 %v12643_v19 }
0x18b9   : > { %v12647_v49 = vpack.c.bf16 %v11980_v12, %v9270_v53 }
0x18bb   : > { %v11983_v6 = vpop.f32.mrb[148].mxu0  ;;  %12648 = vmatprep.subr.bf16.mxu0 %v12647_v49  ;;  %12660 = vmatprep.subr.bf16.mxu1 %v12647_v49 }
0x18bc   : > { %v9280_v0 = vpop.f32.mrb[149].mxu0  ;;  %12650 = vmatpush3.bf16.msra.mxu0 %v12647_v49  ;;  %12664 = vmatpush3.bf16.msra.mxu1 %v12647_v49 }
0x18bd   : > { %v12651_v47 = vpack.c.bf16 %v11983_v6, %v9280_v0  ;;  %v10361_v6 = vld [vmem:[%s17984_s14 + $0x1] ss:$0 sm:$0xff] }
0x18bf   : > { %v11986_v31 = vpop.f32.mrb[150].mxu0  ;;  %12652 = vmatprep.subr.bf16.mxu0 %v12651_v47  ;;  %12661 = vmatprep.subr.bf16.mxu1 %v12651_v47 }
0x18c0   : > { %v9290_v7 = vpop.f32.mrb[151].mxu0  ;;  %12654 = vmatpush3.bf16.msra.mxu0 %v12651_v47  ;;  %12665 = vmatpush3.bf16.msra.mxu1 %v12651_v47 }
0x18c1   : > { %v12655_v34 = vpack.c.bf16 %v11986_v31, %v9290_v7 }
0x18c3   : > { %12656 = vmatprep.subr.bf16.mxu0 %v12655_v34  ;;  %12662 = vmatprep.subr.bf16.mxu1 %v12655_v34 }
0x18c4   : > { %12658 = vmatpush3.bf16.msra.mxu0 %v12655_v34  ;;  %12666 = vmatpush3.bf16.msra.mxu1 %v12655_v34 }
0x18c7   : > { %12007 = vmatmul.mubr.msk.f32.vlgmr.msra.gmra.mrb[144].mxu1 %vm726_vm0, %v9302_v61  ;;  %12004 = vmatmul.mubr.msk.f32.vlgmr.msra.gmra.mrb[152].mxu0 %vm726_vm0, %v9300_v40 }
0x18c8   : > { %12009 = vmatprep.mubr.msk.f32.mxu1 %vm726_vm0, %v9303_v28 }
0x18cb   : > { %12010 = vmatmul.mubr.msk.f32.gmra.mrb[146].mxu1 %vm726_vm0, %v9304_v38 }
0x18cc   : > { %12012 = vmatprep.mubr.msk.f32.mxu1 %vm726_vm0, %v9305_v24 }
0x18cf   : > { %12013 = vmatmul.mubr.msk.f32.gmra.mrb[148].mxu1 %vm726_vm0, %v9306_v51 }
0x18d0   : > { %12015 = vmatprep.mubr.msk.f32.mxu1 %vm726_vm0, %v9307_v26 }
0x18d3   : > { %12016 = vmatmul.mubr.msk.f32.gmra.mrb[150].mxu1 %vm726_vm0, %v9308_v13 }
0x18d4   : > { %12018 = vmatprep.mubr.msk.f32.mxu1 %vm726_vm0, %v9309_v29 }
0x18d7   : > { %12019 = vmatmul.mubr.msk.f32.gmra.mrb[152].mxu1 %vm726_vm0, %v9310_v55 }
0x18d8   : > { %12021 = vmatprep.mubr.msk.f32.mxu1 %vm726_vm0, %v9311_v16 }
0x18db   : > { %12022 = vmatmul.mubr.msk.f32.gmra.mrb[154].mxu1 %vm726_vm0, %v9312_v5 }
0x18dc   : > { %12024 = vmatprep.mubr.msk.f32.mxu1 %vm726_vm0, %v9313_v25 }
0x18df   : > { %12025 = vmatmul.mubr.msk.f32.gmra.mrb[156].mxu1 %vm726_vm0, %v9314_v41 }
0x18e0   : > { %12027 = vmatprep.mubr.msk.f32.mxu1 %vm726_vm0, %v9315_v42 }
0x18e3   : > { %12028 = vmatmul.mubr.msk.f32.gmra.mrb[158].mxu1 %vm726_vm0, %v9316_v45 }
0x18e4   : > { %12030 = vmatprep.mubr.msk.f32.mxu1 %vm726_vm0, %v9317_v1 }
0x18e7   : > { %12031 = vmatmul.mubr.msk.f32.gmra.mrb[160].mxu1 %vm726_vm0, %v9318_v18 }
0x18e8   : > { %12033 = vmatprep.mubr.msk.f32.mxu1 %vm726_vm0, %v9319_v37 }
0x18eb   : > { %12034 = vmatmul.mubr.msk.f32.gmra.mrb[162].mxu1 %vm726_vm0, %v9320_v36 }
0x18ec   : > { %12036 = vmatprep.mubr.msk.f32.mxu1 %vm726_vm0, %v9321_v27 }
0x18ef   : > { %12037 = vmatmul.mubr.msk.f32.gmra.mrb[164].mxu1 %vm726_vm0, %v9322_v33 }
0x18f0   : > { %12039 = vmatprep.mubr.msk.f32.mxu1 %vm726_vm0, %v9323_v10 }
0x18f3   : > { %12040 = vmatmul.mubr.msk.f32.gmra.mrb[166].mxu1 %vm726_vm0, %v9324_v39 }
0x18f4   : > { %12042 = vmatprep.mubr.msk.f32.mxu1 %vm726_vm0, %v9325_v8 }
0x18f7   : > { %12043 = vmatmul.mubr.msk.f32.gmra.mrb[168].mxu1 %vm726_vm0, %v9326_v43 }
0x18f8   : > { %12045 = vmatprep.mubr.msk.f32.mxu1 %vm726_vm0, %v9327_v56 }
0x18fb   : > { %12046 = vmatmul.mubr.msk.f32.gmra.mrb[170].mxu1 %vm726_vm0, %v9328_v63 }
0x18fc   : > { %12048 = vmatprep.mubr.msk.f32.mxu1 %vm726_vm0, %v9329_v50 }
0x18ff   : > { %12049 = vmatmul.mubr.msk.f32.gmra.mrb[172].mxu1 %vm726_vm0, %v9330_v46 }
0x1979   : > { %v11957_v2 = vpop.f32.mrb[136].mxu1 }
0x197a   : > { %v9083_v35 = vadd.f32 1e-05, %v11957_v2  ;;  %v9077_v17 = vpop.f32.mrb[137].mxu1 }
0x197b   : > { %v9078_v3 = vadd.f32 1e-05, %v9077_v17 }
0x197c   : > { %13187 = vrsqrt.f32 %v9083_v35 }
0x197d   : > { %13189 = vrsqrt.f32 %v9078_v3  ;;  %v11960_v57 = vpop.f32.mrb[138].mxu1 }
0x197e   : > { %v9093_v48 = vadd.f32 1e-05, %v11960_v57  ;;  %v9087_v52 = vpop.f32.mrb[139].mxu1 }
0x197f   : > { %v9088_v59 = vadd.f32 1e-05, %v9087_v52 }
0x1980   : > { %13191 = vrsqrt.f32 %v9093_v48 }
0x1981   : > { %13193 = vrsqrt.f32 %v9088_v59  ;;  %v11963_v58 = vpop.f32.mrb[140].mxu1 }
0x1982   : > { %v9103_v44 = vadd.f32 1e-05, %v11963_v58  ;;  %v9097_v22 = vpop.f32.mrb[141].mxu1 }
0x1983   : > { %v9098_v4 = vadd.f32 1e-05, %v9097_v22 }
0x1984   : > { %13195 = vrsqrt.f32 %v9103_v44 }
0x1985   : > { %13197 = vrsqrt.f32 %v9098_v4  ;;  %v11966_v23 = vpop.f32.mrb[142].mxu1 }
0x1986   : > { %v13188_v11 = vpop.eup %13187  ;;  %v9113_v30 = vadd.f32 1e-05, %v11966_v23  ;;  %v9107_v19 = vpop.f32.mrb[143].mxu1 }
0x1987   : > { %v13190_v12 = vpop.eup %13189  ;;  %v9125_v53 = vmul.f32 %v13188_v11, %v17650_v21  ;;  %v9108_v49 = vadd.f32 1e-05, %v9107_v19 }
0x1988   : > { %v9124_v0 = vmul.f32 %v13190_v12, %v17653_v20  ;;  %13199 = vrsqrt.f32 %v9113_v30 }
0x1989   : > { %v9138_v47 = vmul.f32 %v10360_v15, %v9125_v53  ;;  %13201 = vrsqrt.f32 %v9108_v49 }
0x198a   : > { %v13192_v31 = vpop.eup %13191  ;;  %v9137_v7 = vmul.f32 %v10360_v15, %v9124_v0 }
0x198b   : > { %v13194_v21 = vpop.eup %13193  ;;  %v9151_v34 = vadd.f32 %v10361_v6, %v9138_v47  ;;  %v9127_v61 = vmul.f32 %v13192_v31, %v17666_v14 }
0x198c   : > { %v9150_v40 = vadd.f32 %v10361_v6, %v9137_v7  ;;  %v9126_v20 = vmul.f32 %v13194_v21, %v17669_v60 }
0x198d   : > { %9159 = vst.msk [vmem:[%s17873_s27 + $0x8] sm:$0xff] %vm726_vm0, %v9151_v34  ;;  %v9140_v28 = vmul.f32 %v10360_v15, %v9127_v61 }
0x198e   : > { %v13196_v38 = vpop.eup %13195  ;;  %9158 = vst.msk [vmem:[%s17873_s27] sm:$0xff] %vm726_vm0, %v9150_v40  ;;  %v9139_v24 = vmul.f32 %v10360_v15, %v9126_v20 }
0x198f   : > { %v13198_v51 = vpop.eup %13197  ;;  %v9153_v26 = vadd.f32 %v10361_v6, %v9140_v28  ;;  %v9129_v13 = vmul.f32 %v13196_v38, %v17678_v62 }
0x1990   : > { %v9152_v29 = vadd.f32 %v10361_v6, %v9139_v24  ;;  %v9128_v14 = vmul.f32 %v13198_v51, %v17681_v9 }
0x1991   : > { %9161 = vst.msk [vmem:[%s17873_s27 + $0x18] sm:$0xff] %vm726_vm0, %v9153_v26  ;;  %v9142_v60 = vmul.f32 %v10360_v15, %v9129_v13 }
0x1992   : > { %v13200_v55 = vpop.eup %13199  ;;  %9160 = vst.msk [vmem:[%s17873_s27 + $0x10] sm:$0xff] %vm726_vm0, %v9152_v29  ;;  %v9141_v16 = vmul.f32 %v10360_v15, %v9128_v14 }
0x1993   : > { %v13202_v5 = vpop.eup %13201  ;;  %v9155_v25 = vadd.f32 %v10361_v6, %v9142_v60  ;;  %v9131_v41 = vmul.f32 %v13200_v55, %v17695_v54 }
0x1994   : > { %v9154_v42 = vadd.f32 %v10361_v6, %v9141_v16  ;;  %v9130_v62 = vmul.f32 %v13202_v5, %v17698_v32 }
0x1995   : > { %9163 = vst.msk [vmem:[%s17873_s27 + $0x28] sm:$0xff] %vm726_vm0, %v9155_v25  ;;  %v9144_v9 = vmul.f32 %v10360_v15, %v9131_v41 }
0x1996   : > { %9162 = vst.msk [vmem:[%s17873_s27 + $0x20] sm:$0xff] %vm726_vm0, %v9154_v42  ;;  %v9143_v45 = vmul.f32 %v10360_v15, %v9130_v62 }
0x1997   : > { %v9157_v1 = vadd.f32 %v10361_v6, %v9144_v9 }
0x1998   : > { %v9156_v54 = vadd.f32 %v10361_v6, %v9143_v45 }
0x1999   : > { %9165 = vst.msk [vmem:[%s17873_s27 + $0x38] sm:$0xff] %vm726_vm0, %v9157_v1 }
0x199a   : > { %9164 = vst.msk [vmem:[%s17873_s27 + $0x30] sm:$0xff] %vm726_vm0, %v9156_v54  ;;  %v12008_v32 = vpop.f32.mrb[144].mxu1  ;;  %v12005_v18 = vpop.f32.mrb[152].mxu0 }
0x199b   : > { %9656 = vst.msk [vmem:[%s17897_s5 + $0x18] sm:$0xff] %vm9652_vm12, %v12008_v32  ;;  %v9503_v37 = vpop.f32.mrb[145].mxu1  ;;  %9654 = vst.msk [vmem:[%s17897_s5 + $0x8] sm:$0xff] %vm9652_vm12, %v12005_v18  ;;  %v9493_v36 = vpop.f32.mrb[153].mxu0 }
0x199c   : > { %9655 = vst.msk [vmem:[%s17897_s5 + $0x10] sm:$0xff] %vm9652_vm12, %v9503_v37  ;;  %9653 = vst.msk [vmem:[%s17897_s5] sm:$0xff] %vm9652_vm12, %v9493_v36 }
0x199e   : > { %v12011_v27 = vpop.f32.mrb[146].mxu1 }
0x199f   : > { %9658 = vst.msk [vmem:[%s17897_s5 + $0x28] sm:$0xff] %vm9652_vm12, %v12011_v27  ;;  %v9513_v33 = vpop.f32.mrb[147].mxu1 }
0x19a0   : > { %9657 = vst.msk [vmem:[%s17897_s5 + $0x20] sm:$0xff] %vm9652_vm12, %v9513_v33 }
0x19a2   : > { %v12014_v10 = vpop.f32.mrb[148].mxu1 }
0x19a3   : > { %9660 = vst.msk [vmem:[%s17897_s5 + $0x38] sm:$0xff] %vm9652_vm12, %v12014_v10  ;;  %v9523_v39 = vpop.f32.mrb[149].mxu1 }
0x19a4   : > { %9659 = vst.msk [vmem:[%s17897_s5 + $0x30] sm:$0xff] %vm9652_vm12, %v9523_v39 }
0x19a6   : > { %v12017_v8 = vpop.f32.mrb[150].mxu1 }
0x19a7   : > { %9662 = vst.msk [vmem:[%s17897_s5 + $0x48] sm:$0xff] %vm9652_vm12, %v12017_v8  ;;  %v9533_v43 = vpop.f32.mrb[151].mxu1 }
0x19a8   : > { %9661 = vst.msk [vmem:[%s17897_s5 + $0x40] sm:$0xff] %vm9652_vm12, %v9533_v43 }
0x19aa   : > { %v12020_v56 = vpop.f32.mrb[152].mxu1 }
0x19ab   : > { %9664 = vst.msk [vmem:[%s17897_s5 + $0x58] sm:$0xff] %vm9652_vm12, %v12020_v56  ;;  %v9543_v63 = vpop.f32.mrb[153].mxu1 }
0x19ac   : > { %9663 = vst.msk [vmem:[%s17897_s5 + $0x50] sm:$0xff] %vm9652_vm12, %v9543_v63 }
0x19ae   : > { %v12023_v50 = vpop.f32.mrb[154].mxu1 }
0x19af   : > { %9666 = vst.msk [vmem:[%s17897_s5 + $0x68] sm:$0xff] %vm9652_vm12, %v12023_v50  ;;  %v9553_v46 = vpop.f32.mrb[155].mxu1 }
0x19b0   : > { %9665 = vst.msk [vmem:[%s17897_s5 + $0x60] sm:$0xff] %vm9652_vm12, %v9553_v46 }
0x19b2   : > { %v12026_v2 = vpop.f32.mrb[156].mxu1 }
0x19b3   : > { %9668 = vst.msk [vmem:[%s17897_s5 + $0x78] sm:$0xff] %vm9652_vm12, %v12026_v2  ;;  %v9563_v35 = vpop.f32.mrb[157].mxu1 }
0x19b4   : > { %9667 = vst.msk [vmem:[%s17897_s5 + $0x70] sm:$0xff] %vm9652_vm12, %v9563_v35 }
0x19b6   : > { %v12029_v17 = vpop.f32.mrb[158].mxu1 }
0x19b7   : > { %9670 = vst.msk [vmem:[%s17897_s5 + $0x88] sm:$0xff] %vm9652_vm12, %v12029_v17  ;;  %v9573_v3 = vpop.f32.mrb[159].mxu1 }
0x19b8   : > { %9669 = vst.msk [vmem:[%s17897_s5 + $0x80] sm:$0xff] %vm9652_vm12, %v9573_v3 }
0x19ba   : > { %v12032_v57 = vpop.f32.mrb[160].mxu1 }
0x19bb   : > { %9672 = vst.msk [vmem:[%s17897_s5 + $0x98] sm:$0xff] %vm9652_vm12, %v12032_v57  ;;  %v9583_v48 = vpop.f32.mrb[161].mxu1 }
0x19bc   : > { %9671 = vst.msk [vmem:[%s17897_s5 + $0x90] sm:$0xff] %vm9652_vm12, %v9583_v48 }
0x19be   : > { %v12035_v52 = vpop.f32.mrb[162].mxu1 }
0x19bf   : > { %9674 = vst.msk [vmem:[%s17897_s5 + $0xa8] sm:$0xff] %vm9652_vm12, %v12035_v52  ;;  %v9593_v59 = vpop.f32.mrb[163].mxu1 }
0x19c0   : > { %9673 = vst.msk [vmem:[%s17897_s5 + $0xa0] sm:$0xff] %vm9652_vm12, %v9593_v59 }
0x19c2   : > { %v12038_v58 = vpop.f32.mrb[164].mxu1 }
0x19c3   : > { %9676 = vst.msk [vmem:[%s17897_s5 + $0xb8] sm:$0xff] %vm9652_vm12, %v12038_v58  ;;  %v9603_v44 = vpop.f32.mrb[165].mxu1 }
0x19c4   : > { %9675 = vst.msk [vmem:[%s17897_s5 + $0xb0] sm:$0xff] %vm9652_vm12, %v9603_v44 }
0x19c6   : > { %v12041_v22 = vpop.f32.mrb[166].mxu1 }
0x19c7   : > { %9678 = vst.msk [vmem:[%s17897_s5 + $0xc8] sm:$0xff] %vm9652_vm12, %v12041_v22  ;;  %v9613_v4 = vpop.f32.mrb[167].mxu1 }
0x19c8   : > { %9677 = vst.msk [vmem:[%s17897_s5 + $0xc0] sm:$0xff] %vm9652_vm12, %v9613_v4 }
0x19ca   : > { %v12044_v23 = vpop.f32.mrb[168].mxu1 }
0x19cb   : > { %9680 = vst.msk [vmem:[%s17897_s5 + $0xd8] sm:$0xff] %vm9652_vm12, %v12044_v23  ;;  %v9623_v11 = vpop.f32.mrb[169].mxu1 }
0x19cc   : > { %9679 = vst.msk [vmem:[%s17897_s5 + $0xd0] sm:$0xff] %vm9652_vm12, %v9623_v11 }
0x19ce   : > { %v12047_v15 = vpop.f32.mrb[170].mxu1 }
0x19cf   : > { %9682 = vst.msk [vmem:[%s17897_s5 + $0xe8] sm:$0xff] %vm9652_vm12, %v12047_v15  ;;  %v9633_v30 = vpop.f32.mrb[171].mxu1 }
0x19d0   : > { %9681 = vst.msk [vmem:[%s17897_s5 + $0xe0] sm:$0xff] %vm9652_vm12, %v9633_v30 }
0x19d2   : > { %v12050_v19 = vpop.f32.mrb[172].mxu1 }
0x19d3   : > { %9684 = vst.msk [vmem:[%s17897_s5 + $0xf8] sm:$0xff] %vm9652_vm12, %v12050_v19  ;;  %v9643_v12 = vpop.f32.mrb[173].mxu1 }
0x19d4   : > { %9683 = vst.msk [vmem:[%s17897_s5 + $0xf0] sm:$0xff] %vm9652_vm12, %v9643_v12 }
0x19d5 PF: > { %s18317_s25 = sld [smem:[#allocation2_spill]] }
0x19db   : > { %s32_s2 = sadd.s32 1, %s18317_s25  }
0x19dc   : > { %p29_p4 = scmp.ge.s32.totalorder %s32_s2, 4  }
0x19de   :  { %31 = sbr.rel (!%p29_p4) target bundleno = 8 (0x8), region = 166 }

</bundles_post_ra>
